<compile_context>
chip_gen: v7x
topology: tpu7x:2x2x1
jax: 0.10.0
libtpu: 0.0.40
codegen_flags: <defaults>
</compile_context>

<pallas_src>
import functools

import numpy as np
import jax
import jax.numpy as jnp
from jax.experimental import pallas as pl
from jax.experimental.pallas import tpu as pltpu

NPOSE = 24 * 6                    # 144
NSHAPE = 10
NCAM = 3
NSTATE = NPOSE + NSHAPE + NCAM    # 157
STATE_PAD = 256                   # lane-padded packed-state width (2 * 128)
HIDDEN = 1024


def _round_up(n, m):
    return ((n + m - 1) // m) * m


def _target_batch_tile():
    """Batch-tile rows: 128 on v5e (4x128 MXU), 256 on v6e / v7x (2x256 MXU)."""
    try:
        kind = jax.devices()[0].device_kind.lower()
    except Exception:
        kind = ""
    return 128 if "v5" in kind else 256


# ----------------------------- Pallas kernel --------------------------------

def _regressor_kernel(n_iter,
                      x_ref, state0_ref,
                      w1x_ref, w1s_ref, b1_ref,
                      w2_ref, b2_ref,
                      wdec_ref, bdec_ref,
                      state_out_ref,
                      hx_ref):
    # Hoist all loads once — the n_iter Python loop unrolls at trace time and
    # re-indexing refs per iteration would re-emit vld.
    x = x_ref[...]                          # [TM, Fp]   bf16
    w1x = w1x_ref[...]                      # [Fp, H]    bf16
    w1s = w1s_ref[...]                      # [256, H]   bf16
    w2 = w2_ref[...]                        # [H, H]     bf16
    wdec = wdec_ref[...]                    # [H, 256]   bf16 (zero-padded cols)
    # Biases stay as [1, N] rows — the VPU add does an implicit sublane
    # broadcast for free; no materialized [TM, N] broadcasts pinning vregs.
    b1 = b1_ref[...]                        # [1, H]     f32
    b2 = b2_ref[...]                        # [1, H]     f32
    bdec = bdec_ref[...]                    # [1, 256]   f32 (zero-padded lanes)

    state = state0_ref[...]                 # [TM, 256]  f32, padded lanes == 0

    # x-part of fc1 is loop-invariant (x never changes) -> compute once into an
    # explicit VMEM scratch so the unrolled loop doesn't spill a [TM, 1024] f32.
    hx_ref[...] = jnp.dot(x, w1x, preferred_element_type=jnp.float32) + b1

    # NOTE: drop1/drop2 are identity in eval mode (no in-kernel PRNG needed).
    for _ in range(n_iter):
        # fc1 over concat([x, pose, shape, cam]) == hx + state @ w1s
        h = hx_ref[...] + jnp.dot(state.astype(jnp.bfloat16), w1s,
                                  preferred_element_type=jnp.float32)
        # fc2
        h = jnp.dot(h.astype(jnp.bfloat16), w2,
                    preferred_element_type=jnp.float32) + b2
        # fused residual decoders (decpose|decshape|deccam). Padded columns of
        # wdec and padded lanes of bdec are zero, so padded state lanes stay 0.
        state = state + jnp.dot(h.astype(jnp.bfloat16), wdec,
                                preferred_element_type=jnp.float32) + bdec

    state_out_ref[...] = state              # single lane-dense [TM, 256] store


def run_regressor_iters(x, init_pose, init_shape, init_cam, kparams, n_iter=1):
    """Runs the n_iter regressor loop as one Pallas call with a batch grid."""
    B, F = x.shape
    Fp = kparams["w1x"].shape[0]            # feat dim already padded to 128x

    # Batch tiling: bf16 sublane multiple is 16; clamp the tile to the padded
    # batch so tiny batches don't pay for a full 128/256-row tile.
    TM = min(_target_batch_tile(), _round_up(B, 16))
    Bp = _round_up(B, TM)
    grid = (Bp // TM,)

    # Zero-padded, lane-dense inputs.
    x_p = jnp.zeros((Bp, Fp), jnp.bfloat16).at[:B, :F].set(x.astype(jnp.bfloat16))
    state0 = jnp.zeros((Bp, STATE_PAD), jnp.float32)
    state0 = state0.at[:B, 0:NPOSE].set(init_pose)
    state0 = state0.at[:B, NPOSE:NPOSE + NSHAPE].set(init_shape)
    state0 = state0.at[:B, NPOSE + NSHAPE:NSTATE].set(init_cam)

    weights = (kparams["w1x"], kparams["w1s"], kparams["b1"],
               kparams["w2"], kparams["b2"],
               kparams["wdec"], kparams["bdec"])
    inputs = (x_p, state0) + weights

    # VMEM budget: resident weights + double-buffered batch tiles + hx scratch.
    weight_bytes = sum(int(a.size) * a.dtype.itemsize for a in weights)
    tile_bytes = 2 * (TM * Fp * 2 + TM * STATE_PAD * 4)   # 2x-buffered inputs
    out_bytes = 2 * TM * STATE_PAD * 4                    # 2x-buffered output
    scratch_bytes = TM * HIDDEN * 4
    need = weight_bytes + tile_bytes + out_bytes + scratch_bytes
    vmem_limit = min(int(need * 1.5) + (4 << 20), 40 << 20)  # <=40 MiB: v7x-safe
    if need + (2 << 20) > (40 << 20):
        # TODO(synk): for very large feat_dim, K-tile hx = x @ w1x over a
        # reduction grid axis instead of holding all of w1x resident.
        raise ValueError(
            f"regressor VMEM footprint {need >> 20} MiB exceeds the 40 MiB budget")

    def batch_spec(shape):
        return pl.BlockSpec(shape, lambda i: (i, 0))

    def resident(shape):                    # constant block -> DMA'd once
        return pl.BlockSpec(shape, lambda i: (0, 0))

    state_out = pl.pallas_call(
        functools.partial(_regressor_kernel, n_iter),
        out_shape=jax.ShapeDtypeStruct((Bp, STATE_PAD), jnp.float32),
        grid=grid,
        in_specs=[
            batch_spec((TM, Fp)),                 # x tile
            batch_spec((TM, STATE_PAD)),          # state0 tile
            resident((Fp, HIDDEN)),               # w1x
            resident((STATE_PAD, HIDDEN)),        # w1s
            resident((1, HIDDEN)),                # b1
            resident((HIDDEN, HIDDEN)),           # w2
            resident((1, HIDDEN)),                # b2
            resident((HIDDEN, STATE_PAD)),        # wdec (fused decoders)
            resident((1, STATE_PAD)),             # bdec
        ],
        out_specs=batch_spec((TM, STATE_PAD)),
        scratch_shapes=[pltpu.VMEM((TM, HIDDEN), jnp.float32)],
        compiler_params=pltpu.CompilerParams(
            # Parallel batch axis -> sharded over both v7x TensorCores
            # (no-op on single-TC v5e/v6e); resident weights per TC.
            dimension_semantics=("parallel",),
            vmem_limit_bytes=vmem_limit),
    )(*inputs)
    # TODO(synk): for repeated small-batch calls (PyMAF pyramid levels /
    # consecutive frames), fuse invocations or cross-call-prefetch the weights
    # so the ~3 MiB weight DMA amortizes/overlaps the JAX glue.
    # TODO(synk): on v7x, fp8(e4m3) weights with per-tensor scales would halve
    # the weight DMA again; kept bf16 here for v5e/v6e compatibility.

    pred_pose = state_out[:B, 0:NPOSE]
    pred_shape = state_out[:B, NPOSE:NPOSE + NSHAPE]
    pred_cam = state_out[:B, NPOSE + NSHAPE:NSTATE]
    return pred_pose, pred_shape, pred_cam


# ----------------------------- JAX glue -------------------------------------

def rot6d_to_rotmat(x):
    """x: [B, 144] 6D rotations -> [B*24, 3, 3] rotation matrices."""
    x = x.reshape(-1, 3, 2)
    a1 = x[:, :, 0]
    a2 = x[:, :, 1]
    b1 = a1 / jnp.maximum(jnp.linalg.norm(a1, axis=-1, keepdims=True), 1e-8)
    proj = jnp.sum(b1 * a2, axis=-1, keepdims=True)
    b2u = a2 - proj * b1
    b2 = b2u / jnp.maximum(jnp.linalg.norm(b2u, axis=-1, keepdims=True), 1e-8)
    b3 = jnp.cross(b1, b2)
    return jnp.stack([b1, b2, b3], axis=-1)  # columns are b1, b2, b3


def rotation_matrix_to_quaternion(R, eps=1e-8):
    """R: [N,3,3] -> unit quaternion [N,4] (w,x,y,z); robust near angle=pi."""
    m00, m01, m02 = R[:, 0, 0], R[:, 0, 1], R[:, 0, 2]
    m10, m11, m12 = R[:, 1, 0], R[:, 1, 1], R[:, 1, 2]
    m20, m21, m22 = R[:, 2, 0], R[:, 2, 1], R[:, 2, 2]
    trace = m00 + m11 + m22

    def s(v):
        return jnp.sqrt(jnp.maximum(v, eps))

    t0 = s(1.0 + trace)
    q0 = 0.5 * jnp.stack([t0, (m21 - m12) / t0, (m02 - m20) / t0, (m10 - m01) / t0], -1)
    t1 = s(1.0 + m00 - m11 - m22)
    q1 = 0.5 * jnp.stack([(m21 - m12) / t1, t1, (m01 + m10) / t1, (m02 + m20) / t1], -1)
    t2 = s(1.0 - m00 + m11 - m22)
    q2 = 0.5 * jnp.stack([(m02 - m20) / t2, (m01 + m10) / t2, t2, (m12 + m21) / t2], -1)
    t3 = s(1.0 - m00 - m11 + m22)
    q3 = 0.5 * jnp.stack([(m10 - m01) / t3, (m02 + m20) / t3, (m12 + m21) / t3, t3], -1)

    c0 = (trace > 0.0)[:, None]
    c1 = ((m00 >= m11) & (m00 >= m22))[:, None]
    c2 = (m11 >= m22)[:, None]
    q = jnp.where(c0, q0, jnp.where(c1, q1, jnp.where(c2, q2, q3)))
    return q / jnp.maximum(jnp.linalg.norm(q, axis=-1, keepdims=True), eps)


def quaternion_to_angle_axis(q, eps=1e-8):
    qw, qx, qy, qz = q[:, 0], q[:, 1], q[:, 2], q[:, 3]
    sin_sq = qx * qx + qy * qy + qz * qz
    sin_theta = jnp.sqrt(jnp.maximum(sin_sq, 0.0))
    two_theta = 2.0 * jnp.where(qw < 0.0,
                                jnp.arctan2(-sin_theta, -qw),
                                jnp.arctan2(sin_theta, qw))
    k = jnp.where(sin_sq > eps, two_theta / jnp.maximum(sin_theta, eps), 2.0)
    return jnp.stack([qx * k, qy * k, qz * k], -1)


def rotation_matrix_to_angle_axis(R):
    """R: [N, 3, 3] -> [N, 3] axis-angle (via quaternion, as in kornia)."""
    return quaternion_to_angle_axis(rotation_matrix_to_quaternion(R))


# ----------------------------- parameters -----------------------------------

def make_params(key, feat_dim):
    """Deterministic synthetic parameters in torch-equivalent layout
    (weights stored as [in_features, out_features], i.e. torch weight.T)."""
    ks = jax.random.split(key, 13)

    def xavier(k, fan_in, fan_out, gain=1.0):
        bound = gain * jnp.sqrt(6.0 / (fan_in + fan_out))
        return jax.random.uniform(k, (fan_in, fan_out), jnp.float32, -bound, bound)

    in1 = feat_dim + NPOSE + NSHAPE + NCAM   # feat_dim + 157
    params = {
        "w1": xavier(ks[0], in1, HIDDEN),
        "b1": jax.random.normal(ks[1], (HIDDEN,), jnp.float32) * 0.01,
        "w2": xavier(ks[2], HIDDEN, HIDDEN),
        "b2": jax.random.normal(ks[3], (HIDDEN,), jnp.float32) * 0.01,
        "wp": xavier(ks[4], HIDDEN, NPOSE, gain=0.01),
        "bp": jax.random.normal(ks[5], (NPOSE,), jnp.float32) * 0.01,
        "ws": xavier(ks[6], HIDDEN, NSHAPE, gain=0.01),
        "bs": jax.random.normal(ks[7], (NSHAPE,), jnp.float32) * 0.01,
        "wc": xavier(ks[8], HIDDEN, NCAM, gain=0.01),
        "bc": jax.random.normal(ks[9], (NCAM,), jnp.float32) * 0.01,
    }
    # synthetic smpl_mean_params buffers (the real ones come from a .npz file)
    buffers = {
        "init_pose": jax.random.normal(ks[10], (1, NPOSE), jnp.float32) * 0.1,
        "init_shape": jnp.zeros((1, NSHAPE), jnp.float32),
        "init_cam": jnp.array([[0.9, 0.0, 0.0]], jnp.float32),
    }
    return params, buffers


def pack_params(p, feat_dim):
    """Torch-layout params -> kernel layout: bf16 weights, fc1 split into
    (x-part, fused+padded state part), fused zero-padded decoder."""
    Fp = _round_up(feat_dim, 128)
    w1 = p["w1"]                                         # [feat_dim + 157, H]

    w1x = jnp.zeros((Fp, HIDDEN), jnp.float32).at[:feat_dim].set(w1[:feat_dim])
    w1s = jnp.zeros((STATE_PAD, HIDDEN), jnp.float32).at[:NSTATE].set(w1[feat_dim:])

    wdec = jnp.zeros((HIDDEN, STATE_PAD), jnp.float32)
    wdec = wdec.at[:, 0:NPOSE].set(p["wp"])
    wdec = wdec.at[:, NPOSE:NPOSE + NSHAPE].set(p["ws"])
    wdec = wdec.at[:, NPOSE + NSHAPE:NSTATE].set(p["wc"])

    bdec = jnp.zeros((1, STATE_PAD), jnp.float32)
    bdec = bdec.at[0, 0:NPOSE].set(p["bp"])
    bdec = bdec.at[0, NPOSE:NPOSE + NSHAPE].set(p["bs"])
    bdec = bdec.at[0, NPOSE + NSHAPE:NSTATE].set(p["bc"])

    return {
        "w1x": w1x.astype(jnp.bfloat16),
        "w1s": w1s.astype(jnp.bfloat16),
        "b1": p["b1"].reshape(1, HIDDEN).astype(jnp.float32),
        "w2": p["w2"].astype(jnp.bfloat16),
        "b2": p["b2"].reshape(1, HIDDEN).astype(jnp.float32),
        "wdec": wdec.astype(jnp.bfloat16),
        "bdec": bdec,
    }


# ----------------------------- forward --------------------------------------

def regressor_forward(x, kparams, buffers, n_iter=1):
    B = x.shape[0]
    init_pose = jnp.broadcast_to(buffers["init_pose"], (B, NPOSE))
    init_shape = jnp.broadcast_to(buffers["init_shape"], (B, NSHAPE))
    init_cam = jnp.broadcast_to(buffers["init_cam"], (B, NCAM))

    pred_pose, pred_shape, pred_cam = run_regressor_iters(
        x, init_pose, init_shape, init_cam, kparams, n_iter=n_iter)

    pred_rotmat = rot6d_to_rotmat(pred_pose).reshape(B, 24, 3, 3)
    pose_aa = rotation_matrix_to_angle_axis(
        pred_rotmat.reshape(-1, 3, 3)).reshape(B, 72)

    # TODO(synk): SMPL body model (vertices/joints), `projection` keypoints and
    # the J_regressor remap need external SMPL model assets; not translated.
    output = {
        "theta": jnp.concatenate([pred_cam, pred_shape, pose_aa], axis=1),
        "verts": None,
        "kp_2d": None,
        "kp_3d": None,
        "smpl_kp_3d": None,
        "rotmat": pred_rotmat,
        "pred_cam": pred_cam,
        "pred_shape": pred_shape,
        "pred_pose": pred_pose,
    }
    return output


def _regressor_iters_ref(x, init_pose, init_shape, init_cam, kp, n_iter):
    """Pure-JAX reference with the same bf16/f32 mixed precision (for checking)."""
    F = x.shape[1]
    state = jnp.concatenate([init_pose, init_shape, init_cam], axis=1)
    state = jnp.pad(state, ((0, 0), (0, STATE_PAD - NSTATE)))
    hx = jnp.dot(x.astype(jnp.bfloat16), kp["w1x"][:F],
                 preferred_element_type=jnp.float32) + kp["b1"]
    for _ in range(n_iter):
        h = hx + jnp.dot(state.astype(jnp.bfloat16), kp["w1s"],
                         preferred_element_type=jnp.float32)
        h = jnp.dot(h.astype(jnp.bfloat16), kp["w2"],
                    preferred_element_type=jnp.float32) + kp["b2"]
        state = state + jnp.dot(h.astype(jnp.bfloat16), kp["wdec"],
                                preferred_element_type=jnp.float32) + kp["bdec"]
    return (state[:, :NPOSE],
            state[:, NPOSE:NPOSE + NSHAPE],
            state[:, NPOSE + NSHAPE:NSTATE])


if __name__ == "__main__":
    key = jax.random.PRNGKey(0)
    k_x, k_p = jax.random.split(key)

    B = 2
    FEAT_DIM = 32
    N_ITER = 3

    x = jax.random.normal(k_x, (B, FEAT_DIM), jnp.float32)
    params, buffers = make_params(k_p, FEAT_DIM)
    kparams = pack_params(params, FEAT_DIM)

    out = regressor_forward(x, kparams, buffers, n_iter=N_ITER)
    jax.block_until_ready(out["theta"])
    jax.block_until_ready(out["rotmat"])

    # shape checks
    assert out["theta"].shape == (B, 3 + 10 + 72)
    assert out["rotmat"].shape == (B, 24, 3, 3)
    assert out["pred_pose"].shape == (B, NPOSE)
    assert out["pred_shape"].shape == (B, NSHAPE)
    assert out["pred_cam"].shape == (B, NCAM)

    # numeric check against a pure-JAX reference with matching mixed precision
    ip = jnp.broadcast_to(buffers["init_pose"], (B, NPOSE))
    ish = jnp.broadcast_to(buffers["init_shape"], (B, NSHAPE))
    ic = jnp.broadcast_to(buffers["init_cam"], (B, NCAM))
    rp, rs, rc = _regressor_iters_ref(x, ip, ish, ic, kparams, N_ITER)
    np.testing.assert_allclose(np.asarray(out["pred_pose"]), np.asarray(rp),
                               rtol=1e-2, atol=1e-2)
    np.testing.assert_allclose(np.asarray(out["pred_shape"]), np.asarray(rs),
                               rtol=1e-2, atol=1e-2)
    np.testing.assert_allclose(np.asarray(out["pred_cam"]), np.asarray(rc),
                               rtol=1e-2, atol=1e-2)

    print("KERNEL_OK")
</pallas_src>

<mosaic_0001>
module attributes {stable_mosaic.version = 11 : i64} {
  func.func @_regressor_kernel(%arg0: i32, %arg1: memref<16x128xbf16, #tpu.memory_space<vmem>>, %arg2: memref<16x256xf32, #tpu.memory_space<vmem>>, %arg3: memref<128x1024xbf16, #tpu.memory_space<vmem>>, %arg4: memref<256x1024xbf16, #tpu.memory_space<vmem>>, %arg5: memref<1x1024xf32, #tpu.memory_space<vmem>>, %arg6: memref<1024x1024xbf16, #tpu.memory_space<vmem>>, %arg7: memref<1x1024xf32, #tpu.memory_space<vmem>>, %arg8: memref<1024x256xbf16, #tpu.memory_space<vmem>>, %arg9: memref<1x256xf32, #tpu.memory_space<vmem>>, %arg10: memref<16x256xf32, #tpu.memory_space<vmem>>, %arg11: memref<16x1024xf32, #tpu.memory_space<vmem>>) attributes {dimension_semantics = [#tpu.dimension_semantics<parallel>], iteration_bounds = array<i64: 1>, scalar_prefetch = 0 : i64, scratch_operands = 1 : i64, tpu.core_type = #tpu.core_type<tc>, window_params = [{transform_indices = @transform_0, window_bounds = array<i64: 16, 128>}, {transform_indices = @transform_1, window_bounds = array<i64: 16, 256>}, {pipeline_mode = #tpu.pipeline_mode<synchronous>, transform_indices = @transform_2, window_bounds = array<i64: 128, 1024>}, {pipeline_mode = #tpu.pipeline_mode<synchronous>, transform_indices = @transform_3, window_bounds = array<i64: 256, 1024>}, {pipeline_mode = #tpu.pipeline_mode<synchronous>, transform_indices = @transform_4, window_bounds = array<i64: 1, 1024>}, {pipeline_mode = #tpu.pipeline_mode<synchronous>, transform_indices = @transform_5, window_bounds = array<i64: 1024, 1024>}, {pipeline_mode = #tpu.pipeline_mode<synchronous>, transform_indices = @transform_6, window_bounds = array<i64: 1, 1024>}, {pipeline_mode = #tpu.pipeline_mode<synchronous>, transform_indices = @transform_7, window_bounds = array<i64: 1024, 256>}, {pipeline_mode = #tpu.pipeline_mode<synchronous>, transform_indices = @transform_8, window_bounds = array<i64: 1, 256>}, {transform_indices = @transform_9, window_bounds = array<i64: 16, 256>}]} {
    %c0 = arith.constant 0 : index
    %c0_0 = arith.constant 0 : index
    %0 = vector.load %arg1[%c0, %c0_0] : memref<16x128xbf16, #tpu.memory_space<vmem>>, vector<16x128xbf16>
    %c0_1 = arith.constant 0 : index
    %c0_2 = arith.constant 0 : index
    %1 = vector.load %arg3[%c0_1, %c0_2] : memref<128x1024xbf16, #tpu.memory_space<vmem>>, vector<128x1024xbf16>
    %c0_3 = arith.constant 0 : index
    %c0_4 = arith.constant 0 : index
    %2 = vector.load %arg4[%c0_3, %c0_4] : memref<256x1024xbf16, #tpu.memory_space<vmem>>, vector<256x1024xbf16>
    %c0_5 = arith.constant 0 : index
    %c0_6 = arith.constant 0 : index
    %3 = vector.load %arg6[%c0_5, %c0_6] : memref<1024x1024xbf16, #tpu.memory_space<vmem>>, vector<1024x1024xbf16>
    %c0_7 = arith.constant 0 : index
    %c0_8 = arith.constant 0 : index
    %4 = vector.load %arg8[%c0_7, %c0_8] : memref<1024x256xbf16, #tpu.memory_space<vmem>>, vector<1024x256xbf16>
    %c0_9 = arith.constant 0 : index
    %c0_10 = arith.constant 0 : index
    %5 = vector.load %arg5[%c0_9, %c0_10] : memref<1x1024xf32, #tpu.memory_space<vmem>>, vector<1x1024xf32>
    %c0_11 = arith.constant 0 : index
    %c0_12 = arith.constant 0 : index
    %6 = vector.load %arg7[%c0_11, %c0_12] : memref<1x1024xf32, #tpu.memory_space<vmem>>, vector<1x1024xf32>
    %c0_13 = arith.constant 0 : index
    %c0_14 = arith.constant 0 : index
    %7 = vector.load %arg9[%c0_13, %c0_14] : memref<1x256xf32, #tpu.memory_space<vmem>>, vector<1x256xf32>
    %c0_15 = arith.constant 0 : index
    %c0_16 = arith.constant 0 : index
    %8 = vector.load %arg2[%c0_15, %c0_16] : memref<16x256xf32, #tpu.memory_space<vmem>>, vector<16x256xf32>
    %cst = arith.constant dense<0.000000e+00> : vector<16x1024xf32>
    %9 = tpu.matmul %0, %1, %cst {dimension_numbers = #tpu.dot_dimension_numbers<[1], [0], [0], [1], [0, 0, 1, 1], [], []>} : vector<16x128xbf16>, vector<128x1024xbf16>, vector<16x1024xf32> -> vector<16x1024xf32>
    %10 = vector.broadcast %5 : vector<1x1024xf32> to vector<16x1024xf32>
    %11 = arith.addf %9, %10 : vector<16x1024xf32>
    %c0_17 = arith.constant 0 : index
    %c0_18 = arith.constant 0 : index
    %12 = vector.load %arg11[%c0_17, %c0_18] : memref<16x1024xf32, #tpu.memory_space<vmem>>, vector<16x1024xf32>
    tpu.vector_store %arg11[%c0_17, %c0_18], %11 {strides = array<i32>} : memref<16x1024xf32, #tpu.memory_space<vmem>>, vector<16x1024xf32>,
    %c0_19 = arith.constant 0 : index
    %c0_20 = arith.constant 0 : index
    %13 = vector.load %arg11[%c0_19, %c0_20] : memref<16x1024xf32, #tpu.memory_space<vmem>>, vector<16x1024xf32>
    %14 = arith.truncf %8 : vector<16x256xf32> to vector<16x256xbf16>
    %cst_21 = arith.constant dense<0.000000e+00> : vector<16x1024xf32>
    %15 = tpu.matmul %14, %2, %cst_21 {dimension_numbers = #tpu.dot_dimension_numbers<[1], [0], [0], [1], [0, 0, 1, 1], [], []>} : vector<16x256xbf16>, vector<256x1024xbf16>, vector<16x1024xf32> -> vector<16x1024xf32>
    %16 = arith.addf %13, %15 : vector<16x1024xf32>
    %17 = arith.truncf %16 : vector<16x1024xf32> to vector<16x1024xbf16>
    %cst_22 = arith.constant dense<0.000000e+00> : vector<16x1024xf32>
    %18 = tpu.matmul %17, %3, %cst_22 {dimension_numbers = #tpu.dot_dimension_numbers<[1], [0], [0], [1], [0, 0, 1, 1], [], []>} : vector<16x1024xbf16>, vector<1024x1024xbf16>, vector<16x1024xf32> -> vector<16x1024xf32>
    %19 = vector.broadcast %6 : vector<1x1024xf32> to vector<16x1024xf32>
    %20 = arith.addf %18, %19 : vector<16x1024xf32>
    %21 = arith.truncf %20 : vector<16x1024xf32> to vector<16x1024xbf16>
    %cst_23 = arith.constant dense<0.000000e+00> : vector<16x256xf32>
    %22 = tpu.matmul %21, %4, %cst_23 {dimension_numbers = #tpu.dot_dimension_numbers<[1], [0], [0], [1], [0, 0, 1, 1], [], []>} : vector<16x1024xbf16>, vector<1024x256xbf16>, vector<16x256xf32> -> vector<16x256xf32>
    %23 = arith.addf %8, %22 : vector<16x256xf32>
    %24 = vector.broadcast %7 : vector<1x256xf32> to vector<16x256xf32>
    %25 = arith.addf %23, %24 : vector<16x256xf32>
    %c0_24 = arith.constant 0 : index
    %c0_25 = arith.constant 0 : index
    %26 = vector.load %arg11[%c0_24, %c0_25] : memref<16x1024xf32, #tpu.memory_space<vmem>>, vector<16x1024xf32>
    %27 = arith.truncf %25 : vector<16x256xf32> to vector<16x256xbf16>
    %cst_26 = arith.constant dense<0.000000e+00> : vector<16x1024xf32>
    %28 = tpu.matmul %27, %2, %cst_26 {dimension_numbers = #tpu.dot_dimension_numbers<[1], [0], [0], [1], [0, 0, 1, 1], [], []>} : vector<16x256xbf16>, vector<256x1024xbf16>, vector<16x1024xf32> -> vector<16x1024xf32>
    %29 = arith.addf %26, %28 : vector<16x1024xf32>
    %30 = arith.truncf %29 : vector<16x1024xf32> to vector<16x1024xbf16>
    %cst_27 = arith.constant dense<0.000000e+00> : vector<16x1024xf32>
    %31 = tpu.matmul %30, %3, %cst_27 {dimension_numbers = #tpu.dot_dimension_numbers<[1], [0], [0], [1], [0, 0, 1, 1], [], []>} : vector<16x1024xbf16>, vector<1024x1024xbf16>, vector<16x1024xf32> -> vector<16x1024xf32>
    %32 = vector.broadcast %6 : vector<1x1024xf32> to vector<16x1024xf32>
    %33 = arith.addf %31, %32 : vector<16x1024xf32>
    %34 = arith.truncf %33 : vector<16x1024xf32> to vector<16x1024xbf16>
    %cst_28 = arith.constant dense<0.000000e+00> : vector<16x256xf32>
    %35 = tpu.matmul %34, %4, %cst_28 {dimension_numbers = #tpu.dot_dimension_numbers<[1], [0], [0], [1], [0, 0, 1, 1], [], []>} : vector<16x1024xbf16>, vector<1024x256xbf16>, vector<16x256xf32> -> vector<16x256xf32>
    %36 = arith.addf %25, %35 : vector<16x256xf32>
    %37 = vector.broadcast %7 : vector<1x256xf32> to vector<16x256xf32>
    %38 = arith.addf %36, %37 : vector<16x256xf32>
    %c0_29 = arith.constant 0 : index
    %c0_30 = arith.constant 0 : index
    %39 = vector.load %arg11[%c0_29, %c0_30] : memref<16x1024xf32, #tpu.memory_space<vmem>>, vector<16x1024xf32>
    %40 = arith.truncf %38 : vector<16x256xf32> to vector<16x256xbf16>
    %cst_31 = arith.constant dense<0.000000e+00> : vector<16x1024xf32>
    %41 = tpu.matmul %40, %2, %cst_31 {dimension_numbers = #tpu.dot_dimension_numbers<[1], [0], [0], [1], [0, 0, 1, 1], [], []>} : vector<16x256xbf16>, vector<256x1024xbf16>, vector<16x1024xf32> -> vector<16x1024xf32>
    %42 = arith.addf %39, %41 : vector<16x1024xf32>
    %43 = arith.truncf %42 : vector<16x1024xf32> to vector<16x1024xbf16>
    %cst_32 = arith.constant dense<0.000000e+00> : vector<16x1024xf32>
    %44 = tpu.matmul %43, %3, %cst_32 {dimension_numbers = #tpu.dot_dimension_numbers<[1], [0], [0], [1], [0, 0, 1, 1], [], []>} : vector<16x1024xbf16>, vector<1024x1024xbf16>, vector<16x1024xf32> -> vector<16x1024xf32>
    %45 = vector.broadcast %6 : vector<1x1024xf32> to vector<16x1024xf32>
    %46 = arith.addf %44, %45 : vector<16x1024xf32>
    %47 = arith.truncf %46 : vector<16x1024xf32> to vector<16x1024xbf16>
    %cst_33 = arith.constant dense<0.000000e+00> : vector<16x256xf32>
    %48 = tpu.matmul %47, %4, %cst_33 {dimension_numbers = #tpu.dot_dimension_numbers<[1], [0], [0], [1], [0, 0, 1, 1], [], []>} : vector<16x1024xbf16>, vector<1024x256xbf16>, vector<16x256xf32> -> vector<16x256xf32>
    %49 = arith.addf %38, %48 : vector<16x256xf32>
    %50 = vector.broadcast %7 : vector<1x256xf32> to vector<16x256xf32>
    %51 = arith.addf %49, %50 : vector<16x256xf32>
    %c0_34 = arith.constant 0 : index
    %c0_35 = arith.constant 0 : index
    %52 = vector.load %arg10[%c0_34, %c0_35] : memref<16x256xf32, #tpu.memory_space<vmem>>, vector<16x256xf32>
    tpu.vector_store %arg10[%c0_34, %c0_35], %51 {strides = array<i32>} : memref<16x256xf32, #tpu.memory_space<vmem>>, vector<16x256xf32>,
    return
  }
  func.func @transform_0(%arg0: i32) -> (i32, i32) {
    %c0_i32 = arith.constant 0 : i32
    %c0_i32_0 = arith.constant 0 : i32
    return %arg0, %c0_i32 : i32, i32
  }
  func.func @transform_1(%arg0: i32) -> (i32, i32) {
    %c0_i32 = arith.constant 0 : i32
    %c0_i32_0 = arith.constant 0 : i32
    return %arg0, %c0_i32 : i32, i32
  }
  func.func @transform_2(%arg0: i32) -> (i32, i32) {
    %c0_i32 = arith.constant 0 : i32
    %c0_i32_0 = arith.constant 0 : i32
    %c0_i32_1 = arith.constant 0 : i32
    return %c0_i32, %c0_i32_0 : i32, i32
  }
  func.func @transform_3(%arg0: i32) -> (i32, i32) {
    %c0_i32 = arith.constant 0 : i32
    %c0_i32_0 = arith.constant 0 : i32
    %c0_i32_1 = arith.constant 0 : i32
    return %c0_i32, %c0_i32_0 : i32, i32
  }
  func.func @transform_4(%arg0: i32) -> (i32, i32) {
    %c0_i32 = arith.constant 0 : i32
    %c0_i32_0 = arith.constant 0 : i32
    %c0_i32_1 = arith.constant 0 : i32
    return %c0_i32, %c0_i32_0 : i32, i32
  }
  func.func @transform_5(%arg0: i32) -> (i32, i32) {
    %c0_i32 = arith.constant 0 : i32
    %c0_i32_0 = arith.constant 0 : i32
    %c0_i32_1 = arith.constant 0 : i32
    return %c0_i32, %c0_i32_0 : i32, i32
  }
  func.func @transform_6(%arg0: i32) -> (i32, i32) {
    %c0_i32 = arith.constant 0 : i32
    %c0_i32_0 = arith.constant 0 : i32
    %c0_i32_1 = arith.constant 0 : i32
    return %c0_i32, %c0_i32_0 : i32, i32
  }
  func.func @transform_7(%arg0: i32) -> (i32, i32) {
    %c0_i32 = arith.constant 0 : i32
    %c0_i32_0 = arith.constant 0 : i32
    %c0_i32_1 = arith.constant 0 : i32
    return %c0_i32, %c0_i32_0 : i32, i32
  }
  func.func @transform_8(%arg0: i32) -> (i32, i32) {
    %c0_i32 = arith.constant 0 : i32
    %c0_i32_0 = arith.constant 0 : i32
    %c0_i32_1 = arith.constant 0 : i32
    return %c0_i32, %c0_i32_0 : i32, i32
  }
  func.func @transform_9(%arg0: i32) -> (i32, i32) {
    %c0_i32 = arith.constant 0 : i32
    %c0_i32_0 = arith.constant 0 : i32
    return %arg0, %c0_i32 : i32, i32
  }
}

</mosaic_0001>

<bundles_post_ra>
// kernel: tpu_custom_call.1
= control target key start
LH: loop header
LB: loop body
LE: loop exit
PB: predicated region body
PF: predicated region fallthrough
CT: control target
= control target key end

     0   :  { %14 = vsyncpa [#allocation4], 0  ;;  %s14453_s0 = inlined_call_operand.hbm [shape: bf16[16,128], index: 0, kind: input, shape index: {}]   ;;  %s14454_s1 = inlined_call_operand.hbm [shape: f32[16,256], index: 1, kind: input, shape index: {}]   ;;  %s14455_s2 = inlined_call_operand.hbm [shape: bf16[128,1024], index: 2, kind: input, shape index: {}]   ;;  %s14456_s3 = inlined_call_operand.hbm [shape: bf16[256,1024], index: 3, kind: input, shape index: {}]   ;;  %s14457_s4 = inlined_call_operand.hbm [shape: f32[1,1024], index: 4, kind: input, shape index: {}]   ;;  %s14458_s5 = inlined_call_operand.hbm [shape: bf16[1024,1024], index: 5, kind: input, shape index: {}]   ;;  %s14459_s6 = inlined_call_operand.hbm [shape: f32[1,1024], index: 6, kind: input, shape index: {}]   ;;  %s14460_s7 = inlined_call_operand.hbm [shape: bf16[1024,256], index: 7, kind: input, shape index: {}]   ;;  %s14461_s8 = inlined_call_operand.hbm [shape: f32[1,256], index: 8, kind: input, shape index: {}]   ;;  %s14462_s9 = inlined_call_operand.hbm [shape: f32[16,256], index: 9, kind: output, shape index: {}]  }
   0x1   :  { %15 = vsyncpa [#allocation7], 0 }
   0x2   :  { %16 = vsyncpa [#allocation10], 0 }
   0x3   :  { %17 = vsyncpa [#allocation13], 0 }
   0x4   :  { %18 = vsyncpa [#allocation16], 0 }
   0x5   :  { %19 = vsyncpa [#allocation5], 0  ;;  %s10467_s30 = smov [#allocation6]   ;;  %s10235_s13 = scalar_lea.hbm %s14454_s1, 512 }
   0x6   :  { %s37_s10 = sshll.u32 %s10467_s30, 4  ;;  %p10236_p0 = scmp.ne.s32.totalorder %s14454_s1, %s10235_s13  ;;  %s38_s10 = int_to_ptr.vmem [resolvable:$true] %s37_s10 }
   0x7   :  { %p10239_p1 = scmp.lt.u32.totalorder %s10235_s13, %s14454_s1 }
   0x9   :  { %p10241_p2 = pnand %p10239_p1, %p10236_p0 }
   0xb   :  { %10244 = shalt.err (!%p10241_p2)
}
   0xc   :  { %s10245_s18 = scalar_lea.vmem %s38_s10, 512  ;;  %p10250_p4 = scmp.lt.s32.totalorder %s38_s10, %s38_s10 }
   0xd   :  { %p10246_p3 = scmp.ne.s32.totalorder %s38_s10, %s10245_s18  ;;  %p10251_p5 = scmp.lt.s32.totalorder %s10245_s18, %s10245_s18 }
   0xf   :  { %p10252_p6 = por %p10251_p5, %p10250_p4 }
  0x11   :  { %p10253_p7 = pnand %p10252_p6, %p10246_p3 }
  0x13   :  { %10256 = shalt.err (!%p10253_p7)
}
  0x14   :  { %s10468_s19 = smov 256   ;;  %s10469_s20 = smov 16  }
  0x15   :  { %43 = dma.hbm_to_vmem [thread:$0]  %s14454_s1, 512, %s38_s10, [#allocation7], %s10468_s19, %s10468_s19, %s10469_s20  }
  0x16   :  { %s10470_s23 = smov [#allocation9]   ;;  %s10471_s25 = smov [#allocation12]  }
  0x17   :  { %s61_s24 = sshll.u32 %s10470_s23, 4  ;;  %s83_s26 = sshll.u32 %s10471_s25, 4  ;;  %s62_s24 = int_to_ptr.vmem [resolvable:$true] %s61_s24  ;;  %s84_s26 = int_to_ptr.vmem [resolvable:$true] %s83_s26 }
  0x18   :  { %s10257_s29 = scalar_lea.hbm %s14456_s3, 16384 }
  0x19   :  { %p10258_p8 = scmp.ne.s32.totalorder %s14456_s3, %s10257_s29  ;;  %p10261_p9 = scmp.lt.u32.totalorder %s10257_s29, %s14456_s3 }
  0x1b   :  { %p10263_p10 = pnand %p10261_p9, %p10258_p8 }
  0x1d   :  { %10266 = shalt.err (!%p10263_p10)
}
  0x1e   :  { %s10267_s1 = scalar_lea.vmem %s62_s24, 16384  ;;  %p10272_p12 = scmp.lt.s32.totalorder %s62_s24, %s62_s24 }
  0x1f   :  { %p10268_p11 = scmp.ne.s32.totalorder %s62_s24, %s10267_s1  ;;  %p10273_p13 = scmp.lt.s32.totalorder %s10267_s1, %s10267_s1 }
  0x21   :  { %p10274_p0 = por %p10273_p13, %p10272_p12 }
  0x23   :  { %p10275_p1 = pnand %p10274_p0, %p10268_p11 }
  0x25   :  { %10278 = shalt.err (!%p10275_p1)
}
  0x26   :  { %s10472_s10 = smov 512   ;;  %s10473_s14 = smov 32  }
  0x27   :  { %67 = dma.hbm_to_vmem [thread:$0]  %s14456_s3, 16384, %s62_s24, [#allocation10], %s10472_s10, %s10472_s10, %s10473_s14  }
  0x28   :  { %s10279_s21 = scalar_lea.hbm %s14458_s5, 65536 }
  0x29   :  { %p10280_p2 = scmp.ne.s32.totalorder %s14458_s5, %s10279_s21  ;;  %p10283_p3 = scmp.lt.u32.totalorder %s10279_s21, %s14458_s5 }
  0x2b   :  { %p10285_p4 = pnand %p10283_p3, %p10280_p2 }
  0x2d   :  { %10288 = shalt.err (!%p10285_p4)
}
  0x2e   :  { %s10289_s28 = scalar_lea.vmem %s84_s26, 65536  ;;  %p10294_p6 = scmp.lt.s32.totalorder %s84_s26, %s84_s26 }
  0x2f   :  { %p10290_p5 = scmp.ne.s32.totalorder %s84_s26, %s10289_s28  ;;  %p10295_p7 = scmp.lt.s32.totalorder %s10289_s28, %s10289_s28 }
  0x31   :  { %p10296_p8 = por %p10295_p7, %p10294_p6 }
  0x33   :  { %p10297_p9 = pnand %p10296_p8, %p10290_p5 }
  0x35   :  { %10300 = shalt.err (!%p10297_p9)
}
  0x36   :  { %89 = dma.hbm_to_vmem [thread:$0]  %s14458_s5, 65536, %s84_s26, [#allocation13], %s10472_s10, %s10472_s10, %s10473_s14  }
  0x37   :  { %s10474_s29 = smov [#allocation15]   ;;  %s10301_s13 = scalar_lea.hbm %s14460_s7, 16384 }
  0x38   :  { %s105_s30 = sshll.u32 %s10474_s29, 4  ;;  %p10302_p10 = scmp.ne.s32.totalorder %s14460_s7, %s10301_s13  ;;  %s106_s30 = int_to_ptr.vmem [resolvable:$true] %s105_s30 }
  0x39   :  { %p10305_p11 = scmp.lt.u32.totalorder %s10301_s13, %s14460_s7 }
  0x3b   :  { %p10307_p12 = pnand %p10305_p11, %p10302_p10 }
  0x3d   :  { %10310 = shalt.err (!%p10307_p12)
}
  0x3e   :  { %s10311_s18 = scalar_lea.vmem %s106_s30, 16384  ;;  %p10316_p0 = scmp.lt.s32.totalorder %s106_s30, %s106_s30 }
  0x3f   :  { %p10312_p13 = scmp.ne.s32.totalorder %s106_s30, %s10311_s18  ;;  %p10317_p1 = scmp.lt.s32.totalorder %s10311_s18, %s10311_s18 }
  0x41   :  { %p10318_p2 = por %p10317_p1, %p10316_p0 }
  0x43   :  { %p10319_p3 = pnand %p10318_p2, %p10312_p13 }
  0x45   :  { %10322 = shalt.err (!%p10319_p3)
}
  0x46   :  { %s10475_s5 = smov 128   ;;  %s10476_s26 = smov 8  }
  0x47   :  { %111 = dma.hbm_to_vmem [thread:$0]  %s14460_s7, 16384, %s106_s30, [#allocation16], %s10475_s5, %s10475_s5, %s10476_s26  }
  0x48   :  { %s10477_s23 = smov [#allocation3]   ;;  %s10323_s3 = scalar_lea.hbm %s14453_s0, 128 }
  0x49   :  { %s25_s25 = sshll.u32 %s10477_s23, 4  ;;  %p10324_p4 = scmp.ne.s32.totalorder %s14453_s0, %s10323_s3  ;;  %s26_s25 = int_to_ptr.vmem [resolvable:$true] %s25_s25 }
  0x4a   :  { %p10327_p5 = scmp.lt.u32.totalorder %s10323_s3, %s14453_s0 }
  0x4c   :  { %p10329_p6 = pnand %p10327_p5, %p10324_p4 }
  0x4e   :  { %10332 = shalt.err (!%p10329_p6)
}
  0x4f   :  { %s10333_s13 = scalar_lea.vmem %s26_s25, 128  ;;  %p10338_p8 = scmp.lt.s32.totalorder %s26_s25, %s26_s25 }
  0x50   :  { %p10334_p7 = scmp.ne.s32.totalorder %s26_s25, %s10333_s13  ;;  %p10339_p9 = scmp.lt.s32.totalorder %s10333_s13, %s10333_s13 }
  0x52   :  { %p10340_p10 = por %p10339_p9, %p10338_p8 }
  0x54   :  { %p10341_p11 = pnand %p10340_p10, %p10334_p7 }
  0x56   :  { %10344 = shalt.err (!%p10341_p11)
}
  0x57   :  { %s10478_s7 = smov 64   ;;  %s10479_s30 = smov 4  }
  0x58   :  { %31 = dma.hbm_to_vmem [thread:$0]  %s14453_s0, 128, %s26_s25, [#allocation4], %s10478_s7, %s10478_s7, %s10479_s30  }
  0x59   :  { %s10480_s16 = smov [#allocation8]   ;;  %s10481_s18 = smov [#allocation11]  }
  0x5a   :  { %s49_s17 = sshll.u32 %s10480_s16, 4  ;;  %s74_s5 = sshll.u32 %s10481_s18, 4  ;;  %s50_s17 = int_to_ptr.vmem [resolvable:$true] %s49_s17  ;;  %s75_s5 = int_to_ptr.vmem [resolvable:$true] %s74_s5 }
  0x5b   :  { %s10345_s22 = scalar_lea.hbm %s14455_s2, 8192 }
  0x5c   :  { %p10346_p12 = scmp.ne.s32.totalorder %s14455_s2, %s10345_s22  ;;  %p10349_p13 = scmp.lt.u32.totalorder %s10345_s22, %s14455_s2 }
  0x5e   :  { %p10351_p0 = pnand %p10349_p13, %p10346_p12 }
  0x60   :  { %10354 = shalt.err (!%p10351_p0)
}
  0x61   :  { %s10355_s0 = scalar_lea.vmem %s50_s17, 8192  ;;  %p10360_p2 = scmp.lt.s32.totalorder %s50_s17, %s50_s17 }
  0x62   :  { %p10356_p1 = scmp.ne.s32.totalorder %s50_s17, %s10355_s0  ;;  %p10361_p3 = scmp.lt.s32.totalorder %s10355_s0, %s10355_s0 }
  0x64   :  { %p10362_p4 = por %p10361_p3, %p10360_p2 }
  0x66   :  { %p10363_p5 = pnand %p10362_p4, %p10356_p1 }
  0x68   :  { %10366 = shalt.err (!%p10363_p5)
}
  0x69   :  { %55 = dma.hbm_to_vmem [thread:$0]  %s14455_s2, 8192, %s50_s17, [#allocation7], %s10472_s10, %s10472_s10, %s10473_s14  }
  0x6a   :  { %s10367_s12 = scalar_lea.hbm %s14457_s4, 128 }
  0x6b   :  { %p10368_p6 = scmp.ne.s32.totalorder %s14457_s4, %s10367_s12  ;;  %p10371_p7 = scmp.lt.u32.totalorder %s10367_s12, %s14457_s4 }
  0x6d   :  { %p10373_p8 = pnand %p10371_p7, %p10368_p6 }
  0x6f   :  { %10376 = shalt.err (!%p10373_p8)
}
  0x70   :  { %s10377_s15 = scalar_lea.vmem %s75_s5, 128  ;;  %p10382_p10 = scmp.lt.s32.totalorder %s75_s5, %s75_s5 }
  0x71   :  { %p10378_p9 = scmp.ne.s32.totalorder %s75_s5, %s10377_s15  ;;  %p10383_p11 = scmp.lt.s32.totalorder %s10377_s15, %s10377_s15 }
  0x73   :  { %p10384_p12 = por %p10383_p11, %p10382_p10 }
  0x75   :  { %p10385_p13 = pnand %p10384_p12, %p10378_p9 }
  0x77   :  { %10388 = shalt.err (!%p10385_p13)
}
  0x78   :  { %77 = dma.hbm_to_vmem [thread:$0]  %s14457_s4, 128, %s75_s5, [#allocation10]  }
  0x79   :  { %s10482_s14 = smov [#allocation14]   ;;  %s10483_s17 = smov [#allocation17]  }
  0x7a   :  { %s96_s16 = sshll.u32 %s10482_s14, 4  ;;  %s118_s18 = sshll.u32 %s10483_s17, 4  ;;  %s97_s16 = int_to_ptr.vmem [resolvable:$true] %s96_s16  ;;  %s119_s18 = int_to_ptr.vmem [resolvable:$true] %s118_s18 }
  0x7b   :  { %s10389_s22 = scalar_lea.hbm %s14459_s6, 128 }
  0x7c   :  { %p10390_p0 = scmp.ne.s32.totalorder %s14459_s6, %s10389_s22  ;;  %p10393_p1 = scmp.lt.u32.totalorder %s10389_s22, %s14459_s6 }
  0x7e   :  { %p10395_p2 = pnand %p10393_p1, %p10390_p0 }
  0x80   :  { %10398 = shalt.err (!%p10395_p2)
}
  0x81   :  { %s10399_s4 = scalar_lea.vmem %s97_s16, 128  ;;  %p10404_p4 = scmp.lt.s32.totalorder %s97_s16, %s97_s16 }
  0x82   :  { %p10400_p3 = scmp.ne.s32.totalorder %s97_s16, %s10399_s4  ;;  %p10405_p5 = scmp.lt.s32.totalorder %s10399_s4, %s10399_s4 }
  0x84   :  { %p10406_p6 = por %p10405_p5, %p10404_p4 }
  0x86   :  { %p10407_p7 = pnand %p10406_p6, %p10400_p3 }
  0x88   :  { %10410 = shalt.err (!%p10407_p7)
}
  0x89   :  { %99 = dma.hbm_to_vmem [thread:$0]  %s14459_s6, 128, %s97_s16, [#allocation13]  }
  0x8a   :  { %s10411_s29 = scalar_lea.hbm %s14461_s8, 32 }
  0x8b   :  { %p10412_p8 = scmp.ne.s32.totalorder %s14461_s8, %s10411_s29  ;;  %p10415_p9 = scmp.lt.u32.totalorder %s10411_s29, %s14461_s8 }
  0x8d   :  { %p10417_p10 = pnand %p10415_p9, %p10412_p8 }
  0x8f   :  { %10420 = shalt.err (!%p10417_p10)
}
  0x90   :  { %s10421_s30 = scalar_lea.vmem %s119_s18, 32  ;;  %p10426_p12 = scmp.lt.s32.totalorder %s119_s18, %s119_s18 }
  0x91   :  { %p10422_p11 = scmp.ne.s32.totalorder %s119_s18, %s10421_s30  ;;  %p10427_p13 = scmp.lt.s32.totalorder %s10421_s30, %s10421_s30 }
  0x93   :  { %p10428_p0 = por %p10427_p13, %p10426_p12 }
  0x95   :  { %p10429_p1 = pnand %p10428_p0, %p10422_p11 }
  0x97   :  { %10432 = shalt.err (!%p10429_p1)
}
  0x98   :  { %121 = dma.hbm_to_vmem [thread:$0]  %s14461_s8, 32, %s119_s18, [#allocation16]  }
  0x99   :  { %10455 = dma.done.wait [#allocation4], 128  }
  0x9a   :  { %10456 = vsyncadd [#allocation4], 4294967168 }
  0x9b   :  { %10457 = dma.done.wait [#allocation7], 8704  }
  0x9c   :  { %10458 = vsyncadd [#allocation7], 4294958592 }
  0x9d   :  { %10459 = dma.done.wait [#allocation10], 16512  }
  0x9e   :  { %10460 = vsyncadd [#allocation10], 4294950784 }
  0x9f   :  { %10461 = dma.done.wait [#allocation13], 65664  }
  0xa0   :  { %10462 = vsyncadd [#allocation13], 4294901632 }
  0xa1   :  { %10463 = dma.done.wait [#allocation16], 16416  }
  0xa2   :  { %10464 = vsyncadd [#allocation16], 4294950880  ;;  %v10484_v0 = vmov 0   ;;  %v153_v1 = vld [vmem:[#allocation8 + $0x8] sm:$0xff]  ;;  %v152_v23 = vld [vmem:[#allocation8] sm:$0xff]  ;;  %s10485_s8 = smov [#allocation18]  }
  0xa3   :  { %1433 = vmatprep.mubr.bf16.mxu1 %v10484_v0  ;;  %1390 = vmatprep.mubr.bf16.mxu0 %v10484_v0  ;;  %v157_v2 = vld [vmem:[#allocation8 + $0x28] sm:$0xff]  ;;  %v156_v24 = vld [vmem:[#allocation8 + $0x20] sm:$0xff]  ;;  %v155_v46 = vld [vmem:[#allocation8 + $0x18] sm:$0xff]  ;;  %s8685_s15 = sshll.u32 %s10485_s8, 4  ;;  %s8686_s15 = int_to_ptr.vmem [resolvable:$true] %s8685_s15 }
  0xa4   :  { %v161_v3 = vld [vmem:[#allocation8 + $0x48] sm:$0xff]  ;;  %v8705_v4 = vcombine.high %v153_v1, %v157_v2  ;;  %v8704_v5 = vcombine.low %v153_v1, %v157_v2  ;;  %v8703_v26 = vcombine.high %v152_v23, %v156_v24  ;;  %v8702_v27 = vcombine.low %v152_v23, %v156_v24  ;;  %v160_v28 = vld [vmem:[#allocation8 + $0x40] sm:$0xff]  ;;  %v159_v48 = vld [vmem:[#allocation8 + $0x38] sm:$0xff]  ;;  %s10433_s2 = scalar_lea.vmem %s8686_s15, 512  ;;  %p10438_p3 = scmp.lt.s32.totalorder %s8686_s15, %s8686_s15 }
  0xa5   :  { %v165_v6 = vld [vmem:[#allocation8 + $0x68] sm:$0xff]  ;;  %v164_v31 = vld [vmem:[#allocation8 + $0x60] sm:$0xff]  ;;  %v8709_v53 = vcombine.high %v155_v46, %v159_v48  ;;  %v163_v55 = vld [vmem:[#allocation8 + $0x58] sm:$0xff]  ;;  %v8708_v60 = vcombine.low %v155_v46, %v159_v48  ;;  %p10434_p2 = scmp.ne.s32.totalorder %s8686_s15, %s10433_s2  ;;  %p10439_p4 = scmp.lt.s32.totalorder %s10433_s2, %s10433_s2 }
  0xa6   :  { %v8713_v7 = vcombine.high %v161_v3, %v165_v6  ;;  %v169_v8 = vld [vmem:[#allocation8 + $0x88] sm:$0xff]  ;;  %1401 = vmatprep.subr.bf16.mxu1 %v8705_v4  ;;  %v8712_v10 = vcombine.low %v161_v3, %v165_v6  ;;  %1358 = vmatprep.subr.bf16.mxu0 %v8703_v26  ;;  %v8711_v32 = vcombine.high %v160_v28, %v164_v31  ;;  %v168_v33 = vld [vmem:[#allocation8 + $0x80] sm:$0xff]  ;;  %v167_v56 = vld [vmem:[#allocation8 + $0x78] sm:$0xff] }
  0xa7   :  { %v173_v9 = vld [vmem:[#allocation8 + $0xa8] sm:$0xff]  ;;  %1402 = vmatpush1.bf16.msra.mxu1 %v8704_v5  ;;  %v172_v34 = vld [vmem:[#allocation8 + $0xa0] sm:$0xff]  ;;  %1359 = vmatpush1.bf16.msra.mxu0 %v8702_v27  ;;  %v8710_v36 = vcombine.low %v160_v28, %v164_v31  ;;  %v10658_v57 = vld [vmem:[#allocation3] sm:$0xff]   ;;  %v8717_v61 = vcombine.high %v163_v55, %v167_v56  ;;  %v8716_v5 = vcombine.low %v163_v55, %v167_v56  ;;  %p10440_p5 = por %p10439_p4, %p10438_p3 }
  0xa8   :  { %1403 = vmatprep.subr.bf16.mxu1 %v8713_v7  ;;  %v8721_v11 = vcombine.high %v169_v8, %v173_v9  ;;  %v177_v12 = vld [vmem:[#allocation8 + $0xc8] sm:$0xff]  ;;  %v8720_v14 = vcombine.low %v169_v8, %v173_v9  ;;  %1360 = vmatprep.subr.bf16.mxu0 %v8711_v32  ;;  %v8719_v39 = vcombine.high %v168_v33, %v172_v34  ;;  %v176_v41 = vld [vmem:[#allocation8 + $0xc0] sm:$0xff]  ;;  %v171_v62 = vld [vmem:[#allocation8 + $0x98] sm:$0xff] }
  0xa9   :  { %v181_v13 = vld [vmem:[#allocation8 + $0xe8] sm:$0xff]  ;;  %v180_v42 = vld [vmem:[#allocation8 + $0xe0] sm:$0xff]  ;;  %v8718_v44 = vcombine.low %v168_v33, %v172_v34  ;;  %v175_v1 = vld [vmem:[#allocation8 + $0xb8] sm:$0xff]  ;;  %p10441_p6 = pnand %p10440_p5, %p10434_p2 }
  0xaa   :  { %v8729_v15 = vcombine.high %v177_v12, %v181_v13  ;;  %v185_v16 = vld [vmem:[#allocation8 + $0x108] sm:$0xff]  ;;  %v8728_v18 = vcombine.low %v177_v12, %v181_v13  ;;  %v8727_v47 = vcombine.high %v176_v41, %v180_v42  ;;  %v184_v49 = vld [vmem:[#allocation8 + $0x100] sm:$0xff]  ;;  %v8726_v52 = vcombine.low %v176_v41, %v180_v42  ;;  %v179_v6 = vld [vmem:[#allocation8 + $0xd8] sm:$0xff] }
  0xab   :  { %1404 = vmatpush1.bf16.msra.mxu1 %v8712_v10  ;;  %v189_v17 = vld [vmem:[#allocation8 + $0x128] sm:$0xff]  ;;  %1361 = vmatpush1.bf16.msra.mxu0 %v8710_v36  ;;  %v188_v50 = vld [vmem:[#allocation8 + $0x120] sm:$0xff]  ;;  %v183_v7 = vld [vmem:[#allocation8 + $0xf8] sm:$0xff]  ;;  %v8725_v8 = vcombine.high %v171_v62, %v175_v1  ;;  %v8724_v13 = vcombine.low %v171_v62, %v175_v1 }
  0xac   :  { %1405 = vmatprep.subr.bf16.mxu1 %v8721_v11  ;;  %v8737_v19 = vcombine.high %v185_v16, %v189_v17  ;;  %v193_v20 = vld [vmem:[#allocation8 + $0x148] sm:$0xff]  ;;  %v8736_v22 = vcombine.low %v185_v16, %v189_v17  ;;  %1362 = vmatprep.subr.bf16.mxu0 %v8719_v39  ;;  %v8735_v54 = vcombine.high %v184_v49, %v188_v50  ;;  %v192_v58 = vld [vmem:[#allocation8 + $0x140] sm:$0xff]  ;;  %v207_v26 = vld [vmem:[#allocation8 + $0x1b8] sm:$0xff] }
  0xad   :  { %v197_v21 = vld [vmem:[#allocation8 + $0x168] sm:$0xff]  ;;  %v196_v59 = vld [vmem:[#allocation8 + $0x160] sm:$0xff]  ;;  %v8734_v63 = vcombine.low %v184_v49, %v188_v50  ;;  %v8733_v16 = vcombine.high %v179_v6, %v183_v7 }
  0xae   :  { %v8745_v25 = vcombine.high %v193_v20, %v197_v21  ;;  %v201_v29 = vld [vmem:[#allocation8 + $0x188] sm:$0xff]  ;;  %v8744_v35 = vcombine.low %v193_v20, %v197_v21  ;;  %v8743_v2 = vcombine.high %v192_v58, %v196_v59  ;;  %v200_v3 = vld [vmem:[#allocation8 + $0x180] sm:$0xff]  ;;  %v8742_v9 = vcombine.low %v192_v58, %v196_v59  ;;  %v195_v20 = vld [vmem:[#allocation8 + $0x158] sm:$0xff] }
  0xaf   :  { %1406 = vmatpush1.bf16.msra.mxu1 %v8720_v14  ;;  %v205_v30 = vld [vmem:[#allocation8 + $0x1a8] sm:$0xff]  ;;  %1363 = vmatpush1.bf16.msra.mxu0 %v8718_v44  ;;  %v204_v4 = vld [vmem:[#allocation8 + $0x1a0] sm:$0xff]  ;;  %v187_v14 = vld [vmem:[#allocation8 + $0x118] sm:$0xff] }
  0xb0   :  { %1407 = vmatprep.subr.bf16.mxu1 %v8729_v15  ;;  %v8753_v37 = vcombine.high %v201_v29, %v205_v30  ;;  %v209_v38 = vld [vmem:[#allocation8 + $0x1c8] sm:$0xff]  ;;  %v8752_v43 = vcombine.low %v201_v29, %v205_v30  ;;  %1364 = vmatprep.subr.bf16.mxu0 %v8727_v47  ;;  %v208_v10 = vld [vmem:[#allocation8 + $0x1c0] sm:$0xff]  ;;  %v8751_v12 = vcombine.high %v200_v3, %v204_v4  ;;  %v191_v15 = vld [vmem:[#allocation8 + $0x138] sm:$0xff] }
  0xb1   :  { %v213_v40 = vld [vmem:[#allocation8 + $0x1e8] sm:$0xff]  ;;  %v212_v11 = vld [vmem:[#allocation8 + $0x1e0] sm:$0xff]  ;;  %v8750_v17 = vcombine.low %v200_v3, %v204_v4  ;;  %v199_v21 = vld [vmem:[#allocation8 + $0x178] sm:$0xff]  ;;  %v8740_v24 = vcombine.low %v187_v14, %v191_v15 }
  0xb2   :  { %v8761_v45 = vcombine.high %v209_v38, %v213_v40  ;;  %v8760_v51 = vcombine.low %v209_v38, %v213_v40  ;;  %v8758_v23 = vcombine.low %v208_v10, %v212_v11  ;;  %v8749_v27 = vcombine.high %v195_v20, %v199_v21  ;;  %v211_v29 = vld [vmem:[#allocation8 + $0x1d8] sm:$0xff]  ;;  %v216_v33 = vld [vmem:[#allocation9] sm:$0xff]  ;;  %v988_v39 = vld [vmem:[#allocation6 + $0x8] sm:$0xff] }
  0xb3   :  { %1408 = vmatpush1.bf16.msra.mxu1 %v8728_v18  ;;  %1365 = vmatpush1.bf16.msra.mxu0 %v8726_v52  ;;  %v8759_v18 = vcombine.high %v208_v10, %v212_v11  ;;  %v8748_v28 = vcombine.low %v195_v20, %v199_v21  ;;  %v215_v30 = vld [vmem:[#allocation8 + $0x1f8] sm:$0xff]  ;;  %v220_v34 = vld [vmem:[#allocation9 + $0x20] sm:$0xff] }
  0xb4   :  { %1409 = vmatprep.subr.bf16.mxu1 %v8737_v19  ;;  %1366 = vmatprep.subr.bf16.mxu0 %v8735_v54  ;;  %v8732_v19 = vcombine.low %v179_v6, %v183_v7  ;;  %v8764_v36 = vcombine.low %v211_v29, %v215_v30  ;;  %v228_v38 = vld [vmem:[#allocation9 + $0x60] sm:$0xff]  ;;  %v990_v40 = vld [vmem:[#allocation6 + $0x18] sm:$0xff]  ;;  %v10664_v41 = vcombine.high %v216_v33, %v220_v34 }
  0xb5   :  { %v10666_v42 = vcombine.low %v216_v33, %v220_v34  ;;  %v10668_v44 = vpack.c.bf16 %v990_v40, %v988_v39  ;;  %v240_v47 = vld [vmem:[#allocation9 + $0xc0] sm:$0xff]  ;;  %v182_v33 = vld [vmem:[#allocation8 + $0xf0] sm:$0xff] }
  0xb6   :  { %v244_v48 = vld [vmem:[#allocation9 + $0xe0] sm:$0xff]  ;;  %v186_v40 = vld [vmem:[#allocation8 + $0x110] sm:$0xff] }
  0xb7   :  { %1410 = vmatpush1.bf16.msra.mxu1 %v8736_v22  ;;  %1367 = vmatpush1.bf16.msra.mxu0 %v8734_v63  ;;  %v8741_v22 = vcombine.high %v187_v14, %v191_v15  ;;  %v252_v52 = vld [vmem:[#allocation9 + $0x120] sm:$0xff]  ;;  %v10688_v54 = vcombine.low %v240_v47, %v244_v48 }
  0xb8   :  { %1411 = vmatprep.subr.bf16.mxu1 %v8745_v25  ;;  %1368 = vmatprep.subr.bf16.mxu0 %v8743_v2  ;;  %v203_v25 = vld [vmem:[#allocation8 + $0x198] sm:$0xff]  ;;  %v256_v55 = vld [vmem:[#allocation9 + $0x140] sm:$0xff] }
  0xb9   :  { %v8757_v31 = vcombine.high %v203_v25, %v207_v26  ;;  %v8756_v32 = vcombine.low %v203_v25, %v207_v26  ;;  %v260_v56 = vld [vmem:[#allocation9 + $0x160] sm:$0xff]  ;;  %v174_v25 = vld [vmem:[#allocation8 + $0xb0] sm:$0xff] }
  0xba   :  { %v10697_v62 = vcombine.high %v256_v55, %v260_v56  ;;  %v10700_v63 = vcombine.low %v256_v55, %v260_v56  ;;  %v272_v2 = vld [vmem:[#allocation9 + $0x1c0] sm:$0xff]  ;;  %v194_v56 = vld [vmem:[#allocation8 + $0x150] sm:$0xff] }
  0xbb   :  { %1412 = vmatpush1.bf16.msra.mxu1 %v8744_v35  ;;  %1369 = vmatpush1.bf16.msra.mxu0 %v8742_v9  ;;  %v8765_v35 = vcombine.high %v211_v29, %v215_v30  ;;  %v276_v3 = vld [vmem:[#allocation9 + $0x1e0] sm:$0xff]  ;;  %v158_v9 = vld [vmem:[#allocation8 + $0x30] sm:$0xff] }
  0xbc   :  { %1413 = vmatprep.subr.bf16.mxu1 %v8753_v37  ;;  %1370 = vmatprep.subr.bf16.mxu0 %v8751_v12  ;;  %v224_v37 = vld [vmem:[#allocation9 + $0x40] sm:$0xff]  ;;  %v10712_v10 = vcombine.low %v272_v2, %v276_v3 }
  0xbd   :  { %v10675_v46 = vcombine.low %v224_v37, %v228_v38  ;;  %v280_v6 = vld [vmem:[#allocation9 + $0x200] sm:$0xff] }
  0xbe   :  { %v284_v7 = vld [vmem:[#allocation9 + $0x220] sm:$0xff] }
  0xbf   :  { %1414 = vmatpush1.bf16.msra.mxu1 %v8752_v43  ;;  %1371 = vmatpush1.bf16.msra.mxu0 %v8750_v17  ;;  %v232_v43 = vld [vmem:[#allocation9 + $0x80] sm:$0xff]  ;;  %v166_v17 = vld [vmem:[#allocation8 + $0x70] sm:$0xff] }
  0xc0   :  { %1415 = vmatprep.subr.bf16.mxu1 %v8761_v45  ;;  %1372 = vmatprep.subr.bf16.mxu0 %v8759_v18  ;;  %v10671_v45 = vcombine.high %v224_v37, %v228_v38  ;;  %v288_v14 = vld [vmem:[#allocation9 + $0x240] sm:$0xff]  ;;  %v10718_v18 = vcombine.low %v280_v6, %v284_v7 }
  0xc1   :  { %v292_v15 = vld [vmem:[#allocation9 + $0x260] sm:$0xff] }
  0xc2   :  { %v10721_v21 = vcombine.high %v288_v14, %v292_v15  ;;  %v10724_v26 = vcombine.low %v288_v14, %v292_v15  ;;  %v304_v30 = vld [vmem:[#allocation9 + $0x2c0] sm:$0xff] }
  0xc3   :  { %1416 = vmatpush1.bf16.msra.mxu1 %v8760_v51  ;;  %1373 = vmatpush1.bf16.msra.mxu0 %v8758_v23  ;;  %v248_v51 = vld [vmem:[#allocation9 + $0x100] sm:$0xff] }
  0xc4   :  { %1487 = vmatprep.subr.bf16.mxu1 %v8709_v53  ;;  %v10685_v53 = vcombine.high %v240_v47, %v244_v48  ;;  %v10691_v58 = vcombine.high %v248_v51, %v252_v52  ;;  %v10694_v59 = vcombine.low %v248_v51, %v252_v52  ;;  %v300_v23 = vld [vmem:[#allocation9 + $0x2a0] sm:$0xff] }
  0xc5   :  { %v312_v38 = vld [vmem:[#allocation9 + $0x300] sm:$0xff] }
  0xc6   :  { %1434 = vmatmul.mubr.bf16.vlgmr.msra.gmra.mrb[0].mxu1 %v10658_v57  ;;  %1391 = vmatmul.mubr.bf16.vlgmr.msra.gmra.mrb[0].mxu0 %v10658_v57  ;;  %v316_v39 = vld [vmem:[#allocation9 + $0x320] sm:$0xff] }
  0xc7   :  { %1488 = vmatpush1.bf16.msra.mxu1 %v8708_v60  ;;  %1519 = vmatprep.mubr.bf16.mxu1 %v10484_v0  ;;  %v264_v60 = vld [vmem:[#allocation9 + $0x180] sm:$0xff]  ;;  %v10739_v51 = vcombine.high %v312_v38, %v316_v39 }
  0xc8   :  { %1489 = vmatprep.subr.bf16.mxu1 %v8717_v61  ;;  %1476 = vmatprep.mubr.bf16.mxu0 %v10484_v0  ;;  %v236_v0 = vld [vmem:[#allocation9 + $0xa0] sm:$0xff] }
  0xc9   :  { %v10679_v49 = vcombine.high %v232_v43, %v236_v0  ;;  %v10682_v50 = vcombine.low %v232_v43, %v236_v0  ;;  %v268_v61 = vld [vmem:[#allocation9 + $0x1a0] sm:$0xff]  ;;  %v190_v43 = vld [vmem:[#allocation8 + $0x130] sm:$0xff]  ;;  %15720 = vst [vmem:[#allocation26_spill] sm:$0xff] %v10739_v51 }
  0xca   :  { %v10703_v1 = vcombine.high %v264_v60, %v268_v61  ;;  %v10706_v4 = vcombine.low %v264_v60, %v268_v61  ;;  %v8738_v47 = vcombine.low %v186_v40, %v190_v43  ;;  %v8739_v48 = vcombine.high %v186_v40, %v190_v43  ;;  %v320_v52 = vld [vmem:[#allocation9 + $0x340] sm:$0xff]  ;;  %v198_v60 = vld [vmem:[#allocation8 + $0x170] sm:$0xff] }
  0xcb   :  { %1490 = vmatpush1.bf16.msra.mxu1 %v8716_v5  ;;  %v10709_v5 = vcombine.high %v272_v2, %v276_v3  ;;  %v324_v55 = vld [vmem:[#allocation9 + $0x360] sm:$0xff]  ;;  %v10742_v61 = vcombine.low %v312_v38, %v316_v39  ;;  %v8746_v2 = vcombine.low %v194_v56, %v198_v60  ;;  %v8747_v3 = vcombine.high %v194_v56, %v198_v60  ;;  %v229_v38 = vld [vmem:[#allocation9 + $0x68] sm:$0xff] }
  0xcc   :  { %1491 = vmatprep.subr.bf16.mxu1 %v8725_v8  ;;  %v154_v8 = vld [vmem:[#allocation8 + $0x10] sm:$0xff]  ;;  %v245_v56 = vld [vmem:[#allocation9 + $0xe8] sm:$0xff] }
  0xcd   :  { %v8706_v11 = vcombine.low %v154_v8, %v158_v9  ;;  %v8707_v12 = vcombine.high %v154_v8, %v158_v9  ;;  %15721 = vst [vmem:[#allocation27_spill] sm:$0xff] %v10742_v61  ;;  %v332_v8 = vld [vmem:[#allocation9 + $0x3a0] sm:$0xff]  ;;  %v202_v9 = vld [vmem:[#allocation8 + $0x190] sm:$0xff] }
  0xcf   :  { %1492 = vmatpush1.bf16.msra.mxu1 %v8724_v13  ;;  %v10715_v13 = vcombine.high %v280_v6, %v284_v7  ;;  %1444 = vmatprep.subr.bf16.mxu0 %v8707_v12  ;;  %v10745_v6 = vcombine.high %v320_v52, %v324_v55  ;;  %v328_v7 = vld [vmem:[#allocation9 + $0x380] sm:$0xff]  ;;  %v10748_v12 = vcombine.low %v320_v52, %v324_v55  ;;  %v241_v55 = vld [vmem:[#allocation9 + $0xc8] sm:$0xff] }
  0xd0   :  { %1493 = vmatprep.subr.bf16.mxu1 %v8733_v16  ;;  %1445 = vmatpush1.bf16.msra.mxu0 %v8706_v11  ;;  %v162_v16 = vld [vmem:[#allocation8 + $0x50] sm:$0xff]  ;;  %v10751_v15 = vcombine.high %v328_v7, %v332_v8 }
  0xd1   :  { %v8715_v20 = vcombine.high %v162_v16, %v166_v17  ;;  %15722 = vst [vmem:[#allocation28_spill] sm:$0xff] %v10745_v6  ;;  %v206_v11 = vld [vmem:[#allocation8 + $0x1b0] sm:$0xff]  ;;  %15723 = vst [vmem:[#allocation29_spill] sm:$0xff] %v10748_v12 }
  0xd2   :  { %v8755_v14 = vcombine.high %v202_v9, %v206_v11  ;;  %15724 = vst [vmem:[#allocation30_spill] sm:$0xff] %v10751_v15 }
  0xd3   :  { %1494 = vmatpush1.bf16.msra.mxu1 %v8732_v19  ;;  %v8714_v19 = vcombine.low %v162_v16, %v166_v17  ;;  %1446 = vmatprep.subr.bf16.mxu0 %v8715_v20  ;;  %v8754_v16 = vcombine.low %v202_v9, %v206_v11  ;;  %v336_v17 = vld [vmem:[#allocation9 + $0x3c0] sm:$0xff]  ;;  %v210_v20 = vld [vmem:[#allocation8 + $0x1d0] sm:$0xff]  ;;  %v257_v11 = vld [vmem:[#allocation9 + $0x148] sm:$0xff] }
  0xd4   :  { %1495 = vmatprep.subr.bf16.mxu1 %v8741_v22  ;;  %v296_v22 = vld [vmem:[#allocation9 + $0x280] sm:$0xff] }
  0xd5   :  { %1447 = vmatpush1.bf16.msra.mxu0 %v8714_v19  ;;  %v10727_v29 = vcombine.high %v296_v22, %v300_v23  ;;  %v10730_v34 = vcombine.low %v296_v22, %v300_v23  ;;  %v340_v19 = vld [vmem:[#allocation9 + $0x3e0] sm:$0xff]  ;;  %v214_v22 = vld [vmem:[#allocation8 + $0x1f0] sm:$0xff]  ;;  %v10754_v23 = vcombine.low %v328_v7, %v332_v8  ;;  %v253_v7 = vld [vmem:[#allocation9 + $0x128] sm:$0xff]  ;;  %v10789_v8 = vcombine.low %v241_v55, %v245_v56 }
  0xd7   :  { %1496 = vmatpush1.bf16.msra.mxu1 %v8740_v24  ;;  %v170_v24 = vld [vmem:[#allocation8 + $0x90] sm:$0xff]  ;;  %15725 = vst [vmem:[#allocation31_spill] sm:$0xff] %v10754_v23  ;;  %15735 = vst [vmem:[#allocation41_spill] sm:$0xff] %v10789_v8 }
  0xd8   :  { %1497 = vmatprep.subr.bf16.mxu1 %v8749_v27  ;;  %v8722_v27 = vcombine.low %v170_v24, %v174_v25 }
  0xdb   :  { %1498 = vmatpush1.bf16.msra.mxu1 %v8748_v28  ;;  %v8723_v28 = vcombine.high %v170_v24, %v174_v25  ;;  %v8763_v24 = vcombine.high %v210_v20, %v214_v22  ;;  %v10757_v25 = vcombine.high %v336_v17, %v340_v19 }
  0xdc   :  { %1499 = vmatprep.subr.bf16.mxu1 %v8757_v31  ;;  %v308_v31 = vld [vmem:[#allocation9 + $0x2e0] sm:$0xff] }
  0xdd   :  { %1448 = vmatprep.subr.bf16.mxu0 %v8723_v28  ;;  %v10733_v37 = vcombine.high %v304_v30, %v308_v31  ;;  %v10736_v0 = vcombine.low %v304_v30, %v308_v31  ;;  %15726 = vst [vmem:[#allocation32_spill] sm:$0xff] %v10757_v25  ;;  %v217_v28 = vld [vmem:[#allocation9 + $0x8] sm:$0xff]  ;;  %v10760_v31 = vcombine.low %v336_v17, %v340_v19 }
  0xde   :  { %1449 = vmatpush1.bf16.msra.mxu0 %v8722_v27  ;;  %v8762_v27 = vcombine.low %v210_v20, %v214_v22  ;;  %v221_v30 = vld [vmem:[#allocation9 + $0x28] sm:$0xff] }
  0xdf   :  { %1500 = vmatpush1.bf16.msra.mxu1 %v8756_v32  ;;  %v178_v32 = vld [vmem:[#allocation8 + $0xd0] sm:$0xff]  ;;  %15719 = vst [vmem:[#allocation25_spill] sm:$0xff] %v10736_v0  ;;  %15727 = vst [vmem:[#allocation33_spill] sm:$0xff] %v10760_v31  ;;  %v10769_v40 = vcombine.low %v217_v28, %v221_v30  ;;  %v265_v19 = vld [vmem:[#allocation9 + $0x188] sm:$0xff] }
  0xe0   :  { %1501 = vmatprep.subr.bf16.mxu1 %v8765_v35  ;;  %v8730_v35 = vcombine.low %v178_v32, %v182_v33  ;;  %v269_v20 = vld [vmem:[#allocation9 + $0x1a8] sm:$0xff] }
  0xe1   :  { %15729 = vst [vmem:[#allocation35_spill] sm:$0xff] %v10769_v40 }
  0xe3   :  { %1502 = vmatpush1.bf16.msra.mxu1 %v8764_v36  ;;  %v8731_v36 = vcombine.high %v178_v32, %v182_v33  ;;  %v987_v32 = vld [vmem:[#allocation6] sm:$0xff]  ;;  %v989_v33 = vld [vmem:[#allocation6 + $0x10] sm:$0xff] }
  0xe4   :  { %2204 = vmatprep.subr.bf16.mxu1 %v10664_v41  ;;  %v10766_v39 = vpack.c.bf16 %v989_v33, %v987_v32  ;;  %v281_v33 = vld [vmem:[#allocation9 + $0x208] sm:$0xff] }
  0xe5   :  { %1450 = vmatprep.subr.bf16.mxu0 %v8731_v36  ;;  %v225_v36 = vld [vmem:[#allocation9 + $0x48] sm:$0xff] }
  0xe6   :  { %1520 = vmatmul.mubr.bf16.vlgmr.msra.gmra.mrb[4].mxu1 %v10658_v57  ;;  %1451 = vmatpush1.bf16.msra.mxu0 %v8730_v35  ;;  %v10763_v35 = vcombine.high %v217_v28, %v221_v30  ;;  %v10772_v43 = vcombine.high %v225_v36, %v229_v38  ;;  %v10776_v52 = vcombine.low %v225_v36, %v229_v38  ;;  %v277_v28 = vld [vmem:[#allocation9 + $0x1e8] sm:$0xff] }
  0xe7   :  { %2205 = vmatpush1.bf16.msra.mxu1 %v10666_v42  ;;  %2236 = vmatprep.mubr.bf16.mxu1 %v10668_v44  ;;  %v10807_v30 = vcombine.low %v265_v19, %v269_v20  ;;  %v285_v36 = vld [vmem:[#allocation9 + $0x228] sm:$0xff] }
  0xe8   :  { %2206 = vmatprep.subr.bf16.mxu1 %v10671_v45  ;;  %1452 = vmatprep.subr.bf16.mxu0 %v8739_v48  ;;  %15728 = vst [vmem:[#allocation34_spill] sm:$0xff] %v10763_v35  ;;  %15730 = vst [vmem:[#allocation36_spill] sm:$0xff] %v10772_v43  ;;  %v237_v48 = vld [vmem:[#allocation9 + $0xa8] sm:$0xff] }
  0xe9   :  { %15731 = vst [vmem:[#allocation37_spill] sm:$0xff] %v10776_v52  ;;  %15741 = vst [vmem:[#allocation47_spill] sm:$0xff] %v10807_v30  ;;  %v344_v38 = vld [vmem:[#allocation12] sm:$0xff] }
  0xea   :  { %1453 = vmatpush1.bf16.msra.mxu0 %v8738_v47  ;;  %v233_v47 = vld [vmem:[#allocation9 + $0x88] sm:$0xff] }
  0xeb   :  { %2207 = vmatpush1.bf16.msra.mxu1 %v10675_v46  ;;  %1454 = vmatprep.subr.bf16.mxu0 %v8747_v3  ;;  %v10783_v60 = vcombine.low %v233_v47, %v237_v48  ;;  %v249_v3 = vld [vmem:[#allocation9 + $0x108] sm:$0xff] }
  0xec   :  { %2208 = vmatprep.subr.bf16.mxu1 %v10679_v49  ;;  %v10792_v9 = vcombine.high %v249_v3, %v253_v7 }
  0xed   :  { %15733 = vst [vmem:[#allocation39_spill] sm:$0xff] %v10783_v60 }
  0xee   :  { %1455 = vmatpush1.bf16.msra.mxu0 %v8746_v2  ;;  %v10786_v2 = vcombine.high %v241_v55, %v245_v56  ;;  %15736 = vst [vmem:[#allocation42_spill] sm:$0xff] %v10792_v9 }
  0xef   :  { %2209 = vmatpush1.bf16.msra.mxu1 %v10682_v50  ;;  %1456 = vmatprep.subr.bf16.mxu0 %v8755_v14  ;;  %v261_v14 = vld [vmem:[#allocation9 + $0x168] sm:$0xff] }
  0xf0   :  { %2210 = vmatprep.subr.bf16.mxu1 %v10685_v53  ;;  %15734 = vst [vmem:[#allocation40_spill] sm:$0xff] %v10786_v2  ;;  %v10798_v17 = vcombine.high %v257_v11, %v261_v14  ;;  %v10801_v22 = vcombine.low %v257_v11, %v261_v14  ;;  %v293_v11 = vld [vmem:[#allocation9 + $0x268] sm:$0xff] }
  0xf1   :  { %v352_v14 = vld [vmem:[#allocation12 + $0x40] sm:$0xff] }
  0xf2   :  { %1457 = vmatpush1.bf16.msra.mxu0 %v8754_v16  ;;  %v10795_v16 = vcombine.low %v249_v3, %v253_v7  ;;  %15738 = vst [vmem:[#allocation44_spill] sm:$0xff] %v10798_v17  ;;  %15739 = vst [vmem:[#allocation45_spill] sm:$0xff] %v10801_v22  ;;  %v10820_v3 = vcombine.high %v281_v33, %v285_v36  ;;  %v289_v7 = vld [vmem:[#allocation9 + $0x248] sm:$0xff] }
  0xf3   :  { %2211 = vmatpush1.bf16.msra.mxu1 %v10688_v54  ;;  %1458 = vmatprep.subr.bf16.mxu0 %v8763_v24  ;;  %v10804_v24 = vcombine.high %v265_v19, %v269_v20  ;;  %v356_v19 = vld [vmem:[#allocation12 + $0x60] sm:$0xff]  ;;  %v10825_v20 = vcombine.low %v281_v33, %v285_v36  ;;  %v10837_v33 = vcombine.low %v289_v7, %v293_v11 }
  0xf4   :  { %2212 = vmatprep.subr.bf16.mxu1 %v10691_v58  ;;  %15737 = vst [vmem:[#allocation43_spill] sm:$0xff] %v10795_v16  ;;  %15746 = vst [vmem:[#allocation52_spill] sm:$0xff] %v10820_v3 }
  0xf5   :  { %15740 = vst [vmem:[#allocation46_spill] sm:$0xff] %v10804_v24  ;;  %15747 = vst [vmem:[#allocation53_spill] sm:$0xff] %v10825_v20 }
  0xf6   :  { %1459 = vmatpush1.bf16.msra.mxu0 %v8762_v27  ;;  %v273_v27 = vld [vmem:[#allocation9 + $0x1c8] sm:$0xff]  ;;  %15751 = vst [vmem:[#allocation57_spill] sm:$0xff] %v10837_v33 }
  0xf7   :  { %2213 = vmatpush1.bf16.msra.mxu1 %v10694_v59  ;;  %v10810_v32 = vcombine.high %v273_v27, %v277_v28 }
  0xf8   :  { %2214 = vmatprep.subr.bf16.mxu1 %v10697_v62 }
  0xf9   :  { %1477 = vmatmul.mubr.bf16.vlgmr.msra.gmra.mrb[4].mxu0 %v10658_v57  ;;  %v10780_v57 = vcombine.high %v233_v47, %v237_v48  ;;  %15742 = vst [vmem:[#allocation48_spill] sm:$0xff] %v10810_v32  ;;  %v348_v47 = vld [vmem:[#allocation12 + $0x20] sm:$0xff]  ;;  %v10813_v48 = vcombine.low %v273_v27, %v277_v28  ;;  %v10827_v27 = vcombine.low %v352_v14, %v356_v19 }
  0xfa   :  { %v10815_v55 = vcombine.low %v344_v38, %v348_v47  ;;  %v10817_v56 = vcombine.high %v344_v38, %v348_v47  ;;  %v10829_v28 = vcombine.high %v352_v14, %v356_v19  ;;  %v10832_v38 = vcombine.high %v289_v7, %v293_v11  ;;  %v297_v47 = vld [vmem:[#allocation9 + $0x288] sm:$0xff] }
  0xfb   :  { %2215 = vmatpush1.bf16.msra.mxu1 %v10700_v63  ;;  %15732 = vst [vmem:[#allocation38_spill] sm:$0xff] %v10780_v57  ;;  %15743 = vst [vmem:[#allocation49_spill] sm:$0xff] %v10813_v48 }
  0xfc   :  { %2216 = vmatprep.subr.bf16.mxu1 %v10703_v1  ;;  %15744 = vst [vmem:[#allocation50_spill] sm:$0xff] %v10815_v55  ;;  %15745 = vst [vmem:[#allocation51_spill] sm:$0xff] %v10817_v56  ;;  %5001 = vmatprep.subr.bf16.mxu0 %v10817_v56 }
  0xfd   :  { %5002 = vmatpush1.bf16.msra.mxu0 %v10815_v55  ;;  %15748 = vst [vmem:[#allocation54_spill] sm:$0xff] %v10827_v27  ;;  %15749 = vst [vmem:[#allocation55_spill] sm:$0xff] %v10829_v28  ;;  %v397_v55 = vld [vmem:[#allocation12 + $0x1a8] sm:$0xff] }
  0xfe   :  { %15750 = vst [vmem:[#allocation56_spill] sm:$0xff] %v10832_v38  ;;  %5003 = vmatprep.subr.bf16.mxu0 %v10829_v28  ;;  %v393_v28 = vld [vmem:[#allocation12 + $0x188] sm:$0xff] }
  0xff   :  { %2217 = vmatpush1.bf16.msra.mxu1 %v10706_v4 }
 0x100   :  { %2218 = vmatprep.subr.bf16.mxu1 %v10709_v5 }
 0x101   :  { %5004 = vmatpush1.bf16.msra.mxu0 %v10827_v27  ;;  %v303_v27 = vld [vmem:[#allocation9 + $0x2b8] sm:$0xff] }
 0x103   :  { %2219 = vmatpush1.bf16.msra.mxu1 %v10712_v10 }
 0x104   :  { %2220 = vmatprep.subr.bf16.mxu1 %v10715_v13 }
 0x107   :  { %2221 = vmatpush1.bf16.msra.mxu1 %v10718_v18 }
 0x108   :  { %2222 = vmatprep.subr.bf16.mxu1 %v10721_v21 }
 0x10b   :  { %2223 = vmatpush1.bf16.msra.mxu1 %v10724_v26 }
 0x10c   :  { %2224 = vmatprep.subr.bf16.mxu1 %v10727_v29 }
 0x10f   :  { %2225 = vmatpush1.bf16.msra.mxu1 %v10730_v34 }
 0x110   :  { %2226 = vmatprep.subr.bf16.mxu1 %v10733_v37 }
 0x113   :  { %2227 = vmatpush1.bf16.msra.mxu1 %v10736_v0  ;;  %v413_v0 = vld [vmem:[#allocation12 + $0x228] sm:$0xff] }
 0x114   :  { %2228 = vmatprep.subr.bf16.mxu1 %v10739_v51  ;;  %v409_v51 = vld [vmem:[#allocation12 + $0x208] sm:$0xff] }
 0x117   :  { %2229 = vmatpush1.bf16.msra.mxu1 %v10742_v61 }
 0x118   :  { %2230 = vmatprep.subr.bf16.mxu1 %v10745_v6 }
 0x11b   :  { %2231 = vmatpush1.bf16.msra.mxu1 %v10748_v12 }
 0x11c   :  { %2232 = vmatprep.subr.bf16.mxu1 %v10751_v15  ;;  %v405_v15 = vld [vmem:[#allocation12 + $0x1e8] sm:$0xff] }
 0x11f   :  { %2233 = vmatpush1.bf16.msra.mxu1 %v10754_v23  ;;  %v401_v23 = vld [vmem:[#allocation12 + $0x1c8] sm:$0xff] }
 0x120   :  { %2234 = vmatprep.subr.bf16.mxu1 %v10757_v25  ;;  %v11264_v61 = vcombine.high %v401_v23, %v405_v15 }
 0x122   :  { %15876 = vst [vmem:[#allocation182_spill] sm:$0xff] %v11264_v61 }
 0x123   :  { %2235 = vmatpush1.bf16.msra.mxu1 %v10760_v31 }
 0x124   :  { %2247 = vmatprep.subr.bf16.mxu1 %v10763_v35 }
 0x126   :  { %2237 = vmatmul.mubr.bf16.vlgmr.msra.gmra.mrb[8].mxu1 %v10766_v39 }
 0x127   :  { %2248 = vmatpush1.bf16.msra.mxu1 %v10769_v40  ;;  %2279 = vmatprep.mubr.bf16.mxu1 %v10668_v44  ;;  %v408_v40 = vld [vmem:[#allocation12 + $0x200] sm:$0xff] }
 0x128   :  { %2249 = vmatprep.subr.bf16.mxu1 %v10772_v43  ;;  %v404_v43 = vld [vmem:[#allocation12 + $0x1e0] sm:$0xff] }
 0x12b   :  { %2250 = vmatpush1.bf16.msra.mxu1 %v10776_v52  ;;  %v400_v52 = vld [vmem:[#allocation12 + $0x1c0] sm:$0xff] }
 0x12c   :  { %2251 = vmatprep.subr.bf16.mxu1 %v10780_v57  ;;  %v396_v57 = vld [vmem:[#allocation12 + $0x1a0] sm:$0xff] }
 0x12f   :  { %2252 = vmatpush1.bf16.msra.mxu1 %v10783_v60  ;;  %v392_v60 = vld [vmem:[#allocation12 + $0x180] sm:$0xff] }
 0x130   :  { %2253 = vmatprep.subr.bf16.mxu1 %v10786_v2  ;;  %v388_v2 = vld [vmem:[#allocation12 + $0x160] sm:$0xff] }
 0x133   :  { %2254 = vmatpush1.bf16.msra.mxu1 %v10789_v8  ;;  %v384_v8 = vld [vmem:[#allocation12 + $0x140] sm:$0xff] }
 0x134   :  { %2255 = vmatprep.subr.bf16.mxu1 %v10792_v9  ;;  %v380_v9 = vld [vmem:[#allocation12 + $0x120] sm:$0xff] }
 0x137   :  { %2256 = vmatpush1.bf16.msra.mxu1 %v10795_v16  ;;  %v376_v16 = vld [vmem:[#allocation12 + $0x100] sm:$0xff] }
 0x138   :  { %2257 = vmatprep.subr.bf16.mxu1 %v10798_v17  ;;  %v372_v17 = vld [vmem:[#allocation12 + $0xe0] sm:$0xff] }
 0x13b   :  { %2258 = vmatpush1.bf16.msra.mxu1 %v10801_v22  ;;  %v368_v22 = vld [vmem:[#allocation12 + $0xc0] sm:$0xff] }
 0x13c   :  { %2259 = vmatprep.subr.bf16.mxu1 %v10804_v24  ;;  %v364_v24 = vld [vmem:[#allocation12 + $0xa0] sm:$0xff]  ;;  %v10851_v11 = vcombine.low %v368_v22, %v372_v17 }
 0x13e   :  { %15756 = vst [vmem:[#allocation62_spill] sm:$0xff] %v10851_v11 }
 0x13f   :  { %2260 = vmatpush1.bf16.msra.mxu1 %v10807_v30  ;;  %v360_v30 = vld [vmem:[#allocation12 + $0x80] sm:$0xff] }
 0x140   :  { %2261 = vmatprep.subr.bf16.mxu1 %v10810_v32  ;;  %v301_v32 = vld [vmem:[#allocation9 + $0x2a8] sm:$0xff]  ;;  %v10839_v36 = vcombine.low %v360_v30, %v364_v24  ;;  %v10841_v14 = vcombine.high %v360_v30, %v364_v24  ;;  %v10853_v24 = vcombine.high %v368_v22, %v372_v17  ;;  %v10865_v17 = vcombine.high %v376_v16, %v380_v9 }
 0x141   :  { %v10844_v19 = vcombine.high %v297_v47, %v301_v32  ;;  %v10849_v7 = vcombine.low %v297_v47, %v301_v32  ;;  %v10863_v47 = vcombine.low %v376_v16, %v380_v9  ;;  %v10877_v9 = vcombine.high %v384_v8, %v388_v2 }
 0x142   :  { %15752 = vst [vmem:[#allocation58_spill] sm:$0xff] %v10839_v36  ;;  %15753 = vst [vmem:[#allocation59_spill] sm:$0xff] %v10841_v14  ;;  %5005 = vmatprep.subr.bf16.mxu0 %v10841_v14  ;;  %v291_v14 = vld [vmem:[#allocation9 + $0x258] sm:$0xff] }
 0x143   :  { %2262 = vmatpush1.bf16.msra.mxu1 %v10813_v48  ;;  %15754 = vst [vmem:[#allocation60_spill] sm:$0xff] %v10844_v19  ;;  %v309_v48 = vld [vmem:[#allocation9 + $0x2e8] sm:$0xff]  ;;  %5006 = vmatpush1.bf16.msra.mxu0 %v10839_v36  ;;  %15755 = vst [vmem:[#allocation61_spill] sm:$0xff] %v10849_v7 }
 0x144   :  { %2263 = vmatprep.subr.bf16.mxu1 %v10820_v3  ;;  %v305_v3 = vld [vmem:[#allocation9 + $0x2c8] sm:$0xff]  ;;  %15757 = vst [vmem:[#allocation63_spill] sm:$0xff] %v10853_v24  ;;  %5007 = vmatprep.subr.bf16.mxu0 %v10853_v24  ;;  %15760 = vst [vmem:[#allocation66_spill] sm:$0xff] %v10863_v47 }
 0x145   :  { %v10856_v30 = vcombine.high %v305_v3, %v309_v48  ;;  %v10861_v32 = vcombine.low %v305_v3, %v309_v48  ;;  %15761 = vst [vmem:[#allocation67_spill] sm:$0xff] %v10865_v17  ;;  %v10875_v3 = vcombine.low %v384_v8, %v388_v2  ;;  %15765 = vst [vmem:[#allocation71_spill] sm:$0xff] %v10877_v9 }
 0x146   :  { %v10889_v2 = vcombine.high %v392_v60, %v396_v57 }
 0x147   :  { %2264 = vmatpush1.bf16.msra.mxu1 %v10825_v20  ;;  %15758 = vst [vmem:[#allocation64_spill] sm:$0xff] %v10856_v30  ;;  %v317_v20 = vld [vmem:[#allocation9 + $0x328] sm:$0xff]  ;;  %5008 = vmatpush1.bf16.msra.mxu0 %v10851_v11  ;;  %15759 = vst [vmem:[#allocation65_spill] sm:$0xff] %v10861_v32  ;;  %v271_v11 = vld [vmem:[#allocation9 + $0x1b8] sm:$0xff] }
 0x148   :  { %2265 = vmatprep.subr.bf16.mxu1 %v10832_v38  ;;  %v313_v38 = vld [vmem:[#allocation9 + $0x308] sm:$0xff]  ;;  %5009 = vmatprep.subr.bf16.mxu0 %v10865_v17  ;;  %15764 = vst [vmem:[#allocation70_spill] sm:$0xff] %v10875_v3  ;;  %15769 = vst [vmem:[#allocation75_spill] sm:$0xff] %v10889_v2  ;;  %v267_v17 = vld [vmem:[#allocation9 + $0x198] sm:$0xff] }
 0x149   :  { %v10868_v22 = vcombine.high %v313_v38, %v317_v20  ;;  %v10873_v48 = vcombine.low %v313_v38, %v317_v20  ;;  %v10887_v38 = vcombine.low %v392_v60, %v396_v57  ;;  %v10901_v57 = vcombine.high %v400_v52, %v404_v43 }
 0x14b   :  { %2266 = vmatpush1.bf16.msra.mxu1 %v10837_v33  ;;  %15762 = vst [vmem:[#allocation68_spill] sm:$0xff] %v10868_v22  ;;  %v325_v33 = vld [vmem:[#allocation9 + $0x368] sm:$0xff]  ;;  %5010 = vmatpush1.bf16.msra.mxu0 %v10863_v47  ;;  %15763 = vst [vmem:[#allocation69_spill] sm:$0xff] %v10873_v48 }
 0x14c   :  { %2267 = vmatprep.subr.bf16.mxu1 %v10844_v19  ;;  %v321_v19 = vld [vmem:[#allocation9 + $0x348] sm:$0xff]  ;;  %5011 = vmatprep.subr.bf16.mxu0 %v10877_v9  ;;  %15768 = vst [vmem:[#allocation74_spill] sm:$0xff] %v10887_v38  ;;  %15773 = vst [vmem:[#allocation79_spill] sm:$0xff] %v10901_v57  ;;  %v239_v9 = vld [vmem:[#allocation9 + $0xb8] sm:$0xff] }
 0x14d   :  { %v10880_v16 = vcombine.high %v321_v19, %v325_v33  ;;  %v10885_v20 = vcombine.low %v321_v19, %v325_v33  ;;  %v10899_v19 = vcombine.low %v400_v52, %v404_v43 }
 0x14f   :  { %2268 = vmatpush1.bf16.msra.mxu1 %v10849_v7  ;;  %15766 = vst [vmem:[#allocation72_spill] sm:$0xff] %v10880_v16  ;;  %v333_v7 = vld [vmem:[#allocation9 + $0x3a8] sm:$0xff]  ;;  %5012 = vmatpush1.bf16.msra.mxu0 %v10875_v3  ;;  %15767 = vst [vmem:[#allocation73_spill] sm:$0xff] %v10885_v20  ;;  %v227_v3 = vld [vmem:[#allocation9 + $0x58] sm:$0xff] }
 0x150   :  { %2269 = vmatprep.subr.bf16.mxu1 %v10856_v30  ;;  %v329_v30 = vld [vmem:[#allocation9 + $0x388] sm:$0xff]  ;;  %5013 = vmatprep.subr.bf16.mxu0 %v10889_v2  ;;  %15772 = vst [vmem:[#allocation78_spill] sm:$0xff] %v10899_v19 }
 0x151   :  { %v10892_v8 = vcombine.high %v329_v30, %v333_v7  ;;  %v10897_v33 = vcombine.low %v329_v30, %v333_v7 }
 0x153   :  { %2270 = vmatpush1.bf16.msra.mxu1 %v10861_v32  ;;  %15770 = vst [vmem:[#allocation76_spill] sm:$0xff] %v10892_v8  ;;  %v341_v32 = vld [vmem:[#allocation9 + $0x3e8] sm:$0xff]  ;;  %5014 = vmatpush1.bf16.msra.mxu0 %v10887_v38  ;;  %15771 = vst [vmem:[#allocation77_spill] sm:$0xff] %v10897_v33 }
 0x154   :  { %2271 = vmatprep.subr.bf16.mxu1 %v10868_v22  ;;  %v337_v22 = vld [vmem:[#allocation9 + $0x3c8] sm:$0xff]  ;;  %5015 = vmatprep.subr.bf16.mxu0 %v10901_v57 }
 0x155   :  { %v10904_v60 = vcombine.high %v337_v22, %v341_v32  ;;  %v412_v38 = vld [vmem:[#allocation12 + $0x220] sm:$0xff]  ;;  %v10909_v7 = vcombine.low %v337_v22, %v341_v32 }
 0x156   :  { %v10911_v30 = vcombine.low %v408_v40, %v412_v38  ;;  %v10913_v43 = vcombine.high %v408_v40, %v412_v38  ;;  %v420_v57 = vld [vmem:[#allocation12 + $0x260] sm:$0xff] }
 0x157   :  { %2272 = vmatpush1.bf16.msra.mxu1 %v10873_v48  ;;  %15774 = vst [vmem:[#allocation80_spill] sm:$0xff] %v10904_v60  ;;  %v222_v48 = vld [vmem:[#allocation9 + $0x30] sm:$0xff]  ;;  %5016 = vmatpush1.bf16.msra.mxu0 %v10899_v19  ;;  %15775 = vst [vmem:[#allocation81_spill] sm:$0xff] %v10909_v7  ;;  %v416_v19 = vld [vmem:[#allocation12 + $0x240] sm:$0xff] }
 0x158   :  { %2273 = vmatprep.subr.bf16.mxu1 %v10880_v16  ;;  %v218_v16 = vld [vmem:[#allocation9 + $0x10] sm:$0xff]  ;;  %15776 = vst [vmem:[#allocation82_spill] sm:$0xff] %v10911_v30  ;;  %15777 = vst [vmem:[#allocation83_spill] sm:$0xff] %v10913_v43  ;;  %5017 = vmatprep.subr.bf16.mxu0 %v10913_v43  ;;  %v10923_v22 = vcombine.low %v416_v19, %v420_v57  ;;  %v10925_v40 = vcombine.high %v416_v19, %v420_v57 }
 0x159   :  { %v10916_v52 = vcombine.high %v218_v16, %v222_v48  ;;  %v10921_v32 = vcombine.low %v218_v16, %v222_v48  ;;  %v254_v43 = vld [vmem:[#allocation9 + $0x130] sm:$0xff] }
 0x15a   :  { %15780 = vst [vmem:[#allocation86_spill] sm:$0xff] %v10923_v22  ;;  %15781 = vst [vmem:[#allocation87_spill] sm:$0xff] %v10925_v40 }
 0x15b   :  { %2274 = vmatpush1.bf16.msra.mxu1 %v10885_v20  ;;  %15778 = vst [vmem:[#allocation84_spill] sm:$0xff] %v10916_v52  ;;  %v230_v20 = vld [vmem:[#allocation9 + $0x70] sm:$0xff]  ;;  %5018 = vmatpush1.bf16.msra.mxu0 %v10911_v30  ;;  %15779 = vst [vmem:[#allocation85_spill] sm:$0xff] %v10921_v32  ;;  %v424_v30 = vld [vmem:[#allocation12 + $0x280] sm:$0xff] }
 0x15c   :  { %2275 = vmatprep.subr.bf16.mxu1 %v10892_v8  ;;  %v226_v8 = vld [vmem:[#allocation9 + $0x50] sm:$0xff]  ;;  %5019 = vmatprep.subr.bf16.mxu0 %v10925_v40 }
 0x15d   :  { %v10928_v38 = vcombine.high %v226_v8, %v230_v20  ;;  %v10934_v48 = vcombine.low %v226_v8, %v230_v20  ;;  %v246_v40 = vld [vmem:[#allocation9 + $0xf0] sm:$0xff] }
 0x15f   :  { %2276 = vmatpush1.bf16.msra.mxu1 %v10897_v33  ;;  %15782 = vst [vmem:[#allocation88_spill] sm:$0xff] %v10928_v38  ;;  %v238_v33 = vld [vmem:[#allocation9 + $0xb0] sm:$0xff]  ;;  %5020 = vmatpush1.bf16.msra.mxu0 %v10923_v22  ;;  %15783 = vst [vmem:[#allocation89_spill] sm:$0xff] %v10934_v48  ;;  %v432_v22 = vld [vmem:[#allocation12 + $0x2c0] sm:$0xff] }
 0x160   :  { %2277 = vmatprep.subr.bf16.mxu1 %v10904_v60  ;;  %v234_v60 = vld [vmem:[#allocation9 + $0x90] sm:$0xff] }
 0x161   :  { %v10942_v57 = vcombine.high %v234_v60, %v238_v33  ;;  %v10947_v20 = vcombine.low %v234_v60, %v238_v33 }
 0x163   :  { %2278 = vmatpush1.bf16.msra.mxu1 %v10909_v7  ;;  %v428_v7 = vld [vmem:[#allocation12 + $0x2a0] sm:$0xff]  ;;  %15786 = vst [vmem:[#allocation92_spill] sm:$0xff] %v10942_v57  ;;  %15787 = vst [vmem:[#allocation93_spill] sm:$0xff] %v10947_v20 }
 0x164   :  { %2290 = vmatprep.subr.bf16.mxu1 %v10916_v52  ;;  %v10937_v16 = vcombine.low %v424_v30, %v428_v7  ;;  %v10939_v19 = vcombine.high %v424_v30, %v428_v7  ;;  %v242_v52 = vld [vmem:[#allocation9 + $0xd0] sm:$0xff] }
 0x165   :  { %v10954_v30 = vcombine.high %v242_v52, %v246_v40  ;;  %v10959_v33 = vcombine.low %v242_v52, %v246_v40 }
 0x166   :  { %2280 = vmatmul.mubr.bf16.vlgmr.msra.gmra.mrb[12].mxu1 %v10766_v39  ;;  %15784 = vst [vmem:[#allocation90_spill] sm:$0xff] %v10937_v16  ;;  %15785 = vst [vmem:[#allocation91_spill] sm:$0xff] %v10939_v19  ;;  %5021 = vmatprep.subr.bf16.mxu0 %v10939_v19  ;;  %v444_v19 = vld [vmem:[#allocation12 + $0x320] sm:$0xff] }
 0x167   :  { %2291 = vmatpush1.bf16.msra.mxu1 %v10921_v32  ;;  %2322 = vmatprep.mubr.bf16.mxu1 %v10668_v44  ;;  %v436_v32 = vld [vmem:[#allocation12 + $0x2e0] sm:$0xff]  ;;  %15790 = vst [vmem:[#allocation96_spill] sm:$0xff] %v10954_v30  ;;  %15791 = vst [vmem:[#allocation97_spill] sm:$0xff] %v10959_v33 }
 0x168   :  { %2292 = vmatprep.subr.bf16.mxu1 %v10928_v38  ;;  %5022 = vmatpush1.bf16.msra.mxu0 %v10937_v16  ;;  %v10949_v8 = vcombine.low %v432_v22, %v436_v32  ;;  %v10951_v7 = vcombine.high %v432_v22, %v436_v32  ;;  %v250_v38 = vld [vmem:[#allocation9 + $0x110] sm:$0xff]  ;;  %v440_v16 = vld [vmem:[#allocation12 + $0x300] sm:$0xff] }
 0x169   :  { %v10961_v60 = vcombine.low %v440_v16, %v444_v19  ;;  %v10963_v32 = vcombine.high %v440_v16, %v444_v19  ;;  %v10966_v22 = vcombine.high %v250_v38, %v254_v43  ;;  %v10971_v52 = vcombine.low %v250_v38, %v254_v43 }
 0x16a   :  { %15788 = vst [vmem:[#allocation94_spill] sm:$0xff] %v10949_v8  ;;  %15789 = vst [vmem:[#allocation95_spill] sm:$0xff] %v10951_v7  ;;  %5023 = vmatprep.subr.bf16.mxu0 %v10951_v7  ;;  %v452_v7 = vld [vmem:[#allocation12 + $0x360] sm:$0xff] }
 0x16b   :  { %2293 = vmatpush1.bf16.msra.mxu1 %v10934_v48  ;;  %15792 = vst [vmem:[#allocation98_spill] sm:$0xff] %v10961_v60  ;;  %15793 = vst [vmem:[#allocation99_spill] sm:$0xff] %v10963_v32  ;;  %v262_v48 = vld [vmem:[#allocation9 + $0x170] sm:$0xff] }
 0x16c   :  { %2294 = vmatprep.subr.bf16.mxu1 %v10942_v57  ;;  %5024 = vmatpush1.bf16.msra.mxu0 %v10949_v8  ;;  %15794 = vst [vmem:[#allocation100_spill] sm:$0xff] %v10966_v22  ;;  %v258_v57 = vld [vmem:[#allocation9 + $0x150] sm:$0xff]  ;;  %v448_v8 = vld [vmem:[#allocation12 + $0x340] sm:$0xff]  ;;  %15795 = vst [vmem:[#allocation101_spill] sm:$0xff] %v10971_v52 }
 0x16d   :  { %5025 = vmatprep.subr.bf16.mxu0 %v10963_v32  ;;  %v10973_v40 = vcombine.low %v448_v8, %v452_v7  ;;  %v10975_v16 = vcombine.high %v448_v8, %v452_v7  ;;  %v10978_v19 = vcombine.high %v258_v57, %v262_v48  ;;  %v460_v32 = vld [vmem:[#allocation12 + $0x3a0] sm:$0xff]  ;;  %v10983_v43 = vcombine.low %v258_v57, %v262_v48 }
 0x16f   :  { %2295 = vmatpush1.bf16.msra.mxu1 %v10947_v20  ;;  %15796 = vst [vmem:[#allocation102_spill] sm:$0xff] %v10973_v40  ;;  %15797 = vst [vmem:[#allocation103_spill] sm:$0xff] %v10975_v16  ;;  %v270_v20 = vld [vmem:[#allocation9 + $0x1b0] sm:$0xff] }
 0x170   :  { %2296 = vmatprep.subr.bf16.mxu1 %v10954_v30  ;;  %5026 = vmatpush1.bf16.msra.mxu0 %v10961_v60  ;;  %15798 = vst [vmem:[#allocation104_spill] sm:$0xff] %v10978_v19  ;;  %v266_v30 = vld [vmem:[#allocation9 + $0x190] sm:$0xff]  ;;  %v456_v60 = vld [vmem:[#allocation12 + $0x380] sm:$0xff]  ;;  %15799 = vst [vmem:[#allocation105_spill] sm:$0xff] %v10983_v43 }
 0x171   :  { %5027 = vmatprep.subr.bf16.mxu0 %v10975_v16  ;;  %v10985_v38 = vcombine.high %v456_v60, %v460_v32  ;;  %v10988_v8 = vcombine.high %v266_v30, %v270_v20  ;;  %v10990_v7 = vcombine.low %v456_v60, %v460_v32  ;;  %v468_v16 = vld [vmem:[#allocation12 + $0x3e0] sm:$0xff]  ;;  %v10995_v48 = vcombine.low %v266_v30, %v270_v20  ;;  %v282_v32 = vld [vmem:[#allocation9 + $0x210] sm:$0xff] }
 0x173   :  { %2297 = vmatpush1.bf16.msra.mxu1 %v10959_v33  ;;  %15800 = vst [vmem:[#allocation106_spill] sm:$0xff] %v10985_v38  ;;  %15801 = vst [vmem:[#allocation107_spill] sm:$0xff] %v10988_v8  ;;  %v278_v33 = vld [vmem:[#allocation9 + $0x1f0] sm:$0xff] }
 0x174   :  { %2298 = vmatprep.subr.bf16.mxu1 %v10966_v22  ;;  %5028 = vmatpush1.bf16.msra.mxu0 %v10973_v40  ;;  %15802 = vst [vmem:[#allocation108_spill] sm:$0xff] %v10990_v7  ;;  %v274_v22 = vld [vmem:[#allocation9 + $0x1d0] sm:$0xff]  ;;  %v464_v40 = vld [vmem:[#allocation12 + $0x3c0] sm:$0xff]  ;;  %15803 = vst [vmem:[#allocation109_spill] sm:$0xff] %v10995_v48 }
 0x175   :  { %5029 = vmatprep.subr.bf16.mxu0 %v10985_v38  ;;  %v10997_v57 = vcombine.high %v464_v40, %v468_v16  ;;  %v11002_v60 = vcombine.low %v464_v40, %v468_v16  ;;  %v476_v38 = vld [vmem:[#allocation12 + $0x420] sm:$0xff]  ;;  %v11007_v20 = vcombine.low %v274_v22, %v278_v33  ;;  %v290_v16 = vld [vmem:[#allocation9 + $0x250] sm:$0xff] }
 0x177   :  { %2299 = vmatpush1.bf16.msra.mxu1 %v10971_v52  ;;  %15804 = vst [vmem:[#allocation110_spill] sm:$0xff] %v10997_v57  ;;  %15806 = vst [vmem:[#allocation112_spill] sm:$0xff] %v11002_v60  ;;  %v286_v52 = vld [vmem:[#allocation9 + $0x230] sm:$0xff] }
 0x178   :  { %2300 = vmatprep.subr.bf16.mxu1 %v10978_v19  ;;  %5030 = vmatpush1.bf16.msra.mxu0 %v10990_v7  ;;  %v11000_v19 = vcombine.high %v274_v22, %v278_v33  ;;  %v472_v7 = vld [vmem:[#allocation12 + $0x400] sm:$0xff]  ;;  %15807 = vst [vmem:[#allocation113_spill] sm:$0xff] %v11007_v20  ;;  %v298_v22 = vld [vmem:[#allocation9 + $0x290] sm:$0xff] }
 0x179   :  { %5031 = vmatprep.subr.bf16.mxu0 %v10997_v57  ;;  %v11009_v30 = vcombine.high %v472_v7, %v476_v38  ;;  %v11014_v40 = vcombine.low %v472_v7, %v476_v38  ;;  %v306_v7 = vld [vmem:[#allocation9 + $0x2d0] sm:$0xff] }
 0x17a   :  { %15805 = vst [vmem:[#allocation111_spill] sm:$0xff] %v11000_v19 }
 0x17b   :  { %2301 = vmatpush1.bf16.msra.mxu1 %v10983_v43  ;;  %15808 = vst [vmem:[#allocation114_spill] sm:$0xff] %v11009_v30  ;;  %15810 = vst [vmem:[#allocation116_spill] sm:$0xff] %v11014_v40  ;;  %v294_v43 = vld [vmem:[#allocation9 + $0x270] sm:$0xff] }
 0x17c   :  { %2302 = vmatprep.subr.bf16.mxu1 %v10988_v8  ;;  %5032 = vmatpush1.bf16.msra.mxu0 %v11002_v60  ;;  %v11012_v8 = vcombine.high %v282_v32, %v286_v52  ;;  %v11018_v60 = vcombine.low %v282_v32, %v286_v52  ;;  %v11021_v33 = vcombine.high %v290_v16, %v294_v43 }
 0x17d   :  { %5044 = vmatprep.subr.bf16.mxu0 %v11009_v30  ;;  %v310_v30 = vld [vmem:[#allocation9 + $0x2f0] sm:$0xff] }
 0x17e   :  { %15809 = vst [vmem:[#allocation115_spill] sm:$0xff] %v11012_v8  ;;  %15811 = vst [vmem:[#allocation117_spill] sm:$0xff] %v11018_v60  ;;  %v11033_v32 = vcombine.high %v306_v7, %v310_v30 }
 0x17f   :  { %2303 = vmatpush1.bf16.msra.mxu1 %v10995_v48  ;;  %15812 = vst [vmem:[#allocation118_spill] sm:$0xff] %v11021_v33  ;;  %v302_v48 = vld [vmem:[#allocation9 + $0x2b0] sm:$0xff] }
 0x180   :  { %2304 = vmatprep.subr.bf16.mxu1 %v11000_v19  ;;  %v11024_v19 = vcombine.low %v290_v16, %v294_v43  ;;  %v11027_v38 = vcombine.high %v298_v22, %v302_v48  ;;  %v11030_v52 = vcombine.low %v298_v22, %v302_v48  ;;  %15816 = vst [vmem:[#allocation122_spill] sm:$0xff] %v11033_v32 }
 0x181   :  { %v11036_v43 = vcombine.low %v306_v7, %v310_v30 }
 0x182   :  { %15813 = vst [vmem:[#allocation119_spill] sm:$0xff] %v11024_v19  ;;  %15814 = vst [vmem:[#allocation120_spill] sm:$0xff] %v11027_v38 }
 0x183   :  { %2305 = vmatpush1.bf16.msra.mxu1 %v11007_v20  ;;  %15815 = vst [vmem:[#allocation121_spill] sm:$0xff] %v11030_v52  ;;  %v318_v20 = vld [vmem:[#allocation9 + $0x330] sm:$0xff]  ;;  %15817 = vst [vmem:[#allocation123_spill] sm:$0xff] %v11036_v43 }
 0x184   :  { %2306 = vmatprep.subr.bf16.mxu1 %v11012_v8  ;;  %v314_v8 = vld [vmem:[#allocation9 + $0x310] sm:$0xff] }
 0x185   :  { %v11039_v16 = vcombine.high %v314_v8, %v318_v20  ;;  %v11042_v48 = vcombine.low %v314_v8, %v318_v20 }
 0x187   :  { %2307 = vmatpush1.bf16.msra.mxu1 %v11018_v60  ;;  %15818 = vst [vmem:[#allocation124_spill] sm:$0xff] %v11039_v16  ;;  %v326_v60 = vld [vmem:[#allocation9 + $0x370] sm:$0xff]  ;;  %15819 = vst [vmem:[#allocation125_spill] sm:$0xff] %v11042_v48 }
 0x188   :  { %2308 = vmatprep.subr.bf16.mxu1 %v11021_v33  ;;  %v322_v33 = vld [vmem:[#allocation9 + $0x350] sm:$0xff] }
 0x189   :  { %v11045_v22 = vcombine.high %v322_v33, %v326_v60  ;;  %v11048_v30 = vcombine.low %v322_v33, %v326_v60  ;;  %v219_v33 = vld [vmem:[#allocation9 + $0x18] sm:$0xff] }
 0x18b   :  { %2309 = vmatpush1.bf16.msra.mxu1 %v11024_v19  ;;  %15820 = vst [vmem:[#allocation126_spill] sm:$0xff] %v11045_v22  ;;  %v334_v19 = vld [vmem:[#allocation9 + $0x3b0] sm:$0xff]  ;;  %15821 = vst [vmem:[#allocation127_spill] sm:$0xff] %v11048_v30 }
 0x18c   :  { %2310 = vmatprep.subr.bf16.mxu1 %v11027_v38  ;;  %v330_v38 = vld [vmem:[#allocation9 + $0x390] sm:$0xff] }
 0x18d   :  { %v11051_v7 = vcombine.high %v330_v38, %v334_v19 }
 0x18f   :  { %2311 = vmatpush1.bf16.msra.mxu1 %v11030_v52  ;;  %15822 = vst [vmem:[#allocation128_spill] sm:$0xff] %v11051_v7  ;;  %v338_v52 = vld [vmem:[#allocation9 + $0x3d0] sm:$0xff] }
 0x190   :  { %2312 = vmatprep.subr.bf16.mxu1 %v11033_v32 }
 0x193   :  { %2313 = vmatpush1.bf16.msra.mxu1 %v11036_v43  ;;  %v342_v43 = vld [vmem:[#allocation9 + $0x3f0] sm:$0xff] }
 0x194   :  { %2314 = vmatprep.subr.bf16.mxu1 %v11039_v16  ;;  %v11060_v16 = vcombine.low %v330_v38, %v334_v19  ;;  %v11065_v60 = vcombine.high %v338_v52, %v342_v43 }
 0x196   :  { %15823 = vst [vmem:[#allocation129_spill] sm:$0xff] %v11060_v16  ;;  %15824 = vst [vmem:[#allocation130_spill] sm:$0xff] %v11065_v60 }
 0x197   :  { %2315 = vmatpush1.bf16.msra.mxu1 %v11042_v48  ;;  %v11068_v48 = vcombine.low %v338_v52, %v342_v43 }
 0x198   :  { %2316 = vmatprep.subr.bf16.mxu1 %v11045_v22  ;;  %v223_v22 = vld [vmem:[#allocation9 + $0x38] sm:$0xff] }
 0x199   :  { %v11053_v32 = vpop.f32.mrb[0].mxu1  ;;  %15825 = vst [vmem:[#allocation131_spill] sm:$0xff] %v11068_v48  ;;  %v11071_v2 = vcombine.high %v219_v33, %v223_v22  ;;  %v11074_v19 = vcombine.low %v219_v33, %v223_v22  ;;  %v243_v22 = vld [vmem:[#allocation9 + $0xd8] sm:$0xff] }
 0x19a   :  { %v11055_v8 = vpop.f32.mrb[1].mxu1  ;;  %v247_v33 = vld [vmem:[#allocation9 + $0xf8] sm:$0xff] }
 0x19b   :  { %v11057_v20 = vpop.f32.mrb[2].mxu1  ;;  %2317 = vmatpush1.bf16.msra.mxu1 %v11048_v30  ;;  %15826 = vst [vmem:[#allocation132_spill] sm:$0xff] %v11071_v2  ;;  %v231_v30 = vld [vmem:[#allocation9 + $0x78] sm:$0xff]  ;;  %15827 = vst [vmem:[#allocation133_spill] sm:$0xff] %v11074_v19 }
 0x19c   :  { %v11062_v57 = vpop.f32.mrb[3].mxu1  ;;  %2318 = vmatprep.subr.bf16.mxu1 %v11051_v7  ;;  %v11077_v38 = vcombine.high %v227_v3, %v231_v30  ;;  %v235_v7 = vld [vmem:[#allocation9 + $0x98] sm:$0xff]  ;;  %v11081_v52 = vcombine.low %v227_v3, %v231_v30  ;;  %v11095_v3 = vcombine.high %v243_v22, %v247_v33 }
 0x19d   :  { %v11085_v43 = vcombine.high %v235_v7, %v239_v9 }
 0x19e   :  { %15828 = vst [vmem:[#allocation134_spill] sm:$0xff] %v11077_v38  ;;  %15829 = vst [vmem:[#allocation135_spill] sm:$0xff] %v11081_v52 }
 0x19f   :  { %2319 = vmatpush1.bf16.msra.mxu1 %v11060_v16  ;;  %15830 = vst [vmem:[#allocation136_spill] sm:$0xff] %v11085_v43  ;;  %15832 = vst [vmem:[#allocation138_spill] sm:$0xff] %v11095_v3  ;;  %v11102_v16 = vcombine.low %v243_v22, %v247_v33  ;;  %v11117_v33 = vcombine.high %v267_v17, %v271_v11 }
 0x1a0   :  { %2320 = vmatprep.subr.bf16.mxu1 %v11065_v60 }
 0x1a1   :  { %15833 = vst [vmem:[#allocation139_spill] sm:$0xff] %v11102_v16  ;;  %15838 = vst [vmem:[#allocation144_spill] sm:$0xff] %v11117_v33 }
 0x1a3   :  { %2321 = vmatpush1.bf16.msra.mxu1 %v11068_v48  ;;  %v11087_v48 = vpop.f32.mrb[0].mxu0 }
 0x1a4   :  { %2333 = vmatprep.subr.bf16.mxu1 %v11071_v2  ;;  %v11090_v2 = vcombine.low %v235_v7, %v239_v9  ;;  %v11092_v60 = vpop.f32.mrb[1].mxu0  ;;  %v259_v7 = vld [vmem:[#allocation9 + $0x158] sm:$0xff] }
 0x1a5   :  { %v11097_v30 = vpop.f32.mrb[2].mxu0 }
 0x1a6   :  { %2323 = vmatmul.mubr.bf16.vlgmr.msra.gmra.mrb[16].mxu1 %v10766_v39  ;;  %15831 = vst [vmem:[#allocation137_spill] sm:$0xff] %v11090_v2 }
 0x1a7   :  { %2334 = vmatpush1.bf16.msra.mxu1 %v11074_v19  ;;  %2365 = vmatprep.mubr.bf16.mxu1 %v10668_v44  ;;  %v251_v44 = vld [vmem:[#allocation9 + $0x118] sm:$0xff]  ;;  %v11099_v19 = vpop.f32.mrb[3].mxu0 }
 0x1a8   :  { %2335 = vmatprep.subr.bf16.mxu1 %v11077_v38  ;;  %v255_v38 = vld [vmem:[#allocation9 + $0x138] sm:$0xff] }
 0x1a9   :  { %v11105_v9 = vcombine.high %v251_v44, %v255_v38 }
 0x1ab   :  { %2336 = vmatpush1.bf16.msra.mxu1 %v11081_v52  ;;  %15834 = vst [vmem:[#allocation140_spill] sm:$0xff] %v11105_v9  ;;  %v263_v52 = vld [vmem:[#allocation9 + $0x178] sm:$0xff] }
 0x1ac   :  { %2337 = vmatprep.subr.bf16.mxu1 %v11085_v43  ;;  %v11108_v43 = vcombine.low %v251_v44, %v255_v38  ;;  %v11111_v47 = vcombine.high %v259_v7, %v263_v52  ;;  %v11114_v22 = vcombine.low %v259_v7, %v263_v52  ;;  %v283_v7 = vld [vmem:[#allocation9 + $0x218] sm:$0xff] }
 0x1ae   :  { %15835 = vst [vmem:[#allocation141_spill] sm:$0xff] %v11108_v43  ;;  %15836 = vst [vmem:[#allocation142_spill] sm:$0xff] %v11111_v47 }
 0x1af   :  { %2338 = vmatpush1.bf16.msra.mxu1 %v11090_v2  ;;  %15837 = vst [vmem:[#allocation143_spill] sm:$0xff] %v11114_v22  ;;  %v275_v2 = vld [vmem:[#allocation9 + $0x1d8] sm:$0xff] }
 0x1b0   :  { %2339 = vmatprep.subr.bf16.mxu1 %v11095_v3 }
 0x1b3   :  { %2340 = vmatpush1.bf16.msra.mxu1 %v11102_v16  ;;  %v279_v16 = vld [vmem:[#allocation9 + $0x1f8] sm:$0xff] }
 0x1b4   :  { %2341 = vmatprep.subr.bf16.mxu1 %v11105_v9  ;;  %v11126_v9 = vcombine.low %v267_v17, %v271_v11  ;;  %v11131_v52 = vcombine.high %v275_v2, %v279_v16 }
 0x1b6   :  { %15839 = vst [vmem:[#allocation145_spill] sm:$0xff] %v11126_v9  ;;  %15840 = vst [vmem:[#allocation146_spill] sm:$0xff] %v11131_v52 }
 0x1b7   :  { %2342 = vmatpush1.bf16.msra.mxu1 %v11108_v43  ;;  %v11134_v43 = vcombine.low %v275_v2, %v279_v16 }
 0x1b8   :  { %2343 = vmatprep.subr.bf16.mxu1 %v11111_v47  ;;  %v287_v47 = vld [vmem:[#allocation9 + $0x238] sm:$0xff] }
 0x1b9   :  { %v11119_v3 = vpop.f32.mrb[4].mxu1  ;;  %15841 = vst [vmem:[#allocation147_spill] sm:$0xff] %v11134_v43  ;;  %v11137_v36 = vcombine.high %v283_v7, %v287_v47  ;;  %v11140_v11 = vcombine.low %v283_v7, %v287_v47 }
 0x1ba   :  { %v11121_v38 = vpop.f32.mrb[5].mxu1 }
 0x1bb   :  { %v11123_v44 = vpop.f32.mrb[6].mxu1  ;;  %2344 = vmatpush1.bf16.msra.mxu1 %v11114_v22  ;;  %15842 = vst [vmem:[#allocation148_spill] sm:$0xff] %v11137_v36  ;;  %v295_v22 = vld [vmem:[#allocation9 + $0x278] sm:$0xff]  ;;  %15843 = vst [vmem:[#allocation149_spill] sm:$0xff] %v11140_v11 }
 0x1bc   :  { %v11128_v24 = vpop.f32.mrb[7].mxu1  ;;  %2345 = vmatprep.subr.bf16.mxu1 %v11117_v33  ;;  %v11143_v17 = vcombine.high %v291_v14, %v295_v22  ;;  %v299_v33 = vld [vmem:[#allocation9 + $0x298] sm:$0xff]  ;;  %v11146_v2 = vcombine.low %v291_v14, %v295_v22 }
 0x1bd   :  { %v11149_v16 = vcombine.high %v299_v33, %v303_v27  ;;  %v11152_v47 = vcombine.low %v299_v33, %v303_v27 }
 0x1be   :  { %15844 = vst [vmem:[#allocation150_spill] sm:$0xff] %v11143_v17  ;;  %15845 = vst [vmem:[#allocation151_spill] sm:$0xff] %v11146_v2 }
 0x1bf   :  { %2346 = vmatpush1.bf16.msra.mxu1 %v11126_v9  ;;  %15846 = vst [vmem:[#allocation152_spill] sm:$0xff] %v11149_v16  ;;  %v311_v9 = vld [vmem:[#allocation9 + $0x2f8] sm:$0xff]  ;;  %15847 = vst [vmem:[#allocation153_spill] sm:$0xff] %v11152_v47 }
 0x1c0   :  { %2347 = vmatprep.subr.bf16.mxu1 %v11131_v52  ;;  %v307_v52 = vld [vmem:[#allocation9 + $0x2d8] sm:$0xff] }
 0x1c1   :  { %v11155_v7 = vcombine.high %v307_v52, %v311_v9  ;;  %v11158_v14 = vcombine.low %v307_v52, %v311_v9 }
 0x1c3   :  { %2348 = vmatpush1.bf16.msra.mxu1 %v11134_v43  ;;  %15848 = vst [vmem:[#allocation154_spill] sm:$0xff] %v11155_v7  ;;  %v319_v43 = vld [vmem:[#allocation9 + $0x338] sm:$0xff]  ;;  %15849 = vst [vmem:[#allocation155_spill] sm:$0xff] %v11158_v14 }
 0x1c4   :  { %2349 = vmatprep.subr.bf16.mxu1 %v11137_v36  ;;  %v315_v36 = vld [vmem:[#allocation9 + $0x318] sm:$0xff] }
 0x1c5   :  { %v11161_v22 = vcombine.high %v315_v36, %v319_v43  ;;  %v11164_v27 = vcombine.low %v315_v36, %v319_v43 }
 0x1c7   :  { %2350 = vmatpush1.bf16.msra.mxu1 %v11140_v11  ;;  %15850 = vst [vmem:[#allocation156_spill] sm:$0xff] %v11161_v22  ;;  %v327_v11 = vld [vmem:[#allocation9 + $0x378] sm:$0xff]  ;;  %15851 = vst [vmem:[#allocation157_spill] sm:$0xff] %v11164_v27 }
 0x1c8   :  { %2351 = vmatprep.subr.bf16.mxu1 %v11143_v17  ;;  %v323_v17 = vld [vmem:[#allocation9 + $0x358] sm:$0xff] }
 0x1c9   :  { %v11167_v33 = vcombine.high %v323_v17, %v327_v11  ;;  %v11170_v9 = vcombine.low %v323_v17, %v327_v11 }
 0x1cb   :  { %2352 = vmatpush1.bf16.msra.mxu1 %v11146_v2  ;;  %15852 = vst [vmem:[#allocation158_spill] sm:$0xff] %v11167_v33  ;;  %v335_v2 = vld [vmem:[#allocation9 + $0x3b8] sm:$0xff]  ;;  %15853 = vst [vmem:[#allocation159_spill] sm:$0xff] %v11170_v9 }
 0x1cc   :  { %2353 = vmatprep.subr.bf16.mxu1 %v11149_v16  ;;  %v331_v16 = vld [vmem:[#allocation9 + $0x398] sm:$0xff] }
 0x1cd   :  { %v11173_v52 = vcombine.high %v331_v16, %v335_v2  ;;  %v11176_v36 = vcombine.low %v331_v16, %v335_v2 }
 0x1cf   :  { %2354 = vmatpush1.bf16.msra.mxu1 %v11152_v47  ;;  %15854 = vst [vmem:[#allocation160_spill] sm:$0xff] %v11173_v52  ;;  %v343_v47 = vld [vmem:[#allocation9 + $0x3f8] sm:$0xff]  ;;  %15855 = vst [vmem:[#allocation161_spill] sm:$0xff] %v11176_v36 }
 0x1d0   :  { %2355 = vmatprep.subr.bf16.mxu1 %v11155_v7  ;;  %v339_v7 = vld [vmem:[#allocation9 + $0x3d8] sm:$0xff] }
 0x1d1   :  { %v11179_v43 = vcombine.high %v339_v7, %v343_v47  ;;  %v11182_v11 = vcombine.low %v339_v7, %v343_v47 }
 0x1d3   :  { %2356 = vmatpush1.bf16.msra.mxu1 %v11158_v14  ;;  %15856 = vst [vmem:[#allocation162_spill] sm:$0xff] %v11179_v43  ;;  %v349_v14 = vld [vmem:[#allocation12 + $0x28] sm:$0xff]  ;;  %15857 = vst [vmem:[#allocation163_spill] sm:$0xff] %v11182_v11 }
 0x1d4   :  { %2357 = vmatprep.subr.bf16.mxu1 %v11161_v22  ;;  %v345_v22 = vld [vmem:[#allocation12 + $0x8] sm:$0xff] }
 0x1d5   :  { %v11185_v17 = vcombine.high %v345_v22, %v349_v14  ;;  %v11188_v2 = vcombine.low %v345_v22, %v349_v14  ;;  %v992_v14 = vlaneseq }
 0x1d7   :  { %2358 = vmatpush1.bf16.msra.mxu1 %v11164_v27  ;;  %15858 = vst [vmem:[#allocation164_spill] sm:$0xff] %v11185_v17  ;;  %v357_v27 = vld [vmem:[#allocation12 + $0x68] sm:$0xff]  ;;  %15859 = vst [vmem:[#allocation165_spill] sm:$0xff] %v11188_v2 }
 0x1d8   :  { %2359 = vmatprep.subr.bf16.mxu1 %v11167_v33  ;;  %v353_v33 = vld [vmem:[#allocation12 + $0x48] sm:$0xff] }
 0x1d9   :  { %v11191_v16 = vcombine.high %v353_v33, %v357_v27  ;;  %v11195_v47 = vcombine.low %v353_v33, %v357_v27 }
 0x1db   :  { %2360 = vmatpush1.bf16.msra.mxu1 %v11170_v9  ;;  %15860 = vst [vmem:[#allocation166_spill] sm:$0xff] %v11191_v16  ;;  %v365_v9 = vld [vmem:[#allocation12 + $0xa8] sm:$0xff]  ;;  %15861 = vst [vmem:[#allocation167_spill] sm:$0xff] %v11195_v47 }
 0x1dc   :  { %2361 = vmatprep.subr.bf16.mxu1 %v11173_v52  ;;  %v361_v52 = vld [vmem:[#allocation12 + $0x88] sm:$0xff] }
 0x1dd   :  { %v11198_v7 = vcombine.high %v361_v52, %v365_v9  ;;  %v11201_v22 = vcombine.low %v361_v52, %v365_v9  ;;  %v385_v52 = vld [vmem:[#allocation12 + $0x148] sm:$0xff] }
 0x1df   :  { %2362 = vmatpush1.bf16.msra.mxu1 %v11176_v36  ;;  %15862 = vst [vmem:[#allocation168_spill] sm:$0xff] %v11198_v7  ;;  %15863 = vst [vmem:[#allocation169_spill] sm:$0xff] %v11201_v22  ;;  %v381_v36 = vld [vmem:[#allocation12 + $0x128] sm:$0xff] }
 0x1e0   :  { %2363 = vmatprep.subr.bf16.mxu1 %v11179_v43  ;;  %v369_v43 = vld [vmem:[#allocation12 + $0xc8] sm:$0xff] }
 0x1e3   :  { %2364 = vmatpush1.bf16.msra.mxu1 %v11182_v11  ;;  %v373_v11 = vld [vmem:[#allocation12 + $0xe8] sm:$0xff] }
 0x1e4   :  { %5173 = vmatprep.subr.bf16.mxu1 %v11185_v17  ;;  %v11204_v17 = vcombine.high %v369_v43, %v373_v11  ;;  %v11209_v27 = vcombine.low %v369_v43, %v373_v11 }
 0x1e6   :  { %2366 = vmatmul.mubr.bf16.vlgmr.msra.gmra.mrb[20].mxu1 %v10766_v39  ;;  %15864 = vst [vmem:[#allocation170_spill] sm:$0xff] %v11204_v17  ;;  %v377_v39 = vld [vmem:[#allocation12 + $0x108] sm:$0xff]  ;;  %15865 = vst [vmem:[#allocation171_spill] sm:$0xff] %v11209_v27 }
 0x1e7   :  { %5174 = vmatpush1.bf16.msra.mxu1 %v11188_v2  ;;  %v11206_v2 = vshrl.u32 %v992_v14, 7  ;;  %v11223_v14 = vcombine.low %v377_v39, %v381_v36 }
 0x1e8   :  { %5175 = vmatprep.subr.bf16.mxu1 %v11191_v16  ;;  %v11220_v16 = vld [vmem:[#allocation11] sm:$0xff] }
 0x1e9   :  { %v11213_v33 = vsub.s32 0, %v11206_v2  ;;  %v11218_v9 = vsub.s32 1, %v11206_v2  ;;  %15867 = vst [vmem:[#allocation173_spill] sm:$0xff] %v11223_v14 }
 0x1eb   :  { %5176 = vmatpush1.bf16.msra.mxu1 %v11195_v47  ;;  %v11215_v47 = vcombine.high %v377_v39, %v381_v36  ;;  %v995_v43 = vrot.slane %v11220_v16, %v11213_v33 }
 0x1ec   :  { %5177 = vmatprep.subr.bf16.mxu1 %v11198_v7  ;;  %v389_v7 = vld [vmem:[#allocation12 + $0x168] sm:$0xff] }
 0x1ed   :  { %15866 = vst [vmem:[#allocation172_spill] sm:$0xff] %v11215_v47  ;;  %v11228_v11 = vcombine.high %v385_v52, %v389_v7  ;;  %v11239_v36 = vcombine.low %v385_v52, %v389_v7  ;;  %v11253_v12 = vadd.f32 %v11097_v30, %v995_v43  ;;  %v480_v30 = vld [vmem:[#allocation12 + $0x440] sm:$0xff] }
 0x1ef   :  { %5178 = vmatpush1.bf16.msra.mxu1 %v11201_v22  ;;  %15868 = vst [vmem:[#allocation174_spill] sm:$0xff] %v11228_v11  ;;  %v999_v22 = vrot.slane %v11220_v16, %v11218_v9  ;;  %15869 = vst [vmem:[#allocation175_spill] sm:$0xff] %v11239_v36 }
 0x1f0   :  { %5179 = vmatprep.subr.bf16.mxu1 %v11204_v17  ;;  %v11230_v17 = vpop.f32.mrb[4].mxu0  ;;  %15873 = vst [vmem:[#allocation179_spill] sm:$0xff] %v11253_v12 }
 0x1f1   :  { %v11234_v56 = vpop.f32.mrb[5].mxu0  ;;  %v11250_v31 = vadd.f32 %v11092_v60, %v999_v22  ;;  %v11256_v52 = vadd.f32 %v11099_v19, %v999_v22  ;;  %v484_v22 = vld [vmem:[#allocation12 + $0x460] sm:$0xff] }
 0x1f2   :  { %v11236_v35 = vpop.f32.mrb[6].mxu0 }
 0x1f3   :  { %5180 = vmatpush1.bf16.msra.mxu1 %v11209_v27  ;;  %v11241_v39 = vpop.f32.mrb[7].mxu0  ;;  %v11247_v27 = vcombine.high %v393_v28, %v397_v55  ;;  %15872 = vst [vmem:[#allocation178_spill] sm:$0xff] %v11250_v31  ;;  %15874 = vst [vmem:[#allocation180_spill] sm:$0xff] %v11256_v52 }
 0x1f4   :  { %5181 = vmatprep.subr.bf16.mxu1 %v11215_v47  ;;  %v11244_v47 = vadd.f32 %v11087_v48, %v995_v43  ;;  %v11259_v48 = vcombine.low %v393_v28, %v397_v55  ;;  %v11276_v28 = vcombine.high %v480_v30, %v484_v22 }
 0x1f5   :  { %15871 = vst [vmem:[#allocation177_spill] sm:$0xff] %v11247_v27 }
 0x1f6   :  { %15870 = vst [vmem:[#allocation176_spill] sm:$0xff] %v11244_v47  ;;  %15875 = vst [vmem:[#allocation181_spill] sm:$0xff] %v11259_v48 }
 0x1f7   :  { %5182 = vmatpush1.bf16.msra.mxu1 %v11223_v14  ;;  %15878 = vst [vmem:[#allocation184_spill] sm:$0xff] %v11276_v28 }
 0x1f8   :  { %5183 = vmatprep.subr.bf16.mxu1 %v11228_v11 }
 0x1f9   :  { %v2238_v25 = vpop.f32.mrb[8].mxu1 }
 0x1fa   :  { %v2240_v7 = vpop.f32.mrb[9].mxu1  ;;  %v2376_v11 = vadd.f32 %v2238_v25, %v11244_v47  ;;  %v11273_v25 = vcombine.low %v401_v23, %v405_v15  ;;  %v11285_v15 = vcombine.low %v480_v30, %v484_v22  ;;  %v11287_v23 = vcombine.low %v409_v51, %v413_v0  ;;  %v533_v47 = vld [vmem:[#allocation12 + $0x5e8] sm:$0xff] }
 0x1fb   :  { %v2242_v14 = vpop.f32.mrb[10].mxu1  ;;  %5184 = vmatpush1.bf16.msra.mxu1 %v11239_v36  ;;  %v2377_v43 = vadd.f32 %v2240_v7, %v11250_v31  ;;  %v488_v7 = vld [vmem:[#allocation12 + $0x480] sm:$0xff]  ;;  %v429_v31 = vld [vmem:[#allocation12 + $0x2a8] sm:$0xff] }
 0x1fc   :  { %v2384_v60 = vadd.f32 %v2242_v14, %v11253_v12  ;;  %v2244_v6 = vpop.f32.mrb[11].mxu1  ;;  %5185 = vmatprep.subr.bf16.mxu1 %v11247_v27  ;;  %15877 = vst [vmem:[#allocation183_spill] sm:$0xff] %v11273_v25  ;;  %v11278_v14 = vcombine.high %v409_v51, %v413_v0  ;;  %15880 = vst [vmem:[#allocation186_spill] sm:$0xff] %v11285_v15  ;;  %v604_v27 = vld [vmem:[#allocation12 + $0x820] sm:$0xff] }
 0x1fd   :  { %v2385_v19 = vadd.f32 %v2244_v6, %v11256_v52  ;;  %v492_v6 = vld [vmem:[#allocation12 + $0x4a0] sm:$0xff]  ;;  %15881 = vst [vmem:[#allocation187_spill] sm:$0xff] %v11287_v23  ;;  %v425_v52 = vld [vmem:[#allocation12 + $0x288] sm:$0xff] }
 0x1fe   :  { %v11268_v36 = vpack.c.bf16 %v2384_v60, %v2376_v11  ;;  %15879 = vst [vmem:[#allocation185_spill] sm:$0xff] %v11278_v14  ;;  %v417_v11 = vld [vmem:[#allocation12 + $0x248] sm:$0xff]  ;;  %v11297_v30 = vcombine.low %v488_v7, %v492_v6  ;;  %v11305_v22 = vcombine.high %v425_v52, %v429_v31 }
 0x1ff   :  { %v11270_v55 = vpack.c.bf16 %v2385_v19, %v2377_v43  ;;  %5186 = vmatpush1.bf16.msra.mxu1 %v11259_v48  ;;  %v421_v60 = vld [vmem:[#allocation12 + $0x268] sm:$0xff]  ;;  %v11291_v43 = vcombine.high %v488_v7, %v492_v6  ;;  %v500_v48 = vld [vmem:[#allocation12 + $0x4e0] sm:$0xff]  ;;  %v11311_v6 = vcombine.low %v425_v52, %v429_v31 }
 0x200   :  { %5187 = vmatprep.subr.bf16.mxu1 %v11264_v61  ;;  %v11293_v19 = vcombine.high %v417_v11, %v421_v60  ;;  %v496_v61 = vld [vmem:[#allocation12 + $0x4c0] sm:$0xff]  ;;  %15884 = vst [vmem:[#allocation190_spill] sm:$0xff] %v11297_v30  ;;  %v11299_v0 = vcombine.low %v417_v11, %v421_v60  ;;  %15887 = vst [vmem:[#allocation193_spill] sm:$0xff] %v11305_v22 }
 0x201   :  { %5033 = vmatprep.mubr.bf16.mxu0 %v11270_v55  ;;  %5205 = vmatprep.mubr.bf16.mxu1 %v11270_v55  ;;  %15882 = vst [vmem:[#allocation188_spill] sm:$0xff] %v11291_v43  ;;  %v11303_v51 = vcombine.high %v496_v61, %v500_v48  ;;  %v11309_v7 = vcombine.low %v496_v61, %v500_v48  ;;  %15889 = vst [vmem:[#allocation195_spill] sm:$0xff] %v11311_v6 }
 0x202   :  { %5034 = vmatmul.mubr.bf16.vlgmr.msra.gmra.mrb[8].mxu0 %v11268_v36  ;;  %15883 = vst [vmem:[#allocation189_spill] sm:$0xff] %v11293_v19  ;;  %15885 = vst [vmem:[#allocation191_spill] sm:$0xff] %v11299_v0 }
 0x203   :  { %5045 = vmatpush1.bf16.msra.mxu0 %v11014_v40  ;;  %5188 = vmatpush1.bf16.msra.mxu1 %v11273_v25  ;;  %15886 = vst [vmem:[#allocation192_spill] sm:$0xff] %v11303_v51  ;;  %v433_v25 = vld [vmem:[#allocation12 + $0x2c8] sm:$0xff]  ;;  %15888 = vst [vmem:[#allocation194_spill] sm:$0xff] %v11309_v7 }
 0x204   :  { %5046 = vmatprep.subr.bf16.mxu0 %v11276_v28  ;;  %5189 = vmatprep.subr.bf16.mxu1 %v11278_v14  ;;  %v504_v14 = vld [vmem:[#allocation12 + $0x500] sm:$0xff]  ;;  %v437_v40 = vld [vmem:[#allocation12 + $0x2e8] sm:$0xff] }
 0x205   :  { %v508_v28 = vld [vmem:[#allocation12 + $0x520] sm:$0xff]  ;;  %v11317_v60 = vcombine.high %v433_v25, %v437_v40  ;;  %v11323_v31 = vcombine.low %v433_v25, %v437_v40 }
 0x206   :  { %v11315_v11 = vcombine.high %v504_v14, %v508_v28  ;;  %v11321_v61 = vcombine.low %v504_v14, %v508_v28 }
 0x207   :  { %5047 = vmatpush1.bf16.msra.mxu0 %v11285_v15  ;;  %5190 = vmatpush1.bf16.msra.mxu1 %v11287_v23  ;;  %15891 = vst [vmem:[#allocation197_spill] sm:$0xff] %v11317_v60  ;;  %v441_v23 = vld [vmem:[#allocation12 + $0x308] sm:$0xff]  ;;  %15893 = vst [vmem:[#allocation199_spill] sm:$0xff] %v11323_v31 }
 0x208   :  { %5048 = vmatprep.subr.bf16.mxu0 %v11291_v43  ;;  %5191 = vmatprep.subr.bf16.mxu1 %v11293_v19  ;;  %15890 = vst [vmem:[#allocation196_spill] sm:$0xff] %v11315_v11  ;;  %v512_v19 = vld [vmem:[#allocation12 + $0x540] sm:$0xff]  ;;  %v445_v15 = vld [vmem:[#allocation12 + $0x328] sm:$0xff]  ;;  %15892 = vst [vmem:[#allocation198_spill] sm:$0xff] %v11321_v61 }
 0x209   :  { %v516_v43 = vld [vmem:[#allocation12 + $0x560] sm:$0xff]  ;;  %v11329_v48 = vcombine.high %v441_v23, %v445_v15  ;;  %v11335_v40 = vcombine.low %v441_v23, %v445_v15 }
 0x20a   :  { %v11327_v52 = vcombine.high %v512_v19, %v516_v43  ;;  %v11333_v28 = vcombine.low %v512_v19, %v516_v43 }
 0x20b   :  { %5049 = vmatpush1.bf16.msra.mxu0 %v11297_v30  ;;  %5192 = vmatpush1.bf16.msra.mxu1 %v11299_v0  ;;  %15895 = vst [vmem:[#allocation201_spill] sm:$0xff] %v11329_v48  ;;  %v449_v0 = vld [vmem:[#allocation12 + $0x348] sm:$0xff]  ;;  %15897 = vst [vmem:[#allocation203_spill] sm:$0xff] %v11335_v40 }
 0x20c   :  { %5050 = vmatprep.subr.bf16.mxu0 %v11303_v51  ;;  %5193 = vmatprep.subr.bf16.mxu1 %v11305_v22  ;;  %15894 = vst [vmem:[#allocation200_spill] sm:$0xff] %v11327_v52  ;;  %v520_v22 = vld [vmem:[#allocation12 + $0x580] sm:$0xff]  ;;  %v453_v30 = vld [vmem:[#allocation12 + $0x368] sm:$0xff]  ;;  %15896 = vst [vmem:[#allocation202_spill] sm:$0xff] %v11333_v28 }
 0x20d   :  { %v524_v51 = vld [vmem:[#allocation12 + $0x5a0] sm:$0xff]  ;;  %v11341_v14 = vcombine.high %v449_v0, %v453_v30  ;;  %v11347_v15 = vcombine.low %v449_v0, %v453_v30 }
 0x20e   :  { %v11339_v25 = vcombine.high %v520_v22, %v524_v51  ;;  %v11345_v43 = vcombine.low %v520_v22, %v524_v51 }
 0x20f   :  { %5051 = vmatpush1.bf16.msra.mxu0 %v11309_v7  ;;  %5194 = vmatpush1.bf16.msra.mxu1 %v11311_v6  ;;  %15899 = vst [vmem:[#allocation205_spill] sm:$0xff] %v11341_v14  ;;  %v457_v6 = vld [vmem:[#allocation12 + $0x388] sm:$0xff]  ;;  %15901 = vst [vmem:[#allocation207_spill] sm:$0xff] %v11347_v15 }
 0x210   :  { %5052 = vmatprep.subr.bf16.mxu0 %v11315_v11  ;;  %5195 = vmatprep.subr.bf16.mxu1 %v11317_v60  ;;  %15898 = vst [vmem:[#allocation204_spill] sm:$0xff] %v11339_v25  ;;  %v528_v60 = vld [vmem:[#allocation12 + $0x5c0] sm:$0xff]  ;;  %v461_v7 = vld [vmem:[#allocation12 + $0x3a8] sm:$0xff]  ;;  %15900 = vst [vmem:[#allocation206_spill] sm:$0xff] %v11345_v43 }
 0x211   :  { %v532_v11 = vld [vmem:[#allocation12 + $0x5e0] sm:$0xff]  ;;  %v11353_v19 = vcombine.high %v457_v6, %v461_v7  ;;  %v11359_v30 = vcombine.low %v457_v6, %v461_v7 }
 0x212   :  { %v11351_v23 = vcombine.high %v528_v60, %v532_v11  ;;  %v11357_v51 = vcombine.low %v528_v60, %v532_v11 }
 0x213   :  { %5053 = vmatpush1.bf16.msra.mxu0 %v11321_v61  ;;  %5196 = vmatpush1.bf16.msra.mxu1 %v11323_v31  ;;  %15903 = vst [vmem:[#allocation209_spill] sm:$0xff] %v11353_v19  ;;  %v465_v31 = vld [vmem:[#allocation12 + $0x3c8] sm:$0xff]  ;;  %15905 = vst [vmem:[#allocation211_spill] sm:$0xff] %v11359_v30 }
 0x214   :  { %5054 = vmatprep.subr.bf16.mxu0 %v11327_v52  ;;  %5197 = vmatprep.subr.bf16.mxu1 %v11329_v48  ;;  %15902 = vst [vmem:[#allocation208_spill] sm:$0xff] %v11351_v23  ;;  %v536_v48 = vld [vmem:[#allocation12 + $0x600] sm:$0xff]  ;;  %v469_v61 = vld [vmem:[#allocation12 + $0x3e8] sm:$0xff]  ;;  %15904 = vst [vmem:[#allocation210_spill] sm:$0xff] %v11357_v51 }
 0x215   :  { %v540_v52 = vld [vmem:[#allocation12 + $0x620] sm:$0xff]  ;;  %v11365_v22 = vcombine.high %v465_v31, %v469_v61  ;;  %v11371_v7 = vcombine.low %v465_v31, %v469_v61 }
 0x216   :  { %v11363_v0 = vcombine.high %v536_v48, %v540_v52  ;;  %v11369_v11 = vcombine.low %v536_v48, %v540_v52 }
 0x217   :  { %5055 = vmatpush1.bf16.msra.mxu0 %v11333_v28  ;;  %5198 = vmatpush1.bf16.msra.mxu1 %v11335_v40  ;;  %15907 = vst [vmem:[#allocation213_spill] sm:$0xff] %v11365_v22  ;;  %v473_v40 = vld [vmem:[#allocation12 + $0x408] sm:$0xff]  ;;  %15909 = vst [vmem:[#allocation215_spill] sm:$0xff] %v11371_v7 }
 0x218   :  { %5056 = vmatprep.subr.bf16.mxu0 %v11339_v25  ;;  %5199 = vmatprep.subr.bf16.mxu1 %v11341_v14  ;;  %15906 = vst [vmem:[#allocation212_spill] sm:$0xff] %v11363_v0  ;;  %v544_v14 = vld [vmem:[#allocation12 + $0x640] sm:$0xff]  ;;  %v477_v28 = vld [vmem:[#allocation12 + $0x428] sm:$0xff]  ;;  %15908 = vst [vmem:[#allocation214_spill] sm:$0xff] %v11369_v11 }
 0x219   :  { %v548_v25 = vld [vmem:[#allocation12 + $0x660] sm:$0xff]  ;;  %v11377_v60 = vcombine.high %v473_v40, %v477_v28  ;;  %v11383_v61 = vcombine.low %v473_v40, %v477_v28 }
 0x21a   :  { %v11375_v6 = vcombine.high %v544_v14, %v548_v25  ;;  %v11381_v52 = vcombine.low %v544_v14, %v548_v25 }
 0x21b   :  { %5057 = vmatpush1.bf16.msra.mxu0 %v11345_v43  ;;  %5200 = vmatpush1.bf16.msra.mxu1 %v11347_v15  ;;  %15911 = vst [vmem:[#allocation217_spill] sm:$0xff] %v11377_v60  ;;  %v481_v15 = vld [vmem:[#allocation12 + $0x448] sm:$0xff]  ;;  %15913 = vst [vmem:[#allocation219_spill] sm:$0xff] %v11383_v61 }
 0x21c   :  { %5058 = vmatprep.subr.bf16.mxu0 %v11351_v23  ;;  %5201 = vmatprep.subr.bf16.mxu1 %v11353_v19  ;;  %15910 = vst [vmem:[#allocation216_spill] sm:$0xff] %v11375_v6  ;;  %v552_v19 = vld [vmem:[#allocation12 + $0x680] sm:$0xff]  ;;  %v485_v43 = vld [vmem:[#allocation12 + $0x468] sm:$0xff]  ;;  %15912 = vst [vmem:[#allocation218_spill] sm:$0xff] %v11381_v52 }
 0x21d   :  { %v556_v23 = vld [vmem:[#allocation12 + $0x6a0] sm:$0xff]  ;;  %v11389_v48 = vcombine.high %v481_v15, %v485_v43  ;;  %v11396_v40 = vcombine.low %v481_v15, %v485_v43 }
 0x21e   :  { %v11387_v31 = vcombine.high %v552_v19, %v556_v23  ;;  %v11394_v28 = vcombine.low %v552_v19, %v556_v23 }
 0x21f   :  { %5059 = vmatpush1.bf16.msra.mxu0 %v11357_v51  ;;  %5202 = vmatpush1.bf16.msra.mxu1 %v11359_v30  ;;  %15915 = vst [vmem:[#allocation221_spill] sm:$0xff] %v11389_v48  ;;  %v489_v30 = vld [vmem:[#allocation12 + $0x488] sm:$0xff]  ;;  %15917 = vst [vmem:[#allocation223_spill] sm:$0xff] %v11396_v40 }
 0x220   :  { %5060 = vmatprep.subr.bf16.mxu0 %v11363_v0  ;;  %5203 = vmatprep.subr.bf16.mxu1 %v11365_v22  ;;  %15914 = vst [vmem:[#allocation220_spill] sm:$0xff] %v11387_v31  ;;  %v560_v22 = vld [vmem:[#allocation12 + $0x6c0] sm:$0xff]  ;;  %v493_v51 = vld [vmem:[#allocation12 + $0x4a8] sm:$0xff]  ;;  %15916 = vst [vmem:[#allocation222_spill] sm:$0xff] %v11394_v28 }
 0x221   :  { %v564_v0 = vld [vmem:[#allocation12 + $0x6e0] sm:$0xff]  ;;  %v11402_v14 = vcombine.high %v489_v30, %v493_v51  ;;  %v11408_v43 = vcombine.low %v489_v30, %v493_v51 }
 0x222   :  { %v11400_v25 = vcombine.high %v560_v22, %v564_v0  ;;  %v11406_v23 = vcombine.low %v560_v22, %v564_v0 }
 0x223   :  { %5061 = vmatpush1.bf16.msra.mxu0 %v11369_v11  ;;  %5204 = vmatpush1.bf16.msra.mxu1 %v11371_v7  ;;  %15919 = vst [vmem:[#allocation225_spill] sm:$0xff] %v11402_v14  ;;  %v497_v7 = vld [vmem:[#allocation12 + $0x4c8] sm:$0xff]  ;;  %15921 = vst [vmem:[#allocation227_spill] sm:$0xff] %v11408_v43 }
 0x224   :  { %5062 = vmatprep.subr.bf16.mxu0 %v11375_v6  ;;  %5216 = vmatprep.subr.bf16.mxu1 %v11377_v60  ;;  %15918 = vst [vmem:[#allocation224_spill] sm:$0xff] %v11400_v25  ;;  %v568_v60 = vld [vmem:[#allocation12 + $0x700] sm:$0xff]  ;;  %v501_v11 = vld [vmem:[#allocation12 + $0x4e8] sm:$0xff]  ;;  %15920 = vst [vmem:[#allocation226_spill] sm:$0xff] %v11406_v23 }
 0x225   :  { %v572_v6 = vld [vmem:[#allocation12 + $0x720] sm:$0xff]  ;;  %v11414_v19 = vcombine.high %v497_v7, %v501_v11  ;;  %v11420_v51 = vcombine.low %v497_v7, %v501_v11 }
 0x226   :  { %5206 = vmatmul.mubr.bf16.vlgmr.msra.gmra.mrb[24].mxu1 %v11268_v36  ;;  %v11412_v15 = vcombine.high %v568_v60, %v572_v6  ;;  %v11418_v0 = vcombine.low %v568_v60, %v572_v6 }
 0x227   :  { %5063 = vmatpush1.bf16.msra.mxu0 %v11381_v52  ;;  %5217 = vmatpush1.bf16.msra.mxu1 %v11383_v61  ;;  %15923 = vst [vmem:[#allocation229_spill] sm:$0xff] %v11414_v19  ;;  %v505_v61 = vld [vmem:[#allocation12 + $0x508] sm:$0xff]  ;;  %15925 = vst [vmem:[#allocation231_spill] sm:$0xff] %v11420_v51 }
 0x228   :  { %5064 = vmatprep.subr.bf16.mxu0 %v11387_v31  ;;  %5218 = vmatprep.subr.bf16.mxu1 %v11389_v48  ;;  %15922 = vst [vmem:[#allocation228_spill] sm:$0xff] %v11412_v15  ;;  %v576_v48 = vld [vmem:[#allocation12 + $0x740] sm:$0xff]  ;;  %v509_v52 = vld [vmem:[#allocation12 + $0x528] sm:$0xff]  ;;  %15924 = vst [vmem:[#allocation230_spill] sm:$0xff] %v11418_v0 }
 0x229   :  { %v580_v31 = vld [vmem:[#allocation12 + $0x760] sm:$0xff]  ;;  %v11426_v22 = vcombine.high %v505_v61, %v509_v52  ;;  %v11434_v7 = vcombine.low %v505_v61, %v509_v52 }
 0x22a   :  { %v11424_v30 = vcombine.high %v576_v48, %v580_v31  ;;  %v11432_v11 = vcombine.low %v576_v48, %v580_v31  ;;  %v15933_v31 = vsub.s32 3, %v11206_v2 }
 0x22b   :  { %5065 = vmatpush1.bf16.msra.mxu0 %v11394_v28  ;;  %5219 = vmatpush1.bf16.msra.mxu1 %v11396_v40  ;;  %15927 = vst [vmem:[#allocation233_spill] sm:$0xff] %v11426_v22  ;;  %v513_v40 = vld [vmem:[#allocation12 + $0x548] sm:$0xff]  ;;  %15929 = vst [vmem:[#allocation235_spill] sm:$0xff] %v11434_v7 }
 0x22c   :  { %5066 = vmatprep.subr.bf16.mxu0 %v11400_v25  ;;  %5220 = vmatprep.subr.bf16.mxu1 %v11402_v14  ;;  %15926 = vst [vmem:[#allocation232_spill] sm:$0xff] %v11424_v30  ;;  %v584_v14 = vld [vmem:[#allocation12 + $0x780] sm:$0xff]  ;;  %v517_v28 = vld [vmem:[#allocation12 + $0x568] sm:$0xff]  ;;  %15928 = vst [vmem:[#allocation234_spill] sm:$0xff] %v11432_v11  ;;  %v1007_v52 = vrot.slane %v11220_v16, %v15933_v31 }
 0x22d   :  { %v588_v25 = vld [vmem:[#allocation12 + $0x7a0] sm:$0xff]  ;;  %v11440_v60 = vcombine.high %v513_v40, %v517_v28  ;;  %v11452_v48 = vcombine.low %v513_v40, %v517_v28  ;;  %v529_v31 = vld [vmem:[#allocation12 + $0x5c8] sm:$0xff] }
 0x22e   :  { %v11438_v6 = vcombine.high %v584_v14, %v588_v25  ;;  %v11450_v61 = vcombine.low %v584_v14, %v588_v25  ;;  %v11464_v25 = vadd.f32 %v11055_v8, %v1007_v52  ;;  %v11470_v40 = vadd.f32 %v11062_v57, %v1007_v52  ;;  %v608_v52 = vld [vmem:[#allocation12 + $0x840] sm:$0xff] }
 0x22f   :  { %5067 = vmatpush1.bf16.msra.mxu0 %v11406_v23  ;;  %5221 = vmatpush1.bf16.msra.mxu1 %v11408_v43  ;;  %15931 = vst [vmem:[#allocation237_spill] sm:$0xff] %v11440_v60  ;;  %v596_v23 = vld [vmem:[#allocation12 + $0x7e0] sm:$0xff]  ;;  %v525_v43 = vld [vmem:[#allocation12 + $0x5a8] sm:$0xff]  ;;  %15935 = vst [vmem:[#allocation239_spill] sm:$0xff] %v11452_v48  ;;  %v11484_v57 = vcombine.high %v529_v31, %v533_v47 }
 0x230   :  { %5068 = vmatprep.subr.bf16.mxu0 %v11412_v15  ;;  %5222 = vmatprep.subr.bf16.mxu1 %v11414_v19  ;;  %15930 = vst [vmem:[#allocation236_spill] sm:$0xff] %v11438_v6  ;;  %v592_v19 = vld [vmem:[#allocation12 + $0x7c0] sm:$0xff]  ;;  %v521_v15 = vld [vmem:[#allocation12 + $0x588] sm:$0xff]  ;;  %15934 = vst [vmem:[#allocation238_spill] sm:$0xff] %v11450_v61 }
 0x231   :  { %15939 = vst [vmem:[#allocation243_spill] sm:$0xff] %v11464_v25  ;;  %15941 = vst [vmem:[#allocation245_spill] sm:$0xff] %v11470_v40 }
 0x232   :  { %15945 = vst [vmem:[#allocation249_spill] sm:$0xff] %v11484_v57 }
 0x233   :  { %5069 = vmatpush1.bf16.msra.mxu0 %v11418_v0  ;;  %5223 = vmatpush1.bf16.msra.mxu1 %v11420_v51  ;;  %v15932_v0 = vsub.s32 2, %v11206_v2 }
 0x234   :  { %5070 = vmatprep.subr.bf16.mxu0 %v11424_v30  ;;  %5224 = vmatprep.subr.bf16.mxu1 %v11426_v22  ;;  %v11456_v22 = vcombine.high %v592_v19, %v596_v23  ;;  %v11458_v30 = vcombine.high %v521_v15, %v525_v43 }
 0x235   :  { %v1003_v51 = vrot.slane %v11220_v16, %v15932_v0  ;;  %v600_v0 = vld [vmem:[#allocation12 + $0x800] sm:$0xff] }
 0x236   :  { %15936 = vst [vmem:[#allocation240_spill] sm:$0xff] %v11456_v22  ;;  %15937 = vst [vmem:[#allocation241_spill] sm:$0xff] %v11458_v30 }
 0x237   :  { %5071 = vmatpush1.bf16.msra.mxu0 %v11432_v11  ;;  %5225 = vmatpush1.bf16.msra.mxu1 %v11434_v7  ;;  %v11461_v11 = vadd.f32 %v11053_v32, %v1003_v51  ;;  %v11467_v28 = vadd.f32 %v11057_v20, %v1003_v51  ;;  %v11476_v7 = vcombine.low %v521_v15, %v525_v43  ;;  %v612_v43 = vld [vmem:[#allocation12 + $0x860] sm:$0xff]  ;;  %v537_v15 = vld [vmem:[#allocation12 + $0x608] sm:$0xff] }
 0x238   :  { %5072 = vmatprep.subr.bf16.mxu0 %v11438_v6  ;;  %5226 = vmatprep.subr.bf16.mxu1 %v11440_v60  ;;  %v11474_v6 = vcombine.low %v592_v19, %v596_v23  ;;  %v11478_v32 = vcombine.high %v600_v0, %v604_v27  ;;  %v541_v19 = vld [vmem:[#allocation12 + $0x628] sm:$0xff] }
 0x239   :  { %v2281_v12 = vpop.f32.mrb[12].mxu1  ;;  %15938 = vst [vmem:[#allocation242_spill] sm:$0xff] %v11461_v11  ;;  %15940 = vst [vmem:[#allocation244_spill] sm:$0xff] %v11467_v28 }
 0x23a   :  { %v2283_v14 = vpop.f32.mrb[13].mxu1  ;;  %15942 = vst [vmem:[#allocation246_spill] sm:$0xff] %v11474_v6  ;;  %15943 = vst [vmem:[#allocation247_spill] sm:$0xff] %v11476_v7  ;;  %v2378_v8 = vadd.f32 %v2281_v12, %v11461_v11 }
 0x23b   :  { %5073 = vmatpush1.bf16.msra.mxu0 %v11450_v61  ;;  %v2285_v60 = vpop.f32.mrb[14].mxu1  ;;  %5227 = vmatpush1.bf16.msra.mxu1 %v11452_v48  ;;  %15944 = vst [vmem:[#allocation248_spill] sm:$0xff] %v11478_v32  ;;  %v2379_v48 = vadd.f32 %v2283_v14, %v11464_v25  ;;  %v11500_v14 = vcombine.high %v608_v52, %v612_v43 }
 0x23c   :  { %v2386_v20 = vadd.f32 %v2285_v60, %v11467_v28  ;;  %v2287_v51 = vpop.f32.mrb[15].mxu1  ;;  %5074 = vmatprep.subr.bf16.mxu0 %v11456_v22  ;;  %5228 = vmatprep.subr.bf16.mxu1 %v11458_v30  ;;  %v11494_v60 = vcombine.low %v600_v0, %v604_v27  ;;  %v11496_v30 = vcombine.low %v529_v31, %v533_v47 }
 0x23d   :  { %v2387_v23 = vadd.f32 %v2287_v51, %v11470_v40  ;;  %15948 = vst [vmem:[#allocation252_spill] sm:$0xff] %v11500_v14  ;;  %v11502_v51 = vcombine.high %v537_v15, %v541_v19  ;;  %v11509_v47 = vcombine.low %v608_v52, %v612_v43  ;;  %v11511_v27 = vcombine.low %v537_v15, %v541_v19 }
 0x23e   :  { %v11488_v61 = vpack.c.bf16 %v2386_v20, %v2378_v8  ;;  %15946 = vst [vmem:[#allocation250_spill] sm:$0xff] %v11494_v60  ;;  %15947 = vst [vmem:[#allocation251_spill] sm:$0xff] %v11496_v30  ;;  %v616_v8 = vld [vmem:[#allocation12 + $0x880] sm:$0xff]  ;;  %v545_v20 = vld [vmem:[#allocation12 + $0x648] sm:$0xff] }
 0x23f   :  { %v11490_v12 = vpack.c.bf16 %v2387_v23, %v2379_v48  ;;  %5075 = vmatpush1.bf16.msra.mxu0 %v11474_v6  ;;  %5229 = vmatpush1.bf16.msra.mxu1 %v11476_v7  ;;  %15949 = vst [vmem:[#allocation253_spill] sm:$0xff] %v11502_v51  ;;  %v620_v48 = vld [vmem:[#allocation12 + $0x8a0] sm:$0xff]  ;;  %v549_v23 = vld [vmem:[#allocation12 + $0x668] sm:$0xff]  ;;  %15950 = vst [vmem:[#allocation254_spill] sm:$0xff] %v11509_v47 }
 0x240   :  { %5087 = vmatprep.subr.bf16.mxu0 %v11478_v32  ;;  %5230 = vmatprep.subr.bf16.mxu1 %v11484_v57  ;;  %15951 = vst [vmem:[#allocation255_spill] sm:$0xff] %v11511_v27  ;;  %v11515_v0 = vcombine.high %v616_v8, %v620_v48  ;;  %v11517_v31 = vcombine.high %v545_v20, %v549_v23  ;;  %v624_v57 = vld [vmem:[#allocation12 + $0x8c0] sm:$0xff]  ;;  %v553_v7 = vld [vmem:[#allocation12 + $0x688] sm:$0xff] }
 0x241   :  { %5076 = vmatprep.mubr.bf16.mxu0 %v11490_v12  ;;  %5248 = vmatprep.mubr.bf16.mxu1 %v11490_v12  ;;  %v628_v32 = vld [vmem:[#allocation12 + $0x8e0] sm:$0xff]  ;;  %v557_v6 = vld [vmem:[#allocation12 + $0x6a8] sm:$0xff]  ;;  %v11521_v52 = vcombine.low %v616_v8, %v620_v48  ;;  %v11523_v43 = vcombine.low %v545_v20, %v549_v23 }
 0x242   :  { %5077 = vmatmul.mubr.bf16.vlgmr.msra.gmra.mrb[8].mxu0 %v11488_v61  ;;  %15952 = vst [vmem:[#allocation256_spill] sm:$0xff] %v11515_v0  ;;  %15953 = vst [vmem:[#allocation257_spill] sm:$0xff] %v11517_v31  ;;  %v11527_v15 = vcombine.high %v624_v57, %v628_v32  ;;  %v11529_v19 = vcombine.high %v553_v7, %v557_v6  ;;  %v11533_v8 = vcombine.low %v624_v57, %v628_v32 }
 0x243   :  { %5088 = vmatpush1.bf16.msra.mxu0 %v11494_v60  ;;  %5231 = vmatpush1.bf16.msra.mxu1 %v11496_v30  ;;  %15954 = vst [vmem:[#allocation258_spill] sm:$0xff] %v11521_v52  ;;  %15955 = vst [vmem:[#allocation259_spill] sm:$0xff] %v11523_v43  ;;  %v561_v30 = vld [vmem:[#allocation12 + $0x6c8] sm:$0xff]  ;;  %v11535_v48 = vcombine.low %v553_v7, %v557_v6 }
 0x244   :  { %5089 = vmatprep.subr.bf16.mxu0 %v11500_v14  ;;  %5232 = vmatprep.subr.bf16.mxu1 %v11502_v51  ;;  %15956 = vst [vmem:[#allocation260_spill] sm:$0xff] %v11527_v15  ;;  %15957 = vst [vmem:[#allocation261_spill] sm:$0xff] %v11529_v19  ;;  %v632_v51 = vld [vmem:[#allocation12 + $0x900] sm:$0xff]  ;;  %v565_v60 = vld [vmem:[#allocation12 + $0x6e8] sm:$0xff] }
 0x245   :  { %v636_v14 = vld [vmem:[#allocation12 + $0x920] sm:$0xff]  ;;  %15958 = vst [vmem:[#allocation262_spill] sm:$0xff] %v11533_v8  ;;  %15959 = vst [vmem:[#allocation263_spill] sm:$0xff] %v11535_v48  ;;  %v11541_v23 = vcombine.high %v561_v30, %v565_v60  ;;  %v11547_v7 = vcombine.low %v561_v30, %v565_v60 }
 0x246   :  { %v11539_v20 = vcombine.high %v632_v51, %v636_v14  ;;  %v11545_v32 = vcombine.low %v632_v51, %v636_v14 }
 0x247   :  { %5090 = vmatpush1.bf16.msra.mxu0 %v11509_v47  ;;  %5233 = vmatpush1.bf16.msra.mxu1 %v11511_v27  ;;  %15961 = vst [vmem:[#allocation265_spill] sm:$0xff] %v11541_v23  ;;  %v569_v27 = vld [vmem:[#allocation12 + $0x708] sm:$0xff]  ;;  %15963 = vst [vmem:[#allocation267_spill] sm:$0xff] %v11547_v7 }
 0x248   :  { %5091 = vmatprep.subr.bf16.mxu0 %v11515_v0  ;;  %5234 = vmatprep.subr.bf16.mxu1 %v11517_v31  ;;  %15960 = vst [vmem:[#allocation264_spill] sm:$0xff] %v11539_v20  ;;  %v640_v31 = vld [vmem:[#allocation12 + $0x940] sm:$0xff]  ;;  %v573_v47 = vld [vmem:[#allocation12 + $0x728] sm:$0xff]  ;;  %15962 = vst [vmem:[#allocation266_spill] sm:$0xff] %v11545_v32 }
 0x249   :  { %v644_v0 = vld [vmem:[#allocation12 + $0x960] sm:$0xff]  ;;  %v11553_v57 = vcombine.high %v569_v27, %v573_v47  ;;  %v11559_v30 = vcombine.low %v569_v27, %v573_v47 }
 0x24a   :  { %v11551_v6 = vcombine.high %v640_v31, %v644_v0  ;;  %v11557_v14 = vcombine.low %v640_v31, %v644_v0 }
 0x24b   :  { %5092 = vmatpush1.bf16.msra.mxu0 %v11521_v52  ;;  %5235 = vmatpush1.bf16.msra.mxu1 %v11523_v43  ;;  %15965 = vst [vmem:[#allocation269_spill] sm:$0xff] %v11553_v57  ;;  %v577_v43 = vld [vmem:[#allocation12 + $0x748] sm:$0xff]  ;;  %15967 = vst [vmem:[#allocation271_spill] sm:$0xff] %v11559_v30 }
 0x24c   :  { %5093 = vmatprep.subr.bf16.mxu0 %v11527_v15  ;;  %5236 = vmatprep.subr.bf16.mxu1 %v11529_v19  ;;  %15964 = vst [vmem:[#allocation268_spill] sm:$0xff] %v11551_v6  ;;  %v648_v19 = vld [vmem:[#allocation12 + $0x980] sm:$0xff]  ;;  %v581_v52 = vld [vmem:[#allocation12 + $0x768] sm:$0xff]  ;;  %15966 = vst [vmem:[#allocation270_spill] sm:$0xff] %v11557_v14 }
 0x24d   :  { %v652_v15 = vld [vmem:[#allocation12 + $0x9a0] sm:$0xff]  ;;  %v11565_v51 = vcombine.high %v577_v43, %v581_v52  ;;  %v11571_v47 = vcombine.low %v577_v43, %v581_v52 }
 0x24e   :  { %v11563_v60 = vcombine.high %v648_v19, %v652_v15  ;;  %v11569_v0 = vcombine.low %v648_v19, %v652_v15 }
 0x24f   :  { %5094 = vmatpush1.bf16.msra.mxu0 %v11533_v8  ;;  %5237 = vmatpush1.bf16.msra.mxu1 %v11535_v48  ;;  %15969 = vst [vmem:[#allocation273_spill] sm:$0xff] %v11565_v51  ;;  %v585_v48 = vld [vmem:[#allocation12 + $0x788] sm:$0xff]  ;;  %15971 = vst [vmem:[#allocation275_spill] sm:$0xff] %v11571_v47 }
 0x250   :  { %5095 = vmatprep.subr.bf16.mxu0 %v11539_v20  ;;  %5238 = vmatprep.subr.bf16.mxu1 %v11541_v23  ;;  %15968 = vst [vmem:[#allocation272_spill] sm:$0xff] %v11563_v60  ;;  %v656_v23 = vld [vmem:[#allocation12 + $0x9c0] sm:$0xff]  ;;  %v589_v8 = vld [vmem:[#allocation12 + $0x7a8] sm:$0xff]  ;;  %15970 = vst [vmem:[#allocation274_spill] sm:$0xff] %v11569_v0 }
 0x251   :  { %v660_v20 = vld [vmem:[#allocation12 + $0x9e0] sm:$0xff]  ;;  %v11577_v31 = vcombine.high %v585_v48, %v589_v8  ;;  %v11583_v52 = vcombine.low %v585_v48, %v589_v8 }
 0x252   :  { %v11575_v27 = vcombine.high %v656_v23, %v660_v20  ;;  %v11581_v15 = vcombine.low %v656_v23, %v660_v20 }
 0x253   :  { %5096 = vmatpush1.bf16.msra.mxu0 %v11545_v32  ;;  %5239 = vmatpush1.bf16.msra.mxu1 %v11547_v7  ;;  %15973 = vst [vmem:[#allocation277_spill] sm:$0xff] %v11577_v31  ;;  %v593_v7 = vld [vmem:[#allocation12 + $0x7c8] sm:$0xff]  ;;  %15975 = vst [vmem:[#allocation279_spill] sm:$0xff] %v11583_v52 }
 0x254   :  { %5097 = vmatprep.subr.bf16.mxu0 %v11551_v6  ;;  %5240 = vmatprep.subr.bf16.mxu1 %v11553_v57  ;;  %15972 = vst [vmem:[#allocation276_spill] sm:$0xff] %v11575_v27  ;;  %v664_v57 = vld [vmem:[#allocation12 + $0xa00] sm:$0xff]  ;;  %v597_v32 = vld [vmem:[#allocation12 + $0x7e8] sm:$0xff]  ;;  %15974 = vst [vmem:[#allocation278_spill] sm:$0xff] %v11581_v15 }
 0x255   :  { %v668_v6 = vld [vmem:[#allocation12 + $0xa20] sm:$0xff]  ;;  %v11589_v19 = vcombine.high %v593_v7, %v597_v32  ;;  %v11595_v8 = vcombine.low %v593_v7, %v597_v32 }
 0x256   :  { %v11587_v43 = vcombine.high %v664_v57, %v668_v6  ;;  %v11593_v20 = vcombine.low %v664_v57, %v668_v6 }
 0x257   :  { %5098 = vmatpush1.bf16.msra.mxu0 %v11557_v14  ;;  %5241 = vmatpush1.bf16.msra.mxu1 %v11559_v30  ;;  %15977 = vst [vmem:[#allocation281_spill] sm:$0xff] %v11589_v19  ;;  %v601_v30 = vld [vmem:[#allocation12 + $0x808] sm:$0xff]  ;;  %15979 = vst [vmem:[#allocation283_spill] sm:$0xff] %v11595_v8 }
 0x258   :  { %5099 = vmatprep.subr.bf16.mxu0 %v11563_v60  ;;  %5242 = vmatprep.subr.bf16.mxu1 %v11565_v51  ;;  %15976 = vst [vmem:[#allocation280_spill] sm:$0xff] %v11587_v43  ;;  %v672_v51 = vld [vmem:[#allocation12 + $0xa40] sm:$0xff]  ;;  %v605_v14 = vld [vmem:[#allocation12 + $0x828] sm:$0xff]  ;;  %15978 = vst [vmem:[#allocation282_spill] sm:$0xff] %v11593_v20 }
 0x259   :  { %v676_v60 = vld [vmem:[#allocation12 + $0xa60] sm:$0xff]  ;;  %v11601_v23 = vcombine.high %v601_v30, %v605_v14  ;;  %v11607_v32 = vcombine.low %v601_v30, %v605_v14 }
 0x25a   :  { %v11599_v48 = vcombine.high %v672_v51, %v676_v60  ;;  %v11605_v6 = vcombine.low %v672_v51, %v676_v60 }
 0x25b   :  { %5100 = vmatpush1.bf16.msra.mxu0 %v11569_v0  ;;  %5243 = vmatpush1.bf16.msra.mxu1 %v11571_v47  ;;  %15981 = vst [vmem:[#allocation285_spill] sm:$0xff] %v11601_v23  ;;  %v609_v47 = vld [vmem:[#allocation12 + $0x848] sm:$0xff]  ;;  %15983 = vst [vmem:[#allocation287_spill] sm:$0xff] %v11607_v32 }
 0x25c   :  { %5101 = vmatprep.subr.bf16.mxu0 %v11575_v27  ;;  %5244 = vmatprep.subr.bf16.mxu1 %v11577_v31  ;;  %15980 = vst [vmem:[#allocation284_spill] sm:$0xff] %v11599_v48  ;;  %v680_v31 = vld [vmem:[#allocation12 + $0xa80] sm:$0xff]  ;;  %v613_v0 = vld [vmem:[#allocation12 + $0x868] sm:$0xff]  ;;  %15982 = vst [vmem:[#allocation286_spill] sm:$0xff] %v11605_v6 }
 0x25d   :  { %v684_v27 = vld [vmem:[#allocation12 + $0xaa0] sm:$0xff]  ;;  %v11613_v57 = vcombine.high %v609_v47, %v613_v0  ;;  %v11620_v30 = vcombine.low %v609_v47, %v613_v0 }
 0x25e   :  { %v11611_v7 = vcombine.high %v680_v31, %v684_v27  ;;  %v11618_v14 = vcombine.low %v680_v31, %v684_v27 }
 0x25f   :  { %5102 = vmatpush1.bf16.msra.mxu0 %v11581_v15  ;;  %5245 = vmatpush1.bf16.msra.mxu1 %v11583_v52  ;;  %15985 = vst [vmem:[#allocation289_spill] sm:$0xff] %v11613_v57  ;;  %v617_v52 = vld [vmem:[#allocation12 + $0x888] sm:$0xff]  ;;  %15987 = vst [vmem:[#allocation291_spill] sm:$0xff] %v11620_v30 }
 0x260   :  { %5103 = vmatprep.subr.bf16.mxu0 %v11587_v43  ;;  %5246 = vmatprep.subr.bf16.mxu1 %v11589_v19  ;;  %15984 = vst [vmem:[#allocation288_spill] sm:$0xff] %v11611_v7  ;;  %v688_v19 = vld [vmem:[#allocation12 + $0xac0] sm:$0xff]  ;;  %v621_v15 = vld [vmem:[#allocation12 + $0x8a8] sm:$0xff]  ;;  %15986 = vst [vmem:[#allocation290_spill] sm:$0xff] %v11618_v14 }
 0x261   :  { %v692_v43 = vld [vmem:[#allocation12 + $0xae0] sm:$0xff]  ;;  %v11626_v51 = vcombine.high %v617_v52, %v621_v15  ;;  %v11632_v0 = vcombine.low %v617_v52, %v621_v15  ;;  %v14999_v52 = vsub.s32 4, %v11206_v2 }
 0x262   :  { %v11624_v60 = vcombine.high %v688_v19, %v692_v43  ;;  %v11630_v27 = vcombine.low %v688_v19, %v692_v43 }
 0x263   :  { %5104 = vmatpush1.bf16.msra.mxu0 %v11593_v20  ;;  %5247 = vmatpush1.bf16.msra.mxu1 %v11595_v8  ;;  %15989 = vst [vmem:[#allocation293_spill] sm:$0xff] %v11626_v51  ;;  %v625_v8 = vld [vmem:[#allocation12 + $0x8c8] sm:$0xff]  ;;  %15991 = vst [vmem:[#allocation295_spill] sm:$0xff] %v11632_v0 }
 0x264   :  { %5105 = vmatprep.subr.bf16.mxu0 %v11599_v48  ;;  %5259 = vmatprep.subr.bf16.mxu1 %v11601_v23  ;;  %15988 = vst [vmem:[#allocation292_spill] sm:$0xff] %v11624_v60  ;;  %v696_v23 = vld [vmem:[#allocation12 + $0xb00] sm:$0xff]  ;;  %v629_v20 = vld [vmem:[#allocation12 + $0x8e8] sm:$0xff]  ;;  %15990 = vst [vmem:[#allocation294_spill] sm:$0xff] %v11630_v27 }
 0x265   :  { %v700_v48 = vld [vmem:[#allocation12 + $0xb20] sm:$0xff]  ;;  %v11638_v31 = vcombine.high %v625_v8, %v629_v20  ;;  %v11644_v15 = vcombine.low %v625_v8, %v629_v20 }
 0x266   :  { %5249 = vmatmul.mubr.bf16.vlgmr.msra.gmra.mrb[24].mxu1 %v11488_v61  ;;  %v11636_v47 = vcombine.high %v696_v23, %v700_v48  ;;  %v11642_v43 = vcombine.low %v696_v23, %v700_v48  ;;  %v1011_v48 = vrot.slane %v11220_v16, %v14999_v52 }
 0x267   :  { %5106 = vmatpush1.bf16.msra.mxu0 %v11605_v6  ;;  %5260 = vmatpush1.bf16.msra.mxu1 %v11607_v32  ;;  %15993 = vst [vmem:[#allocation297_spill] sm:$0xff] %v11638_v31  ;;  %v633_v32 = vld [vmem:[#allocation12 + $0x908] sm:$0xff]  ;;  %15995 = vst [vmem:[#allocation299_spill] sm:$0xff] %v11644_v15 }
 0x268   :  { %5107 = vmatprep.subr.bf16.mxu0 %v11611_v7  ;;  %5261 = vmatprep.subr.bf16.mxu1 %v11613_v57  ;;  %15992 = vst [vmem:[#allocation296_spill] sm:$0xff] %v11636_v47  ;;  %v704_v57 = vld [vmem:[#allocation12 + $0xb40] sm:$0xff]  ;;  %v637_v6 = vld [vmem:[#allocation12 + $0x928] sm:$0xff]  ;;  %15994 = vst [vmem:[#allocation298_spill] sm:$0xff] %v11642_v43 }
 0x269   :  { %v708_v7 = vld [vmem:[#allocation12 + $0xb60] sm:$0xff]  ;;  %v11658_v8 = vcombine.low %v633_v32, %v637_v6 }
 0x26a   :  { %v11649_v19 = vcombine.high %v704_v57, %v708_v7  ;;  %v11656_v20 = vcombine.low %v704_v57, %v708_v7  ;;  %v724_v57 = vld [vmem:[#allocation12 + $0xbe0] sm:$0xff] }
 0x26b   :  { %5108 = vmatpush1.bf16.msra.mxu0 %v11618_v14  ;;  %5262 = vmatpush1.bf16.msra.mxu1 %v11620_v30  ;;  %v641_v14 = vld [vmem:[#allocation12 + $0x948] sm:$0xff]  ;;  %15999 = vst [vmem:[#allocation303_spill] sm:$0xff] %v11658_v8 }
 0x26c   :  { %5109 = vmatprep.subr.bf16.mxu0 %v11624_v60  ;;  %5263 = vmatprep.subr.bf16.mxu1 %v11626_v51  ;;  %15996 = vst [vmem:[#allocation300_spill] sm:$0xff] %v11649_v19  ;;  %v11651_v51 = vcombine.high %v633_v32, %v637_v6  ;;  %v712_v60 = vld [vmem:[#allocation12 + $0xb80] sm:$0xff]  ;;  %15998 = vst [vmem:[#allocation302_spill] sm:$0xff] %v11656_v20  ;;  %v649_v6 = vld [vmem:[#allocation12 + $0x988] sm:$0xff] }
 0x26d   :  { %v653_v32 = vld [vmem:[#allocation12 + $0x9a8] sm:$0xff] }
 0x26e   :  { %15997 = vst [vmem:[#allocation301_spill] sm:$0xff] %v11651_v51  ;;  %v11700_v40 = vcombine.low %v649_v6, %v653_v32 }
 0x26f   :  { %5110 = vmatpush1.bf16.msra.mxu0 %v11630_v27  ;;  %5264 = vmatpush1.bf16.msra.mxu1 %v11632_v0  ;;  %v716_v27 = vld [vmem:[#allocation12 + $0xba0] sm:$0xff]  ;;  %v645_v0 = vld [vmem:[#allocation12 + $0x968] sm:$0xff] }
 0x270   :  { %5111 = vmatprep.subr.bf16.mxu0 %v11636_v47  ;;  %5265 = vmatprep.subr.bf16.mxu1 %v11638_v31  ;;  %v11665_v23 = vcombine.high %v712_v60, %v716_v27  ;;  %v11667_v30 = vcombine.high %v641_v14, %v645_v0  ;;  %v720_v31 = vld [vmem:[#allocation12 + $0xbc0] sm:$0xff]  ;;  %v11674_v52 = vcombine.low %v712_v60, %v716_v27  ;;  %v657_v27 = vld [vmem:[#allocation12 + $0x9c8] sm:$0xff] }
 0x271   :  { %v732_v47 = vld [vmem:[#allocation12 + $0xc20] sm:$0xff]  ;;  %16010 = vst [vmem:[#allocation313_spill] sm:$0xff] %v11700_v40 }
 0x272   :  { %16000 = vst [vmem:[#allocation304_spill] sm:$0xff] %v11665_v23  ;;  %16001 = vst [vmem:[#allocation305_spill] sm:$0xff] %v11667_v30 }
 0x273   :  { %5112 = vmatpush1.bf16.msra.mxu0 %v11642_v43  ;;  %5266 = vmatpush1.bf16.msra.mxu1 %v11644_v15  ;;  %v16002_v43 = vsub.s32 5, %v11206_v2  ;;  %16003 = vst [vmem:[#allocation306_spill] sm:$0xff] %v11674_v52  ;;  %v11683_v15 = vcombine.high %v720_v31, %v724_v57 }
 0x274   :  { %5113 = vmatprep.subr.bf16.mxu0 %v11649_v19  ;;  %5267 = vmatprep.subr.bf16.mxu1 %v11651_v51  ;;  %v11676_v19 = vcombine.low %v641_v14, %v645_v0  ;;  %v11679_v51 = vadd.f32 %v11230_v17, %v1011_v48  ;;  %v661_v14 = vld [vmem:[#allocation12 + $0x9e8] sm:$0xff]  ;;  %v11691_v0 = vadd.f32 %v11236_v35, %v1011_v48 }
 0x275   :  { %v1015_v7 = vrot.slane %v11220_v16, %v16002_v43  ;;  %16005 = vst [vmem:[#allocation308_spill] sm:$0xff] %v11683_v15  ;;  %v11685_v16 = vcombine.high %v649_v6, %v653_v32  ;;  %v728_v43 = vld [vmem:[#allocation12 + $0xc00] sm:$0xff]  ;;  %v665_v6 = vld [vmem:[#allocation12 + $0xa08] sm:$0xff] }
 0x276   :  { %16004 = vst [vmem:[#allocation307_spill] sm:$0xff] %v11676_v19  ;;  %v669_v32 = vld [vmem:[#allocation12 + $0xa28] sm:$0xff] }
 0x277   :  { %5114 = vmatpush1.bf16.msra.mxu0 %v11656_v20  ;;  %5268 = vmatpush1.bf16.msra.mxu1 %v11658_v8  ;;  %16006 = vst [vmem:[#allocation309_spill] sm:$0xff] %v11685_v16  ;;  %v11688_v20 = vadd.f32 %v11234_v56, %v1015_v7  ;;  %v11694_v17 = vadd.f32 %v11241_v39, %v1015_v7  ;;  %v736_v7 = vld [vmem:[#allocation12 + $0xc40] sm:$0xff] }
 0x278   :  { %5115 = vmatprep.subr.bf16.mxu0 %v11665_v23  ;;  %5269 = vmatprep.subr.bf16.mxu1 %v11667_v30  ;;  %v11698_v8 = vcombine.low %v720_v31, %v724_v57  ;;  %v11702_v56 = vcombine.high %v728_v43, %v732_v47  ;;  %v11708_v39 = vcombine.high %v657_v27, %v661_v14  ;;  %v740_v57 = vld [vmem:[#allocation12 + $0xc60] sm:$0xff] }
 0x279   :  { %16007 = vst [vmem:[#allocation310_spill] sm:$0xff] %v11688_v20  ;;  %v2324_v60 = vpop.f32.mrb[16].mxu1  ;;  %16008 = vst [vmem:[#allocation311_spill] sm:$0xff] %v11694_v17 }
 0x27a   :  { %v2326_v23 = vpop.f32.mrb[17].mxu1  ;;  %16009 = vst [vmem:[#allocation312_spill] sm:$0xff] %v11698_v8  ;;  %16011 = vst [vmem:[#allocation314_spill] sm:$0xff] %v11702_v56  ;;  %v2380_v25 = vadd.f32 %v2324_v60, %v11679_v51 }
 0x27b   :  { %5116 = vmatpush1.bf16.msra.mxu0 %v11674_v52  ;;  %v2328_v30 = vpop.f32.mrb[18].mxu1  ;;  %5270 = vmatpush1.bf16.msra.mxu1 %v11676_v19  ;;  %16012 = vst [vmem:[#allocation315_spill] sm:$0xff] %v11708_v39  ;;  %v2381_v19 = vadd.f32 %v2326_v23, %v11688_v20  ;;  %v11724_v23 = vcombine.high %v736_v7, %v740_v57  ;;  %v350_v20 = vld [vmem:[#allocation12 + $0x30] sm:$0xff] }
 0x27c   :  { %v2388_v35 = vadd.f32 %v2328_v30, %v11691_v0  ;;  %v2330_v48 = vpop.f32.mrb[19].mxu1  ;;  %5117 = vmatprep.subr.bf16.mxu0 %v11683_v15  ;;  %5271 = vmatprep.subr.bf16.mxu1 %v11685_v16  ;;  %v11718_v30 = vcombine.low %v728_v43, %v732_v47  ;;  %v11720_v16 = vcombine.low %v657_v27, %v661_v14 }
 0x27d   :  { %v2389_v31 = vadd.f32 %v2330_v48, %v11694_v17  ;;  %16015 = vst [vmem:[#allocation318_spill] sm:$0xff] %v11724_v23  ;;  %v11726_v48 = vcombine.high %v665_v6, %v669_v32  ;;  %v11733_v47 = vcombine.low %v736_v7, %v740_v57  ;;  %v11735_v43 = vcombine.low %v665_v6, %v669_v32  ;;  %v9974_v17 = vld [vmem:[#allocation11] sm:$0xff] }
 0x27e   :  { %v11712_v52 = vpack.c.bf16 %v2388_v35, %v2380_v25  ;;  %16013 = vst [vmem:[#allocation316_spill] sm:$0xff] %v11718_v30  ;;  %16014 = vst [vmem:[#allocation317_spill] sm:$0xff] %v11720_v16  ;;  %v744_v25 = vld [vmem:[#allocation12 + $0xc80] sm:$0xff]  ;;  %v673_v35 = vld [vmem:[#allocation12 + $0xa48] sm:$0xff] }
 0x27f   :  { %v11714_v60 = vpack.c.bf16 %v2389_v31, %v2381_v19  ;;  %5118 = vmatpush1.bf16.msra.mxu0 %v11698_v8  ;;  %5272 = vmatpush1.bf16.msra.mxu1 %v11700_v40  ;;  %16016 = vst [vmem:[#allocation319_spill] sm:$0xff] %v11726_v48  ;;  %v748_v19 = vld [vmem:[#allocation12 + $0xca0] sm:$0xff]  ;;  %v677_v31 = vld [vmem:[#allocation12 + $0xa68] sm:$0xff]  ;;  %16017 = vst [vmem:[#allocation320_spill] sm:$0xff] %v11733_v47 }
 0x280   :  { %5130 = vmatprep.subr.bf16.mxu0 %v11702_v56  ;;  %5273 = vmatprep.subr.bf16.mxu1 %v11708_v39  ;;  %16018 = vst [vmem:[#allocation321_spill] sm:$0xff] %v11735_v43  ;;  %v11739_v27 = vcombine.high %v744_v25, %v748_v19  ;;  %v11741_v14 = vcombine.high %v673_v35, %v677_v31  ;;  %v752_v39 = vld [vmem:[#allocation12 + $0xcc0] sm:$0xff]  ;;  %v681_v40 = vld [vmem:[#allocation12 + $0xa88] sm:$0xff] }
 0x281   :  { %5119 = vmatprep.mubr.bf16.mxu0 %v11714_v60  ;;  %5291 = vmatprep.mubr.bf16.mxu1 %v11714_v60  ;;  %v756_v56 = vld [vmem:[#allocation12 + $0xce0] sm:$0xff]  ;;  %v685_v8 = vld [vmem:[#allocation12 + $0xaa8] sm:$0xff]  ;;  %v11745_v7 = vcombine.low %v744_v25, %v748_v19  ;;  %v11747_v57 = vcombine.low %v673_v35, %v677_v31 }
 0x282   :  { %5120 = vmatmul.mubr.bf16.vlgmr.msra.gmra.mrb[8].mxu0 %v11712_v52  ;;  %16019 = vst [vmem:[#allocation322_spill] sm:$0xff] %v11739_v27  ;;  %16020 = vst [vmem:[#allocation323_spill] sm:$0xff] %v11741_v14  ;;  %v11751_v6 = vcombine.high %v752_v39, %v756_v56  ;;  %v11753_v32 = vcombine.high %v681_v40, %v685_v8  ;;  %v11757_v25 = vcombine.low %v752_v39, %v756_v56 }
 0x283   :  { %5131 = vmatpush1.bf16.msra.mxu0 %v11718_v30  ;;  %5274 = vmatpush1.bf16.msra.mxu1 %v11720_v16  ;;  %16021 = vst [vmem:[#allocation324_spill] sm:$0xff] %v11745_v7  ;;  %16022 = vst [vmem:[#allocation325_spill] sm:$0xff] %v11747_v57  ;;  %v689_v16 = vld [vmem:[#allocation12 + $0xac8] sm:$0xff]  ;;  %v11759_v19 = vcombine.low %v681_v40, %v685_v8 }
 0x284   :  { %5132 = vmatprep.subr.bf16.mxu0 %v11724_v23  ;;  %5275 = vmatprep.subr.bf16.mxu1 %v11726_v48  ;;  %16023 = vst [vmem:[#allocation326_spill] sm:$0xff] %v11751_v6  ;;  %16024 = vst [vmem:[#allocation327_spill] sm:$0xff] %v11753_v32  ;;  %v760_v48 = vld [vmem:[#allocation12 + $0xd00] sm:$0xff]  ;;  %v693_v30 = vld [vmem:[#allocation12 + $0xae8] sm:$0xff] }
 0x285   :  { %v764_v23 = vld [vmem:[#allocation12 + $0xd20] sm:$0xff]  ;;  %16025 = vst [vmem:[#allocation328_spill] sm:$0xff] %v11757_v25  ;;  %16026 = vst [vmem:[#allocation329_spill] sm:$0xff] %v11759_v19  ;;  %v11765_v31 = vcombine.high %v689_v16, %v693_v30  ;;  %v11771_v40 = vcombine.low %v689_v16, %v693_v30 }
 0x286   :  { %v11763_v35 = vcombine.high %v760_v48, %v764_v23  ;;  %v11769_v56 = vcombine.low %v760_v48, %v764_v23 }
 0x287   :  { %5133 = vmatpush1.bf16.msra.mxu0 %v11733_v47  ;;  %5276 = vmatpush1.bf16.msra.mxu1 %v11735_v43  ;;  %16028 = vst [vmem:[#allocation331_spill] sm:$0xff] %v11765_v31  ;;  %v697_v43 = vld [vmem:[#allocation12 + $0xb08] sm:$0xff]  ;;  %16030 = vst [vmem:[#allocation333_spill] sm:$0xff] %v11771_v40 }
 0x288   :  { %5134 = vmatprep.subr.bf16.mxu0 %v11739_v27  ;;  %5277 = vmatprep.subr.bf16.mxu1 %v11741_v14  ;;  %16027 = vst [vmem:[#allocation330_spill] sm:$0xff] %v11763_v35  ;;  %v768_v14 = vld [vmem:[#allocation12 + $0xd40] sm:$0xff]  ;;  %v701_v47 = vld [vmem:[#allocation12 + $0xb28] sm:$0xff]  ;;  %16029 = vst [vmem:[#allocation332_spill] sm:$0xff] %v11769_v56 }
 0x289   :  { %v772_v27 = vld [vmem:[#allocation12 + $0xd60] sm:$0xff]  ;;  %v11777_v39 = vcombine.high %v697_v43, %v701_v47  ;;  %v11783_v16 = vcombine.low %v697_v43, %v701_v47 }
 0x28a   :  { %v11775_v8 = vcombine.high %v768_v14, %v772_v27  ;;  %v11781_v23 = vcombine.low %v768_v14, %v772_v27 }
 0x28b   :  { %5135 = vmatpush1.bf16.msra.mxu0 %v11745_v7  ;;  %5278 = vmatpush1.bf16.msra.mxu1 %v11747_v57  ;;  %16032 = vst [vmem:[#allocation335_spill] sm:$0xff] %v11777_v39  ;;  %v705_v57 = vld [vmem:[#allocation12 + $0xb48] sm:$0xff]  ;;  %16034 = vst [vmem:[#allocation337_spill] sm:$0xff] %v11783_v16 }
 0x28c   :  { %5136 = vmatprep.subr.bf16.mxu0 %v11751_v6  ;;  %5279 = vmatprep.subr.bf16.mxu1 %v11753_v32  ;;  %16031 = vst [vmem:[#allocation334_spill] sm:$0xff] %v11775_v8  ;;  %v776_v32 = vld [vmem:[#allocation12 + $0xd80] sm:$0xff]  ;;  %v709_v7 = vld [vmem:[#allocation12 + $0xb68] sm:$0xff]  ;;  %16033 = vst [vmem:[#allocation336_spill] sm:$0xff] %v11781_v23 }
 0x28d   :  { %v780_v6 = vld [vmem:[#allocation12 + $0xda0] sm:$0xff]  ;;  %v11789_v48 = vcombine.high %v705_v57, %v709_v7  ;;  %v11795_v47 = vcombine.low %v705_v57, %v709_v7 }
 0x28e   :  { %v11787_v30 = vcombine.high %v776_v32, %v780_v6  ;;  %v11793_v27 = vcombine.low %v776_v32, %v780_v6 }
 0x28f   :  { %5137 = vmatpush1.bf16.msra.mxu0 %v11757_v25  ;;  %5280 = vmatpush1.bf16.msra.mxu1 %v11759_v19  ;;  %16036 = vst [vmem:[#allocation339_spill] sm:$0xff] %v11789_v48  ;;  %v713_v19 = vld [vmem:[#allocation12 + $0xb88] sm:$0xff]  ;;  %16038 = vst [vmem:[#allocation341_spill] sm:$0xff] %v11795_v47 }
 0x290   :  { %5138 = vmatprep.subr.bf16.mxu0 %v11763_v35  ;;  %5281 = vmatprep.subr.bf16.mxu1 %v11765_v31  ;;  %16035 = vst [vmem:[#allocation338_spill] sm:$0xff] %v11787_v30  ;;  %v784_v31 = vld [vmem:[#allocation12 + $0xdc0] sm:$0xff]  ;;  %v717_v25 = vld [vmem:[#allocation12 + $0xba8] sm:$0xff]  ;;  %16037 = vst [vmem:[#allocation340_spill] sm:$0xff] %v11793_v27 }
 0x291   :  { %v788_v35 = vld [vmem:[#allocation12 + $0xde0] sm:$0xff]  ;;  %v11801_v14 = vcombine.high %v713_v19, %v717_v25  ;;  %v11807_v7 = vcombine.low %v713_v19, %v717_v25 }
 0x292   :  { %v11799_v43 = vcombine.high %v784_v31, %v788_v35  ;;  %v11805_v6 = vcombine.low %v784_v31, %v788_v35 }
 0x293   :  { %5139 = vmatpush1.bf16.msra.mxu0 %v11769_v56  ;;  %5282 = vmatpush1.bf16.msra.mxu1 %v11771_v40  ;;  %16040 = vst [vmem:[#allocation343_spill] sm:$0xff] %v11801_v14  ;;  %v721_v40 = vld [vmem:[#allocation12 + $0xbc8] sm:$0xff]  ;;  %16042 = vst [vmem:[#allocation345_spill] sm:$0xff] %v11807_v7 }
 0x294   :  { %5140 = vmatprep.subr.bf16.mxu0 %v11775_v8  ;;  %5283 = vmatprep.subr.bf16.mxu1 %v11777_v39  ;;  %16039 = vst [vmem:[#allocation342_spill] sm:$0xff] %v11799_v43  ;;  %v792_v39 = vld [vmem:[#allocation12 + $0xe00] sm:$0xff]  ;;  %v725_v56 = vld [vmem:[#allocation12 + $0xbe8] sm:$0xff]  ;;  %16041 = vst [vmem:[#allocation344_spill] sm:$0xff] %v11805_v6 }
 0x295   :  { %v796_v8 = vld [vmem:[#allocation12 + $0xe20] sm:$0xff]  ;;  %v11813_v32 = vcombine.high %v721_v40, %v725_v56  ;;  %v11819_v25 = vcombine.low %v721_v40, %v725_v56 }
 0x296   :  { %v11811_v57 = vcombine.high %v792_v39, %v796_v8  ;;  %v11817_v35 = vcombine.low %v792_v39, %v796_v8 }
 0x297   :  { %5141 = vmatpush1.bf16.msra.mxu0 %v11781_v23  ;;  %5284 = vmatpush1.bf16.msra.mxu1 %v11783_v16  ;;  %16044 = vst [vmem:[#allocation347_spill] sm:$0xff] %v11813_v32  ;;  %v729_v16 = vld [vmem:[#allocation12 + $0xc08] sm:$0xff]  ;;  %16046 = vst [vmem:[#allocation349_spill] sm:$0xff] %v11819_v25 }
 0x298   :  { %5142 = vmatprep.subr.bf16.mxu0 %v11787_v30  ;;  %5285 = vmatprep.subr.bf16.mxu1 %v11789_v48  ;;  %16043 = vst [vmem:[#allocation346_spill] sm:$0xff] %v11811_v57  ;;  %v800_v48 = vld [vmem:[#allocation12 + $0xe40] sm:$0xff]  ;;  %v733_v23 = vld [vmem:[#allocation12 + $0xc28] sm:$0xff]  ;;  %16045 = vst [vmem:[#allocation348_spill] sm:$0xff] %v11817_v35 }
 0x299   :  { %v804_v30 = vld [vmem:[#allocation12 + $0xe60] sm:$0xff]  ;;  %v11825_v31 = vcombine.high %v729_v16, %v733_v23  ;;  %v11831_v56 = vcombine.low %v729_v16, %v733_v23 }
 0x29a   :  { %v11823_v19 = vcombine.high %v800_v48, %v804_v30  ;;  %v11829_v8 = vcombine.low %v800_v48, %v804_v30 }
 0x29b   :  { %5143 = vmatpush1.bf16.msra.mxu0 %v11793_v27  ;;  %5286 = vmatpush1.bf16.msra.mxu1 %v11795_v47  ;;  %16048 = vst [vmem:[#allocation351_spill] sm:$0xff] %v11825_v31  ;;  %v737_v47 = vld [vmem:[#allocation12 + $0xc48] sm:$0xff]  ;;  %16050 = vst [vmem:[#allocation353_spill] sm:$0xff] %v11831_v56 }
 0x29c   :  { %5144 = vmatprep.subr.bf16.mxu0 %v11799_v43  ;;  %5287 = vmatprep.subr.bf16.mxu1 %v11801_v14  ;;  %16047 = vst [vmem:[#allocation350_spill] sm:$0xff] %v11823_v19  ;;  %v808_v14 = vld [vmem:[#allocation12 + $0xe80] sm:$0xff]  ;;  %v741_v27 = vld [vmem:[#allocation12 + $0xc68] sm:$0xff]  ;;  %16049 = vst [vmem:[#allocation352_spill] sm:$0xff] %v11829_v8 }
 0x29d   :  { %v812_v43 = vld [vmem:[#allocation12 + $0xea0] sm:$0xff]  ;;  %v11837_v39 = vcombine.high %v737_v47, %v741_v27  ;;  %v11844_v16 = vcombine.low %v737_v47, %v741_v27 }
 0x29e   :  { %v11835_v40 = vcombine.high %v808_v14, %v812_v43  ;;  %v11842_v23 = vcombine.low %v808_v14, %v812_v43 }
 0x29f   :  { %5145 = vmatpush1.bf16.msra.mxu0 %v11805_v6  ;;  %5288 = vmatpush1.bf16.msra.mxu1 %v11807_v7  ;;  %16052 = vst [vmem:[#allocation355_spill] sm:$0xff] %v11837_v39  ;;  %v745_v7 = vld [vmem:[#allocation12 + $0xc88] sm:$0xff]  ;;  %16054 = vst [vmem:[#allocation357_spill] sm:$0xff] %v11844_v16 }
 0x2a0   :  { %5146 = vmatprep.subr.bf16.mxu0 %v11811_v57  ;;  %5289 = vmatprep.subr.bf16.mxu1 %v11813_v32  ;;  %16051 = vst [vmem:[#allocation354_spill] sm:$0xff] %v11835_v40  ;;  %v816_v32 = vld [vmem:[#allocation12 + $0xec0] sm:$0xff]  ;;  %v749_v6 = vld [vmem:[#allocation12 + $0xca8] sm:$0xff]  ;;  %16053 = vst [vmem:[#allocation356_spill] sm:$0xff] %v11842_v23 }
 0x2a1   :  { %v820_v57 = vld [vmem:[#allocation12 + $0xee0] sm:$0xff]  ;;  %v11850_v48 = vcombine.high %v745_v7, %v749_v6  ;;  %v11856_v27 = vcombine.low %v745_v7, %v749_v6 }
 0x2a2   :  { %v11848_v30 = vcombine.high %v816_v32, %v820_v57  ;;  %v11854_v43 = vcombine.low %v816_v32, %v820_v57 }
 0x2a3   :  { %5147 = vmatpush1.bf16.msra.mxu0 %v11817_v35  ;;  %5290 = vmatpush1.bf16.msra.mxu1 %v11819_v25  ;;  %16056 = vst [vmem:[#allocation359_spill] sm:$0xff] %v11850_v48  ;;  %v753_v25 = vld [vmem:[#allocation12 + $0xcc8] sm:$0xff]  ;;  %16058 = vst [vmem:[#allocation361_spill] sm:$0xff] %v11856_v27 }
 0x2a4   :  { %5148 = vmatprep.subr.bf16.mxu0 %v11823_v19  ;;  %5302 = vmatprep.subr.bf16.mxu1 %v11825_v31  ;;  %16055 = vst [vmem:[#allocation358_spill] sm:$0xff] %v11848_v30  ;;  %v824_v31 = vld [vmem:[#allocation12 + $0xf00] sm:$0xff]  ;;  %v757_v35 = vld [vmem:[#allocation12 + $0xce8] sm:$0xff]  ;;  %16057 = vst [vmem:[#allocation360_spill] sm:$0xff] %v11854_v43 }
 0x2a5   :  { %v828_v19 = vld [vmem:[#allocation12 + $0xf20] sm:$0xff]  ;;  %v11862_v14 = vcombine.high %v753_v25, %v757_v35  ;;  %v11868_v6 = vcombine.low %v753_v25, %v757_v35 }
 0x2a6   :  { %5292 = vmatmul.mubr.bf16.vlgmr.msra.gmra.mrb[24].mxu1 %v11712_v52  ;;  %v11860_v47 = vcombine.high %v824_v31, %v828_v19  ;;  %v11866_v57 = vcombine.low %v824_v31, %v828_v19 }
 0x2a7   :  { %5149 = vmatpush1.bf16.msra.mxu0 %v11829_v8  ;;  %5303 = vmatpush1.bf16.msra.mxu1 %v11831_v56  ;;  %16060 = vst [vmem:[#allocation363_spill] sm:$0xff] %v11862_v14  ;;  %v761_v56 = vld [vmem:[#allocation12 + $0xd08] sm:$0xff]  ;;  %16062 = vst [vmem:[#allocation365_spill] sm:$0xff] %v11868_v6 }
 0x2a8   :  { %5150 = vmatprep.subr.bf16.mxu0 %v11835_v40  ;;  %5304 = vmatprep.subr.bf16.mxu1 %v11837_v39  ;;  %16059 = vst [vmem:[#allocation362_spill] sm:$0xff] %v11860_v47  ;;  %v832_v39 = vld [vmem:[#allocation12 + $0xf40] sm:$0xff]  ;;  %v765_v8 = vld [vmem:[#allocation12 + $0xd28] sm:$0xff]  ;;  %16061 = vst [vmem:[#allocation364_spill] sm:$0xff] %v11866_v57 }
 0x2a9   :  { %v836_v40 = vld [vmem:[#allocation12 + $0xf60] sm:$0xff]  ;;  %v11874_v32 = vcombine.high %v761_v56, %v765_v8  ;;  %v11882_v25 = vcombine.low %v761_v56, %v765_v8 }
 0x2aa   :  { %v11872_v7 = vcombine.high %v832_v39, %v836_v40  ;;  %v11880_v35 = vcombine.low %v832_v39, %v836_v40  ;;  %v16070_v40 = vsub.s32 7, %v11206_v2 }
 0x2ab   :  { %5151 = vmatpush1.bf16.msra.mxu0 %v11842_v23  ;;  %5305 = vmatpush1.bf16.msra.mxu1 %v11844_v16  ;;  %16064 = vst [vmem:[#allocation367_spill] sm:$0xff] %v11874_v32  ;;  %v769_v16 = vld [vmem:[#allocation12 + $0xd48] sm:$0xff]  ;;  %16066 = vst [vmem:[#allocation369_spill] sm:$0xff] %v11882_v25 }
 0x2ac   :  { %5152 = vmatprep.subr.bf16.mxu0 %v11848_v30  ;;  %5306 = vmatprep.subr.bf16.mxu1 %v11850_v48  ;;  %16063 = vst [vmem:[#allocation366_spill] sm:$0xff] %v11872_v7  ;;  %v840_v48 = vld [vmem:[#allocation12 + $0xf80] sm:$0xff]  ;;  %v773_v23 = vld [vmem:[#allocation12 + $0xd68] sm:$0xff]  ;;  %16065 = vst [vmem:[#allocation368_spill] sm:$0xff] %v11880_v35  ;;  %v1023_v8 = vrot.slane %v9974_v17, %v16070_v40 }
 0x2ad   :  { %v844_v30 = vld [vmem:[#allocation12 + $0xfa0] sm:$0xff]  ;;  %v11888_v31 = vcombine.high %v769_v16, %v773_v23  ;;  %v11898_v39 = vcombine.low %v769_v16, %v773_v23  ;;  %v789_v40 = vld [vmem:[#allocation12 + $0xde8] sm:$0xff] }
 0x2ae   :  { %v11886_v19 = vcombine.high %v840_v48, %v844_v30  ;;  %v11896_v56 = vcombine.low %v840_v48, %v844_v30  ;;  %v11910_v30 = vadd.f32 %v11121_v38, %v1023_v8  ;;  %v11916_v16 = vadd.f32 %v11128_v24, %v1023_v8 }
 0x2af   :  { %5153 = vmatpush1.bf16.msra.mxu0 %v11854_v43  ;;  %5307 = vmatpush1.bf16.msra.mxu1 %v11856_v27  ;;  %16068 = vst [vmem:[#allocation371_spill] sm:$0xff] %v11888_v31  ;;  %v852_v43 = vld [vmem:[#allocation12 + $0xfe0] sm:$0xff]  ;;  %v781_v27 = vld [vmem:[#allocation12 + $0xda8] sm:$0xff]  ;;  %16072 = vst [vmem:[#allocation373_spill] sm:$0xff] %v11898_v39 }
 0x2b0   :  { %5154 = vmatprep.subr.bf16.mxu0 %v11860_v47  ;;  %5308 = vmatprep.subr.bf16.mxu1 %v11862_v14  ;;  %16067 = vst [vmem:[#allocation370_spill] sm:$0xff] %v11886_v19  ;;  %v848_v14 = vld [vmem:[#allocation12 + $0xfc0] sm:$0xff]  ;;  %v777_v47 = vld [vmem:[#allocation12 + $0xd88] sm:$0xff]  ;;  %16071 = vst [vmem:[#allocation372_spill] sm:$0xff] %v11896_v56 }
 0x2b1   :  { %16074 = vst [vmem:[#allocation375_spill] sm:$0xff] %v11916_v16 }
 0x2b3   :  { %5155 = vmatpush1.bf16.msra.mxu0 %v11866_v57  ;;  %5309 = vmatpush1.bf16.msra.mxu1 %v11868_v6  ;;  %v16069_v57 = vsub.s32 6, %v11206_v2 }
 0x2b4   :  { %5156 = vmatprep.subr.bf16.mxu0 %v11872_v7  ;;  %5310 = vmatprep.subr.bf16.mxu1 %v11874_v32  ;;  %v11902_v32 = vcombine.high %v848_v14, %v852_v43  ;;  %v11904_v7 = vcombine.high %v777_v47, %v781_v27 }
 0x2b5   :  { %v1019_v6 = vrot.slane %v9974_v17, %v16069_v57  ;;  %v346_v57 = vld [vmem:[#allocation12 + $0x10] sm:$0xff]  ;;  %v785_v17 = vld [vmem:[#allocation12 + $0xdc8] sm:$0xff] }
 0x2b6   :  { %16073 = vst [vmem:[#allocation374_spill] sm:$0xff] %v11904_v7  ;;  %v11930_v24 = vcombine.high %v785_v17, %v789_v40 }
 0x2b7   :  { %5157 = vmatpush1.bf16.msra.mxu0 %v11880_v35  ;;  %5311 = vmatpush1.bf16.msra.mxu1 %v11882_v25  ;;  %v11907_v35 = vadd.f32 %v11119_v3, %v1019_v6  ;;  %v11913_v23 = vadd.f32 %v11123_v44, %v1019_v6  ;;  %v11922_v25 = vcombine.low %v777_v47, %v781_v27  ;;  %v358_v27 = vld [vmem:[#allocation12 + $0x70] sm:$0xff] }
 0x2b8   :  { %5158 = vmatprep.subr.bf16.mxu0 %v11886_v19  ;;  %5312 = vmatprep.subr.bf16.mxu1 %v11888_v31  ;;  %v11920_v19 = vcombine.low %v848_v14, %v852_v43  ;;  %v11924_v3 = vcombine.high %v346_v57, %v350_v20  ;;  %16078 = vst [vmem:[#allocation379_spill] sm:$0xff] %v11930_v24  ;;  %v354_v14 = vld [vmem:[#allocation12 + $0x50] sm:$0xff] }
 0x2b9   :  { %v2367_v15 = vpop.f32.mrb[20].mxu1  ;;  %16076 = vst [vmem:[#allocation377_spill] sm:$0xff] %v11922_v25 }
 0x2ba   :  { %v2369_v48 = vpop.f32.mrb[21].mxu1  ;;  %16075 = vst [vmem:[#allocation376_spill] sm:$0xff] %v11920_v19  ;;  %16077 = vst [vmem:[#allocation378_spill] sm:$0xff] %v11924_v3  ;;  %v2382_v38 = vadd.f32 %v2367_v15, %v11907_v35 }
 0x2bb   :  { %5159 = vmatpush1.bf16.msra.mxu0 %v11896_v56  ;;  %v2371_v31 = vpop.f32.mrb[22].mxu1  ;;  %5313 = vmatpush1.bf16.msra.mxu1 %v11898_v39  ;;  %v2383_v8 = vadd.f32 %v2369_v48, %v11910_v30  ;;  %v793_v39 = vld [vmem:[#allocation12 + $0xe08] sm:$0xff]  ;;  %v11946_v48 = vcombine.high %v354_v14, %v358_v27 }
 0x2bc   :  { %v2390_v44 = vadd.f32 %v2371_v31, %v11913_v23  ;;  %v2373_v6 = vpop.f32.mrb[23].mxu1  ;;  %5160 = vmatprep.subr.bf16.mxu0 %v11902_v32  ;;  %5314 = vmatprep.subr.bf16.mxu1 %v11904_v7  ;;  %v797_v56 = vld [vmem:[#allocation12 + $0xe28] sm:$0xff]  ;;  %v11940_v31 = vcombine.low %v346_v57, %v350_v20  ;;  %v11942_v7 = vcombine.low %v785_v17, %v789_v40 }
 0x2bd   :  { %v2391_v43 = vadd.f32 %v2373_v6, %v11916_v16  ;;  %16081 = vst [vmem:[#allocation382_spill] sm:$0xff] %v11946_v48  ;;  %v366_v6 = vld [vmem:[#allocation12 + $0xb0] sm:$0xff]  ;;  %v11955_v20 = vcombine.low %v354_v14, %v358_v27  ;;  %v11957_v57 = vcombine.low %v793_v39, %v797_v56 }
 0x2be   :  { %v11934_v47 = vpack.c.bf16 %v2390_v44, %v2382_v38  ;;  %16079 = vst [vmem:[#allocation380_spill] sm:$0xff] %v11940_v31  ;;  %16080 = vst [vmem:[#allocation381_spill] sm:$0xff] %v11942_v7  ;;  %v362_v38 = vld [vmem:[#allocation12 + $0x90] sm:$0xff]  ;;  %v11950_v44 = vcombine.high %v793_v39, %v797_v56 }
 0x2bf   :  { %v11936_v15 = vpack.c.bf16 %v2391_v43, %v2383_v8  ;;  %5161 = vmatpush1.bf16.msra.mxu0 %v11920_v19  ;;  %5315 = vmatpush1.bf16.msra.mxu1 %v11922_v25  ;;  %v801_v8 = vld [vmem:[#allocation12 + $0xe48] sm:$0xff]  ;;  %16083 = vst [vmem:[#allocation384_spill] sm:$0xff] %v11955_v20  ;;  %16084 = vst [vmem:[#allocation385_spill] sm:$0xff] %v11957_v57  ;;  %v11961_v17 = vcombine.high %v362_v38, %v366_v6 }
 0x2c0   :  { %5345 = vmatprep.subr.bf16.mxu0 %v11924_v3  ;;  %5316 = vmatprep.subr.bf16.mxu1 %v11930_v24  ;;  %16082 = vst [vmem:[#allocation383_spill] sm:$0xff] %v11950_v44  ;;  %v805_v43 = vld [vmem:[#allocation12 + $0xe68] sm:$0xff]  ;;  %v370_v3 = vld [vmem:[#allocation12 + $0xd0] sm:$0xff]  ;;  %v11968_v56 = vcombine.low %v362_v38, %v366_v6 }
 0x2c1   :  { %5162 = vmatprep.mubr.bf16.mxu0 %v11936_v15  ;;  %5334 = vmatprep.mubr.bf16.mxu1 %v11936_v15  ;;  %16085 = vst [vmem:[#allocation386_spill] sm:$0xff] %v11961_v17  ;;  %v11963_v40 = vcombine.high %v801_v8, %v805_v43  ;;  %v374_v24 = vld [vmem:[#allocation12 + $0xf0] sm:$0xff]  ;;  %v809_v25 = vld [vmem:[#allocation12 + $0xe88] sm:$0xff]  ;;  %v11970_v39 = vcombine.low %v801_v8, %v805_v43 }
 0x2c2   :  { %5163 = vmatmul.mubr.bf16.vlgmr.msra.gmra.mrb[8].mxu0 %v11934_v47  ;;  %16087 = vst [vmem:[#allocation388_spill] sm:$0xff] %v11968_v56  ;;  %v11974_v14 = vcombine.high %v370_v3, %v374_v24  ;;  %v821_v19 = vld [vmem:[#allocation12 + $0xee8] sm:$0xff]  ;;  %v11980_v38 = vcombine.low %v370_v3, %v374_v24 }
 0x2c3   :  { %5346 = vmatpush1.bf16.msra.mxu0 %v11940_v31  ;;  %5317 = vmatpush1.bf16.msra.mxu1 %v11942_v7  ;;  %16086 = vst [vmem:[#allocation387_spill] sm:$0xff] %v11963_v40  ;;  %v813_v31 = vld [vmem:[#allocation12 + $0xea8] sm:$0xff]  ;;  %16088 = vst [vmem:[#allocation389_spill] sm:$0xff] %v11970_v39 }
 0x2c4   :  { %5377 = vmatprep.mubr.bf16.mxu0 %v11270_v55  ;;  %5347 = vmatprep.subr.bf16.mxu0 %v11946_v48  ;;  %16089 = vst [vmem:[#allocation390_spill] sm:$0xff] %v11974_v14  ;;  %v11976_v27 = vcombine.high %v809_v25, %v813_v31  ;;  %v378_v48 = vld [vmem:[#allocation12 + $0x110] sm:$0xff]  ;;  %v817_v7 = vld [vmem:[#allocation12 + $0xec8] sm:$0xff]  ;;  %16091 = vst [vmem:[#allocation392_spill] sm:$0xff] %v11980_v38  ;;  %v11982_v6 = vcombine.low %v809_v25, %v813_v31 }
 0x2c5   :  { %5318 = vmatprep.subr.bf16.mxu1 %v11950_v44  ;;  %v382_v44 = vld [vmem:[#allocation12 + $0x130] sm:$0xff]  ;;  %v11988_v43 = vcombine.high %v817_v7, %v821_v19  ;;  %v11994_v25 = vcombine.low %v817_v7, %v821_v19 }
 0x2c6   :  { %16090 = vst [vmem:[#allocation391_spill] sm:$0xff] %v11976_v27  ;;  %16092 = vst [vmem:[#allocation393_spill] sm:$0xff] %v11982_v6  ;;  %v11986_v8 = vcombine.high %v378_v48, %v382_v44  ;;  %v11992_v3 = vcombine.low %v378_v48, %v382_v44 }
 0x2c7   :  { %5348 = vmatpush1.bf16.msra.mxu0 %v11955_v20  ;;  %5319 = vmatpush1.bf16.msra.mxu1 %v11957_v57  ;;  %16094 = vst [vmem:[#allocation395_spill] sm:$0xff] %v11988_v43  ;;  %v825_v20 = vld [vmem:[#allocation12 + $0xf08] sm:$0xff]  ;;  %16096 = vst [vmem:[#allocation397_spill] sm:$0xff] %v11994_v25 }
 0x2c8   :  { %5349 = vmatprep.subr.bf16.mxu0 %v11961_v17  ;;  %5320 = vmatprep.subr.bf16.mxu1 %v11963_v40  ;;  %16093 = vst [vmem:[#allocation394_spill] sm:$0xff] %v11986_v8  ;;  %v386_v17 = vld [vmem:[#allocation12 + $0x150] sm:$0xff]  ;;  %v829_v57 = vld [vmem:[#allocation12 + $0xf28] sm:$0xff]  ;;  %16095 = vst [vmem:[#allocation396_spill] sm:$0xff] %v11992_v3 }
 0x2c9   :  { %v390_v40 = vld [vmem:[#allocation12 + $0x170] sm:$0xff]  ;;  %v12000_v31 = vcombine.high %v825_v20, %v829_v57  ;;  %v12006_v7 = vcombine.low %v825_v20, %v829_v57 }
 0x2ca   :  { %v11998_v24 = vcombine.high %v386_v17, %v390_v40  ;;  %v12004_v48 = vcombine.low %v386_v17, %v390_v40 }
 0x2cb   :  { %5350 = vmatpush1.bf16.msra.mxu0 %v11968_v56  ;;  %5321 = vmatpush1.bf16.msra.mxu1 %v11970_v39  ;;  %16098 = vst [vmem:[#allocation399_spill] sm:$0xff] %v12000_v31  ;;  %v833_v56 = vld [vmem:[#allocation12 + $0xf48] sm:$0xff]  ;;  %16100 = vst [vmem:[#allocation401_spill] sm:$0xff] %v12006_v7 }
 0x2cc   :  { %5351 = vmatprep.subr.bf16.mxu0 %v11974_v14  ;;  %5322 = vmatprep.subr.bf16.mxu1 %v11976_v27  ;;  %16097 = vst [vmem:[#allocation398_spill] sm:$0xff] %v11998_v24  ;;  %v394_v14 = vld [vmem:[#allocation12 + $0x190] sm:$0xff]  ;;  %v837_v39 = vld [vmem:[#allocation12 + $0xf68] sm:$0xff]  ;;  %16099 = vst [vmem:[#allocation400_spill] sm:$0xff] %v12004_v48 }
 0x2cd   :  { %v398_v27 = vld [vmem:[#allocation12 + $0x1b0] sm:$0xff]  ;;  %v12012_v44 = vcombine.high %v833_v56, %v837_v39  ;;  %v12018_v20 = vcombine.low %v833_v56, %v837_v39 }
 0x2ce   :  { %v12010_v19 = vcombine.high %v394_v14, %v398_v27  ;;  %v12016_v17 = vcombine.low %v394_v14, %v398_v27 }
 0x2cf   :  { %5352 = vmatpush1.bf16.msra.mxu0 %v11980_v38  ;;  %5323 = vmatpush1.bf16.msra.mxu1 %v11982_v6  ;;  %16102 = vst [vmem:[#allocation403_spill] sm:$0xff] %v12012_v44  ;;  %v841_v38 = vld [vmem:[#allocation12 + $0xf88] sm:$0xff]  ;;  %16104 = vst [vmem:[#allocation405_spill] sm:$0xff] %v12018_v20 }
 0x2d0   :  { %5353 = vmatprep.subr.bf16.mxu0 %v11986_v8  ;;  %5324 = vmatprep.subr.bf16.mxu1 %v11988_v43  ;;  %16101 = vst [vmem:[#allocation402_spill] sm:$0xff] %v12010_v19  ;;  %v402_v8 = vld [vmem:[#allocation12 + $0x1d0] sm:$0xff]  ;;  %v845_v6 = vld [vmem:[#allocation12 + $0xfa8] sm:$0xff]  ;;  %16103 = vst [vmem:[#allocation404_spill] sm:$0xff] %v12016_v17 }
 0x2d1   :  { %v406_v43 = vld [vmem:[#allocation12 + $0x1f0] sm:$0xff]  ;;  %v12024_v40 = vcombine.high %v841_v38, %v845_v6  ;;  %v12030_v56 = vcombine.low %v841_v38, %v845_v6 }
 0x2d2   :  { %v12022_v57 = vcombine.high %v402_v8, %v406_v43  ;;  %v12028_v14 = vcombine.low %v402_v8, %v406_v43 }
 0x2d3   :  { %5354 = vmatpush1.bf16.msra.mxu0 %v11992_v3  ;;  %5325 = vmatpush1.bf16.msra.mxu1 %v11994_v25  ;;  %16106 = vst [vmem:[#allocation407_spill] sm:$0xff] %v12024_v40  ;;  %v849_v3 = vld [vmem:[#allocation12 + $0xfc8] sm:$0xff]  ;;  %16108 = vst [vmem:[#allocation409_spill] sm:$0xff] %v12030_v56 }
 0x2d4   :  { %5355 = vmatprep.subr.bf16.mxu0 %v11998_v24  ;;  %5326 = vmatprep.subr.bf16.mxu1 %v12000_v31  ;;  %16105 = vst [vmem:[#allocation406_spill] sm:$0xff] %v12022_v57  ;;  %v410_v24 = vld [vmem:[#allocation12 + $0x210] sm:$0xff]  ;;  %v853_v25 = vld [vmem:[#allocation12 + $0xfe8] sm:$0xff]  ;;  %16107 = vst [vmem:[#allocation408_spill] sm:$0xff] %v12028_v14 }
 0x2d5   :  { %v414_v31 = vld [vmem:[#allocation12 + $0x230] sm:$0xff]  ;;  %v12036_v27 = vcombine.high %v849_v3, %v853_v25  ;;  %v12042_v38 = vcombine.low %v849_v3, %v853_v25 }
 0x2d6   :  { %v12034_v39 = vcombine.high %v410_v24, %v414_v31  ;;  %v12040_v8 = vcombine.low %v410_v24, %v414_v31  ;;  %v434_v31 = vld [vmem:[#allocation12 + $0x2d0] sm:$0xff] }
 0x2d7   :  { %5356 = vmatpush1.bf16.msra.mxu0 %v12004_v48  ;;  %5327 = vmatpush1.bf16.msra.mxu1 %v12006_v7  ;;  %16110 = vst [vmem:[#allocation411_spill] sm:$0xff] %v12036_v27  ;;  %v347_v48 = vld [vmem:[#allocation12 + $0x18] sm:$0xff]  ;;  %16112 = vst [vmem:[#allocation413_spill] sm:$0xff] %v12042_v38 }
 0x2d8   :  { %5357 = vmatprep.subr.bf16.mxu0 %v12010_v19  ;;  %5328 = vmatprep.subr.bf16.mxu1 %v12012_v44  ;;  %16109 = vst [vmem:[#allocation410_spill] sm:$0xff] %v12034_v39  ;;  %v418_v19 = vld [vmem:[#allocation12 + $0x250] sm:$0xff]  ;;  %v351_v7 = vld [vmem:[#allocation12 + $0x38] sm:$0xff]  ;;  %16111 = vst [vmem:[#allocation412_spill] sm:$0xff] %v12040_v8 }
 0x2d9   :  { %v422_v44 = vld [vmem:[#allocation12 + $0x270] sm:$0xff]  ;;  %v12048_v43 = vcombine.high %v347_v48, %v351_v7  ;;  %v12054_v3 = vcombine.low %v347_v48, %v351_v7 }
 0x2da   :  { %v12046_v6 = vcombine.high %v418_v19, %v422_v44  ;;  %v12052_v24 = vcombine.low %v418_v19, %v422_v44 }
 0x2db   :  { %5358 = vmatpush1.bf16.msra.mxu0 %v12016_v17  ;;  %5329 = vmatpush1.bf16.msra.mxu1 %v12018_v20  ;;  %16114 = vst [vmem:[#allocation415_spill] sm:$0xff] %v12048_v43  ;;  %v355_v17 = vld [vmem:[#allocation12 + $0x58] sm:$0xff]  ;;  %16116 = vst [vmem:[#allocation417_spill] sm:$0xff] %v12054_v3 }
 0x2dc   :  { %5359 = vmatprep.subr.bf16.mxu0 %v12022_v57  ;;  %5330 = vmatprep.subr.bf16.mxu1 %v12024_v40  ;;  %16113 = vst [vmem:[#allocation414_spill] sm:$0xff] %v12046_v6  ;;  %v426_v57 = vld [vmem:[#allocation12 + $0x290] sm:$0xff]  ;;  %v359_v20 = vld [vmem:[#allocation12 + $0x78] sm:$0xff]  ;;  %16115 = vst [vmem:[#allocation416_spill] sm:$0xff] %v12052_v24 }
 0x2dd   :  { %v430_v40 = vld [vmem:[#allocation12 + $0x2b0] sm:$0xff]  ;;  %v12067_v7 = vcombine.low %v355_v17, %v359_v20 }
 0x2de   :  { %v12058_v25 = vcombine.high %v426_v57, %v430_v40  ;;  %v12065_v48 = vcombine.low %v426_v57, %v430_v40  ;;  %v450_v40 = vld [vmem:[#allocation12 + $0x350] sm:$0xff] }
 0x2df   :  { %5360 = vmatpush1.bf16.msra.mxu0 %v12028_v14  ;;  %5331 = vmatpush1.bf16.msra.mxu1 %v12030_v56  ;;  %v363_v14 = vld [vmem:[#allocation12 + $0x98] sm:$0xff]  ;;  %16120 = vst [vmem:[#allocation421_spill] sm:$0xff] %v12067_v7 }
 0x2e0   :  { %5361 = vmatprep.subr.bf16.mxu0 %v12034_v39  ;;  %5332 = vmatprep.subr.bf16.mxu1 %v12036_v27  ;;  %16117 = vst [vmem:[#allocation418_spill] sm:$0xff] %v12058_v25  ;;  %v12060_v39 = vcombine.high %v355_v17, %v359_v20  ;;  %v438_v27 = vld [vmem:[#allocation12 + $0x2f0] sm:$0xff]  ;;  %v367_v56 = vld [vmem:[#allocation12 + $0xb8] sm:$0xff]  ;;  %16119 = vst [vmem:[#allocation420_spill] sm:$0xff] %v12065_v48 }
 0x2e1   :  { %v12071_v19 = vcombine.high %v434_v31, %v438_v27  ;;  %v12073_v44 = vcombine.high %v363_v14, %v367_v56  ;;  %v12078_v17 = vcombine.low %v434_v31, %v438_v27  ;;  %v12080_v20 = vcombine.low %v363_v14, %v367_v56 }
 0x2e2   :  { %16118 = vst [vmem:[#allocation419_spill] sm:$0xff] %v12060_v39 }
 0x2e3   :  { %5362 = vmatpush1.bf16.msra.mxu0 %v12040_v8  ;;  %5333 = vmatpush1.bf16.msra.mxu1 %v12042_v38  ;;  %16121 = vst [vmem:[#allocation422_spill] sm:$0xff] %v12071_v19  ;;  %16122 = vst [vmem:[#allocation423_spill] sm:$0xff] %v12073_v44  ;;  %v371_v8 = vld [vmem:[#allocation12 + $0xd8] sm:$0xff] }
 0x2e4   :  { %5363 = vmatprep.subr.bf16.mxu0 %v12046_v6  ;;  %5517 = vmatprep.subr.bf16.mxu1 %v12048_v43  ;;  %v442_v43 = vld [vmem:[#allocation12 + $0x310] sm:$0xff]  ;;  %16123 = vst [vmem:[#allocation424_spill] sm:$0xff] %v12078_v17  ;;  %16124 = vst [vmem:[#allocation425_spill] sm:$0xff] %v12080_v20  ;;  %v731_v38 = vld [vmem:[#allocation12 + $0xc18] sm:$0xff] }
 0x2e5   :  { %v446_v6 = vld [vmem:[#allocation12 + $0x330] sm:$0xff] }
 0x2e6   :  { %5335 = vmatmul.mubr.bf16.vlgmr.msra.gmra.mrb[24].mxu1 %v11934_v47  ;;  %v12090_v27 = vcombine.low %v442_v43, %v446_v6 }
 0x2e7   :  { %5364 = vmatpush1.bf16.msra.mxu0 %v12052_v24  ;;  %5518 = vmatpush1.bf16.msra.mxu1 %v12054_v3  ;;  %v375_v24 = vld [vmem:[#allocation12 + $0xf8] sm:$0xff] }
 0x2e8   :  { %5549 = vmatprep.mubr.bf16.mxu1 %v11270_v55  ;;  %5365 = vmatprep.subr.bf16.mxu0 %v12058_v25  ;;  %v12084_v55 = vcombine.high %v442_v43, %v446_v6  ;;  %v12086_v57 = vcombine.high %v371_v8, %v375_v24  ;;  %v379_v25 = vld [vmem:[#allocation12 + $0x118] sm:$0xff]  ;;  %16127 = vst [vmem:[#allocation428_spill] sm:$0xff] %v12090_v27 }
 0x2e9   :  { %5519 = vmatprep.subr.bf16.mxu1 %v12060_v39  ;;  %v454_v39 = vld [vmem:[#allocation12 + $0x370] sm:$0xff]  ;;  %v383_v3 = vld [vmem:[#allocation12 + $0x138] sm:$0xff]  ;;  %v12092_v14 = vcombine.low %v371_v8, %v375_v24 }
 0x2ea   :  { %16125 = vst [vmem:[#allocation426_spill] sm:$0xff] %v12084_v55  ;;  %16126 = vst [vmem:[#allocation427_spill] sm:$0xff] %v12086_v57  ;;  %v12096_v56 = vcombine.high %v450_v40, %v454_v39  ;;  %v12098_v31 = vcombine.high %v379_v25, %v383_v3  ;;  %v12102_v6 = vcombine.low %v450_v40, %v454_v39 }
 0x2eb   :  { %5366 = vmatpush1.bf16.msra.mxu0 %v12065_v48  ;;  %5520 = vmatpush1.bf16.msra.mxu1 %v12067_v7  ;;  %16128 = vst [vmem:[#allocation429_spill] sm:$0xff] %v12092_v14  ;;  %v387_v7 = vld [vmem:[#allocation12 + $0x158] sm:$0xff]  ;;  %v12104_v8 = vcombine.low %v379_v25, %v383_v3 }
 0x2ec   :  { %5367 = vmatprep.subr.bf16.mxu0 %v12071_v19  ;;  %5521 = vmatprep.subr.bf16.mxu1 %v12073_v44  ;;  %16129 = vst [vmem:[#allocation430_spill] sm:$0xff] %v12096_v56  ;;  %16130 = vst [vmem:[#allocation431_spill] sm:$0xff] %v12098_v31  ;;  %v458_v44 = vld [vmem:[#allocation12 + $0x390] sm:$0xff]  ;;  %v391_v48 = vld [vmem:[#allocation12 + $0x178] sm:$0xff] }
 0x2ed   :  { %v462_v19 = vld [vmem:[#allocation12 + $0x3b0] sm:$0xff]  ;;  %16131 = vst [vmem:[#allocation432_spill] sm:$0xff] %v12102_v6  ;;  %16132 = vst [vmem:[#allocation433_spill] sm:$0xff] %v12104_v8  ;;  %v12110_v24 = vcombine.high %v387_v7, %v391_v48  ;;  %v12116_v3 = vcombine.low %v387_v7, %v391_v48 }
 0x2ee   :  { %v12108_v43 = vcombine.high %v458_v44, %v462_v19  ;;  %v12114_v39 = vcombine.low %v458_v44, %v462_v19 }
 0x2ef   :  { %5368 = vmatpush1.bf16.msra.mxu0 %v12078_v17  ;;  %5522 = vmatpush1.bf16.msra.mxu1 %v12080_v20  ;;  %16134 = vst [vmem:[#allocation435_spill] sm:$0xff] %v12110_v24  ;;  %v395_v20 = vld [vmem:[#allocation12 + $0x198] sm:$0xff]  ;;  %16136 = vst [vmem:[#allocation437_spill] sm:$0xff] %v12116_v3 }
 0x2f0   :  { %5369 = vmatprep.subr.bf16.mxu0 %v12084_v55  ;;  %5523 = vmatprep.subr.bf16.mxu1 %v12086_v57  ;;  %16133 = vst [vmem:[#allocation434_spill] sm:$0xff] %v12108_v43  ;;  %v466_v57 = vld [vmem:[#allocation12 + $0x3d0] sm:$0xff]  ;;  %v399_v17 = vld [vmem:[#allocation12 + $0x1b8] sm:$0xff]  ;;  %16135 = vst [vmem:[#allocation436_spill] sm:$0xff] %v12114_v39 }
 0x2f1   :  { %v470_v55 = vld [vmem:[#allocation12 + $0x3f0] sm:$0xff]  ;;  %v12122_v40 = vcombine.high %v395_v20, %v399_v17  ;;  %v12128_v48 = vcombine.low %v395_v20, %v399_v17 }
 0x2f2   :  { %v12120_v25 = vcombine.high %v466_v57, %v470_v55  ;;  %v12126_v19 = vcombine.low %v466_v57, %v470_v55 }
 0x2f3   :  { %5370 = vmatpush1.bf16.msra.mxu0 %v12090_v27  ;;  %5524 = vmatpush1.bf16.msra.mxu1 %v12092_v14  ;;  %16138 = vst [vmem:[#allocation439_spill] sm:$0xff] %v12122_v40  ;;  %v403_v14 = vld [vmem:[#allocation12 + $0x1d8] sm:$0xff]  ;;  %16140 = vst [vmem:[#allocation441_spill] sm:$0xff] %v12128_v48 }
 0x2f4   :  { %5371 = vmatprep.subr.bf16.mxu0 %v12096_v56  ;;  %5525 = vmatprep.subr.bf16.mxu1 %v12098_v31  ;;  %16137 = vst [vmem:[#allocation438_spill] sm:$0xff] %v12120_v25  ;;  %v474_v31 = vld [vmem:[#allocation12 + $0x410] sm:$0xff]  ;;  %v407_v27 = vld [vmem:[#allocation12 + $0x1f8] sm:$0xff]  ;;  %16139 = vst [vmem:[#allocation440_spill] sm:$0xff] %v12126_v19 }
 0x2f5   :  { %v478_v56 = vld [vmem:[#allocation12 + $0x430] sm:$0xff]  ;;  %v12134_v44 = vcombine.high %v403_v14, %v407_v27  ;;  %v12141_v17 = vcombine.low %v403_v14, %v407_v27 }
 0x2f6   :  { %v12132_v7 = vcombine.high %v474_v31, %v478_v56  ;;  %v12138_v55 = vcombine.low %v474_v31, %v478_v56 }
 0x2f7   :  { %5372 = vmatpush1.bf16.msra.mxu0 %v12102_v6  ;;  %5526 = vmatpush1.bf16.msra.mxu1 %v12104_v8  ;;  %16142 = vst [vmem:[#allocation443_spill] sm:$0xff] %v12134_v44  ;;  %v411_v8 = vld [vmem:[#allocation12 + $0x218] sm:$0xff]  ;;  %16144 = vst [vmem:[#allocation445_spill] sm:$0xff] %v12141_v17 }
 0x2f8   :  { %5373 = vmatprep.subr.bf16.mxu0 %v12108_v43  ;;  %5527 = vmatprep.subr.bf16.mxu1 %v12110_v24  ;;  %16141 = vst [vmem:[#allocation442_spill] sm:$0xff] %v12132_v7  ;;  %v482_v24 = vld [vmem:[#allocation12 + $0x450] sm:$0xff]  ;;  %v415_v6 = vld [vmem:[#allocation12 + $0x238] sm:$0xff]  ;;  %16143 = vst [vmem:[#allocation444_spill] sm:$0xff] %v12138_v55 }
 0x2f9   :  { %v486_v43 = vld [vmem:[#allocation12 + $0x470] sm:$0xff]  ;;  %v12146_v57 = vcombine.high %v411_v8, %v415_v6  ;;  %v12155_v27 = vcombine.low %v411_v8, %v415_v6 }
 0x2fa   :  { %v12144_v20 = vcombine.high %v482_v24, %v486_v43  ;;  %v12151_v56 = vcombine.low %v482_v24, %v486_v43 }
 0x2fb   :  { %5374 = vmatpush1.bf16.msra.mxu0 %v12114_v39  ;;  %5528 = vmatpush1.bf16.msra.mxu1 %v12116_v3  ;;  %16146 = vst [vmem:[#allocation447_spill] sm:$0xff] %v12146_v57  ;;  %v419_v3 = vld [vmem:[#allocation12 + $0x258] sm:$0xff]  ;;  %16148 = vst [vmem:[#allocation449_spill] sm:$0xff] %v12155_v27 }
 0x2fc   :  { %5375 = vmatprep.subr.bf16.mxu0 %v12120_v25  ;;  %5529 = vmatprep.subr.bf16.mxu1 %v12122_v40  ;;  %16145 = vst [vmem:[#allocation446_spill] sm:$0xff] %v12144_v20  ;;  %v490_v40 = vld [vmem:[#allocation12 + $0x490] sm:$0xff]  ;;  %16147 = vst [vmem:[#allocation448_spill] sm:$0xff] %v12151_v56  ;;  %v439_v39 = vld [vmem:[#allocation12 + $0x2f8] sm:$0xff] }
 0x2fd   :  { %v494_v25 = vld [vmem:[#allocation12 + $0x4b0] sm:$0xff] }
 0x2fe   :  { %v12157_v14 = vcombine.high %v490_v40, %v494_v25  ;;  %v12163_v43 = vcombine.low %v490_v40, %v494_v25 }
 0x2ff   :  { %5376 = vmatpush1.bf16.msra.mxu0 %v12126_v19  ;;  %5530 = vmatpush1.bf16.msra.mxu1 %v12128_v48  ;;  %v423_v19 = vld [vmem:[#allocation12 + $0x278] sm:$0xff] }
 0x300   :  { %5388 = vmatprep.subr.bf16.mxu0 %v12132_v7  ;;  %5531 = vmatprep.subr.bf16.mxu1 %v12134_v44  ;;  %16149 = vst [vmem:[#allocation450_spill] sm:$0xff] %v12157_v14  ;;  %v12160_v31 = vcombine.high %v419_v3, %v423_v19  ;;  %v498_v44 = vld [vmem:[#allocation12 + $0x4d0] sm:$0xff]  ;;  %v427_v48 = vld [vmem:[#allocation12 + $0x298] sm:$0xff]  ;;  %16151 = vst [vmem:[#allocation452_spill] sm:$0xff] %v12163_v43  ;;  %v12167_v6 = vcombine.low %v419_v3, %v423_v19 }
 0x301   :  { %v502_v7 = vld [vmem:[#allocation12 + $0x4f0] sm:$0xff] }
 0x302   :  { %5378 = vmatmul.mubr.bf16.vlgmr.msra.gmra.mrb[12].mxu0 %v11268_v36  ;;  %16150 = vst [vmem:[#allocation451_spill] sm:$0xff] %v12160_v31  ;;  %16152 = vst [vmem:[#allocation453_spill] sm:$0xff] %v12167_v6  ;;  %v12169_v8 = vcombine.high %v498_v44, %v502_v7  ;;  %v12175_v25 = vcombine.low %v498_v44, %v502_v7 }
 0x303   :  { %5389 = vmatpush1.bf16.msra.mxu0 %v12138_v55  ;;  %5420 = vmatprep.mubr.bf16.mxu0 %v11490_v12  ;;  %v431_v55 = vld [vmem:[#allocation12 + $0x2b8] sm:$0xff] }
 0x304   :  { %5532 = vmatpush1.bf16.msra.mxu1 %v12141_v17  ;;  %5390 = vmatprep.subr.bf16.mxu0 %v12144_v20  ;;  %16153 = vst [vmem:[#allocation454_spill] sm:$0xff] %v12169_v8  ;;  %v12172_v24 = vcombine.high %v427_v48, %v431_v55  ;;  %v510_v20 = vld [vmem:[#allocation12 + $0x530] sm:$0xff]  ;;  %v435_v17 = vld [vmem:[#allocation12 + $0x2d8] sm:$0xff]  ;;  %16155 = vst [vmem:[#allocation456_spill] sm:$0xff] %v12175_v25  ;;  %v12179_v3 = vcombine.low %v427_v48, %v431_v55 }
 0x305   :  { %5533 = vmatprep.subr.bf16.mxu1 %v12146_v57  ;;  %v506_v57 = vld [vmem:[#allocation12 + $0x510] sm:$0xff]  ;;  %v12184_v19 = vcombine.high %v435_v17, %v439_v39  ;;  %v12191_v48 = vcombine.low %v435_v17, %v439_v39 }
 0x306   :  { %16154 = vst [vmem:[#allocation455_spill] sm:$0xff] %v12172_v24  ;;  %16156 = vst [vmem:[#allocation457_spill] sm:$0xff] %v12179_v3  ;;  %v12181_v40 = vcombine.high %v506_v57, %v510_v20  ;;  %v12187_v7 = vcombine.low %v506_v57, %v510_v20 }
 0x307   :  { %5391 = vmatpush1.bf16.msra.mxu0 %v12151_v56  ;;  %16158 = vst [vmem:[#allocation459_spill] sm:$0xff] %v12184_v19  ;;  %v447_v56 = vld [vmem:[#allocation12 + $0x338] sm:$0xff]  ;;  %16160 = vst [vmem:[#allocation461_spill] sm:$0xff] %v12191_v48 }
 0x308   :  { %5534 = vmatpush1.bf16.msra.mxu1 %v12155_v27  ;;  %5392 = vmatprep.subr.bf16.mxu0 %v12157_v14  ;;  %16157 = vst [vmem:[#allocation458_spill] sm:$0xff] %v12181_v40  ;;  %v518_v14 = vld [vmem:[#allocation12 + $0x570] sm:$0xff]  ;;  %v443_v27 = vld [vmem:[#allocation12 + $0x318] sm:$0xff]  ;;  %16159 = vst [vmem:[#allocation460_spill] sm:$0xff] %v12187_v7 }
 0x309   :  { %5535 = vmatprep.subr.bf16.mxu1 %v12160_v31  ;;  %v514_v31 = vld [vmem:[#allocation12 + $0x550] sm:$0xff]  ;;  %v12196_v55 = vcombine.high %v443_v27, %v447_v56  ;;  %v12203_v39 = vcombine.low %v443_v27, %v447_v56 }
 0x30a   :  { %v12193_v44 = vcombine.high %v514_v31, %v518_v14  ;;  %v12199_v20 = vcombine.low %v514_v31, %v518_v14 }
 0x30b   :  { %5393 = vmatpush1.bf16.msra.mxu0 %v12163_v43  ;;  %16162 = vst [vmem:[#allocation463_spill] sm:$0xff] %v12196_v55  ;;  %v455_v43 = vld [vmem:[#allocation12 + $0x378] sm:$0xff]  ;;  %16164 = vst [vmem:[#allocation465_spill] sm:$0xff] %v12203_v39 }
 0x30c   :  { %5536 = vmatpush1.bf16.msra.mxu1 %v12167_v6  ;;  %5394 = vmatprep.subr.bf16.mxu0 %v12169_v8  ;;  %16161 = vst [vmem:[#allocation462_spill] sm:$0xff] %v12193_v44  ;;  %v526_v8 = vld [vmem:[#allocation12 + $0x5b0] sm:$0xff]  ;;  %v451_v6 = vld [vmem:[#allocation12 + $0x358] sm:$0xff]  ;;  %16163 = vst [vmem:[#allocation464_spill] sm:$0xff] %v12199_v20 }
 0x30d   :  { %5537 = vmatprep.subr.bf16.mxu1 %v12172_v24  ;;  %v522_v24 = vld [vmem:[#allocation12 + $0x590] sm:$0xff]  ;;  %v12208_v57 = vcombine.high %v451_v6, %v455_v43  ;;  %v12215_v56 = vcombine.low %v451_v6, %v455_v43 }
 0x30e   :  { %v12205_v17 = vcombine.high %v522_v24, %v526_v8  ;;  %v12211_v14 = vcombine.low %v522_v24, %v526_v8 }
 0x30f   :  { %5395 = vmatpush1.bf16.msra.mxu0 %v12175_v25  ;;  %16166 = vst [vmem:[#allocation467_spill] sm:$0xff] %v12208_v57  ;;  %v463_v25 = vld [vmem:[#allocation12 + $0x3b8] sm:$0xff]  ;;  %16168 = vst [vmem:[#allocation469_spill] sm:$0xff] %v12215_v56 }
 0x310   :  { %5538 = vmatpush1.bf16.msra.mxu1 %v12179_v3  ;;  %5396 = vmatprep.subr.bf16.mxu0 %v12181_v40  ;;  %16165 = vst [vmem:[#allocation466_spill] sm:$0xff] %v12205_v17  ;;  %v534_v40 = vld [vmem:[#allocation12 + $0x5f0] sm:$0xff]  ;;  %v459_v3 = vld [vmem:[#allocation12 + $0x398] sm:$0xff]  ;;  %16167 = vst [vmem:[#allocation468_spill] sm:$0xff] %v12211_v14 }
 0x311   :  { %5539 = vmatprep.subr.bf16.mxu1 %v12184_v19  ;;  %v530_v19 = vld [vmem:[#allocation12 + $0x5d0] sm:$0xff]  ;;  %v12220_v31 = vcombine.high %v459_v3, %v463_v25  ;;  %v12227_v43 = vcombine.low %v459_v3, %v463_v25 }
 0x312   :  { %v12217_v27 = vcombine.high %v530_v19, %v534_v40  ;;  %v12223_v8 = vcombine.low %v530_v19, %v534_v40 }
 0x313   :  { %5397 = vmatpush1.bf16.msra.mxu0 %v12187_v7  ;;  %16170 = vst [vmem:[#allocation471_spill] sm:$0xff] %v12220_v31  ;;  %v471_v7 = vld [vmem:[#allocation12 + $0x3f8] sm:$0xff]  ;;  %16172 = vst [vmem:[#allocation473_spill] sm:$0xff] %v12227_v43 }
 0x314   :  { %5540 = vmatpush1.bf16.msra.mxu1 %v12191_v48  ;;  %5398 = vmatprep.subr.bf16.mxu0 %v12193_v44  ;;  %16169 = vst [vmem:[#allocation470_spill] sm:$0xff] %v12217_v27  ;;  %v542_v44 = vld [vmem:[#allocation12 + $0x630] sm:$0xff]  ;;  %v467_v48 = vld [vmem:[#allocation12 + $0x3d8] sm:$0xff]  ;;  %16171 = vst [vmem:[#allocation472_spill] sm:$0xff] %v12223_v8 }
 0x315   :  { %5541 = vmatprep.subr.bf16.mxu1 %v12196_v55  ;;  %v538_v55 = vld [vmem:[#allocation12 + $0x610] sm:$0xff]  ;;  %v12232_v24 = vcombine.high %v467_v48, %v471_v7  ;;  %v12239_v25 = vcombine.low %v467_v48, %v471_v7 }
 0x316   :  { %v12229_v6 = vcombine.high %v538_v55, %v542_v44  ;;  %v12235_v40 = vcombine.low %v538_v55, %v542_v44 }
 0x317   :  { %5399 = vmatpush1.bf16.msra.mxu0 %v12199_v20  ;;  %16174 = vst [vmem:[#allocation475_spill] sm:$0xff] %v12232_v24  ;;  %v479_v20 = vld [vmem:[#allocation12 + $0x438] sm:$0xff]  ;;  %16176 = vst [vmem:[#allocation477_spill] sm:$0xff] %v12239_v25 }
 0x318   :  { %5542 = vmatpush1.bf16.msra.mxu1 %v12203_v39  ;;  %5400 = vmatprep.subr.bf16.mxu0 %v12205_v17  ;;  %16173 = vst [vmem:[#allocation474_spill] sm:$0xff] %v12229_v6  ;;  %v550_v17 = vld [vmem:[#allocation12 + $0x670] sm:$0xff]  ;;  %v475_v39 = vld [vmem:[#allocation12 + $0x418] sm:$0xff]  ;;  %16175 = vst [vmem:[#allocation476_spill] sm:$0xff] %v12235_v40 }
 0x319   :  { %5543 = vmatprep.subr.bf16.mxu1 %v12208_v57  ;;  %v546_v57 = vld [vmem:[#allocation12 + $0x650] sm:$0xff]  ;;  %v12244_v19 = vcombine.high %v475_v39, %v479_v20  ;;  %v12251_v7 = vcombine.low %v475_v39, %v479_v20 }
 0x31a   :  { %v12241_v3 = vcombine.high %v546_v57, %v550_v17  ;;  %v12247_v44 = vcombine.low %v546_v57, %v550_v17 }
 0x31b   :  { %5401 = vmatpush1.bf16.msra.mxu0 %v12211_v14  ;;  %16178 = vst [vmem:[#allocation479_spill] sm:$0xff] %v12244_v19  ;;  %v487_v14 = vld [vmem:[#allocation12 + $0x478] sm:$0xff]  ;;  %16180 = vst [vmem:[#allocation481_spill] sm:$0xff] %v12251_v7 }
 0x31c   :  { %5544 = vmatpush1.bf16.msra.mxu1 %v12215_v56  ;;  %5402 = vmatprep.subr.bf16.mxu0 %v12217_v27  ;;  %16177 = vst [vmem:[#allocation478_spill] sm:$0xff] %v12241_v3  ;;  %v558_v27 = vld [vmem:[#allocation12 + $0x6b0] sm:$0xff]  ;;  %v483_v56 = vld [vmem:[#allocation12 + $0x458] sm:$0xff]  ;;  %16179 = vst [vmem:[#allocation480_spill] sm:$0xff] %v12247_v44 }
 0x31d   :  { %5545 = vmatprep.subr.bf16.mxu1 %v12220_v31  ;;  %v554_v31 = vld [vmem:[#allocation12 + $0x690] sm:$0xff]  ;;  %v12256_v55 = vcombine.high %v483_v56, %v487_v14  ;;  %v12264_v20 = vcombine.low %v483_v56, %v487_v14 }
 0x31e   :  { %v12254_v48 = vcombine.high %v554_v31, %v558_v27  ;;  %v12260_v17 = vcombine.low %v554_v31, %v558_v27  ;;  %v578_v31 = vld [vmem:[#allocation12 + $0x750] sm:$0xff] }
 0x31f   :  { %5403 = vmatpush1.bf16.msra.mxu0 %v12223_v8  ;;  %16182 = vst [vmem:[#allocation483_spill] sm:$0xff] %v12256_v55  ;;  %v495_v8 = vld [vmem:[#allocation12 + $0x4b8] sm:$0xff]  ;;  %16184 = vst [vmem:[#allocation485_spill] sm:$0xff] %v12264_v20 }
 0x320   :  { %5546 = vmatpush1.bf16.msra.mxu1 %v12227_v43  ;;  %5404 = vmatprep.subr.bf16.mxu0 %v12229_v6  ;;  %16181 = vst [vmem:[#allocation482_spill] sm:$0xff] %v12254_v48  ;;  %v566_v6 = vld [vmem:[#allocation12 + $0x6f0] sm:$0xff]  ;;  %v491_v43 = vld [vmem:[#allocation12 + $0x498] sm:$0xff]  ;;  %16183 = vst [vmem:[#allocation484_spill] sm:$0xff] %v12260_v17 }
 0x321   :  { %5547 = vmatprep.subr.bf16.mxu1 %v12232_v24  ;;  %v562_v24 = vld [vmem:[#allocation12 + $0x6d0] sm:$0xff]  ;;  %v12270_v57 = vcombine.high %v491_v43, %v495_v8 }
 0x322   :  { %v12266_v39 = vcombine.high %v562_v24, %v566_v6  ;;  %v12273_v27 = vcombine.low %v562_v24, %v566_v6 }
 0x323   :  { %5405 = vmatpush1.bf16.msra.mxu0 %v12235_v40  ;;  %16186 = vst [vmem:[#allocation487_spill] sm:$0xff] %v12270_v57 }
 0x324   :  { %5548 = vmatpush1.bf16.msra.mxu1 %v12239_v25  ;;  %5406 = vmatprep.subr.bf16.mxu0 %v12241_v3  ;;  %16185 = vst [vmem:[#allocation486_spill] sm:$0xff] %v12266_v39  ;;  %v499_v3 = vld [vmem:[#allocation12 + $0x4d8] sm:$0xff]  ;;  %16187 = vst [vmem:[#allocation488_spill] sm:$0xff] %v12273_v27 }
 0x325   :  { %5560 = vmatprep.subr.bf16.mxu1 %v12244_v19  ;;  %v570_v19 = vld [vmem:[#allocation12 + $0x710] sm:$0xff] }
 0x327   :  { %5407 = vmatpush1.bf16.msra.mxu0 %v12247_v44  ;;  %5550 = vmatmul.mubr.bf16.vlgmr.msra.gmra.mrb[28].mxu1 %v11268_v36  ;;  %v574_v44 = vld [vmem:[#allocation12 + $0x730] sm:$0xff]  ;;  %v503_v36 = vld [vmem:[#allocation12 + $0x4f8] sm:$0xff] }
 0x328   :  { %5561 = vmatpush1.bf16.msra.mxu1 %v12251_v7  ;;  %5592 = vmatprep.mubr.bf16.mxu1 %v11490_v12  ;;  %v12277_v12 = vcombine.low %v491_v43, %v495_v8  ;;  %v12279_v14 = vcombine.high %v570_v19, %v574_v44  ;;  %v12282_v56 = vcombine.high %v499_v3, %v503_v36  ;;  %v511_v7 = vld [vmem:[#allocation12 + $0x538] sm:$0xff] }
 0x329   :  { %5408 = vmatprep.subr.bf16.mxu0 %v12254_v48  ;;  %5562 = vmatprep.subr.bf16.mxu1 %v12256_v55  ;;  %v582_v55 = vld [vmem:[#allocation12 + $0x770] sm:$0xff]  ;;  %v507_v48 = vld [vmem:[#allocation12 + $0x518] sm:$0xff]  ;;  %v12285_v6 = vcombine.low %v570_v19, %v574_v44  ;;  %v12289_v8 = vcombine.low %v499_v3, %v503_v36 }
 0x32a   :  { %16188 = vst [vmem:[#allocation489_spill] sm:$0xff] %v12277_v12  ;;  %16189 = vst [vmem:[#allocation490_spill] sm:$0xff] %v12279_v14  ;;  %v12291_v43 = vcombine.high %v578_v31, %v582_v55  ;;  %v12294_v24 = vcombine.high %v507_v48, %v511_v7  ;;  %v12297_v19 = vcombine.low %v578_v31, %v582_v55 }
 0x32b   :  { %5409 = vmatpush1.bf16.msra.mxu0 %v12260_v17  ;;  %16190 = vst [vmem:[#allocation491_spill] sm:$0xff] %v12282_v56  ;;  %16191 = vst [vmem:[#allocation492_spill] sm:$0xff] %v12285_v6  ;;  %v519_v17 = vld [vmem:[#allocation12 + $0x578] sm:$0xff]  ;;  %v12301_v3 = vcombine.low %v507_v48, %v511_v7 }
 0x32c   :  { %5563 = vmatpush1.bf16.msra.mxu1 %v12264_v20  ;;  %5410 = vmatprep.subr.bf16.mxu0 %v12266_v39  ;;  %16192 = vst [vmem:[#allocation493_spill] sm:$0xff] %v12289_v8  ;;  %16193 = vst [vmem:[#allocation494_spill] sm:$0xff] %v12291_v43  ;;  %v590_v39 = vld [vmem:[#allocation12 + $0x7b0] sm:$0xff]  ;;  %v515_v20 = vld [vmem:[#allocation12 + $0x558] sm:$0xff] }
 0x32d   :  { %5564 = vmatprep.subr.bf16.mxu1 %v12270_v57  ;;  %16194 = vst [vmem:[#allocation495_spill] sm:$0xff] %v12294_v24  ;;  %v586_v57 = vld [vmem:[#allocation12 + $0x790] sm:$0xff]  ;;  %16195 = vst [vmem:[#allocation496_spill] sm:$0xff] %v12297_v19  ;;  %v12306_v36 = vcombine.high %v515_v20, %v519_v17  ;;  %v12313_v7 = vcombine.low %v515_v20, %v519_v17 }
 0x32e   :  { %16196 = vst [vmem:[#allocation497_spill] sm:$0xff] %v12301_v3  ;;  %v12303_v44 = vcombine.high %v586_v57, %v590_v39  ;;  %v12309_v55 = vcombine.low %v586_v57, %v590_v39 }
 0x32f   :  { %5411 = vmatpush1.bf16.msra.mxu0 %v12273_v27  ;;  %16198 = vst [vmem:[#allocation499_spill] sm:$0xff] %v12306_v36  ;;  %v527_v27 = vld [vmem:[#allocation12 + $0x5b8] sm:$0xff]  ;;  %16200 = vst [vmem:[#allocation501_spill] sm:$0xff] %v12313_v7 }
 0x330   :  { %5565 = vmatpush1.bf16.msra.mxu1 %v12277_v12  ;;  %5412 = vmatprep.subr.bf16.mxu0 %v12279_v14  ;;  %16197 = vst [vmem:[#allocation498_spill] sm:$0xff] %v12303_v44  ;;  %v598_v14 = vld [vmem:[#allocation12 + $0x7f0] sm:$0xff]  ;;  %v523_v12 = vld [vmem:[#allocation12 + $0x598] sm:$0xff]  ;;  %16199 = vst [vmem:[#allocation500_spill] sm:$0xff] %v12309_v55 }
 0x331   :  { %5566 = vmatprep.subr.bf16.mxu1 %v12282_v56  ;;  %v594_v56 = vld [vmem:[#allocation12 + $0x7d0] sm:$0xff]  ;;  %v12318_v31 = vcombine.high %v523_v12, %v527_v27  ;;  %v12325_v17 = vcombine.low %v523_v12, %v527_v27 }
 0x332   :  { %v12315_v48 = vcombine.high %v594_v56, %v598_v14  ;;  %v12321_v39 = vcombine.low %v594_v56, %v598_v14 }
 0x333   :  { %5413 = vmatpush1.bf16.msra.mxu0 %v12285_v6  ;;  %16202 = vst [vmem:[#allocation503_spill] sm:$0xff] %v12318_v31  ;;  %v535_v6 = vld [vmem:[#allocation12 + $0x5f8] sm:$0xff]  ;;  %16204 = vst [vmem:[#allocation505_spill] sm:$0xff] %v12325_v17 }
 0x334   :  { %5567 = vmatpush1.bf16.msra.mxu1 %v12289_v8  ;;  %5414 = vmatprep.subr.bf16.mxu0 %v12291_v43  ;;  %16201 = vst [vmem:[#allocation502_spill] sm:$0xff] %v12315_v48  ;;  %v606_v43 = vld [vmem:[#allocation12 + $0x830] sm:$0xff]  ;;  %v531_v8 = vld [vmem:[#allocation12 + $0x5d8] sm:$0xff]  ;;  %16203 = vst [vmem:[#allocation504_spill] sm:$0xff] %v12321_v39 }
 0x335   :  { %5568 = vmatprep.subr.bf16.mxu1 %v12294_v24  ;;  %v602_v24 = vld [vmem:[#allocation12 + $0x810] sm:$0xff]  ;;  %v12330_v57 = vcombine.high %v531_v8, %v535_v6  ;;  %v12337_v27 = vcombine.low %v531_v8, %v535_v6 }
 0x336   :  { %v12327_v20 = vcombine.high %v602_v24, %v606_v43  ;;  %v12333_v14 = vcombine.low %v602_v24, %v606_v43 }
 0x337   :  { %5415 = vmatpush1.bf16.msra.mxu0 %v12297_v19  ;;  %16206 = vst [vmem:[#allocation507_spill] sm:$0xff] %v12330_v57  ;;  %v543_v19 = vld [vmem:[#allocation12 + $0x638] sm:$0xff]  ;;  %16208 = vst [vmem:[#allocation509_spill] sm:$0xff] %v12337_v27 }
 0x338   :  { %5569 = vmatpush1.bf16.msra.mxu1 %v12301_v3  ;;  %5416 = vmatprep.subr.bf16.mxu0 %v12303_v44  ;;  %16205 = vst [vmem:[#allocation506_spill] sm:$0xff] %v12327_v20  ;;  %v614_v44 = vld [vmem:[#allocation12 + $0x870] sm:$0xff]  ;;  %v539_v3 = vld [vmem:[#allocation12 + $0x618] sm:$0xff]  ;;  %16207 = vst [vmem:[#allocation508_spill] sm:$0xff] %v12333_v14 }
 0x339   :  { %5570 = vmatprep.subr.bf16.mxu1 %v12306_v36  ;;  %v610_v36 = vld [vmem:[#allocation12 + $0x850] sm:$0xff]  ;;  %v12342_v56 = vcombine.high %v539_v3, %v543_v19  ;;  %v12351_v6 = vcombine.low %v539_v3, %v543_v19 }
 0x33a   :  { %v12339_v12 = vcombine.high %v610_v36, %v614_v44  ;;  %v12347_v43 = vcombine.low %v610_v36, %v614_v44 }
 0x33b   :  { %5417 = vmatpush1.bf16.msra.mxu0 %v12309_v55  ;;  %16210 = vst [vmem:[#allocation511_spill] sm:$0xff] %v12342_v56  ;;  %16212 = vst [vmem:[#allocation513_spill] sm:$0xff] %v12351_v6  ;;  %v567_v55 = vld [vmem:[#allocation12 + $0x6f8] sm:$0xff] }
 0x33c   :  { %5571 = vmatpush1.bf16.msra.mxu1 %v12313_v7  ;;  %5418 = vmatprep.subr.bf16.mxu0 %v12315_v48  ;;  %16209 = vst [vmem:[#allocation510_spill] sm:$0xff] %v12339_v12  ;;  %v622_v48 = vld [vmem:[#allocation12 + $0x8b0] sm:$0xff]  ;;  %v547_v7 = vld [vmem:[#allocation12 + $0x658] sm:$0xff]  ;;  %16211 = vst [vmem:[#allocation512_spill] sm:$0xff] %v12347_v43 }
 0x33d   :  { %5572 = vmatprep.subr.bf16.mxu1 %v12318_v31  ;;  %v618_v31 = vld [vmem:[#allocation12 + $0x890] sm:$0xff] }
 0x33e   :  { %v12353_v8 = vcombine.high %v618_v31, %v622_v48  ;;  %v12359_v44 = vcombine.low %v618_v31, %v622_v48 }
 0x33f   :  { %5419 = vmatpush1.bf16.msra.mxu0 %v12321_v39  ;;  %v551_v39 = vld [vmem:[#allocation12 + $0x678] sm:$0xff] }
 0x340   :  { %5573 = vmatpush1.bf16.msra.mxu1 %v12325_v17  ;;  %5431 = vmatprep.subr.bf16.mxu0 %v12327_v20  ;;  %16213 = vst [vmem:[#allocation514_spill] sm:$0xff] %v12353_v8  ;;  %v12356_v24 = vcombine.high %v547_v7, %v551_v39  ;;  %v630_v20 = vld [vmem:[#allocation12 + $0x8f0] sm:$0xff]  ;;  %v555_v17 = vld [vmem:[#allocation12 + $0x698] sm:$0xff]  ;;  %16215 = vst [vmem:[#allocation516_spill] sm:$0xff] %v12359_v44  ;;  %v12363_v19 = vcombine.low %v547_v7, %v551_v39 }
 0x341   :  { %5574 = vmatprep.subr.bf16.mxu1 %v12330_v57  ;;  %v626_v57 = vld [vmem:[#allocation12 + $0x8d0] sm:$0xff] }
 0x342   :  { %5421 = vmatmul.mubr.bf16.vlgmr.msra.gmra.mrb[12].mxu0 %v11488_v61  ;;  %16214 = vst [vmem:[#allocation515_spill] sm:$0xff] %v12356_v24  ;;  %16216 = vst [vmem:[#allocation517_spill] sm:$0xff] %v12363_v19  ;;  %v12365_v3 = vcombine.high %v626_v57, %v630_v20  ;;  %v12371_v48 = vcombine.low %v626_v57, %v630_v20 }
 0x343   :  { %5432 = vmatpush1.bf16.msra.mxu0 %v12333_v14  ;;  %5463 = vmatprep.mubr.bf16.mxu0 %v11714_v60  ;;  %v559_v14 = vld [vmem:[#allocation12 + $0x6b8] sm:$0xff] }
 0x344   :  { %5575 = vmatpush1.bf16.msra.mxu1 %v12337_v27  ;;  %5433 = vmatprep.subr.bf16.mxu0 %v12339_v12  ;;  %16217 = vst [vmem:[#allocation518_spill] sm:$0xff] %v12365_v3  ;;  %v12368_v36 = vcombine.high %v555_v17, %v559_v14  ;;  %v638_v12 = vld [vmem:[#allocation12 + $0x930] sm:$0xff]  ;;  %v563_v27 = vld [vmem:[#allocation12 + $0x6d8] sm:$0xff]  ;;  %16219 = vst [vmem:[#allocation520_spill] sm:$0xff] %v12371_v48  ;;  %v12375_v7 = vcombine.low %v555_v17, %v559_v14 }
 0x345   :  { %5576 = vmatprep.subr.bf16.mxu1 %v12342_v56  ;;  %v634_v56 = vld [vmem:[#allocation12 + $0x910] sm:$0xff]  ;;  %v12380_v39 = vcombine.high %v563_v27, %v567_v55  ;;  %v12387_v17 = vcombine.low %v563_v27, %v567_v55 }
 0x346   :  { %16218 = vst [vmem:[#allocation519_spill] sm:$0xff] %v12368_v36  ;;  %16220 = vst [vmem:[#allocation521_spill] sm:$0xff] %v12375_v7  ;;  %v12377_v31 = vcombine.high %v634_v56, %v638_v12  ;;  %v12383_v20 = vcombine.low %v634_v56, %v638_v12 }
 0x347   :  { %5434 = vmatpush1.bf16.msra.mxu0 %v12347_v43  ;;  %16222 = vst [vmem:[#allocation523_spill] sm:$0xff] %v12380_v39  ;;  %v575_v43 = vld [vmem:[#allocation12 + $0x738] sm:$0xff]  ;;  %16224 = vst [vmem:[#allocation525_spill] sm:$0xff] %v12387_v17 }
 0x348   :  { %5577 = vmatpush1.bf16.msra.mxu1 %v12351_v6  ;;  %5435 = vmatprep.subr.bf16.mxu0 %v12353_v8  ;;  %16221 = vst [vmem:[#allocation522_spill] sm:$0xff] %v12377_v31  ;;  %v646_v8 = vld [vmem:[#allocation12 + $0x970] sm:$0xff]  ;;  %v571_v6 = vld [vmem:[#allocation12 + $0x718] sm:$0xff]  ;;  %16223 = vst [vmem:[#allocation524_spill] sm:$0xff] %v12383_v20 }
 0x349   :  { %5578 = vmatprep.subr.bf16.mxu1 %v12356_v24  ;;  %v642_v24 = vld [vmem:[#allocation12 + $0x950] sm:$0xff]  ;;  %v12392_v14 = vcombine.high %v571_v6, %v575_v43  ;;  %v12399_v55 = vcombine.low %v571_v6, %v575_v43 }
 0x34a   :  { %v12389_v57 = vcombine.high %v642_v24, %v646_v8  ;;  %v12395_v12 = vcombine.low %v642_v24, %v646_v8 }
 0x34b   :  { %5436 = vmatpush1.bf16.msra.mxu0 %v12359_v44  ;;  %16226 = vst [vmem:[#allocation527_spill] sm:$0xff] %v12392_v14  ;;  %v583_v44 = vld [vmem:[#allocation12 + $0x778] sm:$0xff]  ;;  %16228 = vst [vmem:[#allocation529_spill] sm:$0xff] %v12399_v55 }
 0x34c   :  { %5579 = vmatpush1.bf16.msra.mxu1 %v12363_v19  ;;  %5437 = vmatprep.subr.bf16.mxu0 %v12365_v3  ;;  %16225 = vst [vmem:[#allocation526_spill] sm:$0xff] %v12389_v57  ;;  %v654_v3 = vld [vmem:[#allocation12 + $0x9b0] sm:$0xff]  ;;  %v579_v19 = vld [vmem:[#allocation12 + $0x758] sm:$0xff]  ;;  %16227 = vst [vmem:[#allocation528_spill] sm:$0xff] %v12395_v12 }
 0x34d   :  { %5580 = vmatprep.subr.bf16.mxu1 %v12368_v36  ;;  %v650_v36 = vld [vmem:[#allocation12 + $0x990] sm:$0xff]  ;;  %v12404_v56 = vcombine.high %v579_v19, %v583_v44  ;;  %v12411_v43 = vcombine.low %v579_v19, %v583_v44 }
 0x34e   :  { %v12401_v27 = vcombine.high %v650_v36, %v654_v3  ;;  %v12407_v8 = vcombine.low %v650_v36, %v654_v3 }
 0x34f   :  { %5438 = vmatpush1.bf16.msra.mxu0 %v12371_v48  ;;  %16230 = vst [vmem:[#allocation531_spill] sm:$0xff] %v12404_v56  ;;  %v591_v48 = vld [vmem:[#allocation12 + $0x7b8] sm:$0xff]  ;;  %16232 = vst [vmem:[#allocation533_spill] sm:$0xff] %v12411_v43 }
 0x350   :  { %5581 = vmatpush1.bf16.msra.mxu1 %v12375_v7  ;;  %5439 = vmatprep.subr.bf16.mxu0 %v12377_v31  ;;  %16229 = vst [vmem:[#allocation530_spill] sm:$0xff] %v12401_v27  ;;  %v662_v31 = vld [vmem:[#allocation12 + $0x9f0] sm:$0xff]  ;;  %v587_v7 = vld [vmem:[#allocation12 + $0x798] sm:$0xff]  ;;  %16231 = vst [vmem:[#allocation532_spill] sm:$0xff] %v12407_v8 }
 0x351   :  { %5582 = vmatprep.subr.bf16.mxu1 %v12380_v39  ;;  %v658_v39 = vld [vmem:[#allocation12 + $0x9d0] sm:$0xff]  ;;  %v12416_v24 = vcombine.high %v587_v7, %v591_v48  ;;  %v12423_v44 = vcombine.low %v587_v7, %v591_v48 }
 0x352   :  { %v12413_v6 = vcombine.high %v658_v39, %v662_v31  ;;  %v12419_v3 = vcombine.low %v658_v39, %v662_v31 }
 0x353   :  { %5440 = vmatpush1.bf16.msra.mxu0 %v12383_v20  ;;  %16234 = vst [vmem:[#allocation535_spill] sm:$0xff] %v12416_v24  ;;  %v599_v20 = vld [vmem:[#allocation12 + $0x7f8] sm:$0xff]  ;;  %16236 = vst [vmem:[#allocation537_spill] sm:$0xff] %v12423_v44 }
 0x354   :  { %5583 = vmatpush1.bf16.msra.mxu1 %v12387_v17  ;;  %5441 = vmatprep.subr.bf16.mxu0 %v12389_v57  ;;  %16233 = vst [vmem:[#allocation534_spill] sm:$0xff] %v12413_v6  ;;  %v670_v57 = vld [vmem:[#allocation12 + $0xa30] sm:$0xff]  ;;  %v595_v17 = vld [vmem:[#allocation12 + $0x7d8] sm:$0xff]  ;;  %16235 = vst [vmem:[#allocation536_spill] sm:$0xff] %v12419_v3 }
 0x355   :  { %5584 = vmatprep.subr.bf16.mxu1 %v12392_v14  ;;  %v666_v14 = vld [vmem:[#allocation12 + $0xa10] sm:$0xff]  ;;  %v12428_v36 = vcombine.high %v595_v17, %v599_v20  ;;  %v12435_v48 = vcombine.low %v595_v17, %v599_v20 }
 0x356   :  { %v12425_v19 = vcombine.high %v666_v14, %v670_v57  ;;  %v12431_v31 = vcombine.low %v666_v14, %v670_v57 }
 0x357   :  { %5442 = vmatpush1.bf16.msra.mxu0 %v12395_v12  ;;  %16238 = vst [vmem:[#allocation539_spill] sm:$0xff] %v12428_v36  ;;  %v607_v12 = vld [vmem:[#allocation12 + $0x838] sm:$0xff]  ;;  %16240 = vst [vmem:[#allocation541_spill] sm:$0xff] %v12435_v48 }
 0x358   :  { %5585 = vmatpush1.bf16.msra.mxu1 %v12399_v55  ;;  %5443 = vmatprep.subr.bf16.mxu0 %v12401_v27  ;;  %16237 = vst [vmem:[#allocation538_spill] sm:$0xff] %v12425_v19  ;;  %v678_v27 = vld [vmem:[#allocation12 + $0xa70] sm:$0xff]  ;;  %v603_v55 = vld [vmem:[#allocation12 + $0x818] sm:$0xff]  ;;  %16239 = vst [vmem:[#allocation540_spill] sm:$0xff] %v12431_v31 }
 0x359   :  { %5586 = vmatprep.subr.bf16.mxu1 %v12404_v56  ;;  %v674_v56 = vld [vmem:[#allocation12 + $0xa50] sm:$0xff]  ;;  %v12440_v39 = vcombine.high %v603_v55, %v607_v12  ;;  %v12447_v20 = vcombine.low %v603_v55, %v607_v12 }
 0x35a   :  { %v12437_v7 = vcombine.high %v674_v56, %v678_v27  ;;  %v12443_v57 = vcombine.low %v674_v56, %v678_v27 }
 0x35b   :  { %5444 = vmatpush1.bf16.msra.mxu0 %v12407_v8  ;;  %16242 = vst [vmem:[#allocation543_spill] sm:$0xff] %v12440_v39  ;;  %v615_v8 = vld [vmem:[#allocation12 + $0x878] sm:$0xff]  ;;  %16244 = vst [vmem:[#allocation545_spill] sm:$0xff] %v12447_v20 }
 0x35c   :  { %5587 = vmatpush1.bf16.msra.mxu1 %v12411_v43  ;;  %5445 = vmatprep.subr.bf16.mxu0 %v12413_v6  ;;  %16241 = vst [vmem:[#allocation542_spill] sm:$0xff] %v12437_v7  ;;  %v686_v6 = vld [vmem:[#allocation12 + $0xab0] sm:$0xff]  ;;  %v611_v43 = vld [vmem:[#allocation12 + $0x858] sm:$0xff]  ;;  %16243 = vst [vmem:[#allocation544_spill] sm:$0xff] %v12443_v57 }
 0x35d   :  { %5588 = vmatprep.subr.bf16.mxu1 %v12416_v24  ;;  %v682_v24 = vld [vmem:[#allocation12 + $0xa90] sm:$0xff]  ;;  %v12452_v14 = vcombine.high %v611_v43, %v615_v8  ;;  %v12460_v12 = vcombine.low %v611_v43, %v615_v8 }
 0x35e   :  { %v12450_v17 = vcombine.high %v682_v24, %v686_v6  ;;  %v12456_v27 = vcombine.low %v682_v24, %v686_v6  ;;  %v706_v24 = vld [vmem:[#allocation12 + $0xb50] sm:$0xff] }
 0x35f   :  { %5446 = vmatpush1.bf16.msra.mxu0 %v12419_v3  ;;  %16246 = vst [vmem:[#allocation547_spill] sm:$0xff] %v12452_v14  ;;  %v623_v3 = vld [vmem:[#allocation12 + $0x8b8] sm:$0xff]  ;;  %16248 = vst [vmem:[#allocation549_spill] sm:$0xff] %v12460_v12 }
 0x360   :  { %5589 = vmatpush1.bf16.msra.mxu1 %v12423_v44  ;;  %5447 = vmatprep.subr.bf16.mxu0 %v12425_v19  ;;  %16245 = vst [vmem:[#allocation546_spill] sm:$0xff] %v12450_v17  ;;  %v694_v19 = vld [vmem:[#allocation12 + $0xaf0] sm:$0xff]  ;;  %v619_v44 = vld [vmem:[#allocation12 + $0x898] sm:$0xff]  ;;  %16247 = vst [vmem:[#allocation548_spill] sm:$0xff] %v12456_v27 }
 0x361   :  { %5590 = vmatprep.subr.bf16.mxu1 %v12428_v36  ;;  %v690_v36 = vld [vmem:[#allocation12 + $0xad0] sm:$0xff]  ;;  %v12466_v56 = vcombine.high %v619_v44, %v623_v3 }
 0x362   :  { %v12462_v55 = vcombine.high %v690_v36, %v694_v19  ;;  %v12469_v6 = vcombine.low %v690_v36, %v694_v19 }
 0x363   :  { %5448 = vmatpush1.bf16.msra.mxu0 %v12431_v31  ;;  %16250 = vst [vmem:[#allocation551_spill] sm:$0xff] %v12466_v56 }
 0x364   :  { %5591 = vmatpush1.bf16.msra.mxu1 %v12435_v48  ;;  %5449 = vmatprep.subr.bf16.mxu0 %v12437_v7  ;;  %16249 = vst [vmem:[#allocation550_spill] sm:$0xff] %v12462_v55  ;;  %v627_v7 = vld [vmem:[#allocation12 + $0x8d8] sm:$0xff]  ;;  %16251 = vst [vmem:[#allocation552_spill] sm:$0xff] %v12469_v6 }
 0x365   :  { %5603 = vmatprep.subr.bf16.mxu1 %v12440_v39  ;;  %v698_v39 = vld [vmem:[#allocation12 + $0xb10] sm:$0xff]  ;;  %v715_v48 = vld [vmem:[#allocation12 + $0xb98] sm:$0xff] }
 0x367   :  { %5450 = vmatpush1.bf16.msra.mxu0 %v12443_v57  ;;  %5593 = vmatmul.mubr.bf16.vlgmr.msra.gmra.mrb[28].mxu1 %v11488_v61  ;;  %v702_v57 = vld [vmem:[#allocation12 + $0xb30] sm:$0xff]  ;;  %v631_v61 = vld [vmem:[#allocation12 + $0x8f8] sm:$0xff] }
 0x368   :  { %5604 = vmatpush1.bf16.msra.mxu1 %v12447_v20  ;;  %5635 = vmatprep.mubr.bf16.mxu1 %v11714_v60  ;;  %v12473_v60 = vcombine.low %v619_v44, %v623_v3  ;;  %v12475_v8 = vcombine.high %v698_v39, %v702_v57  ;;  %v12478_v43 = vcombine.high %v627_v7, %v631_v61  ;;  %v639_v20 = vld [vmem:[#allocation12 + $0x938] sm:$0xff] }
 0x369   :  { %5451 = vmatprep.subr.bf16.mxu0 %v12450_v17  ;;  %5605 = vmatprep.subr.bf16.mxu1 %v12452_v14  ;;  %v710_v14 = vld [vmem:[#allocation12 + $0xb70] sm:$0xff]  ;;  %v635_v17 = vld [vmem:[#allocation12 + $0x918] sm:$0xff]  ;;  %v12481_v19 = vcombine.low %v698_v39, %v702_v57  ;;  %v12485_v3 = vcombine.low %v627_v7, %v631_v61 }
 0x36a   :  { %16252 = vst [vmem:[#allocation553_spill] sm:$0xff] %v12473_v60  ;;  %16253 = vst [vmem:[#allocation554_spill] sm:$0xff] %v12475_v8  ;;  %v12487_v44 = vcombine.high %v706_v24, %v710_v14  ;;  %v12490_v36 = vcombine.high %v635_v17, %v639_v20  ;;  %v12493_v39 = vcombine.low %v706_v24, %v710_v14 }
 0x36b   :  { %5452 = vmatpush1.bf16.msra.mxu0 %v12456_v27  ;;  %16254 = vst [vmem:[#allocation555_spill] sm:$0xff] %v12478_v43  ;;  %16255 = vst [vmem:[#allocation556_spill] sm:$0xff] %v12481_v19  ;;  %v647_v27 = vld [vmem:[#allocation12 + $0x978] sm:$0xff]  ;;  %v12497_v7 = vcombine.low %v635_v17, %v639_v20 }
 0x36c   :  { %5606 = vmatpush1.bf16.msra.mxu1 %v12460_v12  ;;  %5453 = vmatprep.subr.bf16.mxu0 %v12462_v55  ;;  %16256 = vst [vmem:[#allocation557_spill] sm:$0xff] %v12485_v3  ;;  %16257 = vst [vmem:[#allocation558_spill] sm:$0xff] %v12487_v44  ;;  %v718_v55 = vld [vmem:[#allocation12 + $0xbb0] sm:$0xff]  ;;  %v643_v12 = vld [vmem:[#allocation12 + $0x958] sm:$0xff] }
 0x36d   :  { %5607 = vmatprep.subr.bf16.mxu1 %v12466_v56  ;;  %16258 = vst [vmem:[#allocation559_spill] sm:$0xff] %v12490_v36  ;;  %v714_v56 = vld [vmem:[#allocation12 + $0xb90] sm:$0xff]  ;;  %16259 = vst [vmem:[#allocation560_spill] sm:$0xff] %v12493_v39  ;;  %v12502_v61 = vcombine.high %v643_v12, %v647_v27  ;;  %v12509_v20 = vcombine.low %v643_v12, %v647_v27 }
 0x36e   :  { %16260 = vst [vmem:[#allocation561_spill] sm:$0xff] %v12497_v7  ;;  %v12499_v57 = vcombine.high %v714_v56, %v718_v55  ;;  %v12505_v14 = vcombine.low %v714_v56, %v718_v55 }
 0x36f   :  { %5454 = vmatpush1.bf16.msra.mxu0 %v12469_v6  ;;  %16262 = vst [vmem:[#allocation563_spill] sm:$0xff] %v12502_v61  ;;  %v655_v6 = vld [vmem:[#allocation12 + $0x9b8] sm:$0xff]  ;;  %16264 = vst [vmem:[#allocation565_spill] sm:$0xff] %v12509_v20 }
 0x370   :  { %5608 = vmatpush1.bf16.msra.mxu1 %v12473_v60  ;;  %5455 = vmatprep.subr.bf16.mxu0 %v12475_v8  ;;  %16261 = vst [vmem:[#allocation562_spill] sm:$0xff] %v12499_v57  ;;  %v726_v8 = vld [vmem:[#allocation12 + $0xbf0] sm:$0xff]  ;;  %v651_v60 = vld [vmem:[#allocation12 + $0x998] sm:$0xff]  ;;  %16263 = vst [vmem:[#allocation564_spill] sm:$0xff] %v12505_v14 }
 0x371   :  { %5609 = vmatprep.subr.bf16.mxu1 %v12478_v43  ;;  %v722_v43 = vld [vmem:[#allocation12 + $0xbd0] sm:$0xff]  ;;  %v12514_v24 = vcombine.high %v651_v60, %v655_v6  ;;  %v12521_v27 = vcombine.low %v651_v60, %v655_v6 }
 0x372   :  { %v12511_v17 = vcombine.high %v722_v43, %v726_v8  ;;  %v12517_v55 = vcombine.low %v722_v43, %v726_v8 }
 0x373   :  { %5456 = vmatpush1.bf16.msra.mxu0 %v12481_v19  ;;  %16266 = vst [vmem:[#allocation567_spill] sm:$0xff] %v12514_v24  ;;  %v663_v19 = vld [vmem:[#allocation12 + $0x9f8] sm:$0xff]  ;;  %16268 = vst [vmem:[#allocation569_spill] sm:$0xff] %v12521_v27 }
 0x374   :  { %5610 = vmatpush1.bf16.msra.mxu1 %v12485_v3  ;;  %5457 = vmatprep.subr.bf16.mxu0 %v12487_v44  ;;  %16265 = vst [vmem:[#allocation566_spill] sm:$0xff] %v12511_v17  ;;  %v734_v44 = vld [vmem:[#allocation12 + $0xc30] sm:$0xff]  ;;  %v659_v3 = vld [vmem:[#allocation12 + $0x9d8] sm:$0xff]  ;;  %16267 = vst [vmem:[#allocation568_spill] sm:$0xff] %v12517_v55 }
 0x375   :  { %5611 = vmatprep.subr.bf16.mxu1 %v12490_v36  ;;  %v730_v36 = vld [vmem:[#allocation12 + $0xc10] sm:$0xff]  ;;  %v12526_v56 = vcombine.high %v659_v3, %v663_v19  ;;  %v12533_v6 = vcombine.low %v659_v3, %v663_v19 }
 0x376   :  { %v12523_v12 = vcombine.high %v730_v36, %v734_v44  ;;  %v12529_v8 = vcombine.low %v730_v36, %v734_v44 }
 0x377   :  { %5458 = vmatpush1.bf16.msra.mxu0 %v12493_v39  ;;  %16270 = vst [vmem:[#allocation571_spill] sm:$0xff] %v12526_v56  ;;  %v671_v39 = vld [vmem:[#allocation12 + $0xa38] sm:$0xff]  ;;  %16272 = vst [vmem:[#allocation573_spill] sm:$0xff] %v12533_v6 }
 0x378   :  { %5612 = vmatpush1.bf16.msra.mxu1 %v12497_v7  ;;  %5459 = vmatprep.subr.bf16.mxu0 %v12499_v57  ;;  %16269 = vst [vmem:[#allocation570_spill] sm:$0xff] %v12523_v12  ;;  %v742_v57 = vld [vmem:[#allocation12 + $0xc70] sm:$0xff]  ;;  %v667_v7 = vld [vmem:[#allocation12 + $0xa18] sm:$0xff]  ;;  %16271 = vst [vmem:[#allocation572_spill] sm:$0xff] %v12529_v8 }
 0x379   :  { %5613 = vmatprep.subr.bf16.mxu1 %v12502_v61  ;;  %v738_v61 = vld [vmem:[#allocation12 + $0xc50] sm:$0xff]  ;;  %v12538_v43 = vcombine.high %v667_v7, %v671_v39  ;;  %v12547_v19 = vcombine.low %v667_v7, %v671_v39 }
 0x37a   :  { %v12535_v60 = vcombine.high %v738_v61, %v742_v57  ;;  %v12543_v44 = vcombine.low %v738_v61, %v742_v57 }
 0x37b   :  { %5460 = vmatpush1.bf16.msra.mxu0 %v12505_v14  ;;  %16274 = vst [vmem:[#allocation575_spill] sm:$0xff] %v12538_v43  ;;  %16276 = vst [vmem:[#allocation577_spill] sm:$0xff] %v12547_v19  ;;  %v695_v14 = vld [vmem:[#allocation12 + $0xaf8] sm:$0xff] }
 0x37c   :  { %5614 = vmatpush1.bf16.msra.mxu1 %v12509_v20  ;;  %5461 = vmatprep.subr.bf16.mxu0 %v12511_v17  ;;  %16273 = vst [vmem:[#allocation574_spill] sm:$0xff] %v12535_v60  ;;  %v750_v17 = vld [vmem:[#allocation12 + $0xcb0] sm:$0xff]  ;;  %v675_v20 = vld [vmem:[#allocation12 + $0xa58] sm:$0xff]  ;;  %16275 = vst [vmem:[#allocation576_spill] sm:$0xff] %v12543_v44 }
 0x37d   :  { %5615 = vmatprep.subr.bf16.mxu1 %v12514_v24  ;;  %v746_v24 = vld [vmem:[#allocation12 + $0xc90] sm:$0xff] }
 0x37e   :  { %v12549_v3 = vcombine.high %v746_v24, %v750_v17  ;;  %v12555_v57 = vcombine.low %v746_v24, %v750_v17 }
 0x37f   :  { %5462 = vmatpush1.bf16.msra.mxu0 %v12517_v55  ;;  %v679_v55 = vld [vmem:[#allocation12 + $0xa78] sm:$0xff] }
 0x380   :  { %5616 = vmatpush1.bf16.msra.mxu1 %v12521_v27  ;;  %5474 = vmatprep.subr.bf16.mxu0 %v12523_v12  ;;  %16277 = vst [vmem:[#allocation578_spill] sm:$0xff] %v12549_v3  ;;  %v12552_v36 = vcombine.high %v675_v20, %v679_v55  ;;  %v758_v12 = vld [vmem:[#allocation12 + $0xcf0] sm:$0xff]  ;;  %v683_v27 = vld [vmem:[#allocation12 + $0xa98] sm:$0xff]  ;;  %16279 = vst [vmem:[#allocation580_spill] sm:$0xff] %v12555_v57  ;;  %v12559_v39 = vcombine.low %v675_v20, %v679_v55 }
 0x381   :  { %5617 = vmatprep.subr.bf16.mxu1 %v12526_v56  ;;  %v754_v56 = vld [vmem:[#allocation12 + $0xcd0] sm:$0xff] }
 0x382   :  { %5464 = vmatmul.mubr.bf16.vlgmr.msra.gmra.mrb[12].mxu0 %v11712_v52  ;;  %16278 = vst [vmem:[#allocation579_spill] sm:$0xff] %v12552_v36  ;;  %16280 = vst [vmem:[#allocation581_spill] sm:$0xff] %v12559_v39  ;;  %v12561_v7 = vcombine.high %v754_v56, %v758_v12  ;;  %v12567_v17 = vcombine.low %v754_v56, %v758_v12 }
 0x383   :  { %5475 = vmatpush1.bf16.msra.mxu0 %v12529_v8  ;;  %5506 = vmatprep.mubr.bf16.mxu0 %v11936_v15  ;;  %v687_v8 = vld [vmem:[#allocation12 + $0xab8] sm:$0xff] }
 0x384   :  { %5618 = vmatpush1.bf16.msra.mxu1 %v12533_v6  ;;  %5476 = vmatprep.subr.bf16.mxu0 %v12535_v60  ;;  %16281 = vst [vmem:[#allocation582_spill] sm:$0xff] %v12561_v7  ;;  %v12564_v61 = vcombine.high %v683_v27, %v687_v8  ;;  %v766_v60 = vld [vmem:[#allocation12 + $0xd30] sm:$0xff]  ;;  %v691_v6 = vld [vmem:[#allocation12 + $0xad8] sm:$0xff]  ;;  %16283 = vst [vmem:[#allocation584_spill] sm:$0xff] %v12567_v17  ;;  %v12571_v20 = vcombine.low %v683_v27, %v687_v8 }
 0x385   :  { %5619 = vmatprep.subr.bf16.mxu1 %v12538_v43  ;;  %v762_v43 = vld [vmem:[#allocation12 + $0xd10] sm:$0xff]  ;;  %v12576_v55 = vcombine.high %v691_v6, %v695_v14  ;;  %v12583_v27 = vcombine.low %v691_v6, %v695_v14  ;;  %v12587_v8 = vld [vmem:[#allocation14] sm:$0xff] }
 0x386   :  { %16282 = vst [vmem:[#allocation583_spill] sm:$0xff] %v12564_v61  ;;  %16284 = vst [vmem:[#allocation585_spill] sm:$0xff] %v12571_v20  ;;  %v12573_v24 = vcombine.high %v762_v43, %v766_v60  ;;  %v12579_v12 = vcombine.low %v762_v43, %v766_v60  ;;  %v12597_v14 = vrot.slane %v12587_v8, %v11213_v33 }
 0x387   :  { %5477 = vmatpush1.bf16.msra.mxu0 %v12543_v44  ;;  %16286 = vst [vmem:[#allocation587_spill] sm:$0xff] %v12576_v55  ;;  %v703_v44 = vld [vmem:[#allocation12 + $0xb38] sm:$0xff]  ;;  %16288 = vst [vmem:[#allocation589_spill] sm:$0xff] %v12583_v27 }
 0x388   :  { %5620 = vmatpush1.bf16.msra.mxu1 %v12547_v19  ;;  %5478 = vmatprep.subr.bf16.mxu0 %v12549_v3  ;;  %16285 = vst [vmem:[#allocation586_spill] sm:$0xff] %v12573_v24  ;;  %v774_v3 = vld [vmem:[#allocation12 + $0xd70] sm:$0xff]  ;;  %v699_v19 = vld [vmem:[#allocation12 + $0xb18] sm:$0xff]  ;;  %16287 = vst [vmem:[#allocation588_spill] sm:$0xff] %v12579_v12 }
 0x389   :  { %5621 = vmatprep.subr.bf16.mxu1 %v12552_v36  ;;  %v770_v36 = vld [vmem:[#allocation12 + $0xd50] sm:$0xff]  ;;  %16292 = vst [vmem:[#allocation593_spill] sm:$0xff] %v12597_v14  ;;  %v12601_v6 = vcombine.low %v699_v19, %v703_v44 }
 0x38a   :  { %v12585_v56 = vcombine.high %v770_v36, %v774_v3  ;;  %v12593_v60 = vcombine.low %v770_v36, %v774_v3  ;;  %v786_v36 = vld [vmem:[#allocation12 + $0xdd0] sm:$0xff] }
 0x38b   :  { %5479 = vmatpush1.bf16.msra.mxu0 %v12555_v57  ;;  %v707_v57 = vld [vmem:[#allocation12 + $0xb58] sm:$0xff]  ;;  %16293 = vst [vmem:[#allocation594_spill] sm:$0xff] %v12601_v6 }
 0x38c   :  { %5622 = vmatpush1.bf16.msra.mxu1 %v12559_v39  ;;  %5480 = vmatprep.subr.bf16.mxu0 %v12561_v7  ;;  %16289 = vst [vmem:[#allocation590_spill] sm:$0xff] %v12585_v56  ;;  %v778_v7 = vld [vmem:[#allocation12 + $0xd90] sm:$0xff]  ;;  %16291 = vst [vmem:[#allocation592_spill] sm:$0xff] %v12593_v60 }
 0x38d   :  { %5623 = vmatprep.subr.bf16.mxu1 %v12564_v61  ;;  %v12590_v61 = vcombine.high %v699_v19, %v703_v44  ;;  %v782_v39 = vld [vmem:[#allocation12 + $0xdb0] sm:$0xff] }
 0x38e   :  { %v12603_v43 = vcombine.high %v778_v7, %v782_v39  ;;  %v12613_v19 = vcombine.low %v778_v7, %v782_v39  ;;  %v794_v7 = vld [vmem:[#allocation12 + $0xe10] sm:$0xff] }
 0x38f   :  { %5481 = vmatpush1.bf16.msra.mxu0 %v12567_v17  ;;  %16290 = vst [vmem:[#allocation591_spill] sm:$0xff] %v12590_v61  ;;  %v711_v17 = vld [vmem:[#allocation12 + $0xb78] sm:$0xff] }
 0x390   :  { %5624 = vmatpush1.bf16.msra.mxu1 %v12571_v20  ;;  %5482 = vmatprep.subr.bf16.mxu0 %v12573_v24  ;;  %16294 = vst [vmem:[#allocation595_spill] sm:$0xff] %v12603_v43  ;;  %v12610_v3 = vcombine.high %v707_v57, %v711_v17  ;;  %16297 = vst [vmem:[#allocation598_spill] sm:$0xff] %v12613_v19 }
 0x391   :  { %5625 = vmatprep.subr.bf16.mxu1 %v12576_v55  ;;  %v12607_v55 = vrot.slane %v12587_v8, %v11218_v9 }
 0x392   :  { %16296 = vst [vmem:[#allocation597_spill] sm:$0xff] %v12610_v3 }
 0x393   :  { %5483 = vmatpush1.bf16.msra.mxu0 %v12579_v12  ;;  %16295 = vst [vmem:[#allocation596_spill] sm:$0xff] %v12607_v55  ;;  %v790_v12 = vld [vmem:[#allocation12 + $0xdf0] sm:$0xff] }
 0x394   :  { %5626 = vmatpush1.bf16.msra.mxu1 %v12583_v27  ;;  %5484 = vmatprep.subr.bf16.mxu0 %v12585_v56  ;;  %v719_v27 = vld [vmem:[#allocation12 + $0xbb8] sm:$0xff]  ;;  %v12615_v56 = vcombine.low %v707_v57, %v711_v17  ;;  %v12625_v40 = vcombine.high %v786_v36, %v790_v12  ;;  %v798_v17 = vld [vmem:[#allocation12 + $0xe30] sm:$0xff] }
 0x395   :  { %v5164_v24 = vpop.f32.mrb[8].mxu0  ;;  %5627 = vmatprep.subr.bf16.mxu1 %v12590_v61  ;;  %v12634_v57 = vcombine.high %v715_v48, %v719_v27 }
 0x396   :  { %v5166_v20 = vpop.f32.mrb[9].mxu0  ;;  %16298 = vst [vmem:[#allocation599_spill] sm:$0xff] %v12615_v56  ;;  %v12618_v31 = vadd.f32 %v5164_v24, %v12597_v14  ;;  %16299 = vst [vmem:[#allocation600_spill] sm:$0xff] %v12625_v40 }
 0x397   :  { %5485 = vmatpush1.bf16.msra.mxu0 %v12593_v60  ;;  %v5168_v44 = vpop.f32.mrb[10].mxu0  ;;  %v12628_v60 = vadd.f32 %v5166_v20, %v12607_v55  ;;  %16300 = vst [vmem:[#allocation601_spill] sm:$0xff] %v12634_v57  ;;  %v12641_v20 = vcombine.low %v786_v36, %v790_v12  ;;  %v12653_v12 = vcombine.low %v794_v7, %v798_v17 }
 0x398   :  { %v12621_v25 = vadd.f32 %v5168_v44, %v12597_v14  ;;  %5628 = vmatpush1.bf16.msra.mxu1 %v12601_v6  ;;  %v5170_v61 = vpop.f32.mrb[11].mxu0  ;;  %5486 = vmatprep.subr.bf16.mxu0 %v12603_v43  ;;  %v723_v44 = vld [vmem:[#allocation12 + $0xbd8] sm:$0xff]  ;;  %v806_v14 = vld [vmem:[#allocation12 + $0xe70] sm:$0xff] }
 0x399   :  { %v12631_v39 = vadd.f32 %v5170_v61, %v12607_v55  ;;  %5629 = vmatprep.subr.bf16.mxu1 %v12610_v3  ;;  %v727_v6 = vld [vmem:[#allocation12 + $0xbf8] sm:$0xff]  ;;  %16301 = vst [vmem:[#allocation602_spill] sm:$0xff] %v12641_v20  ;;  %v12645_v61 = vcombine.low %v715_v48, %v719_v27  ;;  %v12647_v3 = vcombine.high %v794_v7, %v798_v17  ;;  %v802_v55 = vld [vmem:[#allocation12 + $0xe50] sm:$0xff]  ;;  %16305 = vst [vmem:[#allocation606_spill] sm:$0xff] %v12653_v12 }
 0x39a   :  { %v12650_v24 = vcombine.high %v723_v44, %v727_v6  ;;  %v735_v43 = vld [vmem:[#allocation12 + $0xc38] sm:$0xff]  ;;  %v12657_v48 = vcombine.low %v723_v44, %v727_v6  ;;  %v12659_v27 = vcombine.high %v802_v55, %v806_v14  ;;  %v12665_v7 = vcombine.low %v802_v55, %v806_v14 }
 0x39b   :  { %5487 = vmatpush1.bf16.msra.mxu0 %v12613_v19  ;;  %16302 = vst [vmem:[#allocation603_spill] sm:$0xff] %v12645_v61  ;;  %16303 = vst [vmem:[#allocation604_spill] sm:$0xff] %v12647_v3  ;;  %v12662_v36 = vcombine.high %v731_v38, %v735_v43  ;;  %v743_v19 = vld [vmem:[#allocation12 + $0xc78] sm:$0xff]  ;;  %v12669_v6 = vcombine.low %v731_v38, %v735_v43 }
 0x39c   :  { %5630 = vmatpush1.bf16.msra.mxu1 %v12615_v56  ;;  %5488 = vmatprep.subr.bf16.mxu0 %v12625_v40  ;;  %16304 = vst [vmem:[#allocation605_spill] sm:$0xff] %v12650_v24  ;;  %16306 = vst [vmem:[#allocation607_spill] sm:$0xff] %v12657_v48  ;;  %v814_v40 = vld [vmem:[#allocation12 + $0xeb0] sm:$0xff]  ;;  %v739_v56 = vld [vmem:[#allocation12 + $0xc58] sm:$0xff] }
 0x39d   :  { %5631 = vmatprep.subr.bf16.mxu1 %v12634_v57  ;;  %16307 = vst [vmem:[#allocation608_spill] sm:$0xff] %v12659_v27  ;;  %16308 = vst [vmem:[#allocation609_spill] sm:$0xff] %v12662_v36  ;;  %v810_v57 = vld [vmem:[#allocation12 + $0xe90] sm:$0xff]  ;;  %v12674_v44 = vcombine.high %v739_v56, %v743_v19  ;;  %v12682_v38 = vcombine.low %v739_v56, %v743_v19 }
 0x39e   :  { %16309 = vst [vmem:[#allocation610_spill] sm:$0xff] %v12665_v7  ;;  %16310 = vst [vmem:[#allocation611_spill] sm:$0xff] %v12669_v6  ;;  %v12672_v17 = vcombine.high %v810_v57, %v814_v40  ;;  %v12678_v55 = vcombine.low %v810_v57, %v814_v40  ;;  %v834_v57 = vld [vmem:[#allocation12 + $0xf50] sm:$0xff] }
 0x39f   :  { %5489 = vmatpush1.bf16.msra.mxu0 %v12641_v20  ;;  %16312 = vst [vmem:[#allocation613_spill] sm:$0xff] %v12674_v44  ;;  %v751_v20 = vld [vmem:[#allocation12 + $0xcb8] sm:$0xff]  ;;  %16314 = vst [vmem:[#allocation615_spill] sm:$0xff] %v12682_v38 }
 0x3a0   :  { %5632 = vmatpush1.bf16.msra.mxu1 %v12645_v61  ;;  %5490 = vmatprep.subr.bf16.mxu0 %v12647_v3  ;;  %16311 = vst [vmem:[#allocation612_spill] sm:$0xff] %v12672_v17  ;;  %v822_v3 = vld [vmem:[#allocation12 + $0xef0] sm:$0xff]  ;;  %v747_v61 = vld [vmem:[#allocation12 + $0xc98] sm:$0xff]  ;;  %16313 = vst [vmem:[#allocation614_spill] sm:$0xff] %v12678_v55 }
 0x3a1   :  { %5633 = vmatprep.subr.bf16.mxu1 %v12650_v24  ;;  %v818_v24 = vld [vmem:[#allocation12 + $0xed0] sm:$0xff]  ;;  %v12688_v43 = vcombine.high %v747_v61, %v751_v20 }
 0x3a2   :  { %v12684_v14 = vcombine.high %v818_v24, %v822_v3  ;;  %v12691_v40 = vcombine.low %v818_v24, %v822_v3 }
 0x3a3   :  { %5491 = vmatpush1.bf16.msra.mxu0 %v12653_v12  ;;  %16316 = vst [vmem:[#allocation617_spill] sm:$0xff] %v12688_v43 }
 0x3a4   :  { %5634 = vmatpush1.bf16.msra.mxu1 %v12657_v48  ;;  %5492 = vmatprep.subr.bf16.mxu0 %v12659_v27  ;;  %16315 = vst [vmem:[#allocation616_spill] sm:$0xff] %v12684_v14  ;;  %v755_v27 = vld [vmem:[#allocation12 + $0xcd8] sm:$0xff]  ;;  %16317 = vst [vmem:[#allocation618_spill] sm:$0xff] %v12691_v40  ;;  %v9784_v48 = vld [vmem:[#allocation15 + $0x4] ss:$8 sps:$4 sm:$0xff]  }
 0x3a5   :  { %5646 = vmatprep.subr.bf16.mxu1 %v12662_v36  ;;  %v826_v36 = vld [vmem:[#allocation12 + $0xf10] sm:$0xff] }
 0x3a7   :  { %5493 = vmatpush1.bf16.msra.mxu0 %v12665_v7  ;;  %5636 = vmatmul.mubr.bf16.vlgmr.msra.gmra.mrb[28].mxu1 %v11712_v52  ;;  %v830_v7 = vld [vmem:[#allocation12 + $0xf30] sm:$0xff]  ;;  %v759_v52 = vld [vmem:[#allocation12 + $0xcf8] sm:$0xff] }
 0x3a8   :  { %5647 = vmatpush1.bf16.msra.mxu1 %v12669_v6  ;;  %5678 = vmatprep.mubr.bf16.mxu1 %v11936_v15  ;;  %v12695_v15 = vcombine.low %v747_v61, %v751_v20  ;;  %v12697_v56 = vcombine.high %v826_v36, %v830_v7  ;;  %v12700_v19 = vcombine.high %v755_v27, %v759_v52  ;;  %v767_v6 = vld [vmem:[#allocation12 + $0xd38] sm:$0xff] }
 0x3a9   :  { %5494 = vmatprep.subr.bf16.mxu0 %v12672_v17  ;;  %5648 = vmatprep.subr.bf16.mxu1 %v12674_v44  ;;  %v838_v44 = vld [vmem:[#allocation12 + $0xf70] sm:$0xff]  ;;  %v763_v17 = vld [vmem:[#allocation12 + $0xd18] sm:$0xff]  ;;  %v12703_v3 = vcombine.low %v826_v36, %v830_v7  ;;  %v12707_v24 = vcombine.low %v755_v27, %v759_v52 }
 0x3aa   :  { %16318 = vst [vmem:[#allocation619_spill] sm:$0xff] %v12695_v15  ;;  %16319 = vst [vmem:[#allocation620_spill] sm:$0xff] %v12697_v56  ;;  %v12709_v20 = vcombine.high %v834_v57, %v838_v44  ;;  %v12712_v61 = vcombine.high %v763_v17, %v767_v6  ;;  %v12715_v36 = vcombine.low %v834_v57, %v838_v44  ;;  %v16330_v57 = vsub.s32 2, %v11206_v2 }
 0x3ab   :  { %5495 = vmatpush1.bf16.msra.mxu0 %v12678_v55  ;;  %16320 = vst [vmem:[#allocation621_spill] sm:$0xff] %v12700_v19  ;;  %16321 = vst [vmem:[#allocation622_spill] sm:$0xff] %v12703_v3  ;;  %v775_v55 = vld [vmem:[#allocation12 + $0xd78] sm:$0xff]  ;;  %v12719_v27 = vcombine.low %v763_v17, %v767_v6 }
 0x3ac   :  { %5649 = vmatpush1.bf16.msra.mxu1 %v12682_v38  ;;  %5496 = vmatprep.subr.bf16.mxu0 %v12684_v14  ;;  %16322 = vst [vmem:[#allocation623_spill] sm:$0xff] %v12707_v24  ;;  %16323 = vst [vmem:[#allocation624_spill] sm:$0xff] %v12709_v20  ;;  %v846_v14 = vld [vmem:[#allocation12 + $0xfb0] sm:$0xff]  ;;  %v771_v38 = vld [vmem:[#allocation12 + $0xd58] sm:$0xff] }
 0x3ad   :  { %5650 = vmatprep.subr.bf16.mxu1 %v12688_v43  ;;  %16324 = vst [vmem:[#allocation625_spill] sm:$0xff] %v12712_v61  ;;  %v842_v43 = vld [vmem:[#allocation12 + $0xf90] sm:$0xff]  ;;  %16325 = vst [vmem:[#allocation626_spill] sm:$0xff] %v12715_v36  ;;  %v12724_v52 = vcombine.high %v771_v38, %v775_v55  ;;  %v12736_v6 = vcombine.low %v771_v38, %v775_v55 }
 0x3ae   :  { %16326 = vst [vmem:[#allocation627_spill] sm:$0xff] %v12719_v27  ;;  %v12721_v7 = vcombine.high %v842_v43, %v846_v14  ;;  %v12727_v44 = vcombine.low %v842_v43, %v846_v14 }
 0x3af   :  { %5497 = vmatpush1.bf16.msra.mxu0 %v12691_v40  ;;  %16328 = vst [vmem:[#allocation629_spill] sm:$0xff] %v12724_v52  ;;  %v783_v40 = vld [vmem:[#allocation12 + $0xdb8] sm:$0xff]  ;;  %16332 = vst [vmem:[#allocation632_spill] sm:$0xff] %v12736_v6 }
 0x3b0   :  { %5651 = vmatpush1.bf16.msra.mxu1 %v12695_v15  ;;  %5498 = vmatprep.subr.bf16.mxu0 %v12697_v56  ;;  %16327 = vst [vmem:[#allocation628_spill] sm:$0xff] %v12721_v7  ;;  %v854_v56 = vld [vmem:[#allocation12 + $0xff0] sm:$0xff]  ;;  %v779_v15 = vld [vmem:[#allocation12 + $0xd98] sm:$0xff]  ;;  %16329 = vst [vmem:[#allocation630_spill] sm:$0xff] %v12727_v44 }
 0x3b1   :  { %5652 = vmatprep.subr.bf16.mxu1 %v12700_v19  ;;  %v850_v19 = vld [vmem:[#allocation12 + $0xfd0] sm:$0xff]  ;;  %v12746_v43 = vcombine.high %v779_v15, %v783_v40 }
 0x3b2   :  { %v12738_v17 = vcombine.high %v850_v19, %v854_v56  ;;  %v12749_v55 = vcombine.low %v850_v19, %v854_v56 }
 0x3b3   :  { %5499 = vmatpush1.bf16.msra.mxu0 %v12703_v3  ;;  %16336 = vst [vmem:[#allocation635_spill] sm:$0xff] %v12746_v43  ;;  %v791_v3 = vld [vmem:[#allocation12 + $0xdf8] sm:$0xff] }
 0x3b4   :  { %5653 = vmatpush1.bf16.msra.mxu1 %v12707_v24  ;;  %5500 = vmatprep.subr.bf16.mxu0 %v12709_v20  ;;  %v12732_v20 = vrot.slane %v12587_v8, %v16330_v57  ;;  %16333 = vst [vmem:[#allocation633_spill] sm:$0xff] %v12738_v17  ;;  %16337 = vst [vmem:[#allocation636_spill] sm:$0xff] %v12749_v55 }
 0x3b5   :  { %5654 = vmatprep.subr.bf16.mxu1 %v12712_v61  ;;  %v16334_v61 = vsub.s32 3, %v11206_v2 }
 0x3b6   :  { %16331 = vst [vmem:[#allocation631_spill] sm:$0xff] %v12732_v20 }
 0x3b7   :  { %5501 = vmatpush1.bf16.msra.mxu0 %v12715_v36  ;;  %v12743_v24 = vrot.slane %v12587_v8, %v16334_v61  ;;  %v787_v36 = vld [vmem:[#allocation12 + $0xdd8] sm:$0xff] }
 0x3b8   :  { %5655 = vmatpush1.bf16.msra.mxu1 %v12719_v27  ;;  %5502 = vmatprep.subr.bf16.mxu0 %v12721_v7  ;;  %v12768_v19 = vcombine.high %v787_v36, %v791_v3 }
 0x3b9   :  { %16335 = vst [vmem:[#allocation634_spill] sm:$0xff] %v12743_v24  ;;  %v5336_v14 = vpop.f32.mrb[24].mxu1  ;;  %5656 = vmatprep.subr.bf16.mxu1 %v12724_v52  ;;  %v12759_v52 = vcombine.low %v779_v15, %v783_v40  ;;  %v9782_v15 = vld [vmem:[#allocation15] ss:$8 sps:$4 sm:$0xff]   ;;  %v16342_v40 = vpack.c.bf16 %v12631_v39, %v12628_v60  ;;  %v9793_v39 = vld [vmem:[#allocation15 + $0x34] ss:$8 sps:$4 sm:$0xff]  }
 0x3ba   :  { %v5338_v57 = vpop.f32.mrb[25].mxu1  ;;  %v12752_v38 = vadd.f32 %v5336_v14, %v12732_v20  ;;  %16339 = vst [vmem:[#allocation638_spill] sm:$0xff] %v12768_v19  ;;  %v795_v14 = vld [vmem:[#allocation12 + $0xe18] sm:$0xff] }
 0x3bb   :  { %5503 = vmatpush1.bf16.msra.mxu0 %v12727_v44  ;;  %v5340_v7 = vpop.f32.mrb[26].mxu1  ;;  %16338 = vst [vmem:[#allocation637_spill] sm:$0xff] %v12759_v52  ;;  %v12762_v12 = vadd.f32 %v5338_v57, %v12743_v24  ;;  %v12776_v57 = vcombine.low %v787_v36, %v791_v3  ;;  %v9790_v3 = vld [vmem:[#allocation15 + $0x24] ss:$8 sps:$4 sm:$0xff]  }
 0x3bc   :  { %v12755_v27 = vadd.f32 %v5340_v7, %v12732_v20  ;;  %5657 = vmatpush1.bf16.msra.mxu1 %v12736_v6  ;;  %v5342_v61 = vpop.f32.mrb[27].mxu1  ;;  %5504 = vmatprep.subr.bf16.mxu0 %v12738_v17  ;;  %v799_v6 = vld [vmem:[#allocation12 + $0xe38] sm:$0xff]  ;;  %v9788_v17 = vld [vmem:[#allocation15 + $0x20] ss:$8 sps:$4 sm:$0xff]  }
 0x3bd   :  { %v12765_v56 = vadd.f32 %v5342_v61, %v12743_v24  ;;  %5658 = vmatprep.subr.bf16.mxu1 %v12746_v43  ;;  %16340 = vst [vmem:[#allocation639_spill] sm:$0xff] %v12776_v57  ;;  %v9787_v61 = vld [vmem:[#allocation15 + $0x14] ss:$8 sps:$4 sm:$0xff]   ;;  %v12779_v43 = vcombine.high %v795_v14, %v799_v6 }
 0x3be   :  { %v803_v7 = vld [vmem:[#allocation12 + $0xe58] sm:$0xff] }
 0x3bf   :  { %5505 = vmatpush1.bf16.msra.mxu0 %v12749_v55  ;;  %16341 = vst [vmem:[#allocation640_spill] sm:$0xff] %v12779_v43  ;;  %v807_v24 = vld [vmem:[#allocation12 + $0xe78] sm:$0xff] }
 0x3c0   :  { %5659 = vmatpush1.bf16.msra.mxu1 %v12759_v52  ;;  %6337 = vmatprep.subr.bf16.mxu0 %v9784_v48  ;;  %v9785_v55 = vld [vmem:[#allocation15 + $0x10] ss:$8 sps:$4 sm:$0xff]   ;;  %v12786_v48 = vcombine.low %v795_v14, %v799_v6  ;;  %v12789_v36 = vcombine.high %v803_v7, %v807_v24  ;;  %v12792_v60 = vcombine.low %v803_v7, %v807_v24 }
 0x3c1   :  { %5660 = vmatprep.subr.bf16.mxu1 %v12768_v19  ;;  %v811_v19 = vld [vmem:[#allocation12 + $0xe98] sm:$0xff] }
 0x3c2   :  { %5507 = vmatmul.mubr.bf16.vlgmr.msra.gmra.mrb[12].mxu0 %v11934_v47  ;;  %16343 = vst [vmem:[#allocation641_spill] sm:$0xff] %v12786_v48  ;;  %16344 = vst [vmem:[#allocation642_spill] sm:$0xff] %v12789_v36  ;;  %v815_v52 = vld [vmem:[#allocation12 + $0xeb8] sm:$0xff] }
 0x3c3   :  { %6338 = vmatpush1.bf16.msra.mxu0 %v9782_v15  ;;  %6369 = vmatprep.mubr.bf16.mxu0 %v16342_v40  ;;  %16345 = vst [vmem:[#allocation643_spill] sm:$0xff] %v12792_v60  ;;  %v12795_v40 = vcombine.high %v811_v19, %v815_v52  ;;  %v819_v6 = vld [vmem:[#allocation12 + $0xed8] sm:$0xff] }
 0x3c4   :  { %5661 = vmatpush1.bf16.msra.mxu1 %v12776_v57  ;;  %6339 = vmatprep.subr.bf16.mxu0 %v9787_v61  ;;  %v823_v14 = vld [vmem:[#allocation12 + $0xef8] sm:$0xff]  ;;  %v12798_v61 = vcombine.low %v811_v19, %v815_v52 }
 0x3c5   :  { %5662 = vmatprep.subr.bf16.mxu1 %v12779_v43  ;;  %16346 = vst [vmem:[#allocation644_spill] sm:$0xff] %v12795_v40  ;;  %v9791_v15 = vld [vmem:[#allocation15 + $0x30] ss:$8 sps:$4 sm:$0xff]  }
 0x3c6   :  { %16347 = vst [vmem:[#allocation645_spill] sm:$0xff] %v12798_v61  ;;  %v827_v24 = vld [vmem:[#allocation12 + $0xf18] sm:$0xff] }
 0x3c7   :  { %6340 = vmatpush1.bf16.msra.mxu0 %v9785_v55  ;;  %v9796_v55 = vld [vmem:[#allocation15 + $0x44] ss:$8 sps:$4 sm:$0xff]   ;;  %v831_v7 = vld [vmem:[#allocation12 + $0xf38] sm:$0xff] }
 0x3c8   :  { %5663 = vmatpush1.bf16.msra.mxu1 %v12786_v48  ;;  %6341 = vmatprep.subr.bf16.mxu0 %v9790_v3  ;;  %v12801_v3 = vcombine.high %v819_v6, %v823_v14  ;;  %v12804_v48 = vcombine.low %v819_v6, %v823_v14  ;;  %v835_v52 = vld [vmem:[#allocation12 + $0xf58] sm:$0xff] }
 0x3c9   :  { %5664 = vmatprep.subr.bf16.mxu1 %v12789_v36  ;;  %v9794_v36 = vld [vmem:[#allocation15 + $0x40] ss:$8 sps:$4 sm:$0xff]   ;;  %v839_v19 = vld [vmem:[#allocation12 + $0xf78] sm:$0xff] }
 0x3ca   :  { %16348 = vst [vmem:[#allocation646_spill] sm:$0xff] %v12801_v3  ;;  %16349 = vst [vmem:[#allocation647_spill] sm:$0xff] %v12804_v48  ;;  %v843_v6 = vld [vmem:[#allocation12 + $0xf98] sm:$0xff] }
 0x3cb   :  { %6342 = vmatpush1.bf16.msra.mxu0 %v9788_v17  ;;  %v9799_v17 = vld [vmem:[#allocation15 + $0x54] ss:$8 sps:$4 sm:$0xff]  }
 0x3cc   :  { %5665 = vmatpush1.bf16.msra.mxu1 %v12792_v60  ;;  %6343 = vmatprep.subr.bf16.mxu0 %v9793_v39  ;;  %v12807_v39 = vcombine.high %v827_v24, %v831_v7  ;;  %v12810_v60 = vcombine.low %v827_v24, %v831_v7  ;;  %v847_v14 = vld [vmem:[#allocation12 + $0xfb8] sm:$0xff] }
 0x3cd   :  { %5666 = vmatprep.subr.bf16.mxu1 %v12795_v40  ;;  %v9797_v40 = vld [vmem:[#allocation15 + $0x50] ss:$8 sps:$4 sm:$0xff]  }
 0x3ce   :  { %16350 = vst [vmem:[#allocation648_spill] sm:$0xff] %v12807_v39  ;;  %v851_v24 = vld [vmem:[#allocation12 + $0xfd8] sm:$0xff] }
 0x3cf   :  { %6344 = vmatpush1.bf16.msra.mxu0 %v9791_v15  ;;  %v9802_v15 = vld [vmem:[#allocation15 + $0x64] ss:$8 sps:$4 sm:$0xff]   ;;  %v855_v7 = vld [vmem:[#allocation12 + $0xff8] sm:$0xff] }
 0x3d0   :  { %5667 = vmatpush1.bf16.msra.mxu1 %v12798_v61  ;;  %6345 = vmatprep.subr.bf16.mxu0 %v9796_v55  ;;  %v12813_v55 = vcombine.high %v835_v52, %v839_v19  ;;  %v12816_v61 = vcombine.low %v835_v52, %v839_v19  ;;  %v9806_v52 = vld [vmem:[#allocation15 + $0x80] ss:$8 sps:$4 sm:$0xff]   ;;  %v12828_v19 = vcombine.low %v851_v24, %v855_v7 }
 0x3d1   :  { %5668 = vmatprep.subr.bf16.mxu1 %v12801_v3  ;;  %v9800_v3 = vld [vmem:[#allocation15 + $0x60] ss:$8 sps:$4 sm:$0xff]  }
 0x3d2   :  { %16351 = vst [vmem:[#allocation649_spill] sm:$0xff] %v12813_v55 }
 0x3d3   :  { %6346 = vmatpush1.bf16.msra.mxu0 %v9794_v36  ;;  %v9805_v36 = vld [vmem:[#allocation15 + $0x74] ss:$8 sps:$4 sm:$0xff]  }
 0x3d4   :  { %5669 = vmatpush1.bf16.msra.mxu1 %v12804_v48  ;;  %6347 = vmatprep.subr.bf16.mxu0 %v9799_v17  ;;  %v12819_v17 = vcombine.high %v843_v6, %v847_v14  ;;  %v12822_v48 = vcombine.low %v843_v6, %v847_v14  ;;  %v9814_v6 = vld [vmem:[#allocation15 + $0xa4] ss:$8 sps:$4 sm:$0xff]   ;;  %v9817_v14 = vld [vmem:[#allocation15 + $0xb4] ss:$8 sps:$4 sm:$0xff]  }
 0x3d5   :  { %5670 = vmatprep.subr.bf16.mxu1 %v12807_v39  ;;  %v9803_v39 = vld [vmem:[#allocation15 + $0x70] ss:$8 sps:$4 sm:$0xff]  }
 0x3d7   :  { %6348 = vmatpush1.bf16.msra.mxu0 %v9797_v40  ;;  %v9808_v40 = vld [vmem:[#allocation15 + $0x84] ss:$8 sps:$4 sm:$0xff]  }
 0x3d8   :  { %5671 = vmatpush1.bf16.msra.mxu1 %v12810_v60  ;;  %6349 = vmatprep.subr.bf16.mxu0 %v9802_v15  ;;  %v12825_v15 = vcombine.high %v851_v24, %v855_v7  ;;  %v9820_v24 = vld [vmem:[#allocation15 + $0xc4] ss:$8 sps:$4 sm:$0xff]   ;;  %v9821_v7 = vld [vmem:[#allocation15 + $0xd0] ss:$8 sps:$4 sm:$0xff]  }
 0x3d9   :  { %5672 = vmatprep.subr.bf16.mxu1 %v12813_v55  ;;  %v9811_v55 = vld [vmem:[#allocation15 + $0x94] ss:$8 sps:$4 sm:$0xff]  }
 0x3db   :  { %6350 = vmatpush1.bf16.msra.mxu0 %v9800_v3  ;;  %v9809_v3 = vld [vmem:[#allocation15 + $0x90] ss:$8 sps:$4 sm:$0xff]  }
 0x3dc   :  { %5673 = vmatpush1.bf16.msra.mxu1 %v12816_v61  ;;  %6351 = vmatprep.subr.bf16.mxu0 %v9805_v36  ;;  %v9815_v36 = vld [vmem:[#allocation15 + $0xb0] ss:$8 sps:$4 sm:$0xff]  }
 0x3dd   :  { %5674 = vmatprep.subr.bf16.mxu1 %v12819_v17 }
 0x3df   :  { %6352 = vmatpush1.bf16.msra.mxu0 %v9803_v39  ;;  %v9812_v39 = vld [vmem:[#allocation15 + $0xa0] ss:$8 sps:$4 sm:$0xff]  }
 0x3e0   :  { %5675 = vmatpush1.bf16.msra.mxu1 %v12822_v48  ;;  %6353 = vmatprep.subr.bf16.mxu0 %v9808_v40  ;;  %v9826_v40 = vld [vmem:[#allocation15 + $0xe4] ss:$8 sps:$4 sm:$0xff]  }
 0x3e1   :  { %5676 = vmatprep.subr.bf16.mxu1 %v12825_v15 }
 0x3e3   :  { %6354 = vmatpush1.bf16.msra.mxu0 %v9806_v52  ;;  %v9824_v52 = vld [vmem:[#allocation15 + $0xe0] ss:$8 sps:$4 sm:$0xff]  }
 0x3e4   :  { %5677 = vmatpush1.bf16.msra.mxu1 %v12828_v19  ;;  %6355 = vmatprep.subr.bf16.mxu0 %v9811_v55  ;;  %v9818_v55 = vld [vmem:[#allocation15 + $0xc0] ss:$8 sps:$4 sm:$0xff]  }
 0x3e5   :  { %6530 = vmatprep.subr.bf16.mxu1 %v10664_v41 }
 0x3e7   :  { %5679 = vmatmul.mubr.bf16.vlgmr.msra.gmra.mrb[28].mxu1 %v11934_v47  ;;  %6356 = vmatpush1.bf16.msra.mxu0 %v9809_v3  ;;  %v9823_v47 = vld [vmem:[#allocation15 + $0xd4] ss:$8 sps:$4 sm:$0xff]  }
 0x3e8   :  { %6357 = vmatprep.subr.bf16.mxu0 %v9814_v6  ;;  %6531 = vmatpush1.bf16.msra.mxu1 %v10666_v42  ;;  %v9829_v3 = vld [vmem:[#allocation15 + $0xf4] ss:$8 sps:$4 sm:$0xff]   ;;  %v9827_v6 = vld [vmem:[#allocation15 + $0xf0] ss:$8 sps:$4 sm:$0xff]  }
 0x3e9   :  { %6532 = vmatprep.subr.bf16.mxu1 %v10671_v45 }
 0x3eb   :  { %6358 = vmatpush1.bf16.msra.mxu0 %v9812_v39  ;;  %v9832_v39 = vld [vmem:[#allocation15 + $0x104] ss:$8 sps:$4 sm:$0xff]  }
 0x3ec   :  { %6359 = vmatprep.subr.bf16.mxu0 %v9817_v14  ;;  %6533 = vmatpush1.bf16.msra.mxu1 %v10675_v46  ;;  %v9830_v14 = vld [vmem:[#allocation15 + $0x100] ss:$8 sps:$4 sm:$0xff]  }
 0x3ed   :  { %6534 = vmatprep.subr.bf16.mxu1 %v10679_v49 }
 0x3ef   :  { %6360 = vmatpush1.bf16.msra.mxu0 %v9815_v36  ;;  %v9835_v36 = vld [vmem:[#allocation15 + $0x114] ss:$8 sps:$4 sm:$0xff]  }
 0x3f0   :  { %6361 = vmatprep.subr.bf16.mxu0 %v9820_v24  ;;  %6535 = vmatpush1.bf16.msra.mxu1 %v10682_v50  ;;  %v16352_v24 = vpack.c.bf16 %v12621_v25, %v12618_v31  ;;  %v9839_v25 = vld [vmem:[#allocation15 + $0x130] ss:$8 sps:$4 sm:$0xff]   ;;  %v9844_v31 = vld [vmem:[#allocation15 + $0x144] ss:$8 sps:$4 sm:$0xff]  }
 0x3f1   :  { %6536 = vmatprep.subr.bf16.mxu1 %v10685_v53 }
 0x3f3   :  { %6362 = vmatpush1.bf16.msra.mxu0 %v9818_v55  ;;  %v16353_v55 = vpack.c.bf16 %v12765_v56, %v12762_v12  ;;  %v9842_v12 = vld [vmem:[#allocation15 + $0x140] ss:$8 sps:$4 sm:$0xff]   ;;  %v9847_v56 = vld [vmem:[#allocation15 + $0x154] ss:$8 sps:$4 sm:$0xff]  }
 0x3f4   :  { %6363 = vmatprep.subr.bf16.mxu0 %v9823_v47  ;;  %6537 = vmatpush1.bf16.msra.mxu1 %v10688_v54  ;;  %v9833_v47 = vld [vmem:[#allocation15 + $0x110] ss:$8 sps:$4 sm:$0xff]  }
 0x3f5   :  { %6538 = vmatprep.subr.bf16.mxu1 %v10691_v58 }
 0x3f7   :  { %6364 = vmatpush1.bf16.msra.mxu0 %v9821_v7  ;;  %v9838_v7 = vld [vmem:[#allocation15 + $0x124] ss:$8 sps:$4 sm:$0xff]  }
 0x3f8   :  { %6365 = vmatprep.subr.bf16.mxu0 %v9826_v40  ;;  %6539 = vmatpush1.bf16.msra.mxu1 %v10694_v59  ;;  %v9836_v40 = vld [vmem:[#allocation15 + $0x120] ss:$8 sps:$4 sm:$0xff]  }
 0x3f9   :  { %6540 = vmatprep.subr.bf16.mxu1 %v10697_v62 }
 0x3fb   :  { %6366 = vmatpush1.bf16.msra.mxu0 %v9824_v52  ;;  %v9841_v52 = vld [vmem:[#allocation15 + $0x134] ss:$8 sps:$4 sm:$0xff]  }
 0x3fc   :  { %6367 = vmatprep.subr.bf16.mxu0 %v9829_v3  ;;  %6541 = vmatpush1.bf16.msra.mxu1 %v10700_v63  ;;  %v9845_v3 = vld [vmem:[#allocation15 + $0x150] ss:$8 sps:$4 sm:$0xff]  }
 0x3fd   :  { %6542 = vmatprep.subr.bf16.mxu1 %v10703_v1 }
 0x3ff   :  { %6368 = vmatpush1.bf16.msra.mxu0 %v9827_v6  ;;  %v9850_v6 = vld [vmem:[#allocation15 + $0x164] ss:$8 sps:$4 sm:$0xff]  }
 0x400   :  { %6380 = vmatprep.subr.bf16.mxu0 %v9832_v39  ;;  %6543 = vmatpush1.bf16.msra.mxu1 %v10706_v4  ;;  %v16354_v39 = vld [vmem:[#allocation25_spill] sm:$0xff] }
 0x401   :  { %6544 = vmatprep.subr.bf16.mxu1 %v10709_v5 }
 0x402   :  { %6370 = vmatmul.mubr.bf16.vlgmr.msra.gmra.mrb[16].mxu0 %v16352_v24  ;;  %v9853_v24 = vld [vmem:[#allocation15 + $0x174] ss:$8 sps:$4 sm:$0xff]  }
 0x403   :  { %6381 = vmatpush1.bf16.msra.mxu0 %v9830_v14  ;;  %6412 = vmatprep.mubr.bf16.mxu0 %v16353_v55  ;;  %v16355_v14 = vld [vmem:[#allocation26_spill] sm:$0xff]  ;;  %v16356_v55 = vld [vmem:[#allocation27_spill] sm:$0xff] }
 0x404   :  { %6382 = vmatprep.subr.bf16.mxu0 %v9835_v36  ;;  %6545 = vmatpush1.bf16.msra.mxu1 %v10712_v10  ;;  %v9848_v36 = vld [vmem:[#allocation15 + $0x160] ss:$8 sps:$4 sm:$0xff]  }
 0x405   :  { %6546 = vmatprep.subr.bf16.mxu1 %v10715_v13 }
 0x407   :  { %6383 = vmatpush1.bf16.msra.mxu0 %v9833_v47  ;;  %v16357_v47 = vld [vmem:[#allocation28_spill] sm:$0xff] }
 0x408   :  { %6384 = vmatprep.subr.bf16.mxu0 %v9838_v7  ;;  %6547 = vmatpush1.bf16.msra.mxu1 %v10718_v18  ;;  %v9851_v7 = vld [vmem:[#allocation15 + $0x170] ss:$8 sps:$4 sm:$0xff]  }
 0x409   :  { %6548 = vmatprep.subr.bf16.mxu1 %v10721_v21 }
 0x40b   :  { %6385 = vmatpush1.bf16.msra.mxu0 %v9836_v40  ;;  %v9856_v40 = vld [vmem:[#allocation15 + $0x184] ss:$8 sps:$4 sm:$0xff]  }
 0x40c   :  { %6386 = vmatprep.subr.bf16.mxu0 %v9841_v52  ;;  %6549 = vmatpush1.bf16.msra.mxu1 %v10724_v26  ;;  %v16358_v52 = vld [vmem:[#allocation29_spill] sm:$0xff] }
 0x40d   :  { %6550 = vmatprep.subr.bf16.mxu1 %v10727_v29 }
 0x40f   :  { %6387 = vmatpush1.bf16.msra.mxu0 %v9839_v25  ;;  %v16359_v25 = vld [vmem:[#allocation30_spill] sm:$0xff] }
 0x410   :  { %6388 = vmatprep.subr.bf16.mxu0 %v9844_v31  ;;  %6551 = vmatpush1.bf16.msra.mxu1 %v10730_v34  ;;  %v9854_v31 = vld [vmem:[#allocation15 + $0x180] ss:$8 sps:$4 sm:$0xff]  }
 0x411   :  { %6552 = vmatprep.subr.bf16.mxu1 %v10733_v37 }
 0x413   :  { %6389 = vmatpush1.bf16.msra.mxu0 %v9842_v12  ;;  %v9859_v12 = vld [vmem:[#allocation15 + $0x194] ss:$8 sps:$4 sm:$0xff]  }
 0x414   :  { %6390 = vmatprep.subr.bf16.mxu0 %v9847_v56  ;;  %6553 = vmatpush1.bf16.msra.mxu1 %v16354_v39  ;;  %v16360_v56 = vld [vmem:[#allocation31_spill] sm:$0xff]  ;;  %v9932_v39 = vld [vmem:[#allocation15 + $0x320] ss:$8 sps:$4 sm:$0xff]  }
 0x415   :  { %6554 = vmatprep.subr.bf16.mxu1 %v16355_v14  ;;  %v9934_v14 = vld [vmem:[#allocation15 + $0x324] ss:$8 sps:$4 sm:$0xff]  }
 0x417   :  { %6391 = vmatpush1.bf16.msra.mxu0 %v9845_v3  ;;  %v16361_v3 = vld [vmem:[#allocation32_spill] sm:$0xff] }
 0x418   :  { %6392 = vmatprep.subr.bf16.mxu0 %v9850_v6  ;;  %6555 = vmatpush1.bf16.msra.mxu1 %v16356_v55  ;;  %v9857_v6 = vld [vmem:[#allocation15 + $0x190] ss:$8 sps:$4 sm:$0xff]   ;;  %v9931_v55 = vld [vmem:[#allocation15 + $0x314] ss:$8 sps:$4 sm:$0xff]  }
 0x419   :  { %6556 = vmatprep.subr.bf16.mxu1 %v16357_v47  ;;  %v9862_v47 = vld [vmem:[#allocation15 + $0x1a4] ss:$8 sps:$4 sm:$0xff]  }
 0x41b   :  { %6393 = vmatpush1.bf16.msra.mxu0 %v9848_v36  ;;  %v16362_v36 = vld [vmem:[#allocation33_spill] sm:$0xff] }
 0x41c   :  { %6394 = vmatprep.subr.bf16.mxu0 %v9853_v24  ;;  %6557 = vmatpush1.bf16.msra.mxu1 %v16358_v52  ;;  %v16363_v24 = vld [vmem:[#allocation34_spill] sm:$0xff] }
 0x41d   :  { %6558 = vmatprep.subr.bf16.mxu1 %v16359_v25  ;;  %v9860_v52 = vld [vmem:[#allocation15 + $0x1a0] ss:$8 sps:$4 sm:$0xff]   ;;  %v9865_v25 = vld [vmem:[#allocation15 + $0x1b4] ss:$8 sps:$4 sm:$0xff]  }
 0x41f   :  { %6395 = vmatpush1.bf16.msra.mxu0 %v9851_v7  ;;  %v9863_v7 = vld [vmem:[#allocation15 + $0x1b0] ss:$8 sps:$4 sm:$0xff]  }
 0x420   :  { %6396 = vmatprep.subr.bf16.mxu0 %v9856_v40  ;;  %6559 = vmatpush1.bf16.msra.mxu1 %v16360_v56  ;;  %v9868_v40 = vld [vmem:[#allocation15 + $0x1c4] ss:$8 sps:$4 sm:$0xff]   ;;  %v9866_v56 = vld [vmem:[#allocation15 + $0x1c0] ss:$8 sps:$4 sm:$0xff]  }
 0x421   :  { %6560 = vmatprep.subr.bf16.mxu1 %v16361_v3  ;;  %v9871_v3 = vld [vmem:[#allocation15 + $0x1d4] ss:$8 sps:$4 sm:$0xff]  }
 0x423   :  { %6397 = vmatpush1.bf16.msra.mxu0 %v9854_v31  ;;  %v9869_v31 = vld [vmem:[#allocation15 + $0x1d0] ss:$8 sps:$4 sm:$0xff]  }
 0x424   :  { %6398 = vmatprep.subr.bf16.mxu0 %v9859_v12  ;;  %6561 = vmatpush1.bf16.msra.mxu1 %v16362_v36  ;;  %v9874_v12 = vld [vmem:[#allocation15 + $0x1e4] ss:$8 sps:$4 sm:$0xff]   ;;  %v9872_v36 = vld [vmem:[#allocation15 + $0x1e0] ss:$8 sps:$4 sm:$0xff]  }
 0x425   :  { %6573 = vmatprep.subr.bf16.mxu1 %v16363_v24  ;;  %v9877_v24 = vld [vmem:[#allocation15 + $0x1f4] ss:$8 sps:$4 sm:$0xff]  }
 0x427   :  { %6399 = vmatpush1.bf16.msra.mxu0 %v9857_v6  ;;  %v9875_v6 = vld [vmem:[#allocation15 + $0x1f0] ss:$8 sps:$4 sm:$0xff]  }
 0x428   :  { %6400 = vmatprep.subr.bf16.mxu0 %v9862_v47  ;;  %v9880_v47 = vld [vmem:[#allocation15 + $0x204] ss:$8 sps:$4 sm:$0xff]  }
 0x42b   :  { %6401 = vmatpush1.bf16.msra.mxu0 %v9860_v52  ;;  %v9878_v52 = vld [vmem:[#allocation15 + $0x200] ss:$8 sps:$4 sm:$0xff]  }
 0x42c   :  { %6402 = vmatprep.subr.bf16.mxu0 %v9865_v25  ;;  %v9883_v25 = vld [vmem:[#allocation15 + $0x214] ss:$8 sps:$4 sm:$0xff]  }
 0x42f   :  { %6403 = vmatpush1.bf16.msra.mxu0 %v9863_v7  ;;  %v16364_v7 = vpack.c.bf16 %v12755_v27, %v12752_v38  ;;  %v9898_v27 = vld [vmem:[#allocation15 + $0x264] ss:$8 sps:$4 sm:$0xff]   ;;  %v9896_v38 = vld [vmem:[#allocation15 + $0x260] ss:$8 sps:$4 sm:$0xff]  }
 0x430   :  { %6404 = vmatprep.subr.bf16.mxu0 %v9868_v40  ;;  %v9884_v40 = vld [vmem:[#allocation15 + $0x220] ss:$8 sps:$4 sm:$0xff]  }
 0x433   :  { %6405 = vmatpush1.bf16.msra.mxu0 %v9866_v56  ;;  %v9881_v56 = vld [vmem:[#allocation15 + $0x210] ss:$8 sps:$4 sm:$0xff]  }
 0x434   :  { %6406 = vmatprep.subr.bf16.mxu0 %v9871_v3  ;;  %v9886_v3 = vld [vmem:[#allocation15 + $0x224] ss:$8 sps:$4 sm:$0xff]  }
 0x437   :  { %6407 = vmatpush1.bf16.msra.mxu0 %v9869_v31  ;;  %v9889_v31 = vld [vmem:[#allocation15 + $0x234] ss:$8 sps:$4 sm:$0xff]  }
 0x438   :  { %6408 = vmatprep.subr.bf16.mxu0 %v9874_v12  ;;  %v9890_v12 = vld [vmem:[#allocation15 + $0x240] ss:$8 sps:$4 sm:$0xff]  }
 0x43b   :  { %6409 = vmatpush1.bf16.msra.mxu0 %v9872_v36  ;;  %v9887_v36 = vld [vmem:[#allocation15 + $0x230] ss:$8 sps:$4 sm:$0xff]  }
 0x43c   :  { %6410 = vmatprep.subr.bf16.mxu0 %v9877_v24  ;;  %v9892_v24 = vld [vmem:[#allocation15 + $0x244] ss:$8 sps:$4 sm:$0xff]  }
 0x43f   :  { %6411 = vmatpush1.bf16.msra.mxu0 %v9875_v6  ;;  %v9895_v6 = vld [vmem:[#allocation15 + $0x254] ss:$8 sps:$4 sm:$0xff]  }
 0x440   :  { %6423 = vmatprep.subr.bf16.mxu0 %v9880_v47  ;;  %v9893_v47 = vld [vmem:[#allocation15 + $0x250] ss:$8 sps:$4 sm:$0xff]  }
 0x442   :  { %6413 = vmatmul.mubr.bf16.vlgmr.msra.gmra.mrb[16].mxu0 %v16364_v7  ;;  %v9904_v7 = vld [vmem:[#allocation15 + $0x284] ss:$8 sps:$4 sm:$0xff]  }
 0x443   :  { %6424 = vmatpush1.bf16.msra.mxu0 %v9878_v52  ;;  %v9901_v52 = vld [vmem:[#allocation15 + $0x274] ss:$8 sps:$4 sm:$0xff]  }
 0x444   :  { %6425 = vmatprep.subr.bf16.mxu0 %v9883_v25  ;;  %v9899_v25 = vld [vmem:[#allocation15 + $0x270] ss:$8 sps:$4 sm:$0xff]  }
 0x447   :  { %6426 = vmatpush1.bf16.msra.mxu0 %v9881_v56  ;;  %v9902_v56 = vld [vmem:[#allocation15 + $0x280] ss:$8 sps:$4 sm:$0xff]  }
 0x448   :  { %6427 = vmatprep.subr.bf16.mxu0 %v9886_v3  ;;  %v9907_v3 = vld [vmem:[#allocation15 + $0x294] ss:$8 sps:$4 sm:$0xff]  }
 0x44b   :  { %6428 = vmatpush1.bf16.msra.mxu0 %v9884_v40  ;;  %v9905_v40 = vld [vmem:[#allocation15 + $0x290] ss:$8 sps:$4 sm:$0xff]  }
 0x44c   :  { %6429 = vmatprep.subr.bf16.mxu0 %v9889_v31  ;;  %v9910_v31 = vld [vmem:[#allocation15 + $0x2a4] ss:$8 sps:$4 sm:$0xff]  }
 0x44f   :  { %6430 = vmatpush1.bf16.msra.mxu0 %v9887_v36  ;;  %v9908_v36 = vld [vmem:[#allocation15 + $0x2a0] ss:$8 sps:$4 sm:$0xff]  }
 0x450   :  { %6431 = vmatprep.subr.bf16.mxu0 %v9892_v24  ;;  %v9913_v24 = vld [vmem:[#allocation15 + $0x2b4] ss:$8 sps:$4 sm:$0xff]  }
 0x453   :  { %6432 = vmatpush1.bf16.msra.mxu0 %v9890_v12  ;;  %v9911_v12 = vld [vmem:[#allocation15 + $0x2b0] ss:$8 sps:$4 sm:$0xff]  }
 0x454   :  { %6433 = vmatprep.subr.bf16.mxu0 %v9895_v6  ;;  %v9916_v6 = vld [vmem:[#allocation15 + $0x2c4] ss:$8 sps:$4 sm:$0xff]  }
 0x457   :  { %6434 = vmatpush1.bf16.msra.mxu0 %v9893_v47  ;;  %v9914_v47 = vld [vmem:[#allocation15 + $0x2c0] ss:$8 sps:$4 sm:$0xff]  }
 0x458   :  { %6435 = vmatprep.subr.bf16.mxu0 %v9898_v27  ;;  %v9919_v27 = vld [vmem:[#allocation15 + $0x2d4] ss:$8 sps:$4 sm:$0xff]  }
 0x45b   :  { %6436 = vmatpush1.bf16.msra.mxu0 %v9896_v38  ;;  %v9917_v38 = vld [vmem:[#allocation15 + $0x2d0] ss:$8 sps:$4 sm:$0xff]  }
 0x45c   :  { %6437 = vmatprep.subr.bf16.mxu0 %v9901_v52  ;;  %v9922_v52 = vld [vmem:[#allocation15 + $0x2e4] ss:$8 sps:$4 sm:$0xff]  }
 0x45f   :  { %6438 = vmatpush1.bf16.msra.mxu0 %v9899_v25  ;;  %v9920_v25 = vld [vmem:[#allocation15 + $0x2e0] ss:$8 sps:$4 sm:$0xff]  }
 0x460   :  { %6439 = vmatprep.subr.bf16.mxu0 %v9904_v7  ;;  %v9925_v7 = vld [vmem:[#allocation15 + $0x2f4] ss:$8 sps:$4 sm:$0xff]  }
 0x463   :  { %6440 = vmatpush1.bf16.msra.mxu0 %v9902_v56  ;;  %v9923_v56 = vld [vmem:[#allocation15 + $0x2f0] ss:$8 sps:$4 sm:$0xff]  }
 0x464   :  { %6441 = vmatprep.subr.bf16.mxu0 %v9907_v3  ;;  %v9928_v3 = vld [vmem:[#allocation15 + $0x304] ss:$8 sps:$4 sm:$0xff]  }
 0x467   :  { %6442 = vmatpush1.bf16.msra.mxu0 %v9905_v40  ;;  %v16365_v40 = vsub.s32 4, %v11206_v2 }
 0x468   :  { %6443 = vmatprep.subr.bf16.mxu0 %v9910_v31 }
 0x469   :  { %v12878_v31 = vrot.slane %v12587_v8, %v16365_v40  ;;  %v9926_v40 = vld [vmem:[#allocation15 + $0x300] ss:$8 sps:$4 sm:$0xff]  }
 0x46b   :  { %6444 = vmatpush1.bf16.msra.mxu0 %v9908_v36  ;;  %v16366_v36 = vsub.s32 5, %v11206_v2 }
 0x46c   :  { %6445 = vmatprep.subr.bf16.mxu0 %v9913_v24 }
 0x46d   :  { %v12883_v24 = vrot.slane %v12587_v8, %v16366_v36  ;;  %v9929_v36 = vld [vmem:[#allocation15 + $0x310] ss:$8 sps:$4 sm:$0xff]  }
 0x46f   :  { %6446 = vmatpush1.bf16.msra.mxu0 %v9911_v12  ;;  %16367 = vst [vmem:[#allocation650_spill] sm:$0xff] %v12883_v24 }
 0x470   :  { %6447 = vmatprep.subr.bf16.mxu0 %v9916_v6 }
 0x473   :  { %6448 = vmatpush1.bf16.msra.mxu0 %v9914_v47 }
 0x474   :  { %6449 = vmatprep.subr.bf16.mxu0 %v9919_v27 }
 0x477   :  { %6450 = vmatpush1.bf16.msra.mxu0 %v9917_v38 }
 0x478   :  { %6451 = vmatprep.subr.bf16.mxu0 %v9922_v52 }
 0x47b   :  { %6452 = vmatpush1.bf16.msra.mxu0 %v9920_v25 }
 0x47c   :  { %6453 = vmatprep.subr.bf16.mxu0 %v9925_v7 }
 0x47f   :  { %6454 = vmatpush1.bf16.msra.mxu0 %v9923_v56 }
 0x480   :  { %6466 = vmatprep.subr.bf16.mxu0 %v9928_v3 }
 0x495   :  { %v5508_v12 = vpop.f32.mrb[12].mxu0 }
 0x496   :  { %v5510_v6 = vpop.f32.mrb[13].mxu0  ;;  %v9542_v27 = vadd.f32 %v5508_v12, %v12878_v31  ;;  %v9937_v12 = vld [vmem:[#allocation15 + $0x334] ss:$8 sps:$4 sm:$0xff]  }
 0x497   :  { %v5512_v47 = vpop.f32.mrb[14].mxu0  ;;  %v9543_v25 = vadd.f32 %v5510_v6, %v12883_v24  ;;  %v9940_v6 = vld [vmem:[#allocation15 + $0x344] ss:$8 sps:$4 sm:$0xff]  }
 0x498   :  { %v9544_v38 = vadd.f32 %v5512_v47, %v12878_v31  ;;  %v5514_v52 = vpop.f32.mrb[15].mxu0  ;;  %v9935_v47 = vld [vmem:[#allocation15 + $0x330] ss:$8 sps:$4 sm:$0xff]  }
 0x499   :  { %v9545_v7 = vadd.f32 %v5514_v52, %v12883_v24  ;;  %v9938_v52 = vld [vmem:[#allocation15 + $0x340] ss:$8 sps:$4 sm:$0xff]  }
 0x49a   :  { %v5693_v56 = vpack.c.bf16 %v9544_v38, %v9542_v27  ;;  %v9943_v27 = vld [vmem:[#allocation15 + $0x354] ss:$8 sps:$4 sm:$0xff]   ;;  %v9941_v38 = vld [vmem:[#allocation15 + $0x350] ss:$8 sps:$4 sm:$0xff]   ;;  %v9956_v24 = vld [vmem:[#allocation15 + $0x3a0] ss:$8 sps:$4 sm:$0xff]  }
 0x49b   :  { %v5694_v3 = vpack.c.bf16 %v9545_v7, %v9543_v25  ;;  %v9946_v25 = vld [vmem:[#allocation15 + $0x364] ss:$8 sps:$4 sm:$0xff]   ;;  %v9944_v7 = vld [vmem:[#allocation15 + $0x360] ss:$8 sps:$4 sm:$0xff]  }
 0x49d   :  { %6455 = vmatprep.mubr.bf16.mxu0 %v5694_v3 }
 0x49e   :  { %6456 = vmatmul.mubr.bf16.vlgmr.msra.gmra.mrb[16].mxu0 %v5693_v56  ;;  %v9947_v56 = vld [vmem:[#allocation15 + $0x370] ss:$8 sps:$4 sm:$0xff]  }
 0x49f   :  { %6467 = vmatpush1.bf16.msra.mxu0 %v9926_v40  ;;  %v16370_v40 = vsub.s32 7, %v11206_v2 }
 0x4a0   :  { %6468 = vmatprep.subr.bf16.mxu0 %v9931_v55  ;;  %v9949_v55 = vld [vmem:[#allocation15 + $0x374] ss:$8 sps:$4 sm:$0xff]  }
 0x4a3   :  { %6469 = vmatpush1.bf16.msra.mxu0 %v9929_v36  ;;  %v12897_v36 = vrot.slane %v12587_v8, %v16370_v40 }
 0x4a4   :  { %6470 = vmatprep.subr.bf16.mxu0 %v9934_v14  ;;  %v9952_v14 = vld [vmem:[#allocation15 + $0x384] ss:$8 sps:$4 sm:$0xff]  }
 0x4a7   :  { %6471 = vmatpush1.bf16.msra.mxu0 %v9932_v39  ;;  %v16368_v39 = vsub.s32 6, %v11206_v2 }
 0x4a8   :  { %6472 = vmatprep.subr.bf16.mxu0 %v9937_v12 }
 0x4a9   :  { %v12892_v3 = vrot.slane %v12587_v8, %v16368_v39  ;;  %v9953_v8 = vld [vmem:[#allocation15 + $0x390] ss:$8 sps:$4 sm:$0xff]  }
 0x4ab   :  { %6473 = vmatpush1.bf16.msra.mxu0 %v9935_v47  ;;  %16369 = vst [vmem:[#allocation651_spill] sm:$0xff] %v12892_v3 }
 0x4ac   :  { %6474 = vmatprep.subr.bf16.mxu0 %v9940_v6  ;;  %v9950_v6 = vld [vmem:[#allocation15 + $0x380] ss:$8 sps:$4 sm:$0xff]  }
 0x4af   :  { %6475 = vmatpush1.bf16.msra.mxu0 %v9938_v52 }
 0x4b0   :  { %6476 = vmatprep.subr.bf16.mxu0 %v9943_v27  ;;  %v9955_v27 = vld [vmem:[#allocation15 + $0x394] ss:$8 sps:$4 sm:$0xff]  }
 0x4b3   :  { %6477 = vmatpush1.bf16.msra.mxu0 %v9941_v38 }
 0x4b4   :  { %6478 = vmatprep.subr.bf16.mxu0 %v9946_v25 }
 0x4b7   :  { %6479 = vmatpush1.bf16.msra.mxu0 %v9944_v7 }
 0x4b8   :  { %6480 = vmatprep.subr.bf16.mxu0 %v9949_v55 }
 0x4ba   :  { %v5680_v12 = vpop.f32.mrb[28].mxu1 }
 0x4bb   :  { %6481 = vmatpush1.bf16.msra.mxu0 %v9947_v56  ;;  %v5682_v47 = vpop.f32.mrb[29].mxu1  ;;  %v9546_v38 = vadd.f32 %v5680_v12, %v12892_v3  ;;  %v9958_v56 = vld [vmem:[#allocation15 + $0x3a4] ss:$8 sps:$4 sm:$0xff]   ;;  %v9959_v12 = vld [vmem:[#allocation15 + $0x3b0] ss:$8 sps:$4 sm:$0xff]  }
 0x4bc   :  { %v5684_v52 = vpop.f32.mrb[30].mxu1  ;;  %6482 = vmatprep.subr.bf16.mxu0 %v9952_v14  ;;  %v9547_v55 = vadd.f32 %v5682_v47, %v12897_v36  ;;  %v9961_v14 = vld [vmem:[#allocation15 + $0x3b4] ss:$8 sps:$4 sm:$0xff]  }
 0x4bd   :  { %v9548_v25 = vadd.f32 %v5684_v52, %v12892_v3  ;;  %v5686_v7 = vpop.f32.mrb[31].mxu1  ;;  %v9964_v52 = vld [vmem:[#allocation15 + $0x3c4] ss:$8 sps:$4 sm:$0xff]   ;;  %v9962_v3 = vld [vmem:[#allocation15 + $0x3c0] ss:$8 sps:$4 sm:$0xff]  }
 0x4be   :  { %v9549_v39 = vadd.f32 %v5686_v7, %v12897_v36  ;;  %v9967_v47 = vld [vmem:[#allocation15 + $0x3d4] ss:$8 sps:$4 sm:$0xff]   ;;  %v9971_v7 = vld [vmem:[#allocation15 + $0x3f0] ss:$8 sps:$4 sm:$0xff]  }
 0x4bf   :  { %v5695_v2 = vpack.c.bf16 %v9548_v25, %v9546_v38  ;;  %6483 = vmatpush1.bf16.msra.mxu0 %v9950_v6  ;;  %v9965_v38 = vld [vmem:[#allocation15 + $0x3d0] ss:$8 sps:$4 sm:$0xff]   ;;  %v9970_v6 = vld [vmem:[#allocation15 + $0x3e4] ss:$8 sps:$4 sm:$0xff]   ;;  %v9973_v25 = vld [vmem:[#allocation15 + $0x3f4] ss:$8 sps:$4 sm:$0xff]  }
 0x4c0   :  { %v5696_v40 = vpack.c.bf16 %v9549_v39, %v9547_v55  ;;  %6484 = vmatprep.subr.bf16.mxu0 %v9955_v27  ;;  %v9968_v27 = vld [vmem:[#allocation15 + $0x3e0] ss:$8 sps:$4 sm:$0xff]   ;;  %v16373_v39 = vld [vmem:[#allocation55_spill] sm:$0xff] }
 0x4c1   :  { %v16372_v55 = vld [vmem:[#allocation50_spill] sm:$0xff] }
 0x4c2   :  { %6498 = vmatprep.mubr.bf16.mxu0 %v5696_v40  ;;  %v16376_v40 = vld [vmem:[#allocation58_spill] sm:$0xff] }
 0x4c3   :  { %6485 = vmatpush1.bf16.msra.mxu0 %v9953_v8  ;;  %v16374_v8 = vld [vmem:[#allocation54_spill] sm:$0xff] }
 0x4c4   :  { %6486 = vmatprep.subr.bf16.mxu0 %v9958_v56  ;;  %v16377_v56 = vld [vmem:[#allocation63_spill] sm:$0xff] }
 0x4c7   :  { %6487 = vmatpush1.bf16.msra.mxu0 %v9956_v24  ;;  %v16371_v24 = vld [vmem:[#allocation51_spill] sm:$0xff] }
 0x4c8   :  { %6488 = vmatprep.subr.bf16.mxu0 %v9961_v14  ;;  %v16378_v14 = vld [vmem:[#allocation62_spill] sm:$0xff] }
 0x4cb   :  { %6489 = vmatpush1.bf16.msra.mxu0 %v9959_v12  ;;  %v16379_v12 = vld [vmem:[#allocation67_spill] sm:$0xff] }
 0x4cc   :  { %6490 = vmatprep.subr.bf16.mxu0 %v9964_v52  ;;  %v16380_v52 = vld [vmem:[#allocation66_spill] sm:$0xff] }
 0x4cf   :  { %6491 = vmatpush1.bf16.msra.mxu0 %v9962_v3  ;;  %v16375_v3 = vld [vmem:[#allocation59_spill] sm:$0xff] }
 0x4d0   :  { %6492 = vmatprep.subr.bf16.mxu0 %v9967_v47  ;;  %v16381_v47 = vld [vmem:[#allocation71_spill] sm:$0xff] }
 0x4d3   :  { %6493 = vmatpush1.bf16.msra.mxu0 %v9965_v38  ;;  %v16383_v38 = vld [vmem:[#allocation75_spill] sm:$0xff] }
 0x4d4   :  { %6494 = vmatprep.subr.bf16.mxu0 %v9970_v6  ;;  %v16384_v6 = vld [vmem:[#allocation74_spill] sm:$0xff] }
 0x4d7   :  { %6495 = vmatpush1.bf16.msra.mxu0 %v9968_v27  ;;  %v16385_v27 = vld [vmem:[#allocation79_spill] sm:$0xff] }
 0x4d8   :  { %6496 = vmatprep.subr.bf16.mxu0 %v9973_v25  ;;  %v16386_v25 = vld [vmem:[#allocation78_spill] sm:$0xff] }
 0x4db   :  { %6497 = vmatpush1.bf16.msra.mxu0 %v9971_v7  ;;  %v16387_v7 = vld [vmem:[#allocation83_spill] sm:$0xff] }
 0x4dc   :  { %6726 = vmatprep.subr.bf16.mxu0 %v16371_v24 }
 0x4de   :  { %6499 = vmatmul.mubr.bf16.vlgmr.msra.gmra.mrb[16].mxu0 %v5695_v2  ;;  %v16382_v2 = vld [vmem:[#allocation70_spill] sm:$0xff] }
 0x4df   :  { %6727 = vmatpush1.bf16.msra.mxu0 %v16372_v55 }
 0x4e0   :  { %6728 = vmatprep.subr.bf16.mxu0 %v16373_v39 }
 0x4e3   :  { %6729 = vmatpush1.bf16.msra.mxu0 %v16374_v8  ;;  %v9977_v8 = vld [vmem:[#allocation6 + $0x10] sm:$0xff] }
 0x4e4   :  { %6730 = vmatprep.subr.bf16.mxu0 %v16375_v3 }
 0x4e7   :  { %6731 = vmatpush1.bf16.msra.mxu0 %v16376_v40 }
 0x4e8   :  { %6732 = vmatprep.subr.bf16.mxu0 %v16377_v56  ;;  %v16388_v56 = vld [vmem:[#allocation82_spill] sm:$0xff] }
 0x4eb   :  { %6733 = vmatpush1.bf16.msra.mxu0 %v16378_v14  ;;  %v16389_v14 = vld [vmem:[#allocation87_spill] sm:$0xff] }
 0x4ec   :  { %6734 = vmatprep.subr.bf16.mxu0 %v16379_v12  ;;  %v16390_v12 = vld [vmem:[#allocation86_spill] sm:$0xff] }
 0x4ef   :  { %6735 = vmatpush1.bf16.msra.mxu0 %v16380_v52  ;;  %v16391_v52 = vld [vmem:[#allocation91_spill] sm:$0xff] }
 0x4f0   :  { %6736 = vmatprep.subr.bf16.mxu0 %v16381_v47  ;;  %v16392_v47 = vld [vmem:[#allocation90_spill] sm:$0xff] }
 0x4f3   :  { %6737 = vmatpush1.bf16.msra.mxu0 %v16382_v2  ;;  %v16393_v2 = vld [vmem:[#allocation95_spill] sm:$0xff] }
 0x4f4   :  { %6738 = vmatprep.subr.bf16.mxu0 %v16383_v38  ;;  %v16394_v38 = vld [vmem:[#allocation94_spill] sm:$0xff] }
 0x4f7   :  { %6739 = vmatpush1.bf16.msra.mxu0 %v16384_v6  ;;  %v16395_v6 = vld [vmem:[#allocation99_spill] sm:$0xff] }
 0x4f8   :  { %6740 = vmatprep.subr.bf16.mxu0 %v16385_v27  ;;  %v16396_v27 = vld [vmem:[#allocation98_spill] sm:$0xff] }
 0x4fb   :  { %6741 = vmatpush1.bf16.msra.mxu0 %v16386_v25  ;;  %v16397_v25 = vld [vmem:[#allocation103_spill] sm:$0xff] }
 0x4fc   :  { %6742 = vmatprep.subr.bf16.mxu0 %v16387_v7  ;;  %v16398_v7 = vld [vmem:[#allocation102_spill] sm:$0xff] }
 0x4ff   :  { %6743 = vmatpush1.bf16.msra.mxu0 %v16388_v56  ;;  %v16399_v56 = vld [vmem:[#allocation106_spill] sm:$0xff] }
 0x500   :  { %6744 = vmatprep.subr.bf16.mxu0 %v16389_v14  ;;  %v16400_v14 = vld [vmem:[#allocation108_spill] sm:$0xff] }
 0x503   :  { %6745 = vmatpush1.bf16.msra.mxu0 %v16390_v12  ;;  %v16401_v12 = vld [vmem:[#allocation110_spill] sm:$0xff] }
 0x504   :  { %6746 = vmatprep.subr.bf16.mxu0 %v16391_v52  ;;  %v16402_v52 = vld [vmem:[#allocation112_spill] sm:$0xff] }
 0x507   :  { %6747 = vmatpush1.bf16.msra.mxu0 %v16392_v47  ;;  %v16403_v47 = vld [vmem:[#allocation114_spill] sm:$0xff] }
 0x508   :  { %6748 = vmatprep.subr.bf16.mxu0 %v16393_v2  ;;  %v986_v2 = vld [vmem:[#allocation17] sm:$0x3] }
 0x50b   :  { %6749 = vmatpush1.bf16.msra.mxu0 %v16394_v38 }
 0x50c   :  { %6750 = vmatprep.subr.bf16.mxu0 %v16395_v6  ;;  %v12937_v6 = vrot.slane %v986_v2, %v11218_v9 }
 0x50e   :  { %16404 = vst [vmem:[#allocation652_spill] sm:$0xff] %v12937_v6 }
 0x50f   :  { %6751 = vmatpush1.bf16.msra.mxu0 %v16396_v27  ;;  %v9975_v27 = vld [vmem:[#allocation6 + $0x8] sm:$0xff] }
 0x510   :  { %6752 = vmatprep.subr.bf16.mxu0 %v16397_v25 }
 0x513   :  { %6753 = vmatpush1.bf16.msra.mxu0 %v16398_v7  ;;  %v12940_v7 = vrot.slane %v986_v2, %v11213_v33  ;;  %v16416_v2 = vld [vmem:[#allocation42_spill] sm:$0xff] }
 0x514   :  { %6754 = vmatprep.subr.bf16.mxu0 %v16399_v56  ;;  %v9976_v56 = vld [vmem:[#allocation6] sm:$0xff] }
 0x515   :  { %16405 = vst [vmem:[#allocation653_spill] sm:$0xff] %v12940_v7 }
 0x517   :  { %6755 = vmatpush1.bf16.msra.mxu0 %v16400_v14 }
 0x518   :  { %6756 = vmatprep.subr.bf16.mxu0 %v16401_v12 }
 0x51b   :  { %6757 = vmatpush1.bf16.msra.mxu0 %v16402_v52  ;;  %v9978_v52 = vld [vmem:[#allocation6 + $0x18] sm:$0xff] }
 0x51c   :  { %6769 = vmatprep.subr.bf16.mxu0 %v16403_v47 }
 0x5b1   :  { %v6500_v38 = vpop.f32.mrb[16].mxu0 }
 0x5b2   :  { %v6502_v40 = vpop.f32.mrb[17].mxu0  ;;  %v6509_v14 = vadd.f32 %v9976_v56, %v6500_v38  ;;  %v16412_v56 = vld [vmem:[#allocation38_spill] sm:$0xff]  ;;  %v16417_v38 = vld [vmem:[#allocation43_spill] sm:$0xff] }
 0x5b3   :  { %v6510_v25 = vadd.f32 %v9975_v27, %v6502_v40  ;;  %v6504_v3 = vpop.f32.mrb[18].mxu0  ;;  %v16418_v27 = vld [vmem:[#allocation44_spill] sm:$0xff] }
 0x5b4   :  { %v6511_v12 = vadd.f32 %v9977_v8, %v6504_v3  ;;  %v6506_v39 = vpop.f32.mrb[19].mxu0  ;;  %v12952_v40 = vadd.f32 %v12940_v7, %v6509_v14  ;;  %v16411_v3 = vld [vmem:[#allocation37_spill] sm:$0xff]  ;;  %v16413_v14 = vld [vmem:[#allocation39_spill] sm:$0xff] }
 0x5b5   :  { %v6512_v55 = vadd.f32 %v9978_v52, %v6506_v39  ;;  %v12946_v24 = vadd.f32 %v12937_v6, %v6510_v25  ;;  %v16409_v39 = vld [vmem:[#allocation35_spill] sm:$0xff]  ;;  %v16415_v52 = vld [vmem:[#allocation41_spill] sm:$0xff] }
 0x5b6   :  { %v12943_v47 = vadd.f32 %v12940_v7, %v6511_v12  ;;  %16408 = vst [vmem:[#allocation656_spill] sm:$0xff] %v12952_v40  ;;  %v16414_v12 = vld [vmem:[#allocation40_spill] sm:$0xff]  ;;  %v16419_v25 = vld [vmem:[#allocation45_spill] sm:$0xff] }
 0x5b7   :  { %v12949_v9 = vadd.f32 %v12937_v6, %v6512_v55  ;;  %v16410_v55 = vld [vmem:[#allocation36_spill] sm:$0xff]  ;;  %v16518_v7 = vld [vmem:[#allocation177_spill] sm:$0xff] }
 0x5b8   :  { %16406 = vst [vmem:[#allocation654_spill] sm:$0xff] %v12943_v47  ;;  %v12960_v8 = vpack.c.bf16 %v12943_v47, %v12952_v40  ;;  %v16522_v40 = vld [vmem:[#allocation182_spill] sm:$0xff] }
 0x5b9   :  { %16407 = vst [vmem:[#allocation655_spill] sm:$0xff] %v12949_v9  ;;  %v12956_v33 = vpack.c.bf16 %v12949_v9, %v12946_v24  ;;  %v16520_v9 = vld [vmem:[#allocation180_spill] sm:$0xff] }
 0x5bb   :  { %6562 = vmatprep.mubr.bf16.mxu1 %v12956_v33 }
 0x5bc   :  { %6563 = vmatmul.mubr.bf16.vlgmr.msra.gmra.mrb[32].mxu1 %v12960_v8 }
 0x5bd   :  { %6574 = vmatpush1.bf16.msra.mxu1 %v16409_v39  ;;  %6605 = vmatprep.mubr.bf16.mxu1 %v12956_v33  ;;  %v16420_v39 = vld [vmem:[#allocation46_spill] sm:$0xff] }
 0x5be   :  { %6575 = vmatprep.subr.bf16.mxu1 %v16410_v55  ;;  %v16421_v55 = vld [vmem:[#allocation47_spill] sm:$0xff] }
 0x5c1   :  { %6576 = vmatpush1.bf16.msra.mxu1 %v16411_v3  ;;  %v16422_v3 = vld [vmem:[#allocation48_spill] sm:$0xff] }
 0x5c2   :  { %6577 = vmatprep.subr.bf16.mxu1 %v16412_v56  ;;  %v16423_v56 = vld [vmem:[#allocation49_spill] sm:$0xff] }
 0x5c5   :  { %6578 = vmatpush1.bf16.msra.mxu1 %v16413_v14  ;;  %v16424_v14 = vld [vmem:[#allocation52_spill] sm:$0xff] }
 0x5c6   :  { %6579 = vmatprep.subr.bf16.mxu1 %v16414_v12  ;;  %v16425_v12 = vld [vmem:[#allocation53_spill] sm:$0xff] }
 0x5c9   :  { %6580 = vmatpush1.bf16.msra.mxu1 %v16415_v52  ;;  %v16426_v52 = vld [vmem:[#allocation56_spill] sm:$0xff] }
 0x5ca   :  { %6581 = vmatprep.subr.bf16.mxu1 %v16416_v2  ;;  %v16427_v2 = vld [vmem:[#allocation57_spill] sm:$0xff] }
 0x5cd   :  { %6582 = vmatpush1.bf16.msra.mxu1 %v16417_v38  ;;  %v16428_v38 = vld [vmem:[#allocation60_spill] sm:$0xff] }
 0x5ce   :  { %6583 = vmatprep.subr.bf16.mxu1 %v16418_v27  ;;  %v16429_v27 = vld [vmem:[#allocation61_spill] sm:$0xff] }
 0x5d1   :  { %6584 = vmatpush1.bf16.msra.mxu1 %v16419_v25  ;;  %v16430_v25 = vld [vmem:[#allocation64_spill] sm:$0xff] }
 0x5d2   :  { %6585 = vmatprep.subr.bf16.mxu1 %v16420_v39  ;;  %v16431_v39 = vld [vmem:[#allocation65_spill] sm:$0xff] }
 0x5d5   :  { %6586 = vmatpush1.bf16.msra.mxu1 %v16421_v55  ;;  %v16432_v55 = vld [vmem:[#allocation68_spill] sm:$0xff] }
 0x5d6   :  { %6587 = vmatprep.subr.bf16.mxu1 %v16422_v3  ;;  %v16433_v3 = vld [vmem:[#allocation69_spill] sm:$0xff] }
 0x5d9   :  { %6588 = vmatpush1.bf16.msra.mxu1 %v16423_v56  ;;  %v16434_v56 = vld [vmem:[#allocation72_spill] sm:$0xff] }
 0x5da   :  { %6589 = vmatprep.subr.bf16.mxu1 %v16424_v14  ;;  %v16435_v14 = vld [vmem:[#allocation73_spill] sm:$0xff] }
 0x5dd   :  { %6590 = vmatpush1.bf16.msra.mxu1 %v16425_v12  ;;  %v16436_v12 = vld [vmem:[#allocation76_spill] sm:$0xff] }
 0x5de   :  { %6591 = vmatprep.subr.bf16.mxu1 %v16426_v52  ;;  %v16437_v52 = vld [vmem:[#allocation77_spill] sm:$0xff] }
 0x5e1   :  { %6592 = vmatpush1.bf16.msra.mxu1 %v16427_v2  ;;  %v16438_v2 = vld [vmem:[#allocation80_spill] sm:$0xff] }
 0x5e2   :  { %6593 = vmatprep.subr.bf16.mxu1 %v16428_v38  ;;  %v16439_v38 = vld [vmem:[#allocation81_spill] sm:$0xff] }
 0x5e5   :  { %6594 = vmatpush1.bf16.msra.mxu1 %v16429_v27  ;;  %v16440_v27 = vld [vmem:[#allocation84_spill] sm:$0xff] }
 0x5e6   :  { %6595 = vmatprep.subr.bf16.mxu1 %v16430_v25  ;;  %v16452_v25 = vld [vmem:[#allocation107_spill] sm:$0xff] }
 0x5e9   :  { %6596 = vmatpush1.bf16.msra.mxu1 %v16431_v39  ;;  %v16441_v39 = vld [vmem:[#allocation85_spill] sm:$0xff] }
 0x5ea   :  { %6597 = vmatprep.subr.bf16.mxu1 %v16432_v55  ;;  %v16450_v55 = vld [vmem:[#allocation104_spill] sm:$0xff] }
 0x5ed   :  { %6598 = vmatpush1.bf16.msra.mxu1 %v16433_v3  ;;  %v16442_v3 = vld [vmem:[#allocation88_spill] sm:$0xff] }
 0x5ee   :  { %6599 = vmatprep.subr.bf16.mxu1 %v16434_v56  ;;  %v16443_v56 = vld [vmem:[#allocation89_spill] sm:$0xff] }
 0x5f1   :  { %6600 = vmatpush1.bf16.msra.mxu1 %v16435_v14  ;;  %v16444_v14 = vld [vmem:[#allocation92_spill] sm:$0xff] }
 0x5f2   :  { %6601 = vmatprep.subr.bf16.mxu1 %v16436_v12  ;;  %v16445_v12 = vld [vmem:[#allocation93_spill] sm:$0xff] }
 0x5f5   :  { %6602 = vmatpush1.bf16.msra.mxu1 %v16437_v52  ;;  %v16446_v52 = vld [vmem:[#allocation96_spill] sm:$0xff] }
 0x5f6   :  { %6603 = vmatprep.subr.bf16.mxu1 %v16438_v2  ;;  %v16447_v2 = vld [vmem:[#allocation97_spill] sm:$0xff] }
 0x5f9   :  { %6604 = vmatpush1.bf16.msra.mxu1 %v16439_v38  ;;  %v16448_v38 = vld [vmem:[#allocation100_spill] sm:$0xff] }
 0x5fa   :  { %6616 = vmatprep.subr.bf16.mxu1 %v16440_v27  ;;  %v16449_v27 = vld [vmem:[#allocation101_spill] sm:$0xff] }
 0x5fc   :  { %6606 = vmatmul.mubr.bf16.vlgmr.msra.gmra.mrb[36].mxu1 %v12960_v8 }
 0x5fd   :  { %6617 = vmatpush1.bf16.msra.mxu1 %v16441_v39  ;;  %6648 = vmatprep.mubr.bf16.mxu1 %v12956_v33  ;;  %v16451_v39 = vld [vmem:[#allocation105_spill] sm:$0xff] }
 0x5fe   :  { %6618 = vmatprep.subr.bf16.mxu1 %v16442_v3  ;;  %v16453_v3 = vld [vmem:[#allocation109_spill] sm:$0xff] }
 0x601   :  { %6619 = vmatpush1.bf16.msra.mxu1 %v16443_v56  ;;  %v16454_v56 = vld [vmem:[#allocation111_spill] sm:$0xff] }
 0x602   :  { %6620 = vmatprep.subr.bf16.mxu1 %v16444_v14  ;;  %v16455_v14 = vld [vmem:[#allocation113_spill] sm:$0xff] }
 0x605   :  { %6621 = vmatpush1.bf16.msra.mxu1 %v16445_v12  ;;  %v16456_v12 = vld [vmem:[#allocation115_spill] sm:$0xff] }
 0x606   :  { %6622 = vmatprep.subr.bf16.mxu1 %v16446_v52  ;;  %v16457_v52 = vld [vmem:[#allocation117_spill] sm:$0xff] }
 0x609   :  { %6623 = vmatpush1.bf16.msra.mxu1 %v16447_v2  ;;  %v16458_v2 = vld [vmem:[#allocation118_spill] sm:$0xff] }
 0x60a   :  { %6624 = vmatprep.subr.bf16.mxu1 %v16448_v38  ;;  %v16459_v38 = vld [vmem:[#allocation119_spill] sm:$0xff] }
 0x60d   :  { %6625 = vmatpush1.bf16.msra.mxu1 %v16449_v27  ;;  %v16460_v27 = vld [vmem:[#allocation120_spill] sm:$0xff] }
 0x60e   :  { %6626 = vmatprep.subr.bf16.mxu1 %v16450_v55  ;;  %v16461_v55 = vld [vmem:[#allocation121_spill] sm:$0xff] }
 0x611   :  { %6627 = vmatpush1.bf16.msra.mxu1 %v16451_v39  ;;  %v16462_v39 = vld [vmem:[#allocation122_spill] sm:$0xff] }
 0x612   :  { %6628 = vmatprep.subr.bf16.mxu1 %v16452_v25  ;;  %v16463_v25 = vld [vmem:[#allocation123_spill] sm:$0xff] }
 0x615   :  { %6629 = vmatpush1.bf16.msra.mxu1 %v16453_v3  ;;  %v16464_v3 = vld [vmem:[#allocation124_spill] sm:$0xff] }
 0x616   :  { %6630 = vmatprep.subr.bf16.mxu1 %v16454_v56  ;;  %v16465_v56 = vld [vmem:[#allocation125_spill] sm:$0xff] }
 0x619   :  { %6631 = vmatpush1.bf16.msra.mxu1 %v16455_v14  ;;  %v16466_v14 = vld [vmem:[#allocation126_spill] sm:$0xff] }
 0x61a   :  { %6632 = vmatprep.subr.bf16.mxu1 %v16456_v12  ;;  %v16467_v12 = vld [vmem:[#allocation127_spill] sm:$0xff] }
 0x61d   :  { %6633 = vmatpush1.bf16.msra.mxu1 %v16457_v52  ;;  %v16468_v52 = vld [vmem:[#allocation128_spill] sm:$0xff] }
 0x61e   :  { %6634 = vmatprep.subr.bf16.mxu1 %v16458_v2  ;;  %v16469_v2 = vld [vmem:[#allocation129_spill] sm:$0xff] }
 0x621   :  { %6635 = vmatpush1.bf16.msra.mxu1 %v16459_v38  ;;  %v16470_v38 = vld [vmem:[#allocation130_spill] sm:$0xff] }
 0x622   :  { %6636 = vmatprep.subr.bf16.mxu1 %v16460_v27  ;;  %v16471_v27 = vld [vmem:[#allocation131_spill] sm:$0xff] }
 0x625   :  { %6637 = vmatpush1.bf16.msra.mxu1 %v16461_v55  ;;  %v16472_v55 = vld [vmem:[#allocation132_spill] sm:$0xff] }
 0x626   :  { %6638 = vmatprep.subr.bf16.mxu1 %v16462_v39 }
 0x629   :  { %6639 = vmatpush1.bf16.msra.mxu1 %v16463_v25  ;;  %v16473_v25 = vld [vmem:[#allocation133_spill] sm:$0xff] }
 0x62a   :  { %6640 = vmatprep.subr.bf16.mxu1 %v16464_v3  ;;  %v16482_v3 = vld [vmem:[#allocation142_spill] sm:$0xff] }
 0x62d   :  { %6641 = vmatpush1.bf16.msra.mxu1 %v16465_v56  ;;  %v16474_v56 = vld [vmem:[#allocation134_spill] sm:$0xff] }
 0x62e   :  { %6642 = vmatprep.subr.bf16.mxu1 %v16466_v14  ;;  %v16475_v14 = vld [vmem:[#allocation135_spill] sm:$0xff] }
 0x631   :  { %6643 = vmatpush1.bf16.msra.mxu1 %v16467_v12  ;;  %v16476_v12 = vld [vmem:[#allocation136_spill] sm:$0xff] }
 0x632   :  { %6644 = vmatprep.subr.bf16.mxu1 %v16468_v52  ;;  %v16477_v52 = vld [vmem:[#allocation137_spill] sm:$0xff] }
 0x635   :  { %6645 = vmatpush1.bf16.msra.mxu1 %v16469_v2  ;;  %v16478_v2 = vld [vmem:[#allocation138_spill] sm:$0xff] }
 0x636   :  { %6646 = vmatprep.subr.bf16.mxu1 %v16470_v38  ;;  %v16479_v38 = vld [vmem:[#allocation139_spill] sm:$0xff] }
 0x639   :  { %6647 = vmatpush1.bf16.msra.mxu1 %v16471_v27  ;;  %v16480_v27 = vld [vmem:[#allocation140_spill] sm:$0xff] }
 0x63a   :  { %6659 = vmatprep.subr.bf16.mxu1 %v16472_v55  ;;  %v16481_v55 = vld [vmem:[#allocation141_spill] sm:$0xff] }
 0x63c   :  { %6649 = vmatmul.mubr.bf16.vlgmr.msra.gmra.mrb[40].mxu1 %v12960_v8 }
 0x63d   :  { %6660 = vmatpush1.bf16.msra.mxu1 %v16473_v25  ;;  %6691 = vmatprep.mubr.bf16.mxu1 %v12956_v33  ;;  %v16483_v25 = vld [vmem:[#allocation143_spill] sm:$0xff]  ;;  %v16484_v33 = vld [vmem:[#allocation144_spill] sm:$0xff] }
 0x63e   :  { %6661 = vmatprep.subr.bf16.mxu1 %v16474_v56  ;;  %v16485_v56 = vld [vmem:[#allocation145_spill] sm:$0xff] }
 0x641   :  { %6662 = vmatpush1.bf16.msra.mxu1 %v16475_v14  ;;  %v16486_v14 = vld [vmem:[#allocation146_spill] sm:$0xff] }
 0x642   :  { %6663 = vmatprep.subr.bf16.mxu1 %v16476_v12  ;;  %v16487_v12 = vld [vmem:[#allocation147_spill] sm:$0xff] }
 0x645   :  { %6664 = vmatpush1.bf16.msra.mxu1 %v16477_v52  ;;  %v16488_v52 = vld [vmem:[#allocation148_spill] sm:$0xff] }
 0x646   :  { %6665 = vmatprep.subr.bf16.mxu1 %v16478_v2  ;;  %v16489_v2 = vld [vmem:[#allocation149_spill] sm:$0xff] }
 0x649   :  { %6666 = vmatpush1.bf16.msra.mxu1 %v16479_v38  ;;  %v16490_v38 = vld [vmem:[#allocation150_spill] sm:$0xff] }
 0x64a   :  { %6667 = vmatprep.subr.bf16.mxu1 %v16480_v27  ;;  %v16491_v27 = vld [vmem:[#allocation151_spill] sm:$0xff] }
 0x64d   :  { %6668 = vmatpush1.bf16.msra.mxu1 %v16481_v55  ;;  %v16492_v55 = vld [vmem:[#allocation152_spill] sm:$0xff] }
 0x64e   :  { %6669 = vmatprep.subr.bf16.mxu1 %v16482_v3  ;;  %v16493_v3 = vld [vmem:[#allocation153_spill] sm:$0xff] }
 0x651   :  { %6670 = vmatpush1.bf16.msra.mxu1 %v16483_v25  ;;  %v16494_v25 = vld [vmem:[#allocation154_spill] sm:$0xff] }
 0x652   :  { %6671 = vmatprep.subr.bf16.mxu1 %v16484_v33  ;;  %v16495_v33 = vld [vmem:[#allocation155_spill] sm:$0xff] }
 0x655   :  { %6672 = vmatpush1.bf16.msra.mxu1 %v16485_v56  ;;  %v16496_v56 = vld [vmem:[#allocation156_spill] sm:$0xff] }
 0x656   :  { %6673 = vmatprep.subr.bf16.mxu1 %v16486_v14  ;;  %v16497_v14 = vld [vmem:[#allocation157_spill] sm:$0xff] }
 0x659   :  { %6674 = vmatpush1.bf16.msra.mxu1 %v16487_v12  ;;  %v16498_v12 = vld [vmem:[#allocation158_spill] sm:$0xff] }
 0x65a   :  { %6675 = vmatprep.subr.bf16.mxu1 %v16488_v52  ;;  %v16499_v52 = vld [vmem:[#allocation159_spill] sm:$0xff] }
 0x65d   :  { %6676 = vmatpush1.bf16.msra.mxu1 %v16489_v2  ;;  %v16500_v2 = vld [vmem:[#allocation160_spill] sm:$0xff] }
 0x65e   :  { %6677 = vmatprep.subr.bf16.mxu1 %v16490_v38  ;;  %v16501_v38 = vld [vmem:[#allocation161_spill] sm:$0xff] }
 0x661   :  { %6678 = vmatpush1.bf16.msra.mxu1 %v16491_v27  ;;  %v16502_v27 = vld [vmem:[#allocation162_spill] sm:$0xff] }
 0x662   :  { %6679 = vmatprep.subr.bf16.mxu1 %v16492_v55  ;;  %v16503_v55 = vld [vmem:[#allocation163_spill] sm:$0xff] }
 0x665   :  { %6680 = vmatpush1.bf16.msra.mxu1 %v16493_v3  ;;  %v16504_v3 = vld [vmem:[#allocation164_spill] sm:$0xff] }
 0x666   :  { %6681 = vmatprep.subr.bf16.mxu1 %v16494_v25  ;;  %v16515_v25 = vld [vmem:[#allocation175_spill] sm:$0xff] }
 0x669   :  { %6682 = vmatpush1.bf16.msra.mxu1 %v16495_v33  ;;  %v16505_v33 = vld [vmem:[#allocation165_spill] sm:$0xff] }
 0x66a   :  { %6683 = vmatprep.subr.bf16.mxu1 %v16496_v56  ;;  %v16506_v56 = vld [vmem:[#allocation166_spill] sm:$0xff] }
 0x66d   :  { %6684 = vmatpush1.bf16.msra.mxu1 %v16497_v14  ;;  %v16507_v14 = vld [vmem:[#allocation167_spill] sm:$0xff] }
 0x66e   :  { %6685 = vmatprep.subr.bf16.mxu1 %v16498_v12  ;;  %v16508_v12 = vld [vmem:[#allocation168_spill] sm:$0xff] }
 0x671   :  { %6686 = vmatpush1.bf16.msra.mxu1 %v16499_v52  ;;  %v16509_v52 = vld [vmem:[#allocation169_spill] sm:$0xff] }
 0x672   :  { %6687 = vmatprep.subr.bf16.mxu1 %v16500_v2  ;;  %v16510_v2 = vld [vmem:[#allocation170_spill] sm:$0xff] }
 0x675   :  { %6688 = vmatpush1.bf16.msra.mxu1 %v16501_v38  ;;  %v16511_v38 = vld [vmem:[#allocation171_spill] sm:$0xff] }
 0x676   :  { %6689 = vmatprep.subr.bf16.mxu1 %v16502_v27  ;;  %v16512_v27 = vld [vmem:[#allocation172_spill] sm:$0xff] }
 0x679   :  { %6690 = vmatpush1.bf16.msra.mxu1 %v16503_v55  ;;  %v16513_v55 = vld [vmem:[#allocation173_spill] sm:$0xff] }
 0x67a   :  { %6898 = vmatprep.subr.bf16.mxu1 %v16504_v3  ;;  %v16514_v3 = vld [vmem:[#allocation174_spill] sm:$0xff] }
 0x67c   :  { %6692 = vmatmul.mubr.bf16.vlgmr.msra.gmra.mrb[44].mxu1 %v12960_v8 }
 0x67d   :  { %6899 = vmatpush1.bf16.msra.mxu1 %v16505_v33 }
 0x67e   :  { %6900 = vmatprep.subr.bf16.mxu1 %v16506_v56 }
 0x681   :  { %6901 = vmatpush1.bf16.msra.mxu1 %v16507_v14  ;;  %v16516_v14 = vld [vmem:[#allocation176_spill] sm:$0xff] }
 0x682   :  { %6902 = vmatprep.subr.bf16.mxu1 %v16508_v12  ;;  %v16517_v12 = vld [vmem:[#allocation179_spill] sm:$0xff] }
 0x685   :  { %6903 = vmatpush1.bf16.msra.mxu1 %v16509_v52 }
 0x686   :  { %6904 = vmatprep.subr.bf16.mxu1 %v16510_v2  ;;  %v16519_v2 = vld [vmem:[#allocation178_spill] sm:$0xff] }
 0x689   :  { %6905 = vmatpush1.bf16.msra.mxu1 %v16511_v38 }
 0x68a   :  { %6906 = vmatprep.subr.bf16.mxu1 %v16512_v27 }
 0x68d   :  { %6907 = vmatpush1.bf16.msra.mxu1 %v16513_v55 }
 0x68e   :  { %6908 = vmatprep.subr.bf16.mxu1 %v16514_v3  ;;  %v16521_v3 = vld [vmem:[#allocation181_spill] sm:$0xff] }
 0x68f   :  { %v6564_v8 = vpop.f32.mrb[32].mxu1 }
 0x690   :  { %v6566_v33 = vpop.f32.mrb[33].mxu1  ;;  %v6702_v39 = vadd.f32 %v6564_v8, %v16516_v14  ;;  %v16524_v8 = vld [vmem:[#allocation183_spill] sm:$0xff] }
 0x691   :  { %6909 = vmatpush1.bf16.msra.mxu1 %v16515_v25  ;;  %v6568_v56 = vpop.f32.mrb[34].mxu1  ;;  %v6703_v38 = vadd.f32 %v6566_v33, %v16519_v2  ;;  %v16525_v33 = vld [vmem:[#allocation184_spill] sm:$0xff] }
 0x692   :  { %v6710_v6 = vadd.f32 %v6568_v56, %v16517_v12  ;;  %v6570_v52 = vpop.f32.mrb[35].mxu1  ;;  %6910 = vmatprep.subr.bf16.mxu1 %v16518_v7  ;;  %v16523_v56 = vld [vmem:[#allocation116_spill] sm:$0xff]  ;;  %v16583_v7 = vld [vmem:[#allocation245_spill] sm:$0xff] }
 0x693   :  { %v6711_v27 = vadd.f32 %v6570_v52, %v16520_v9  ;;  %v16528_v52 = vld [vmem:[#allocation187_spill] sm:$0xff]  ;;  %v16533_v9 = vld [vmem:[#allocation192_spill] sm:$0xff] }
 0x694   :  { %v13082_v47 = vpack.c.bf16 %v6710_v6, %v6702_v39  ;;  %v16526_v6 = vld [vmem:[#allocation185_spill] sm:$0xff]  ;;  %v16527_v39 = vld [vmem:[#allocation186_spill] sm:$0xff] }
 0x695   :  { %v13084_v55 = vpack.c.bf16 %v6711_v27, %v6703_v38  ;;  %6911 = vmatpush1.bf16.msra.mxu1 %v16521_v3  ;;  %v16529_v38 = vld [vmem:[#allocation188_spill] sm:$0xff]  ;;  %v16530_v27 = vld [vmem:[#allocation189_spill] sm:$0xff]  ;;  %v16532_v3 = vld [vmem:[#allocation191_spill] sm:$0xff] }
 0x696   :  { %6912 = vmatprep.subr.bf16.mxu1 %v16522_v40  ;;  %v16531_v40 = vld [vmem:[#allocation190_spill] sm:$0xff] }
 0x697   :  { %6758 = vmatprep.mubr.bf16.mxu0 %v13084_v55  ;;  %6930 = vmatprep.mubr.bf16.mxu1 %v13084_v55 }
 0x698   :  { %6759 = vmatmul.mubr.bf16.vlgmr.msra.gmra.mrb[20].mxu0 %v13082_v47 }
 0x699   :  { %6770 = vmatpush1.bf16.msra.mxu0 %v16523_v56  ;;  %6913 = vmatpush1.bf16.msra.mxu1 %v16524_v8  ;;  %v16534_v56 = vld [vmem:[#allocation193_spill] sm:$0xff]  ;;  %v16535_v8 = vld [vmem:[#allocation194_spill] sm:$0xff] }
 0x69a   :  { %6771 = vmatprep.subr.bf16.mxu0 %v16525_v33  ;;  %6914 = vmatprep.subr.bf16.mxu1 %v16526_v6  ;;  %v16536_v33 = vld [vmem:[#allocation195_spill] sm:$0xff]  ;;  %v16537_v6 = vld [vmem:[#allocation196_spill] sm:$0xff] }
 0x69d   :  { %6772 = vmatpush1.bf16.msra.mxu0 %v16527_v39  ;;  %6915 = vmatpush1.bf16.msra.mxu1 %v16528_v52  ;;  %v16538_v39 = vld [vmem:[#allocation197_spill] sm:$0xff]  ;;  %v16539_v52 = vld [vmem:[#allocation198_spill] sm:$0xff] }
 0x69e   :  { %6773 = vmatprep.subr.bf16.mxu0 %v16529_v38  ;;  %6916 = vmatprep.subr.bf16.mxu1 %v16530_v27  ;;  %v16540_v38 = vld [vmem:[#allocation199_spill] sm:$0xff]  ;;  %v16541_v27 = vld [vmem:[#allocation200_spill] sm:$0xff] }
 0x6a1   :  { %6774 = vmatpush1.bf16.msra.mxu0 %v16531_v40  ;;  %6917 = vmatpush1.bf16.msra.mxu1 %v16532_v3  ;;  %v16542_v40 = vld [vmem:[#allocation201_spill] sm:$0xff]  ;;  %v16543_v3 = vld [vmem:[#allocation202_spill] sm:$0xff] }
 0x6a2   :  { %6775 = vmatprep.subr.bf16.mxu0 %v16533_v9  ;;  %6918 = vmatprep.subr.bf16.mxu1 %v16534_v56  ;;  %v16544_v9 = vld [vmem:[#allocation203_spill] sm:$0xff]  ;;  %v16545_v56 = vld [vmem:[#allocation204_spill] sm:$0xff] }
 0x6a5   :  { %6776 = vmatpush1.bf16.msra.mxu0 %v16535_v8  ;;  %6919 = vmatpush1.bf16.msra.mxu1 %v16536_v33  ;;  %v16546_v8 = vld [vmem:[#allocation205_spill] sm:$0xff]  ;;  %v16547_v33 = vld [vmem:[#allocation206_spill] sm:$0xff] }
 0x6a6   :  { %6777 = vmatprep.subr.bf16.mxu0 %v16537_v6  ;;  %6920 = vmatprep.subr.bf16.mxu1 %v16538_v39  ;;  %v16548_v6 = vld [vmem:[#allocation207_spill] sm:$0xff]  ;;  %v16549_v39 = vld [vmem:[#allocation208_spill] sm:$0xff] }
 0x6a9   :  { %6778 = vmatpush1.bf16.msra.mxu0 %v16539_v52  ;;  %6921 = vmatpush1.bf16.msra.mxu1 %v16540_v38  ;;  %v16550_v52 = vld [vmem:[#allocation209_spill] sm:$0xff]  ;;  %v16551_v38 = vld [vmem:[#allocation210_spill] sm:$0xff] }
 0x6aa   :  { %6779 = vmatprep.subr.bf16.mxu0 %v16541_v27  ;;  %6922 = vmatprep.subr.bf16.mxu1 %v16542_v40  ;;  %v16552_v27 = vld [vmem:[#allocation211_spill] sm:$0xff]  ;;  %v16553_v40 = vld [vmem:[#allocation212_spill] sm:$0xff] }
 0x6ad   :  { %6780 = vmatpush1.bf16.msra.mxu0 %v16543_v3  ;;  %6923 = vmatpush1.bf16.msra.mxu1 %v16544_v9  ;;  %v16554_v3 = vld [vmem:[#allocation213_spill] sm:$0xff]  ;;  %v16555_v9 = vld [vmem:[#allocation214_spill] sm:$0xff] }
 0x6ae   :  { %6781 = vmatprep.subr.bf16.mxu0 %v16545_v56  ;;  %6924 = vmatprep.subr.bf16.mxu1 %v16546_v8  ;;  %v16556_v56 = vld [vmem:[#allocation215_spill] sm:$0xff]  ;;  %v16557_v8 = vld [vmem:[#allocation216_spill] sm:$0xff] }
 0x6b1   :  { %6782 = vmatpush1.bf16.msra.mxu0 %v16547_v33  ;;  %6925 = vmatpush1.bf16.msra.mxu1 %v16548_v6  ;;  %v16558_v33 = vld [vmem:[#allocation217_spill] sm:$0xff]  ;;  %v16569_v6 = vld [vmem:[#allocation228_spill] sm:$0xff] }
 0x6b2   :  { %6783 = vmatprep.subr.bf16.mxu0 %v16549_v39  ;;  %6926 = vmatprep.subr.bf16.mxu1 %v16550_v52  ;;  %v16559_v39 = vld [vmem:[#allocation218_spill] sm:$0xff]  ;;  %v16560_v52 = vld [vmem:[#allocation219_spill] sm:$0xff] }
 0x6b5   :  { %6784 = vmatpush1.bf16.msra.mxu0 %v16551_v38  ;;  %6927 = vmatpush1.bf16.msra.mxu1 %v16552_v27  ;;  %v16561_v38 = vld [vmem:[#allocation220_spill] sm:$0xff]  ;;  %v16562_v27 = vld [vmem:[#allocation221_spill] sm:$0xff] }
 0x6b6   :  { %6785 = vmatprep.subr.bf16.mxu0 %v16553_v40  ;;  %6928 = vmatprep.subr.bf16.mxu1 %v16554_v3  ;;  %v16563_v40 = vld [vmem:[#allocation222_spill] sm:$0xff]  ;;  %v16564_v3 = vld [vmem:[#allocation223_spill] sm:$0xff] }
 0x6b9   :  { %6786 = vmatpush1.bf16.msra.mxu0 %v16555_v9  ;;  %6929 = vmatpush1.bf16.msra.mxu1 %v16556_v56  ;;  %v16565_v9 = vld [vmem:[#allocation224_spill] sm:$0xff]  ;;  %v16566_v56 = vld [vmem:[#allocation225_spill] sm:$0xff] }
 0x6ba   :  { %6787 = vmatprep.subr.bf16.mxu0 %v16557_v8  ;;  %6941 = vmatprep.subr.bf16.mxu1 %v16558_v33  ;;  %v16567_v8 = vld [vmem:[#allocation226_spill] sm:$0xff]  ;;  %v16568_v33 = vld [vmem:[#allocation227_spill] sm:$0xff] }
 0x6bc   :  { %6931 = vmatmul.mubr.bf16.vlgmr.msra.gmra.mrb[48].mxu1 %v13082_v47 }
 0x6bd   :  { %6788 = vmatpush1.bf16.msra.mxu0 %v16559_v39  ;;  %6942 = vmatpush1.bf16.msra.mxu1 %v16560_v52  ;;  %v16570_v39 = vld [vmem:[#allocation229_spill] sm:$0xff]  ;;  %v16571_v52 = vld [vmem:[#allocation230_spill] sm:$0xff] }
 0x6be   :  { %6789 = vmatprep.subr.bf16.mxu0 %v16561_v38  ;;  %6943 = vmatprep.subr.bf16.mxu1 %v16562_v27  ;;  %v16572_v38 = vld [vmem:[#allocation231_spill] sm:$0xff]  ;;  %v16573_v27 = vld [vmem:[#allocation232_spill] sm:$0xff] }
 0x6c1   :  { %6790 = vmatpush1.bf16.msra.mxu0 %v16563_v40  ;;  %6944 = vmatpush1.bf16.msra.mxu1 %v16564_v3  ;;  %v16574_v40 = vld [vmem:[#allocation233_spill] sm:$0xff]  ;;  %v16575_v3 = vld [vmem:[#allocation234_spill] sm:$0xff] }
 0x6c2   :  { %6791 = vmatprep.subr.bf16.mxu0 %v16565_v9  ;;  %6945 = vmatprep.subr.bf16.mxu1 %v16566_v56  ;;  %v16576_v9 = vld [vmem:[#allocation235_spill] sm:$0xff]  ;;  %v16577_v56 = vld [vmem:[#allocation236_spill] sm:$0xff] }
 0x6c5   :  { %6792 = vmatpush1.bf16.msra.mxu0 %v16567_v8  ;;  %6946 = vmatpush1.bf16.msra.mxu1 %v16568_v33  ;;  %v16578_v8 = vld [vmem:[#allocation237_spill] sm:$0xff] }
 0x6c6   :  { %6793 = vmatprep.subr.bf16.mxu0 %v16569_v6  ;;  %6947 = vmatprep.subr.bf16.mxu1 %v16570_v39  ;;  %v16579_v39 = vld [vmem:[#allocation238_spill] sm:$0xff] }
 0x6c9   :  { %6794 = vmatpush1.bf16.msra.mxu0 %v16571_v52  ;;  %6948 = vmatpush1.bf16.msra.mxu1 %v16572_v38  ;;  %v16580_v52 = vld [vmem:[#allocation239_spill] sm:$0xff] }
 0x6ca   :  { %6795 = vmatprep.subr.bf16.mxu0 %v16573_v27  ;;  %6949 = vmatprep.subr.bf16.mxu1 %v16574_v40 }
 0x6cd   :  { %6796 = vmatpush1.bf16.msra.mxu0 %v16575_v3  ;;  %6950 = vmatpush1.bf16.msra.mxu1 %v16576_v9  ;;  %v16581_v3 = vld [vmem:[#allocation241_spill] sm:$0xff]  ;;  %v16582_v9 = vld [vmem:[#allocation243_spill] sm:$0xff] }
 0x6ce   :  { %6797 = vmatprep.subr.bf16.mxu0 %v16577_v56  ;;  %6951 = vmatprep.subr.bf16.mxu1 %v16578_v8 }
 0x6cf   :  { %v6607_v33 = vpop.f32.mrb[36].mxu1 }
 0x6d0   :  { %v6609_v6 = vpop.f32.mrb[37].mxu1  ;;  %v6704_v38 = vadd.f32 %v6607_v33, %v11461_v11  ;;  %v16586_v33 = vld [vmem:[#allocation248_spill] sm:$0xff] }
 0x6d1   :  { %v6611_v2 = vpop.f32.mrb[38].mxu1  ;;  %6798 = vmatpush1.bf16.msra.mxu0 %v16579_v39  ;;  %6952 = vmatpush1.bf16.msra.mxu1 %v16580_v52  ;;  %v6705_v56 = vadd.f32 %v6609_v6, %v16582_v9  ;;  %v16584_v39 = vld [vmem:[#allocation246_spill] sm:$0xff]  ;;  %v16585_v52 = vld [vmem:[#allocation247_spill] sm:$0xff] }
 0x6d2   :  { %v6712_v27 = vadd.f32 %v6611_v2, %v11467_v28  ;;  %v6613_v40 = vpop.f32.mrb[39].mxu1  ;;  %6799 = vmatprep.subr.bf16.mxu0 %v11456_v22  ;;  %6953 = vmatprep.subr.bf16.mxu1 %v16581_v3  ;;  %v16587_v2 = vld [vmem:[#allocation249_spill] sm:$0xff]  ;;  %v16588_v6 = vld [vmem:[#allocation250_spill] sm:$0xff]  ;;  %v16646_v3 = vld [vmem:[#allocation308_spill] sm:$0xff] }
 0x6d3   :  { %v6713_v8 = vadd.f32 %v6613_v40, %v16583_v7  ;;  %v16589_v40 = vld [vmem:[#allocation251_spill] sm:$0xff]  ;;  %v16598_v7 = vld [vmem:[#allocation260_spill] sm:$0xff] }
 0x6d4   :  { %v13156_v12 = vpack.c.bf16 %v6712_v27, %v6704_v38  ;;  %v16592_v38 = vld [vmem:[#allocation254_spill] sm:$0xff]  ;;  %v16593_v27 = vld [vmem:[#allocation255_spill] sm:$0xff] }
 0x6d5   :  { %v13158_v14 = vpack.c.bf16 %v6713_v8, %v6705_v56  ;;  %6800 = vmatpush1.bf16.msra.mxu0 %v16584_v39  ;;  %6954 = vmatpush1.bf16.msra.mxu1 %v16585_v52  ;;  %v16590_v56 = vld [vmem:[#allocation252_spill] sm:$0xff]  ;;  %v16591_v8 = vld [vmem:[#allocation253_spill] sm:$0xff]  ;;  %v16596_v52 = vld [vmem:[#allocation258_spill] sm:$0xff] }
 0x6d6   :  { %6812 = vmatprep.subr.bf16.mxu0 %v16586_v33  ;;  %6955 = vmatprep.subr.bf16.mxu1 %v16587_v2  ;;  %v16594_v33 = vld [vmem:[#allocation256_spill] sm:$0xff]  ;;  %v16595_v2 = vld [vmem:[#allocation257_spill] sm:$0xff]  ;;  %v16597_v39 = vld [vmem:[#allocation259_spill] sm:$0xff] }
 0x6d7   :  { %6801 = vmatprep.mubr.bf16.mxu0 %v13158_v14  ;;  %6973 = vmatprep.mubr.bf16.mxu1 %v13158_v14  ;;  %v16649_v22 = vld [vmem:[#allocation311_spill] sm:$0xff] }
 0x6d8   :  { %6802 = vmatmul.mubr.bf16.vlgmr.msra.gmra.mrb[20].mxu0 %v13156_v12 }
 0x6d9   :  { %6813 = vmatpush1.bf16.msra.mxu0 %v16588_v6  ;;  %6956 = vmatpush1.bf16.msra.mxu1 %v16589_v40  ;;  %v16599_v6 = vld [vmem:[#allocation261_spill] sm:$0xff]  ;;  %v16600_v40 = vld [vmem:[#allocation262_spill] sm:$0xff] }
 0x6da   :  { %6814 = vmatprep.subr.bf16.mxu0 %v16590_v56  ;;  %6957 = vmatprep.subr.bf16.mxu1 %v16591_v8  ;;  %v16601_v56 = vld [vmem:[#allocation263_spill] sm:$0xff]  ;;  %v16602_v8 = vld [vmem:[#allocation264_spill] sm:$0xff] }
 0x6dd   :  { %6815 = vmatpush1.bf16.msra.mxu0 %v16592_v38  ;;  %6958 = vmatpush1.bf16.msra.mxu1 %v16593_v27  ;;  %v16603_v38 = vld [vmem:[#allocation265_spill] sm:$0xff]  ;;  %v16604_v27 = vld [vmem:[#allocation266_spill] sm:$0xff] }
 0x6de   :  { %6816 = vmatprep.subr.bf16.mxu0 %v16594_v33  ;;  %6959 = vmatprep.subr.bf16.mxu1 %v16595_v2  ;;  %v16605_v33 = vld [vmem:[#allocation267_spill] sm:$0xff]  ;;  %v16606_v2 = vld [vmem:[#allocation268_spill] sm:$0xff] }
 0x6e1   :  { %6817 = vmatpush1.bf16.msra.mxu0 %v16596_v52  ;;  %6960 = vmatpush1.bf16.msra.mxu1 %v16597_v39  ;;  %v16607_v52 = vld [vmem:[#allocation269_spill] sm:$0xff]  ;;  %v16608_v39 = vld [vmem:[#allocation270_spill] sm:$0xff] }
 0x6e2   :  { %6818 = vmatprep.subr.bf16.mxu0 %v16598_v7  ;;  %6961 = vmatprep.subr.bf16.mxu1 %v16599_v6  ;;  %v16609_v7 = vld [vmem:[#allocation271_spill] sm:$0xff]  ;;  %v16610_v6 = vld [vmem:[#allocation272_spill] sm:$0xff] }
 0x6e5   :  { %6819 = vmatpush1.bf16.msra.mxu0 %v16600_v40  ;;  %6962 = vmatpush1.bf16.msra.mxu1 %v16601_v56  ;;  %v16611_v40 = vld [vmem:[#allocation273_spill] sm:$0xff]  ;;  %v16612_v56 = vld [vmem:[#allocation274_spill] sm:$0xff] }
 0x6e6   :  { %6820 = vmatprep.subr.bf16.mxu0 %v16602_v8  ;;  %6963 = vmatprep.subr.bf16.mxu1 %v16603_v38  ;;  %v16613_v8 = vld [vmem:[#allocation275_spill] sm:$0xff]  ;;  %v16614_v38 = vld [vmem:[#allocation276_spill] sm:$0xff] }
 0x6e9   :  { %6821 = vmatpush1.bf16.msra.mxu0 %v16604_v27  ;;  %6964 = vmatpush1.bf16.msra.mxu1 %v16605_v33  ;;  %v16615_v27 = vld [vmem:[#allocation277_spill] sm:$0xff]  ;;  %v16616_v33 = vld [vmem:[#allocation278_spill] sm:$0xff] }
 0x6ea   :  { %6822 = vmatprep.subr.bf16.mxu0 %v16606_v2  ;;  %6965 = vmatprep.subr.bf16.mxu1 %v16607_v52  ;;  %v16617_v2 = vld [vmem:[#allocation279_spill] sm:$0xff]  ;;  %v16618_v52 = vld [vmem:[#allocation280_spill] sm:$0xff] }
 0x6ed   :  { %6823 = vmatpush1.bf16.msra.mxu0 %v16608_v39  ;;  %6966 = vmatpush1.bf16.msra.mxu1 %v16609_v7  ;;  %v16619_v39 = vld [vmem:[#allocation281_spill] sm:$0xff]  ;;  %v16620_v7 = vld [vmem:[#allocation282_spill] sm:$0xff] }
 0x6ee   :  { %6824 = vmatprep.subr.bf16.mxu0 %v16610_v6  ;;  %6967 = vmatprep.subr.bf16.mxu1 %v16611_v40  ;;  %v16621_v6 = vld [vmem:[#allocation283_spill] sm:$0xff]  ;;  %v16622_v40 = vld [vmem:[#allocation284_spill] sm:$0xff] }
 0x6f1   :  { %6825 = vmatpush1.bf16.msra.mxu0 %v16612_v56  ;;  %6968 = vmatpush1.bf16.msra.mxu1 %v16613_v8  ;;  %v16623_v56 = vld [vmem:[#allocation285_spill] sm:$0xff]  ;;  %v16634_v8 = vld [vmem:[#allocation296_spill] sm:$0xff] }
 0x6f2   :  { %6826 = vmatprep.subr.bf16.mxu0 %v16614_v38  ;;  %6969 = vmatprep.subr.bf16.mxu1 %v16615_v27  ;;  %v16624_v38 = vld [vmem:[#allocation286_spill] sm:$0xff]  ;;  %v16625_v27 = vld [vmem:[#allocation287_spill] sm:$0xff] }
 0x6f5   :  { %6827 = vmatpush1.bf16.msra.mxu0 %v16616_v33  ;;  %6970 = vmatpush1.bf16.msra.mxu1 %v16617_v2  ;;  %v16626_v33 = vld [vmem:[#allocation288_spill] sm:$0xff]  ;;  %v16627_v2 = vld [vmem:[#allocation289_spill] sm:$0xff] }
 0x6f6   :  { %6828 = vmatprep.subr.bf16.mxu0 %v16618_v52  ;;  %6971 = vmatprep.subr.bf16.mxu1 %v16619_v39  ;;  %v16628_v52 = vld [vmem:[#allocation290_spill] sm:$0xff]  ;;  %v16629_v39 = vld [vmem:[#allocation291_spill] sm:$0xff] }
 0x6f9   :  { %6829 = vmatpush1.bf16.msra.mxu0 %v16620_v7  ;;  %6972 = vmatpush1.bf16.msra.mxu1 %v16621_v6  ;;  %v16630_v7 = vld [vmem:[#allocation292_spill] sm:$0xff]  ;;  %v16631_v6 = vld [vmem:[#allocation293_spill] sm:$0xff] }
 0x6fa   :  { %6830 = vmatprep.subr.bf16.mxu0 %v16622_v40  ;;  %6984 = vmatprep.subr.bf16.mxu1 %v16623_v56  ;;  %v16632_v40 = vld [vmem:[#allocation294_spill] sm:$0xff]  ;;  %v16633_v56 = vld [vmem:[#allocation295_spill] sm:$0xff] }
 0x6fc   :  { %6974 = vmatmul.mubr.bf16.vlgmr.msra.gmra.mrb[48].mxu1 %v13156_v12 }
 0x6fd   :  { %6831 = vmatpush1.bf16.msra.mxu0 %v16624_v38  ;;  %6985 = vmatpush1.bf16.msra.mxu1 %v16625_v27  ;;  %v16635_v38 = vld [vmem:[#allocation297_spill] sm:$0xff]  ;;  %v16636_v27 = vld [vmem:[#allocation298_spill] sm:$0xff] }
 0x6fe   :  { %6832 = vmatprep.subr.bf16.mxu0 %v16626_v33  ;;  %6986 = vmatprep.subr.bf16.mxu1 %v16627_v2  ;;  %v16637_v33 = vld [vmem:[#allocation299_spill] sm:$0xff]  ;;  %v16638_v2 = vld [vmem:[#allocation300_spill] sm:$0xff] }
 0x701   :  { %6833 = vmatpush1.bf16.msra.mxu0 %v16628_v52  ;;  %6987 = vmatpush1.bf16.msra.mxu1 %v16629_v39  ;;  %v16639_v52 = vld [vmem:[#allocation301_spill] sm:$0xff]  ;;  %v16640_v39 = vld [vmem:[#allocation302_spill] sm:$0xff] }
 0x702   :  { %6834 = vmatprep.subr.bf16.mxu0 %v16630_v7  ;;  %6988 = vmatprep.subr.bf16.mxu1 %v16631_v6  ;;  %v16641_v7 = vld [vmem:[#allocation303_spill] sm:$0xff]  ;;  %v16642_v6 = vld [vmem:[#allocation304_spill] sm:$0xff] }
 0x705   :  { %6835 = vmatpush1.bf16.msra.mxu0 %v16632_v40  ;;  %6989 = vmatpush1.bf16.msra.mxu1 %v16633_v56  ;;  %v16643_v40 = vld [vmem:[#allocation305_spill] sm:$0xff] }
 0x706   :  { %6836 = vmatprep.subr.bf16.mxu0 %v16634_v8  ;;  %6990 = vmatprep.subr.bf16.mxu1 %v16635_v38  ;;  %v16644_v38 = vld [vmem:[#allocation306_spill] sm:$0xff] }
 0x709   :  { %6837 = vmatpush1.bf16.msra.mxu0 %v16636_v27  ;;  %6991 = vmatpush1.bf16.msra.mxu1 %v16637_v33  ;;  %v16645_v27 = vld [vmem:[#allocation307_spill] sm:$0xff] }
 0x70a   :  { %6838 = vmatprep.subr.bf16.mxu0 %v16638_v2  ;;  %6992 = vmatprep.subr.bf16.mxu1 %v16639_v52 }
 0x70d   :  { %6839 = vmatpush1.bf16.msra.mxu0 %v16640_v39  ;;  %6993 = vmatpush1.bf16.msra.mxu1 %v16641_v7  ;;  %v16647_v39 = vld [vmem:[#allocation309_spill] sm:$0xff]  ;;  %v16648_v7 = vld [vmem:[#allocation310_spill] sm:$0xff] }
 0x70e   :  { %6840 = vmatprep.subr.bf16.mxu0 %v16642_v6  ;;  %6994 = vmatprep.subr.bf16.mxu1 %v16643_v40 }
 0x70f   :  { %v6650_v56 = vpop.f32.mrb[40].mxu1 }
 0x710   :  { %v6652_v8 = vpop.f32.mrb[41].mxu1  ;;  %v6706_v33 = vadd.f32 %v6650_v56, %v11679_v51  ;;  %v16652_v56 = vld [vmem:[#allocation314_spill] sm:$0xff] }
 0x711   :  { %v6654_v9 = vpop.f32.mrb[42].mxu1  ;;  %6841 = vmatpush1.bf16.msra.mxu0 %v16644_v38  ;;  %6995 = vmatpush1.bf16.msra.mxu1 %v16645_v27  ;;  %v6707_v6 = vadd.f32 %v6652_v8, %v16648_v7  ;;  %v16650_v38 = vld [vmem:[#allocation312_spill] sm:$0xff]  ;;  %v16651_v27 = vld [vmem:[#allocation313_spill] sm:$0xff] }
 0x712   :  { %v6714_v2 = vadd.f32 %v6654_v9, %v11691_v0  ;;  %v6656_v52 = vpop.f32.mrb[43].mxu1  ;;  %6842 = vmatprep.subr.bf16.mxu0 %v16646_v3  ;;  %6996 = vmatprep.subr.bf16.mxu1 %v16647_v39  ;;  %v16653_v9 = vld [vmem:[#allocation315_spill] sm:$0xff]  ;;  %v16654_v8 = vld [vmem:[#allocation316_spill] sm:$0xff] }
 0x713   :  { %v6715_v40 = vadd.f32 %v6656_v52, %v16649_v22  ;;  %v16655_v52 = vld [vmem:[#allocation317_spill] sm:$0xff]  ;;  %v16664_v22 = vld [vmem:[#allocation326_spill] sm:$0xff] }
 0x714   :  { %v13232_v28 = vpack.c.bf16 %v6714_v2, %v6706_v33  ;;  %v16656_v33 = vld [vmem:[#allocation318_spill] sm:$0xff]  ;;  %v16657_v2 = vld [vmem:[#allocation319_spill] sm:$0xff] }
 0x715   :  { %v13234_v11 = vpack.c.bf16 %v6715_v40, %v6707_v6  ;;  %6843 = vmatpush1.bf16.msra.mxu0 %v16650_v38  ;;  %6997 = vmatpush1.bf16.msra.mxu1 %v16651_v27  ;;  %v16658_v6 = vld [vmem:[#allocation320_spill] sm:$0xff]  ;;  %v16659_v40 = vld [vmem:[#allocation321_spill] sm:$0xff] }
 0x716   :  { %6855 = vmatprep.subr.bf16.mxu0 %v16652_v56  ;;  %6998 = vmatprep.subr.bf16.mxu1 %v16653_v9  ;;  %v16660_v56 = vld [vmem:[#allocation322_spill] sm:$0xff]  ;;  %v16661_v9 = vld [vmem:[#allocation323_spill] sm:$0xff]  ;;  %v16662_v27 = vld [vmem:[#allocation324_spill] sm:$0xff] }
 0x717   :  { %6844 = vmatprep.mubr.bf16.mxu0 %v13234_v11  ;;  %7016 = vmatprep.mubr.bf16.mxu1 %v13234_v11  ;;  %v16663_v38 = vld [vmem:[#allocation325_spill] sm:$0xff] }
 0x718   :  { %6845 = vmatmul.mubr.bf16.vlgmr.msra.gmra.mrb[20].mxu0 %v13232_v28 }
 0x719   :  { %6856 = vmatpush1.bf16.msra.mxu0 %v16654_v8  ;;  %6999 = vmatpush1.bf16.msra.mxu1 %v16655_v52  ;;  %v16665_v8 = vld [vmem:[#allocation327_spill] sm:$0xff]  ;;  %v16666_v52 = vld [vmem:[#allocation328_spill] sm:$0xff] }
 0x71a   :  { %6857 = vmatprep.subr.bf16.mxu0 %v16656_v33  ;;  %7000 = vmatprep.subr.bf16.mxu1 %v16657_v2  ;;  %v16667_v33 = vld [vmem:[#allocation329_spill] sm:$0xff]  ;;  %v16668_v2 = vld [vmem:[#allocation330_spill] sm:$0xff] }
 0x71d   :  { %6858 = vmatpush1.bf16.msra.mxu0 %v16658_v6  ;;  %7001 = vmatpush1.bf16.msra.mxu1 %v16659_v40  ;;  %v16669_v6 = vld [vmem:[#allocation331_spill] sm:$0xff]  ;;  %v16670_v40 = vld [vmem:[#allocation332_spill] sm:$0xff] }
 0x71e   :  { %6859 = vmatprep.subr.bf16.mxu0 %v16660_v56  ;;  %7002 = vmatprep.subr.bf16.mxu1 %v16661_v9  ;;  %v16671_v56 = vld [vmem:[#allocation333_spill] sm:$0xff]  ;;  %v16672_v9 = vld [vmem:[#allocation334_spill] sm:$0xff] }
 0x721   :  { %6860 = vmatpush1.bf16.msra.mxu0 %v16662_v27  ;;  %7003 = vmatpush1.bf16.msra.mxu1 %v16663_v38  ;;  %v16673_v27 = vld [vmem:[#allocation335_spill] sm:$0xff]  ;;  %v16674_v38 = vld [vmem:[#allocation336_spill] sm:$0xff] }
 0x722   :  { %6861 = vmatprep.subr.bf16.mxu0 %v16664_v22  ;;  %7004 = vmatprep.subr.bf16.mxu1 %v16665_v8  ;;  %v16675_v22 = vld [vmem:[#allocation337_spill] sm:$0xff]  ;;  %v16676_v8 = vld [vmem:[#allocation338_spill] sm:$0xff] }
 0x725   :  { %6862 = vmatpush1.bf16.msra.mxu0 %v16666_v52  ;;  %7005 = vmatpush1.bf16.msra.mxu1 %v16667_v33  ;;  %v16677_v52 = vld [vmem:[#allocation339_spill] sm:$0xff]  ;;  %v16678_v33 = vld [vmem:[#allocation340_spill] sm:$0xff] }
 0x726   :  { %6863 = vmatprep.subr.bf16.mxu0 %v16668_v2  ;;  %7006 = vmatprep.subr.bf16.mxu1 %v16669_v6  ;;  %v16679_v2 = vld [vmem:[#allocation341_spill] sm:$0xff]  ;;  %v16680_v6 = vld [vmem:[#allocation342_spill] sm:$0xff] }
 0x729   :  { %6864 = vmatpush1.bf16.msra.mxu0 %v16670_v40  ;;  %7007 = vmatpush1.bf16.msra.mxu1 %v16671_v56  ;;  %v16681_v40 = vld [vmem:[#allocation343_spill] sm:$0xff]  ;;  %v16682_v56 = vld [vmem:[#allocation344_spill] sm:$0xff] }
 0x72a   :  { %6865 = vmatprep.subr.bf16.mxu0 %v16672_v9  ;;  %7008 = vmatprep.subr.bf16.mxu1 %v16673_v27  ;;  %v16683_v9 = vld [vmem:[#allocation345_spill] sm:$0xff]  ;;  %v16684_v27 = vld [vmem:[#allocation346_spill] sm:$0xff] }
 0x72d   :  { %6866 = vmatpush1.bf16.msra.mxu0 %v16674_v38  ;;  %7009 = vmatpush1.bf16.msra.mxu1 %v16675_v22  ;;  %v16685_v38 = vld [vmem:[#allocation347_spill] sm:$0xff]  ;;  %v16686_v22 = vld [vmem:[#allocation348_spill] sm:$0xff] }
 0x72e   :  { %6867 = vmatprep.subr.bf16.mxu0 %v16676_v8  ;;  %7010 = vmatprep.subr.bf16.mxu1 %v16677_v52  ;;  %v16687_v8 = vld [vmem:[#allocation349_spill] sm:$0xff]  ;;  %v16688_v52 = vld [vmem:[#allocation350_spill] sm:$0xff] }
 0x731   :  { %6868 = vmatpush1.bf16.msra.mxu0 %v16678_v33  ;;  %7011 = vmatpush1.bf16.msra.mxu1 %v16679_v2  ;;  %v16689_v33 = vld [vmem:[#allocation351_spill] sm:$0xff]  ;;  %v16700_v2 = vld [vmem:[#allocation362_spill] sm:$0xff] }
 0x732   :  { %6869 = vmatprep.subr.bf16.mxu0 %v16680_v6  ;;  %7012 = vmatprep.subr.bf16.mxu1 %v16681_v40  ;;  %v16690_v6 = vld [vmem:[#allocation352_spill] sm:$0xff]  ;;  %v16691_v40 = vld [vmem:[#allocation353_spill] sm:$0xff] }
 0x735   :  { %6870 = vmatpush1.bf16.msra.mxu0 %v16682_v56  ;;  %7013 = vmatpush1.bf16.msra.mxu1 %v16683_v9  ;;  %v16692_v56 = vld [vmem:[#allocation354_spill] sm:$0xff]  ;;  %v16693_v9 = vld [vmem:[#allocation355_spill] sm:$0xff] }
 0x736   :  { %6871 = vmatprep.subr.bf16.mxu0 %v16684_v27  ;;  %7014 = vmatprep.subr.bf16.mxu1 %v16685_v38  ;;  %v16694_v27 = vld [vmem:[#allocation356_spill] sm:$0xff]  ;;  %v16695_v38 = vld [vmem:[#allocation357_spill] sm:$0xff] }
 0x739   :  { %6872 = vmatpush1.bf16.msra.mxu0 %v16686_v22  ;;  %7015 = vmatpush1.bf16.msra.mxu1 %v16687_v8  ;;  %v16696_v22 = vld [vmem:[#allocation358_spill] sm:$0xff]  ;;  %v16697_v8 = vld [vmem:[#allocation359_spill] sm:$0xff] }
 0x73a   :  { %6873 = vmatprep.subr.bf16.mxu0 %v16688_v52  ;;  %7027 = vmatprep.subr.bf16.mxu1 %v16689_v33  ;;  %v16698_v52 = vld [vmem:[#allocation360_spill] sm:$0xff]  ;;  %v16699_v33 = vld [vmem:[#allocation361_spill] sm:$0xff] }
 0x73c   :  { %7017 = vmatmul.mubr.bf16.vlgmr.msra.gmra.mrb[48].mxu1 %v13232_v28 }
 0x73d   :  { %6874 = vmatpush1.bf16.msra.mxu0 %v16690_v6  ;;  %7028 = vmatpush1.bf16.msra.mxu1 %v16691_v40  ;;  %v16701_v6 = vld [vmem:[#allocation363_spill] sm:$0xff]  ;;  %v16702_v40 = vld [vmem:[#allocation364_spill] sm:$0xff] }
 0x73e   :  { %6875 = vmatprep.subr.bf16.mxu0 %v16692_v56  ;;  %7029 = vmatprep.subr.bf16.mxu1 %v16693_v9  ;;  %v16703_v56 = vld [vmem:[#allocation365_spill] sm:$0xff]  ;;  %v16704_v9 = vld [vmem:[#allocation366_spill] sm:$0xff] }
 0x741   :  { %6876 = vmatpush1.bf16.msra.mxu0 %v16694_v27  ;;  %7030 = vmatpush1.bf16.msra.mxu1 %v16695_v38  ;;  %v16705_v27 = vld [vmem:[#allocation367_spill] sm:$0xff]  ;;  %v16706_v38 = vld [vmem:[#allocation368_spill] sm:$0xff] }
 0x742   :  { %6877 = vmatprep.subr.bf16.mxu0 %v16696_v22  ;;  %7031 = vmatprep.subr.bf16.mxu1 %v16697_v8  ;;  %v16707_v22 = vld [vmem:[#allocation369_spill] sm:$0xff]  ;;  %v16708_v8 = vld [vmem:[#allocation370_spill] sm:$0xff] }
 0x745   :  { %6878 = vmatpush1.bf16.msra.mxu0 %v16698_v52  ;;  %7032 = vmatpush1.bf16.msra.mxu1 %v16699_v33  ;;  %v16709_v52 = vld [vmem:[#allocation371_spill] sm:$0xff] }
 0x746   :  { %6879 = vmatprep.subr.bf16.mxu0 %v16700_v2  ;;  %7033 = vmatprep.subr.bf16.mxu1 %v16701_v6  ;;  %v16710_v6 = vld [vmem:[#allocation372_spill] sm:$0xff] }
 0x749   :  { %6880 = vmatpush1.bf16.msra.mxu0 %v16702_v40  ;;  %7034 = vmatpush1.bf16.msra.mxu1 %v16703_v56  ;;  %v16711_v40 = vld [vmem:[#allocation373_spill] sm:$0xff] }
 0x74a   :  { %6881 = vmatprep.subr.bf16.mxu0 %v16704_v9  ;;  %7035 = vmatprep.subr.bf16.mxu1 %v16705_v27 }
 0x74d   :  { %6882 = vmatpush1.bf16.msra.mxu0 %v16706_v38  ;;  %7036 = vmatpush1.bf16.msra.mxu1 %v16707_v22  ;;  %v16712_v38 = vld [vmem:[#allocation374_spill] sm:$0xff] }
 0x74e   :  { %6883 = vmatprep.subr.bf16.mxu0 %v16708_v8  ;;  %7037 = vmatprep.subr.bf16.mxu1 %v16709_v52 }
 0x74f   :  { %v6693_v33 = vpop.f32.mrb[44].mxu1 }
 0x750   :  { %v6695_v2 = vpop.f32.mrb[45].mxu1  ;;  %v6708_v56 = vadd.f32 %v6693_v33, %v11907_v35  ;;  %v16715_v33 = vld [vmem:[#allocation379_spill] sm:$0xff] }
 0x751   :  { %v6697_v7 = vpop.f32.mrb[46].mxu1  ;;  %6884 = vmatpush1.bf16.msra.mxu0 %v16710_v6  ;;  %7038 = vmatpush1.bf16.msra.mxu1 %v16711_v40  ;;  %v6709_v8 = vadd.f32 %v6695_v2, %v11910_v30  ;;  %v16713_v6 = vld [vmem:[#allocation376_spill] sm:$0xff]  ;;  %v16714_v40 = vld [vmem:[#allocation377_spill] sm:$0xff] }
 0x752   :  { %v6716_v9 = vadd.f32 %v6697_v7, %v11913_v23  ;;  %v6699_v27 = vpop.f32.mrb[47].mxu1  ;;  %6885 = vmatprep.subr.bf16.mxu0 %v11902_v32  ;;  %7039 = vmatprep.subr.bf16.mxu1 %v16712_v38  ;;  %v16716_v7 = vld [vmem:[#allocation378_spill] sm:$0xff]  ;;  %v16717_v2 = vld [vmem:[#allocation381_spill] sm:$0xff] }
 0x753   :  { %v6717_v52 = vadd.f32 %v6699_v27, %v11916_v16  ;;  %v16718_v27 = vld [vmem:[#allocation380_spill] sm:$0xff]  ;;  %v16729_v16 = vld [vmem:[#allocation393_spill] sm:$0xff] }
 0x754   :  { %v13308_v22 = vpack.c.bf16 %v6716_v9, %v6708_v56  ;;  %v16719_v56 = vld [vmem:[#allocation383_spill] sm:$0xff]  ;;  %v16720_v9 = vld [vmem:[#allocation382_spill] sm:$0xff] }
 0x755   :  { %v13310_v39 = vpack.c.bf16 %v6717_v52, %v6709_v8  ;;  %6886 = vmatpush1.bf16.msra.mxu0 %v16713_v6  ;;  %7040 = vmatpush1.bf16.msra.mxu1 %v16714_v40  ;;  %v16721_v8 = vld [vmem:[#allocation385_spill] sm:$0xff]  ;;  %v16722_v52 = vld [vmem:[#allocation384_spill] sm:$0xff] }
 0x756   :  { %7041 = vmatprep.subr.bf16.mxu1 %v16715_v33  ;;  %7070 = vmatprep.subr.bf16.mxu0 %v16716_v7  ;;  %v16723_v7 = vld [vmem:[#allocation387_spill] sm:$0xff]  ;;  %v16724_v33 = vld [vmem:[#allocation386_spill] sm:$0xff]  ;;  %v16725_v40 = vld [vmem:[#allocation389_spill] sm:$0xff] }
 0x757   :  { %6887 = vmatprep.mubr.bf16.mxu0 %v13310_v39  ;;  %7059 = vmatprep.mubr.bf16.mxu1 %v13310_v39  ;;  %v16726_v6 = vld [vmem:[#allocation388_spill] sm:$0xff] }
 0x758   :  { %6888 = vmatmul.mubr.bf16.vlgmr.msra.gmra.mrb[20].mxu0 %v13308_v22 }
 0x759   :  { %7042 = vmatpush1.bf16.msra.mxu1 %v16717_v2  ;;  %7071 = vmatpush1.bf16.msra.mxu0 %v16718_v27  ;;  %v16727_v2 = vld [vmem:[#allocation391_spill] sm:$0xff]  ;;  %v16728_v27 = vld [vmem:[#allocation390_spill] sm:$0xff] }
 0x75a   :  { %7102 = vmatprep.mubr.bf16.mxu0 %v13084_v55  ;;  %7043 = vmatprep.subr.bf16.mxu1 %v16719_v56  ;;  %v16730_v56 = vld [vmem:[#allocation392_spill] sm:$0xff] }
 0x75b   :  { %7072 = vmatprep.subr.bf16.mxu0 %v16720_v9  ;;  %v16731_v9 = vld [vmem:[#allocation395_spill] sm:$0xff] }
 0x75d   :  { %7044 = vmatpush1.bf16.msra.mxu1 %v16721_v8  ;;  %7073 = vmatpush1.bf16.msra.mxu0 %v16722_v52  ;;  %v16732_v8 = vld [vmem:[#allocation394_spill] sm:$0xff]  ;;  %v16733_v52 = vld [vmem:[#allocation397_spill] sm:$0xff] }
 0x75e   :  { %7045 = vmatprep.subr.bf16.mxu1 %v16723_v7  ;;  %7074 = vmatprep.subr.bf16.mxu0 %v16724_v33  ;;  %v16734_v7 = vld [vmem:[#allocation396_spill] sm:$0xff]  ;;  %v16735_v33 = vld [vmem:[#allocation399_spill] sm:$0xff] }
 0x761   :  { %7046 = vmatpush1.bf16.msra.mxu1 %v16725_v40  ;;  %7075 = vmatpush1.bf16.msra.mxu0 %v16726_v6  ;;  %v16736_v40 = vld [vmem:[#allocation398_spill] sm:$0xff]  ;;  %v16737_v6 = vld [vmem:[#allocation401_spill] sm:$0xff] }
 0x762   :  { %7047 = vmatprep.subr.bf16.mxu1 %v16727_v2  ;;  %7076 = vmatprep.subr.bf16.mxu0 %v16728_v27  ;;  %v16738_v2 = vld [vmem:[#allocation400_spill] sm:$0xff]  ;;  %v16739_v27 = vld [vmem:[#allocation403_spill] sm:$0xff] }
 0x765   :  { %7048 = vmatpush1.bf16.msra.mxu1 %v16729_v16  ;;  %7077 = vmatpush1.bf16.msra.mxu0 %v16730_v56  ;;  %v16740_v16 = vld [vmem:[#allocation402_spill] sm:$0xff]  ;;  %v16741_v56 = vld [vmem:[#allocation405_spill] sm:$0xff] }
 0x766   :  { %7049 = vmatprep.subr.bf16.mxu1 %v16731_v9  ;;  %7078 = vmatprep.subr.bf16.mxu0 %v16732_v8  ;;  %v16742_v9 = vld [vmem:[#allocation404_spill] sm:$0xff]  ;;  %v16743_v8 = vld [vmem:[#allocation407_spill] sm:$0xff] }
 0x769   :  { %7050 = vmatpush1.bf16.msra.mxu1 %v16733_v52  ;;  %7079 = vmatpush1.bf16.msra.mxu0 %v16734_v7  ;;  %v16744_v52 = vld [vmem:[#allocation406_spill] sm:$0xff]  ;;  %v16745_v7 = vld [vmem:[#allocation409_spill] sm:$0xff] }
 0x76a   :  { %7051 = vmatprep.subr.bf16.mxu1 %v16735_v33  ;;  %7080 = vmatprep.subr.bf16.mxu0 %v16736_v40  ;;  %v16746_v33 = vld [vmem:[#allocation408_spill] sm:$0xff]  ;;  %v16747_v40 = vld [vmem:[#allocation411_spill] sm:$0xff] }
 0x76d   :  { %7052 = vmatpush1.bf16.msra.mxu1 %v16737_v6  ;;  %7081 = vmatpush1.bf16.msra.mxu0 %v16738_v2  ;;  %v16748_v6 = vld [vmem:[#allocation410_spill] sm:$0xff]  ;;  %v16749_v2 = vld [vmem:[#allocation413_spill] sm:$0xff] }
 0x76e   :  { %7053 = vmatprep.subr.bf16.mxu1 %v16739_v27  ;;  %7082 = vmatprep.subr.bf16.mxu0 %v16740_v16  ;;  %v16750_v27 = vld [vmem:[#allocation412_spill] sm:$0xff]  ;;  %v16751_v16 = vld [vmem:[#allocation414_spill] sm:$0xff] }
 0x771   :  { %7054 = vmatpush1.bf16.msra.mxu1 %v16741_v56  ;;  %7083 = vmatpush1.bf16.msra.mxu0 %v16742_v9  ;;  %v16752_v56 = vld [vmem:[#allocation415_spill] sm:$0xff] }
 0x772   :  { %7055 = vmatprep.subr.bf16.mxu1 %v16743_v8  ;;  %7084 = vmatprep.subr.bf16.mxu0 %v16744_v52  ;;  %v16753_v8 = vld [vmem:[#allocation416_spill] sm:$0xff]  ;;  %v16754_v52 = vld [vmem:[#allocation417_spill] sm:$0xff]  ;;  %v16936_v9 = vld [vmem:[#allocation599_spill] sm:$0xff] }
 0x775   :  { %7056 = vmatpush1.bf16.msra.mxu1 %v16745_v7  ;;  %7085 = vmatpush1.bf16.msra.mxu0 %v16746_v33  ;;  %v16755_v33 = vld [vmem:[#allocation418_spill] sm:$0xff]  ;;  %v16762_v7 = vld [vmem:[#allocation425_spill] sm:$0xff] }
 0x776   :  { %7057 = vmatprep.subr.bf16.mxu1 %v16747_v40  ;;  %7086 = vmatprep.subr.bf16.mxu0 %v16748_v6  ;;  %v16756_v40 = vld [vmem:[#allocation419_spill] sm:$0xff]  ;;  %v16757_v6 = vld [vmem:[#allocation420_spill] sm:$0xff] }
 0x779   :  { %7058 = vmatpush1.bf16.msra.mxu1 %v16749_v2  ;;  %7087 = vmatpush1.bf16.msra.mxu0 %v16750_v27  ;;  %v16758_v2 = vld [vmem:[#allocation421_spill] sm:$0xff]  ;;  %v16759_v27 = vld [vmem:[#allocation422_spill] sm:$0xff] }
 0x77a   :  { %7088 = vmatprep.subr.bf16.mxu0 %v16751_v16  ;;  %7242 = vmatprep.subr.bf16.mxu1 %v16752_v56  ;;  %v16760_v16 = vld [vmem:[#allocation423_spill] sm:$0xff]  ;;  %v16761_v56 = vld [vmem:[#allocation424_spill] sm:$0xff] }
 0x77c   :  { %7060 = vmatmul.mubr.bf16.vlgmr.msra.gmra.mrb[48].mxu1 %v13308_v22 }
 0x77d   :  { %7089 = vmatpush1.bf16.msra.mxu0 %v16753_v8  ;;  %7243 = vmatpush1.bf16.msra.mxu1 %v16754_v52  ;;  %v16763_v8 = vld [vmem:[#allocation426_spill] sm:$0xff]  ;;  %v16764_v52 = vld [vmem:[#allocation427_spill] sm:$0xff] }
 0x77e   :  { %7274 = vmatprep.mubr.bf16.mxu1 %v13084_v55  ;;  %7090 = vmatprep.subr.bf16.mxu0 %v16755_v33  ;;  %v16765_v55 = vld [vmem:[#allocation428_spill] sm:$0xff]  ;;  %v16766_v33 = vld [vmem:[#allocation429_spill] sm:$0xff] }
 0x77f   :  { %7244 = vmatprep.subr.bf16.mxu1 %v16756_v40  ;;  %v16767_v40 = vld [vmem:[#allocation430_spill] sm:$0xff] }
 0x781   :  { %7091 = vmatpush1.bf16.msra.mxu0 %v16757_v6  ;;  %7245 = vmatpush1.bf16.msra.mxu1 %v16758_v2  ;;  %v16768_v6 = vld [vmem:[#allocation431_spill] sm:$0xff]  ;;  %v16769_v2 = vld [vmem:[#allocation432_spill] sm:$0xff] }
 0x782   :  { %7092 = vmatprep.subr.bf16.mxu0 %v16759_v27  ;;  %7246 = vmatprep.subr.bf16.mxu1 %v16760_v16  ;;  %v16770_v27 = vld [vmem:[#allocation433_spill] sm:$0xff]  ;;  %v16771_v16 = vld [vmem:[#allocation434_spill] sm:$0xff] }
 0x785   :  { %7093 = vmatpush1.bf16.msra.mxu0 %v16761_v56  ;;  %7247 = vmatpush1.bf16.msra.mxu1 %v16762_v7  ;;  %v16772_v56 = vld [vmem:[#allocation435_spill] sm:$0xff]  ;;  %v16773_v7 = vld [vmem:[#allocation436_spill] sm:$0xff] }
 0x786   :  { %7094 = vmatprep.subr.bf16.mxu0 %v16763_v8  ;;  %7248 = vmatprep.subr.bf16.mxu1 %v16764_v52  ;;  %v16774_v8 = vld [vmem:[#allocation437_spill] sm:$0xff]  ;;  %v16775_v52 = vld [vmem:[#allocation438_spill] sm:$0xff] }
 0x789   :  { %7095 = vmatpush1.bf16.msra.mxu0 %v16765_v55  ;;  %7249 = vmatpush1.bf16.msra.mxu1 %v16766_v33  ;;  %v16776_v55 = vld [vmem:[#allocation439_spill] sm:$0xff]  ;;  %v16777_v33 = vld [vmem:[#allocation440_spill] sm:$0xff] }
 0x78a   :  { %7096 = vmatprep.subr.bf16.mxu0 %v16767_v40  ;;  %7250 = vmatprep.subr.bf16.mxu1 %v16768_v6  ;;  %v16778_v40 = vld [vmem:[#allocation441_spill] sm:$0xff]  ;;  %v16779_v6 = vld [vmem:[#allocation442_spill] sm:$0xff] }
 0x78d   :  { %7097 = vmatpush1.bf16.msra.mxu0 %v16769_v2  ;;  %7251 = vmatpush1.bf16.msra.mxu1 %v16770_v27  ;;  %v16780_v2 = vld [vmem:[#allocation443_spill] sm:$0xff] }
 0x78e   :  { %7098 = vmatprep.subr.bf16.mxu0 %v16771_v16  ;;  %7252 = vmatprep.subr.bf16.mxu1 %v16772_v56  ;;  %v16781_v16 = vld [vmem:[#allocation444_spill] sm:$0xff]  ;;  %v16790_v56 = vld [vmem:[#allocation453_spill] sm:$0xff]  ;;  %v16792_v27 = vld [vmem:[#allocation455_spill] sm:$0xff] }
 0x791   :  { %7099 = vmatpush1.bf16.msra.mxu0 %v16773_v7  ;;  %7253 = vmatpush1.bf16.msra.mxu1 %v16774_v8  ;;  %v16782_v7 = vld [vmem:[#allocation445_spill] sm:$0xff]  ;;  %v16783_v8 = vld [vmem:[#allocation446_spill] sm:$0xff] }
 0x792   :  { %7100 = vmatprep.subr.bf16.mxu0 %v16775_v52  ;;  %7254 = vmatprep.subr.bf16.mxu1 %v16776_v55  ;;  %v16784_v52 = vld [vmem:[#allocation447_spill] sm:$0xff]  ;;  %v16785_v55 = vld [vmem:[#allocation448_spill] sm:$0xff] }
 0x795   :  { %7101 = vmatpush1.bf16.msra.mxu0 %v16777_v33  ;;  %7255 = vmatpush1.bf16.msra.mxu1 %v16778_v40  ;;  %v16786_v33 = vld [vmem:[#allocation449_spill] sm:$0xff]  ;;  %v16787_v40 = vld [vmem:[#allocation450_spill] sm:$0xff] }
 0x796   :  { %7113 = vmatprep.subr.bf16.mxu0 %v16779_v6  ;;  %7256 = vmatprep.subr.bf16.mxu1 %v16780_v2  ;;  %v16788_v6 = vld [vmem:[#allocation451_spill] sm:$0xff]  ;;  %v16789_v2 = vld [vmem:[#allocation452_spill] sm:$0xff] }
 0x798   :  { %7103 = vmatmul.mubr.bf16.vlgmr.msra.gmra.mrb[24].mxu0 %v13082_v47 }
 0x799   :  { %7114 = vmatpush1.bf16.msra.mxu0 %v16781_v16  ;;  %7145 = vmatprep.mubr.bf16.mxu0 %v13158_v14  ;;  %v16791_v16 = vld [vmem:[#allocation454_spill] sm:$0xff] }
 0x79a   :  { %7257 = vmatpush1.bf16.msra.mxu1 %v16782_v7  ;;  %7115 = vmatprep.subr.bf16.mxu0 %v16783_v8  ;;  %v16793_v7 = vld [vmem:[#allocation456_spill] sm:$0xff]  ;;  %v16794_v8 = vld [vmem:[#allocation457_spill] sm:$0xff] }
 0x79b   :  { %7258 = vmatprep.subr.bf16.mxu1 %v16784_v52  ;;  %v16795_v52 = vld [vmem:[#allocation458_spill] sm:$0xff] }
 0x79d   :  { %7116 = vmatpush1.bf16.msra.mxu0 %v16785_v55  ;;  %v16796_v55 = vld [vmem:[#allocation459_spill] sm:$0xff] }
 0x79e   :  { %7259 = vmatpush1.bf16.msra.mxu1 %v16786_v33  ;;  %7117 = vmatprep.subr.bf16.mxu0 %v16787_v40  ;;  %v16797_v33 = vld [vmem:[#allocation460_spill] sm:$0xff]  ;;  %v16798_v40 = vld [vmem:[#allocation461_spill] sm:$0xff] }
 0x79f   :  { %7260 = vmatprep.subr.bf16.mxu1 %v16788_v6  ;;  %v16799_v6 = vld [vmem:[#allocation462_spill] sm:$0xff] }
 0x7a1   :  { %7118 = vmatpush1.bf16.msra.mxu0 %v16789_v2  ;;  %v16800_v2 = vld [vmem:[#allocation463_spill] sm:$0xff] }
 0x7a2   :  { %7261 = vmatpush1.bf16.msra.mxu1 %v16790_v56  ;;  %7119 = vmatprep.subr.bf16.mxu0 %v16791_v16  ;;  %v16801_v56 = vld [vmem:[#allocation464_spill] sm:$0xff]  ;;  %v16802_v16 = vld [vmem:[#allocation465_spill] sm:$0xff] }
 0x7a3   :  { %7262 = vmatprep.subr.bf16.mxu1 %v16792_v27  ;;  %v16803_v27 = vld [vmem:[#allocation466_spill] sm:$0xff] }
 0x7a5   :  { %7120 = vmatpush1.bf16.msra.mxu0 %v16793_v7  ;;  %v16804_v7 = vld [vmem:[#allocation467_spill] sm:$0xff] }
 0x7a6   :  { %7263 = vmatpush1.bf16.msra.mxu1 %v16794_v8  ;;  %7121 = vmatprep.subr.bf16.mxu0 %v16795_v52  ;;  %v16805_v8 = vld [vmem:[#allocation468_spill] sm:$0xff]  ;;  %v16806_v52 = vld [vmem:[#allocation469_spill] sm:$0xff] }
 0x7a7   :  { %7264 = vmatprep.subr.bf16.mxu1 %v16796_v55  ;;  %v16807_v55 = vld [vmem:[#allocation470_spill] sm:$0xff] }
 0x7a9   :  { %7122 = vmatpush1.bf16.msra.mxu0 %v16797_v33  ;;  %v16808_v33 = vld [vmem:[#allocation471_spill] sm:$0xff] }
 0x7aa   :  { %7265 = vmatpush1.bf16.msra.mxu1 %v16798_v40  ;;  %7123 = vmatprep.subr.bf16.mxu0 %v16799_v6  ;;  %v16809_v40 = vld [vmem:[#allocation472_spill] sm:$0xff]  ;;  %v16810_v6 = vld [vmem:[#allocation473_spill] sm:$0xff] }
 0x7ab   :  { %7266 = vmatprep.subr.bf16.mxu1 %v16800_v2  ;;  %v16811_v2 = vld [vmem:[#allocation474_spill] sm:$0xff] }
 0x7ad   :  { %7124 = vmatpush1.bf16.msra.mxu0 %v16801_v56  ;;  %v16812_v56 = vld [vmem:[#allocation475_spill] sm:$0xff] }
 0x7ae   :  { %7267 = vmatpush1.bf16.msra.mxu1 %v16802_v16  ;;  %7125 = vmatprep.subr.bf16.mxu0 %v16803_v27  ;;  %v16813_v16 = vld [vmem:[#allocation476_spill] sm:$0xff]  ;;  %v16814_v27 = vld [vmem:[#allocation477_spill] sm:$0xff] }
 0x7af   :  { %7268 = vmatprep.subr.bf16.mxu1 %v16804_v7  ;;  %v16815_v7 = vld [vmem:[#allocation478_spill] sm:$0xff] }
 0x7b1   :  { %7126 = vmatpush1.bf16.msra.mxu0 %v16805_v8  ;;  %v16816_v8 = vld [vmem:[#allocation479_spill] sm:$0xff] }
 0x7b2   :  { %7269 = vmatpush1.bf16.msra.mxu1 %v16806_v52  ;;  %7127 = vmatprep.subr.bf16.mxu0 %v16807_v55  ;;  %v16817_v55 = vld [vmem:[#allocation480_spill] sm:$0xff] }
 0x7b3   :  { %7270 = vmatprep.subr.bf16.mxu1 %v16808_v33  ;;  %v16818_v33 = vld [vmem:[#allocation481_spill] sm:$0xff] }
 0x7b5   :  { %7128 = vmatpush1.bf16.msra.mxu0 %v16809_v40 }
 0x7b6   :  { %7271 = vmatpush1.bf16.msra.mxu1 %v16810_v6  ;;  %7129 = vmatprep.subr.bf16.mxu0 %v16811_v2  ;;  %v16819_v6 = vld [vmem:[#allocation482_spill] sm:$0xff]  ;;  %v16820_v2 = vld [vmem:[#allocation483_spill] sm:$0xff] }
 0x7b7   :  { %7272 = vmatprep.subr.bf16.mxu1 %v16812_v56  ;;  %v16821_v56 = vld [vmem:[#allocation484_spill] sm:$0xff] }
 0x7b9   :  { %7130 = vmatpush1.bf16.msra.mxu0 %v16813_v16  ;;  %v16822_v16 = vld [vmem:[#allocation485_spill] sm:$0xff] }
 0x7ba   :  { %7273 = vmatpush1.bf16.msra.mxu1 %v16814_v27  ;;  %7131 = vmatprep.subr.bf16.mxu0 %v16815_v7  ;;  %v16823_v27 = vld [vmem:[#allocation486_spill] sm:$0xff]  ;;  %v16824_v7 = vld [vmem:[#allocation487_spill] sm:$0xff] }
 0x7bb   :  { %7285 = vmatprep.subr.bf16.mxu1 %v16816_v8  ;;  %v16825_v8 = vld [vmem:[#allocation488_spill] sm:$0xff] }
 0x7bd   :  { %7275 = vmatmul.mubr.bf16.vlgmr.msra.gmra.mrb[52].mxu1 %v13082_v47  ;;  %7132 = vmatpush1.bf16.msra.mxu0 %v16817_v55  ;;  %v16826_v47 = vld [vmem:[#allocation489_spill] sm:$0xff]  ;;  %v16827_v55 = vld [vmem:[#allocation490_spill] sm:$0xff] }
 0x7be   :  { %7286 = vmatpush1.bf16.msra.mxu1 %v16818_v33  ;;  %7317 = vmatprep.mubr.bf16.mxu1 %v13158_v14  ;;  %v16828_v33 = vld [vmem:[#allocation491_spill] sm:$0xff]  ;;  %v16829_v14 = vld [vmem:[#allocation492_spill] sm:$0xff] }
 0x7bf   :  { %7133 = vmatprep.subr.bf16.mxu0 %v16819_v6  ;;  %7287 = vmatprep.subr.bf16.mxu1 %v16820_v2  ;;  %v16830_v6 = vld [vmem:[#allocation493_spill] sm:$0xff]  ;;  %v16831_v2 = vld [vmem:[#allocation494_spill] sm:$0xff] }
 0x7c1   :  { %7134 = vmatpush1.bf16.msra.mxu0 %v16821_v56  ;;  %v16832_v56 = vld [vmem:[#allocation495_spill] sm:$0xff] }
 0x7c2   :  { %7288 = vmatpush1.bf16.msra.mxu1 %v16822_v16  ;;  %7135 = vmatprep.subr.bf16.mxu0 %v16823_v27  ;;  %v16833_v16 = vld [vmem:[#allocation496_spill] sm:$0xff]  ;;  %v16834_v27 = vld [vmem:[#allocation497_spill] sm:$0xff] }
 0x7c3   :  { %7289 = vmatprep.subr.bf16.mxu1 %v16824_v7  ;;  %v16835_v7 = vld [vmem:[#allocation498_spill] sm:$0xff] }
 0x7c5   :  { %7136 = vmatpush1.bf16.msra.mxu0 %v16825_v8  ;;  %v16836_v8 = vld [vmem:[#allocation499_spill] sm:$0xff] }
 0x7c6   :  { %7290 = vmatpush1.bf16.msra.mxu1 %v16826_v47  ;;  %7137 = vmatprep.subr.bf16.mxu0 %v16827_v55  ;;  %v16837_v47 = vld [vmem:[#allocation500_spill] sm:$0xff]  ;;  %v16838_v55 = vld [vmem:[#allocation501_spill] sm:$0xff] }
 0x7c7   :  { %7291 = vmatprep.subr.bf16.mxu1 %v16828_v33  ;;  %v16839_v33 = vld [vmem:[#allocation502_spill] sm:$0xff] }
 0x7c9   :  { %7138 = vmatpush1.bf16.msra.mxu0 %v16829_v14  ;;  %v16840_v14 = vld [vmem:[#allocation503_spill] sm:$0xff] }
 0x7ca   :  { %7292 = vmatpush1.bf16.msra.mxu1 %v16830_v6  ;;  %7139 = vmatprep.subr.bf16.mxu0 %v16831_v2  ;;  %v16841_v6 = vld [vmem:[#allocation504_spill] sm:$0xff]  ;;  %v16842_v2 = vld [vmem:[#allocation505_spill] sm:$0xff] }
 0x7cb   :  { %7293 = vmatprep.subr.bf16.mxu1 %v16832_v56  ;;  %v16843_v56 = vld [vmem:[#allocation506_spill] sm:$0xff] }
 0x7cd   :  { %7140 = vmatpush1.bf16.msra.mxu0 %v16833_v16  ;;  %v16844_v16 = vld [vmem:[#allocation507_spill] sm:$0xff] }
 0x7ce   :  { %7294 = vmatpush1.bf16.msra.mxu1 %v16834_v27  ;;  %7141 = vmatprep.subr.bf16.mxu0 %v16835_v7  ;;  %v16845_v7 = vld [vmem:[#allocation508_spill] sm:$0xff]  ;;  %v16856_v27 = vld [vmem:[#allocation519_spill] sm:$0xff] }
 0x7cf   :  { %7295 = vmatprep.subr.bf16.mxu1 %v16836_v8  ;;  %v16854_v8 = vld [vmem:[#allocation517_spill] sm:$0xff] }
 0x7d1   :  { %7142 = vmatpush1.bf16.msra.mxu0 %v16837_v47  ;;  %v16846_v47 = vld [vmem:[#allocation509_spill] sm:$0xff] }
 0x7d2   :  { %7296 = vmatpush1.bf16.msra.mxu1 %v16838_v55  ;;  %7143 = vmatprep.subr.bf16.mxu0 %v16839_v33  ;;  %v16847_v55 = vld [vmem:[#allocation510_spill] sm:$0xff]  ;;  %v16848_v33 = vld [vmem:[#allocation511_spill] sm:$0xff] }
 0x7d3   :  { %7297 = vmatprep.subr.bf16.mxu1 %v16840_v14  ;;  %v16849_v14 = vld [vmem:[#allocation512_spill] sm:$0xff] }
 0x7d5   :  { %7144 = vmatpush1.bf16.msra.mxu0 %v16841_v6  ;;  %v16850_v6 = vld [vmem:[#allocation513_spill] sm:$0xff] }
 0x7d6   :  { %7298 = vmatpush1.bf16.msra.mxu1 %v16842_v2  ;;  %7156 = vmatprep.subr.bf16.mxu0 %v16843_v56  ;;  %v16851_v2 = vld [vmem:[#allocation514_spill] sm:$0xff]  ;;  %v16852_v56 = vld [vmem:[#allocation515_spill] sm:$0xff] }
 0x7d7   :  { %7299 = vmatprep.subr.bf16.mxu1 %v16844_v16  ;;  %v16853_v16 = vld [vmem:[#allocation516_spill] sm:$0xff] }
 0x7d8   :  { %7146 = vmatmul.mubr.bf16.vlgmr.msra.gmra.mrb[24].mxu0 %v13156_v12 }
 0x7d9   :  { %7157 = vmatpush1.bf16.msra.mxu0 %v16845_v7  ;;  %7188 = vmatprep.mubr.bf16.mxu0 %v13234_v11  ;;  %v16855_v7 = vld [vmem:[#allocation518_spill] sm:$0xff] }
 0x7da   :  { %7300 = vmatpush1.bf16.msra.mxu1 %v16846_v47  ;;  %7158 = vmatprep.subr.bf16.mxu0 %v16847_v55  ;;  %v16857_v47 = vld [vmem:[#allocation520_spill] sm:$0xff]  ;;  %v16858_v55 = vld [vmem:[#allocation521_spill] sm:$0xff] }
 0x7db   :  { %7301 = vmatprep.subr.bf16.mxu1 %v16848_v33  ;;  %v16859_v33 = vld [vmem:[#allocation522_spill] sm:$0xff] }
 0x7dd   :  { %7159 = vmatpush1.bf16.msra.mxu0 %v16849_v14  ;;  %v16860_v14 = vld [vmem:[#allocation523_spill] sm:$0xff] }
 0x7de   :  { %7302 = vmatpush1.bf16.msra.mxu1 %v16850_v6  ;;  %7160 = vmatprep.subr.bf16.mxu0 %v16851_v2  ;;  %v16861_v6 = vld [vmem:[#allocation524_spill] sm:$0xff]  ;;  %v16862_v2 = vld [vmem:[#allocation525_spill] sm:$0xff] }
 0x7df   :  { %7303 = vmatprep.subr.bf16.mxu1 %v16852_v56  ;;  %v16863_v56 = vld [vmem:[#allocation526_spill] sm:$0xff] }
 0x7e1   :  { %7161 = vmatpush1.bf16.msra.mxu0 %v16853_v16  ;;  %v16864_v16 = vld [vmem:[#allocation527_spill] sm:$0xff] }
 0x7e2   :  { %7304 = vmatpush1.bf16.msra.mxu1 %v16854_v8  ;;  %7162 = vmatprep.subr.bf16.mxu0 %v16855_v7  ;;  %v16865_v8 = vld [vmem:[#allocation528_spill] sm:$0xff]  ;;  %v16866_v7 = vld [vmem:[#allocation529_spill] sm:$0xff] }
 0x7e3   :  { %7305 = vmatprep.subr.bf16.mxu1 %v16856_v27  ;;  %v16867_v27 = vld [vmem:[#allocation530_spill] sm:$0xff] }
 0x7e5   :  { %7163 = vmatpush1.bf16.msra.mxu0 %v16857_v47  ;;  %v16868_v47 = vld [vmem:[#allocation531_spill] sm:$0xff] }
 0x7e6   :  { %7306 = vmatpush1.bf16.msra.mxu1 %v16858_v55  ;;  %7164 = vmatprep.subr.bf16.mxu0 %v16859_v33  ;;  %v16869_v55 = vld [vmem:[#allocation532_spill] sm:$0xff]  ;;  %v16870_v33 = vld [vmem:[#allocation533_spill] sm:$0xff] }
 0x7e7   :  { %7307 = vmatprep.subr.bf16.mxu1 %v16860_v14  ;;  %v16871_v14 = vld [vmem:[#allocation534_spill] sm:$0xff] }
 0x7e9   :  { %7165 = vmatpush1.bf16.msra.mxu0 %v16861_v6  ;;  %v16872_v6 = vld [vmem:[#allocation535_spill] sm:$0xff] }
 0x7ea   :  { %7308 = vmatpush1.bf16.msra.mxu1 %v16862_v2  ;;  %7166 = vmatprep.subr.bf16.mxu0 %v16863_v56  ;;  %v16873_v2 = vld [vmem:[#allocation536_spill] sm:$0xff]  ;;  %v16874_v56 = vld [vmem:[#allocation537_spill] sm:$0xff] }
 0x7eb   :  { %7309 = vmatprep.subr.bf16.mxu1 %v16864_v16  ;;  %v16875_v16 = vld [vmem:[#allocation538_spill] sm:$0xff] }
 0x7ed   :  { %7167 = vmatpush1.bf16.msra.mxu0 %v16865_v8  ;;  %v16876_v8 = vld [vmem:[#allocation539_spill] sm:$0xff] }
 0x7ee   :  { %7310 = vmatpush1.bf16.msra.mxu1 %v16866_v7  ;;  %7168 = vmatprep.subr.bf16.mxu0 %v16867_v27  ;;  %v16877_v7 = vld [vmem:[#allocation540_spill] sm:$0xff]  ;;  %v16878_v27 = vld [vmem:[#allocation541_spill] sm:$0xff] }
 0x7ef   :  { %7311 = vmatprep.subr.bf16.mxu1 %v16868_v47  ;;  %v16879_v47 = vld [vmem:[#allocation542_spill] sm:$0xff] }
 0x7f1   :  { %7169 = vmatpush1.bf16.msra.mxu0 %v16869_v55  ;;  %v16880_v55 = vld [vmem:[#allocation543_spill] sm:$0xff] }
 0x7f2   :  { %7312 = vmatpush1.bf16.msra.mxu1 %v16870_v33  ;;  %7170 = vmatprep.subr.bf16.mxu0 %v16871_v14  ;;  %v16881_v14 = vld [vmem:[#allocation544_spill] sm:$0xff] }
 0x7f3   :  { %7313 = vmatprep.subr.bf16.mxu1 %v16872_v6  ;;  %v16882_v6 = vld [vmem:[#allocation545_spill] sm:$0xff] }
 0x7f5   :  { %7171 = vmatpush1.bf16.msra.mxu0 %v16873_v2 }
 0x7f6   :  { %7314 = vmatpush1.bf16.msra.mxu1 %v16874_v56  ;;  %7172 = vmatprep.subr.bf16.mxu0 %v16875_v16  ;;  %v16883_v56 = vld [vmem:[#allocation546_spill] sm:$0xff]  ;;  %v16884_v16 = vld [vmem:[#allocation547_spill] sm:$0xff] }
 0x7f7   :  { %7315 = vmatprep.subr.bf16.mxu1 %v16876_v8  ;;  %v16885_v8 = vld [vmem:[#allocation548_spill] sm:$0xff] }
 0x7f9   :  { %7173 = vmatpush1.bf16.msra.mxu0 %v16877_v7  ;;  %v16886_v7 = vld [vmem:[#allocation549_spill] sm:$0xff] }
 0x7fa   :  { %7316 = vmatpush1.bf16.msra.mxu1 %v16878_v27  ;;  %7174 = vmatprep.subr.bf16.mxu0 %v16879_v47  ;;  %v16887_v27 = vld [vmem:[#allocation550_spill] sm:$0xff]  ;;  %v16888_v47 = vld [vmem:[#allocation551_spill] sm:$0xff] }
 0x7fb   :  { %7328 = vmatprep.subr.bf16.mxu1 %v16880_v55  ;;  %v16889_v55 = vld [vmem:[#allocation552_spill] sm:$0xff] }
 0x7fd   :  { %7318 = vmatmul.mubr.bf16.vlgmr.msra.gmra.mrb[52].mxu1 %v13156_v12  ;;  %7175 = vmatpush1.bf16.msra.mxu0 %v16881_v14  ;;  %v16890_v12 = vld [vmem:[#allocation553_spill] sm:$0xff]  ;;  %v16891_v14 = vld [vmem:[#allocation554_spill] sm:$0xff] }
 0x7fe   :  { %7329 = vmatpush1.bf16.msra.mxu1 %v16882_v6  ;;  %7360 = vmatprep.mubr.bf16.mxu1 %v13234_v11  ;;  %v16892_v6 = vld [vmem:[#allocation555_spill] sm:$0xff]  ;;  %v16893_v11 = vld [vmem:[#allocation556_spill] sm:$0xff] }
 0x7ff   :  { %7176 = vmatprep.subr.bf16.mxu0 %v16883_v56  ;;  %7330 = vmatprep.subr.bf16.mxu1 %v16884_v16  ;;  %v16894_v56 = vld [vmem:[#allocation557_spill] sm:$0xff]  ;;  %v16895_v16 = vld [vmem:[#allocation558_spill] sm:$0xff] }
 0x801   :  { %7177 = vmatpush1.bf16.msra.mxu0 %v16885_v8  ;;  %v16896_v8 = vld [vmem:[#allocation559_spill] sm:$0xff] }
 0x802   :  { %7331 = vmatpush1.bf16.msra.mxu1 %v16886_v7  ;;  %7178 = vmatprep.subr.bf16.mxu0 %v16887_v27  ;;  %v16897_v7 = vld [vmem:[#allocation560_spill] sm:$0xff]  ;;  %v16898_v27 = vld [vmem:[#allocation561_spill] sm:$0xff] }
 0x803   :  { %7332 = vmatprep.subr.bf16.mxu1 %v16888_v47  ;;  %v16899_v47 = vld [vmem:[#allocation562_spill] sm:$0xff] }
 0x805   :  { %7179 = vmatpush1.bf16.msra.mxu0 %v16889_v55  ;;  %v16900_v55 = vld [vmem:[#allocation563_spill] sm:$0xff] }
 0x806   :  { %7333 = vmatpush1.bf16.msra.mxu1 %v16890_v12  ;;  %7180 = vmatprep.subr.bf16.mxu0 %v16891_v14  ;;  %v16901_v12 = vld [vmem:[#allocation564_spill] sm:$0xff]  ;;  %v16902_v14 = vld [vmem:[#allocation565_spill] sm:$0xff] }
 0x807   :  { %7334 = vmatprep.subr.bf16.mxu1 %v16892_v6  ;;  %v16903_v6 = vld [vmem:[#allocation566_spill] sm:$0xff] }
 0x809   :  { %7181 = vmatpush1.bf16.msra.mxu0 %v16893_v11  ;;  %v16904_v11 = vld [vmem:[#allocation567_spill] sm:$0xff] }
 0x80a   :  { %7335 = vmatpush1.bf16.msra.mxu1 %v16894_v56  ;;  %7182 = vmatprep.subr.bf16.mxu0 %v16895_v16  ;;  %v16905_v56 = vld [vmem:[#allocation568_spill] sm:$0xff]  ;;  %v16906_v16 = vld [vmem:[#allocation569_spill] sm:$0xff] }
 0x80b   :  { %7336 = vmatprep.subr.bf16.mxu1 %v16896_v8  ;;  %v16907_v8 = vld [vmem:[#allocation570_spill] sm:$0xff] }
 0x80d   :  { %7183 = vmatpush1.bf16.msra.mxu0 %v16897_v7  ;;  %v16908_v7 = vld [vmem:[#allocation571_spill] sm:$0xff] }
 0x80e   :  { %7337 = vmatpush1.bf16.msra.mxu1 %v16898_v27  ;;  %7184 = vmatprep.subr.bf16.mxu0 %v16899_v47  ;;  %v16909_v47 = vld [vmem:[#allocation572_spill] sm:$0xff]  ;;  %v16920_v27 = vld [vmem:[#allocation583_spill] sm:$0xff] }
 0x80f   :  { %7338 = vmatprep.subr.bf16.mxu1 %v16900_v55  ;;  %v16918_v55 = vld [vmem:[#allocation581_spill] sm:$0xff] }
 0x811   :  { %7185 = vmatpush1.bf16.msra.mxu0 %v16901_v12  ;;  %v16910_v12 = vld [vmem:[#allocation573_spill] sm:$0xff] }
 0x812   :  { %7339 = vmatpush1.bf16.msra.mxu1 %v16902_v14  ;;  %7186 = vmatprep.subr.bf16.mxu0 %v16903_v6  ;;  %v16911_v14 = vld [vmem:[#allocation574_spill] sm:$0xff]  ;;  %v16912_v6 = vld [vmem:[#allocation575_spill] sm:$0xff] }
 0x813   :  { %7340 = vmatprep.subr.bf16.mxu1 %v16904_v11  ;;  %v16913_v11 = vld [vmem:[#allocation576_spill] sm:$0xff] }
 0x815   :  { %7187 = vmatpush1.bf16.msra.mxu0 %v16905_v56  ;;  %v16914_v56 = vld [vmem:[#allocation577_spill] sm:$0xff] }
 0x816   :  { %7341 = vmatpush1.bf16.msra.mxu1 %v16906_v16  ;;  %7199 = vmatprep.subr.bf16.mxu0 %v16907_v8  ;;  %v16915_v16 = vld [vmem:[#allocation578_spill] sm:$0xff]  ;;  %v16916_v8 = vld [vmem:[#allocation579_spill] sm:$0xff] }
 0x817   :  { %7342 = vmatprep.subr.bf16.mxu1 %v16908_v7  ;;  %v16917_v7 = vld [vmem:[#allocation580_spill] sm:$0xff] }
 0x818   :  { %7189 = vmatmul.mubr.bf16.vlgmr.msra.gmra.mrb[24].mxu0 %v13232_v28 }
 0x819   :  { %7200 = vmatpush1.bf16.msra.mxu0 %v16909_v47  ;;  %7231 = vmatprep.mubr.bf16.mxu0 %v13310_v39  ;;  %v16919_v47 = vld [vmem:[#allocation582_spill] sm:$0xff] }
 0x81a   :  { %7343 = vmatpush1.bf16.msra.mxu1 %v16910_v12  ;;  %7201 = vmatprep.subr.bf16.mxu0 %v16911_v14  ;;  %v16921_v12 = vld [vmem:[#allocation584_spill] sm:$0xff]  ;;  %v16922_v14 = vld [vmem:[#allocation585_spill] sm:$0xff] }
 0x81b   :  { %7344 = vmatprep.subr.bf16.mxu1 %v16912_v6  ;;  %v16923_v6 = vld [vmem:[#allocation586_spill] sm:$0xff] }
 0x81d   :  { %7202 = vmatpush1.bf16.msra.mxu0 %v16913_v11  ;;  %v16924_v11 = vld [vmem:[#allocation587_spill] sm:$0xff] }
 0x81e   :  { %7345 = vmatpush1.bf16.msra.mxu1 %v16914_v56  ;;  %7203 = vmatprep.subr.bf16.mxu0 %v16915_v16  ;;  %v16925_v56 = vld [vmem:[#allocation588_spill] sm:$0xff]  ;;  %v16926_v16 = vld [vmem:[#allocation589_spill] sm:$0xff] }
 0x81f   :  { %7346 = vmatprep.subr.bf16.mxu1 %v16916_v8  ;;  %v16927_v8 = vld [vmem:[#allocation590_spill] sm:$0xff] }
 0x821   :  { %7204 = vmatpush1.bf16.msra.mxu0 %v16917_v7 }
 0x822   :  { %7347 = vmatpush1.bf16.msra.mxu1 %v16918_v55  ;;  %7205 = vmatprep.subr.bf16.mxu0 %v16919_v47  ;;  %v16928_v55 = vld [vmem:[#allocation591_spill] sm:$0xff] }
 0x823   :  { %7348 = vmatprep.subr.bf16.mxu1 %v16920_v27  ;;  %v16929_v27 = vld [vmem:[#allocation592_spill] sm:$0xff] }
 0x825   :  { %7206 = vmatpush1.bf16.msra.mxu0 %v16921_v12  ;;  %v16930_v12 = vld [vmem:[#allocation593_spill] sm:$0xff] }
 0x826   :  { %7349 = vmatpush1.bf16.msra.mxu1 %v16922_v14  ;;  %7207 = vmatprep.subr.bf16.mxu0 %v16923_v6  ;;  %v16932_v14 = vld [vmem:[#allocation595_spill] sm:$0xff] }
 0x827   :  { %7350 = vmatprep.subr.bf16.mxu1 %v16924_v11  ;;  %v16931_v11 = vld [vmem:[#allocation594_spill] sm:$0xff] }
 0x829   :  { %7208 = vmatpush1.bf16.msra.mxu0 %v16925_v56 }
 0x82a   :  { %7351 = vmatpush1.bf16.msra.mxu1 %v16926_v16  ;;  %7209 = vmatprep.subr.bf16.mxu0 %v16927_v8  ;;  %v16933_v16 = vld [vmem:[#allocation596_spill] sm:$0xff] }
 0x82b   :  { %v6889_v7 = vpop.f32.mrb[20].mxu0  ;;  %7352 = vmatprep.subr.bf16.mxu1 %v16928_v55  ;;  %v16934_v55 = vld [vmem:[#allocation597_spill] sm:$0xff] }
 0x82c   :  { %v6891_v47 = vpop.f32.mrb[21].mxu0  ;;  %v13546_v33 = vadd.f32 %v6889_v7, %v16930_v12  ;;  %v16935_v7 = vld [vmem:[#allocation598_spill] sm:$0xff] }
 0x82d   :  { %v6893_v2 = vpop.f32.mrb[22].mxu0  ;;  %7210 = vmatpush1.bf16.msra.mxu0 %v16929_v27  ;;  %v9551_v8 = vadd.f32 %v6891_v47, %v16933_v16  ;;  %v16941_v47 = vld [vmem:[#allocation604_spill] sm:$0xff]  ;;  %v16944_v27 = vld [vmem:[#allocation607_spill] sm:$0xff] }
 0x82e   :  { %v13549_v6 = vadd.f32 %v6893_v2, %v16930_v12  ;;  %7353 = vmatpush1.bf16.msra.mxu1 %v16931_v11  ;;  %v6895_v56 = vpop.f32.mrb[23].mxu0  ;;  %7211 = vmatprep.subr.bf16.mxu0 %v16932_v14  ;;  %v16937_v2 = vld [vmem:[#allocation600_spill] sm:$0xff]  ;;  %v16938_v11 = vld [vmem:[#allocation601_spill] sm:$0xff]  ;;  %v16939_v12 = vld [vmem:[#allocation602_spill] sm:$0xff] }
 0x82f   :  { %v9553_v40 = vadd.f32 %v6895_v56, %v16933_v16  ;;  %7354 = vmatprep.subr.bf16.mxu1 %v16934_v55  ;;  %v16940_v14 = vld [vmem:[#allocation603_spill] sm:$0xff]  ;;  %v16942_v56 = vld [vmem:[#allocation605_spill] sm:$0xff]  ;;  %v16943_v55 = vld [vmem:[#allocation606_spill] sm:$0xff] }
 0x831   :  { %v7415_v52 = vpack.c.bf16 %v9553_v40, %v9551_v8  ;;  %7212 = vmatpush1.bf16.msra.mxu0 %v16935_v7  ;;  %v16945_v40 = vld [vmem:[#allocation608_spill] sm:$0xff]  ;;  %v16946_v8 = vld [vmem:[#allocation609_spill] sm:$0xff] }
 0x832   :  { %7355 = vmatpush1.bf16.msra.mxu1 %v16936_v9  ;;  %7213 = vmatprep.subr.bf16.mxu0 %v16937_v2  ;;  %v16947_v2 = vld [vmem:[#allocation610_spill] sm:$0xff] }
 0x833   :  { %7356 = vmatprep.subr.bf16.mxu1 %v16938_v11  ;;  %v16948_v11 = vld [vmem:[#allocation611_spill] sm:$0xff] }
 0x835   :  { %7214 = vmatpush1.bf16.msra.mxu0 %v16939_v12 }
 0x836   :  { %7357 = vmatpush1.bf16.msra.mxu1 %v16940_v14  ;;  %7215 = vmatprep.subr.bf16.mxu0 %v16941_v47  ;;  %v16949_v14 = vld [vmem:[#allocation612_spill] sm:$0xff]  ;;  %v16950_v47 = vld [vmem:[#allocation613_spill] sm:$0xff] }
 0x837   :  { %7358 = vmatprep.subr.bf16.mxu1 %v16942_v56  ;;  %v16951_v56 = vld [vmem:[#allocation614_spill] sm:$0xff] }
 0x839   :  { %7216 = vmatpush1.bf16.msra.mxu0 %v16943_v55  ;;  %v16952_v55 = vld [vmem:[#allocation615_spill] sm:$0xff] }
 0x83a   :  { %7359 = vmatpush1.bf16.msra.mxu1 %v16944_v27  ;;  %7217 = vmatprep.subr.bf16.mxu0 %v16945_v40  ;;  %v16953_v27 = vld [vmem:[#allocation616_spill] sm:$0xff]  ;;  %v16954_v40 = vld [vmem:[#allocation617_spill] sm:$0xff] }
 0x83b   :  { %7371 = vmatprep.subr.bf16.mxu1 %v16946_v8  ;;  %v16955_v8 = vld [vmem:[#allocation618_spill] sm:$0xff] }
 0x83d   :  { %7361 = vmatmul.mubr.bf16.vlgmr.msra.gmra.mrb[52].mxu1 %v13232_v28  ;;  %7218 = vmatpush1.bf16.msra.mxu0 %v16947_v2  ;;  %v16956_v28 = vld [vmem:[#allocation619_spill] sm:$0xff]  ;;  %v16957_v2 = vld [vmem:[#allocation620_spill] sm:$0xff] }
 0x83e   :  { %7372 = vmatpush1.bf16.msra.mxu1 %v16948_v11  ;;  %7403 = vmatprep.mubr.bf16.mxu1 %v13310_v39  ;;  %v16958_v11 = vld [vmem:[#allocation621_spill] sm:$0xff]  ;;  %v16959_v39 = vld [vmem:[#allocation622_spill] sm:$0xff] }
 0x83f   :  { %7219 = vmatprep.subr.bf16.mxu0 %v16949_v14  ;;  %7373 = vmatprep.subr.bf16.mxu1 %v16950_v47  ;;  %v16960_v14 = vld [vmem:[#allocation623_spill] sm:$0xff]  ;;  %v16961_v47 = vld [vmem:[#allocation624_spill] sm:$0xff] }
 0x841   :  { %7220 = vmatpush1.bf16.msra.mxu0 %v16951_v56  ;;  %v16962_v56 = vld [vmem:[#allocation625_spill] sm:$0xff] }
 0x842   :  { %7374 = vmatpush1.bf16.msra.mxu1 %v16952_v55  ;;  %7221 = vmatprep.subr.bf16.mxu0 %v16953_v27  ;;  %v16963_v55 = vld [vmem:[#allocation626_spill] sm:$0xff]  ;;  %v16964_v27 = vld [vmem:[#allocation627_spill] sm:$0xff] }
 0x843   :  { %7375 = vmatprep.subr.bf16.mxu1 %v16954_v40  ;;  %v16965_v40 = vld [vmem:[#allocation628_spill] sm:$0xff] }
 0x845   :  { %7222 = vmatpush1.bf16.msra.mxu0 %v16955_v8 }
 0x846   :  { %7376 = vmatpush1.bf16.msra.mxu1 %v16956_v28  ;;  %7223 = vmatprep.subr.bf16.mxu0 %v16957_v2  ;;  %v16966_v28 = vld [vmem:[#allocation629_spill] sm:$0xff] }
 0x847   :  { %7377 = vmatprep.subr.bf16.mxu1 %v16958_v11  ;;  %v16970_v11 = vld [vmem:[#allocation635_spill] sm:$0xff] }
 0x849   :  { %7224 = vmatpush1.bf16.msra.mxu0 %v16959_v39 }
 0x84a   :  { %7378 = vmatpush1.bf16.msra.mxu1 %v16960_v14  ;;  %7225 = vmatprep.subr.bf16.mxu0 %v16961_v47  ;;  %v16968_v14 = vld [vmem:[#allocation633_spill] sm:$0xff] }
 0x84b   :  { %7379 = vmatprep.subr.bf16.mxu1 %v16962_v56  ;;  %v16967_v56 = vld [vmem:[#allocation632_spill] sm:$0xff] }
 0x84d   :  { %7226 = vmatpush1.bf16.msra.mxu0 %v16963_v55 }
 0x84e   :  { %7380 = vmatpush1.bf16.msra.mxu1 %v16964_v27  ;;  %7227 = vmatprep.subr.bf16.mxu0 %v16965_v40  ;;  %v16969_v27 = vld [vmem:[#allocation634_spill] sm:$0xff] }
 0x84f   :  { %v7061_v8 = vpop.f32.mrb[48].mxu1  ;;  %7381 = vmatprep.subr.bf16.mxu1 %v16966_v28 }
 0x850   :  { %v7063_v2 = vpop.f32.mrb[49].mxu1  ;;  %v13594_v39 = vadd.f32 %v7061_v8, %v12732_v20  ;;  %v9982_v8 = vld [vmem:[#allocation15 + $0x10] ss:$8 sps:$4 sm:$0xff]  }
 0x851   :  { %v7065_v12 = vpop.f32.mrb[50].mxu1  ;;  %7228 = vmatpush1.bf16.msra.mxu0 %v12727_v44  ;;  %v13602_v40 = vadd.f32 %v7063_v2, %v16969_v27  ;;  %v9979_v44 = vld [vmem:[#allocation15 + $0x4] ss:$8 sps:$4 sm:$0xff]   ;;  %v9981_v2 = vld [vmem:[#allocation15 + $0x14] ss:$8 sps:$4 sm:$0xff]  }
 0x852   :  { %v13597_v47 = vadd.f32 %v7065_v12, %v12732_v20  ;;  %7382 = vmatpush1.bf16.msra.mxu1 %v16967_v56  ;;  %v7067_v55 = vpop.f32.mrb[51].mxu1  ;;  %7229 = vmatprep.subr.bf16.mxu0 %v16968_v14  ;;  %v16971_v20 = vld [vmem:[#allocation636_spill] sm:$0xff]  ;;  %v16972_v56 = vld [vmem:[#allocation637_spill] sm:$0xff]  ;;  %v16973_v14 = vld [vmem:[#allocation638_spill] sm:$0xff] }
 0x853   :  { %v13605_v28 = vadd.f32 %v7067_v55, %v16969_v27  ;;  %7383 = vmatprep.subr.bf16.mxu1 %v16970_v11  ;;  %v9980_v55 = vld [vmem:[#allocation15] ss:$8 sps:$4 sm:$0xff]  }
 0x854   :  { %v16974_v12 = vld [vmem:[#allocation641_spill] sm:$0xff] }
 0x855   :  { %7230 = vmatpush1.bf16.msra.mxu0 %v16971_v20  ;;  %v16976_v20 = vld [vmem:[#allocation643_spill] sm:$0xff] }
 0x856   :  { %7384 = vmatpush1.bf16.msra.mxu1 %v16972_v56  ;;  %7422 = vmatprep.subr.bf16.mxu0 %v9979_v44  ;;  %v9983_v56 = vld [vmem:[#allocation15 + $0x24] ss:$8 sps:$4 sm:$0xff]  }
 0x857   :  { %7385 = vmatprep.subr.bf16.mxu1 %v16973_v14  ;;  %v16975_v44 = vld [vmem:[#allocation642_spill] sm:$0xff] }
 0x858   :  { %7232 = vmatmul.mubr.bf16.vlgmr.msra.gmra.mrb[24].mxu0 %v13308_v22  ;;  %v9984_v14 = vld [vmem:[#allocation15 + $0x20] ss:$8 sps:$4 sm:$0xff]  }
 0x859   :  { %7423 = vmatpush1.bf16.msra.mxu0 %v9980_v55  ;;  %7454 = vmatprep.mubr.bf16.mxu0 %v7415_v52  ;;  %v9985_v55 = vld [vmem:[#allocation15 + $0x34] ss:$8 sps:$4 sm:$0xff]  }
 0x85a   :  { %7386 = vmatpush1.bf16.msra.mxu1 %v12776_v57  ;;  %7424 = vmatprep.subr.bf16.mxu0 %v9981_v2  ;;  %v16977_v52 = vld [vmem:[#allocation644_spill] sm:$0xff]  ;;  %v16978_v2 = vld [vmem:[#allocation645_spill] sm:$0xff] }
 0x85b   :  { %7387 = vmatprep.subr.bf16.mxu1 %v12779_v43  ;;  %v9986_v57 = vld [vmem:[#allocation15 + $0x30] ss:$8 sps:$4 sm:$0xff]   ;;  %v9987_v43 = vld [vmem:[#allocation15 + $0x44] ss:$8 sps:$4 sm:$0xff]  }
 0x85d   :  { %7425 = vmatpush1.bf16.msra.mxu0 %v9982_v8  ;;  %v16979_v8 = vld [vmem:[#allocation646_spill] sm:$0xff] }
 0x85e   :  { %7388 = vmatpush1.bf16.msra.mxu1 %v16974_v12  ;;  %7426 = vmatprep.subr.bf16.mxu0 %v9983_v56  ;;  %v9988_v12 = vld [vmem:[#allocation15 + $0x40] ss:$8 sps:$4 sm:$0xff]   ;;  %v16980_v56 = vld [vmem:[#allocation647_spill] sm:$0xff] }
 0x85f   :  { %7389 = vmatprep.subr.bf16.mxu1 %v16975_v44  ;;  %v9989_v44 = vld [vmem:[#allocation15 + $0x54] ss:$8 sps:$4 sm:$0xff]  }
 0x861   :  { %7427 = vmatpush1.bf16.msra.mxu0 %v9984_v14  ;;  %v16981_v14 = vld [vmem:[#allocation648_spill] sm:$0xff] }
 0x862   :  { %7390 = vmatpush1.bf16.msra.mxu1 %v16976_v20  ;;  %7428 = vmatprep.subr.bf16.mxu0 %v9985_v55  ;;  %v9990_v20 = vld [vmem:[#allocation15 + $0x50] ss:$8 sps:$4 sm:$0xff]   ;;  %v9991_v55 = vld [vmem:[#allocation15 + $0x64] ss:$8 sps:$4 sm:$0xff]  }
 0x863   :  { %7391 = vmatprep.subr.bf16.mxu1 %v16977_v52 }
 0x865   :  { %7429 = vmatpush1.bf16.msra.mxu0 %v9986_v57  ;;  %v16982_v57 = vld [vmem:[#allocation649_spill] sm:$0xff] }
 0x866   :  { %7392 = vmatpush1.bf16.msra.mxu1 %v16978_v2  ;;  %7430 = vmatprep.subr.bf16.mxu0 %v9987_v43  ;;  %v9992_v2 = vld [vmem:[#allocation15 + $0x60] ss:$8 sps:$4 sm:$0xff]   ;;  %v9993_v43 = vld [vmem:[#allocation15 + $0x74] ss:$8 sps:$4 sm:$0xff]  }
 0x867   :  { %7393 = vmatprep.subr.bf16.mxu1 %v16979_v8 }
 0x869   :  { %7431 = vmatpush1.bf16.msra.mxu0 %v9988_v12  ;;  %v9994_v12 = vld [vmem:[#allocation15 + $0x70] ss:$8 sps:$4 sm:$0xff]  }
 0x86a   :  { %7394 = vmatpush1.bf16.msra.mxu1 %v16980_v56  ;;  %7432 = vmatprep.subr.bf16.mxu0 %v9989_v44  ;;  %v9995_v44 = vld [vmem:[#allocation15 + $0x84] ss:$8 sps:$4 sm:$0xff]  }
 0x86b   :  { %7395 = vmatprep.subr.bf16.mxu1 %v16981_v14 }
 0x86d   :  { %7433 = vmatpush1.bf16.msra.mxu0 %v9990_v20  ;;  %v9996_v20 = vld [vmem:[#allocation15 + $0x80] ss:$8 sps:$4 sm:$0xff]  }
 0x86e   :  { %7396 = vmatpush1.bf16.msra.mxu1 %v12810_v60  ;;  %7434 = vmatprep.subr.bf16.mxu0 %v9991_v55  ;;  %v9997_v55 = vld [vmem:[#allocation15 + $0x94] ss:$8 sps:$4 sm:$0xff]  }
 0x86f   :  { %7397 = vmatprep.subr.bf16.mxu1 %v16982_v57 }
 0x871   :  { %7435 = vmatpush1.bf16.msra.mxu0 %v9992_v2  ;;  %v9998_v2 = vld [vmem:[#allocation15 + $0x90] ss:$8 sps:$4 sm:$0xff]  }
 0x872   :  { %7398 = vmatpush1.bf16.msra.mxu1 %v12816_v61  ;;  %7436 = vmatprep.subr.bf16.mxu0 %v9993_v43  ;;  %v9999_v43 = vld [vmem:[#allocation15 + $0xa4] ss:$8 sps:$4 sm:$0xff]  }
 0x873   :  { %7399 = vmatprep.subr.bf16.mxu1 %v12819_v17 }
 0x875   :  { %7437 = vmatpush1.bf16.msra.mxu0 %v9994_v12  ;;  %v10000_v12 = vld [vmem:[#allocation15 + $0xa0] ss:$8 sps:$4 sm:$0xff]  }
 0x876   :  { %7400 = vmatpush1.bf16.msra.mxu1 %v12822_v48  ;;  %7438 = vmatprep.subr.bf16.mxu0 %v9995_v44  ;;  %v10001_v44 = vld [vmem:[#allocation15 + $0xb4] ss:$8 sps:$4 sm:$0xff]  }
 0x877   :  { %7401 = vmatprep.subr.bf16.mxu1 %v12825_v15 }
 0x879   :  { %7439 = vmatpush1.bf16.msra.mxu0 %v9996_v20  ;;  %v10002_v20 = vld [vmem:[#allocation15 + $0xb0] ss:$8 sps:$4 sm:$0xff]  }
 0x87a   :  { %7402 = vmatpush1.bf16.msra.mxu1 %v12828_v19  ;;  %7440 = vmatprep.subr.bf16.mxu0 %v9997_v55  ;;  %v16988_v55 = vld [vmem:[#allocation28_spill] sm:$0xff] }
 0x87b   :  { %7604 = vmatprep.subr.bf16.mxu1 %v10664_v41  ;;  %v10003_v41 = vld [vmem:[#allocation15 + $0xc4] ss:$8 sps:$4 sm:$0xff]  }
 0x87d   :  { %7404 = vmatmul.mubr.bf16.vlgmr.msra.gmra.mrb[52].mxu1 %v13308_v22  ;;  %7441 = vmatpush1.bf16.msra.mxu0 %v9998_v2  ;;  %v10004_v22 = vld [vmem:[#allocation15 + $0xc0] ss:$8 sps:$4 sm:$0xff]  }
 0x87e   :  { %7442 = vmatprep.subr.bf16.mxu0 %v9999_v43  ;;  %7605 = vmatpush1.bf16.msra.mxu1 %v10666_v42  ;;  %v10005_v42 = vld [vmem:[#allocation15 + $0xd4] ss:$8 sps:$4 sm:$0xff]   ;;  %v10024_v2 = vld [vmem:[#allocation15 + $0x160] ss:$8 sps:$4 sm:$0xff]  }
 0x87f   :  { %7606 = vmatprep.subr.bf16.mxu1 %v10671_v45  ;;  %v10006_v45 = vld [vmem:[#allocation15 + $0xd0] ss:$8 sps:$4 sm:$0xff]  }
 0x880   :  { %v16990_v43 = vld [vmem:[#allocation30_spill] sm:$0xff] }
 0x881   :  { %7443 = vmatpush1.bf16.msra.mxu0 %v10000_v12  ;;  %v10026_v12 = vld [vmem:[#allocation15 + $0x170] ss:$8 sps:$4 sm:$0xff]  }
 0x882   :  { %7444 = vmatprep.subr.bf16.mxu0 %v10001_v44  ;;  %7607 = vmatpush1.bf16.msra.mxu1 %v10675_v46  ;;  %v10007_v46 = vld [vmem:[#allocation15 + $0xe4] ss:$8 sps:$4 sm:$0xff]  }
 0x883   :  { %7608 = vmatprep.subr.bf16.mxu1 %v10679_v49  ;;  %v10008_v49 = vld [vmem:[#allocation15 + $0xe0] ss:$8 sps:$4 sm:$0xff]   ;;  %v10027_v44 = vld [vmem:[#allocation15 + $0x184] ss:$8 sps:$4 sm:$0xff]  }
 0x885   :  { %7445 = vmatpush1.bf16.msra.mxu0 %v10002_v20  ;;  %v16991_v20 = vld [vmem:[#allocation31_spill] sm:$0xff] }
 0x886   :  { %7446 = vmatprep.subr.bf16.mxu0 %v10003_v41  ;;  %7609 = vmatpush1.bf16.msra.mxu1 %v10682_v50  ;;  %v10009_v50 = vld [vmem:[#allocation15 + $0xf4] ss:$8 sps:$4 sm:$0xff]  }
 0x887   :  { %7610 = vmatprep.subr.bf16.mxu1 %v10685_v53  ;;  %v10010_v53 = vld [vmem:[#allocation15 + $0xf0] ss:$8 sps:$4 sm:$0xff]  }
 0x888   :  { %v16992_v41 = vld [vmem:[#allocation32_spill] sm:$0xff] }
 0x889   :  { %7447 = vmatpush1.bf16.msra.mxu0 %v10004_v22  ;;  %v10028_v22 = vld [vmem:[#allocation15 + $0x180] ss:$8 sps:$4 sm:$0xff]  }
 0x88a   :  { %7448 = vmatprep.subr.bf16.mxu0 %v10005_v42  ;;  %7611 = vmatpush1.bf16.msra.mxu1 %v10688_v54  ;;  %v10011_v54 = vld [vmem:[#allocation15 + $0x104] ss:$8 sps:$4 sm:$0xff]   ;;  %v10029_v42 = vld [vmem:[#allocation15 + $0x194] ss:$8 sps:$4 sm:$0xff]  }
 0x88b   :  { %7612 = vmatprep.subr.bf16.mxu1 %v10691_v58  ;;  %v16983_v58 = vpack.c.bf16 %v13549_v6, %v13546_v33  ;;  %v10017_v6 = vld [vmem:[#allocation15 + $0x134] ss:$8 sps:$4 sm:$0xff]   ;;  %v10018_v33 = vld [vmem:[#allocation15 + $0x130] ss:$8 sps:$4 sm:$0xff]  }
 0x88d   :  { %7449 = vmatpush1.bf16.msra.mxu0 %v10006_v45  ;;  %v16993_v45 = vld [vmem:[#allocation33_spill] sm:$0xff] }
 0x88e   :  { %7450 = vmatprep.subr.bf16.mxu0 %v10007_v46  ;;  %7613 = vmatpush1.bf16.msra.mxu1 %v10694_v59  ;;  %v10012_v59 = vld [vmem:[#allocation15 + $0x100] ss:$8 sps:$4 sm:$0xff]  }
 0x88f   :  { %7614 = vmatprep.subr.bf16.mxu1 %v10697_v62  ;;  %v16984_v62 = vpack.c.bf16 %v13605_v28, %v13602_v40  ;;  %v16986_v40 = vld [vmem:[#allocation26_spill] sm:$0xff] }
 0x890   :  { %v10022_v28 = vld [vmem:[#allocation15 + $0x150] ss:$8 sps:$4 sm:$0xff]  }
 0x891   :  { %7451 = vmatpush1.bf16.msra.mxu0 %v10008_v49  ;;  %v16994_v46 = vld [vmem:[#allocation34_spill] sm:$0xff] }
 0x892   :  { %7452 = vmatprep.subr.bf16.mxu0 %v10009_v50  ;;  %7615 = vmatpush1.bf16.msra.mxu1 %v10700_v63  ;;  %v10013_v63 = vld [vmem:[#allocation15 + $0x114] ss:$8 sps:$4 sm:$0xff]   ;;  %v10030_v49 = vld [vmem:[#allocation15 + $0x190] ss:$8 sps:$4 sm:$0xff]   ;;  %v10031_v50 = vld [vmem:[#allocation15 + $0x1a4] ss:$8 sps:$4 sm:$0xff]  }
 0x893   :  { %7616 = vmatprep.subr.bf16.mxu1 %v10703_v1  ;;  %v10014_v1 = vld [vmem:[#allocation15 + $0x110] ss:$8 sps:$4 sm:$0xff]  }
 0x895   :  { %7453 = vmatpush1.bf16.msra.mxu0 %v10010_v53  ;;  %v10032_v53 = vld [vmem:[#allocation15 + $0x1a0] ss:$8 sps:$4 sm:$0xff]  }
 0x896   :  { %7465 = vmatprep.subr.bf16.mxu0 %v10011_v54  ;;  %7617 = vmatpush1.bf16.msra.mxu1 %v10706_v4  ;;  %v10015_v4 = vld [vmem:[#allocation15 + $0x124] ss:$8 sps:$4 sm:$0xff]   ;;  %v10033_v54 = vld [vmem:[#allocation15 + $0x1b4] ss:$8 sps:$4 sm:$0xff]  }
 0x897   :  { %7618 = vmatprep.subr.bf16.mxu1 %v10709_v5  ;;  %v10016_v5 = vld [vmem:[#allocation15 + $0x120] ss:$8 sps:$4 sm:$0xff]  }
 0x898   :  { %7455 = vmatmul.mubr.bf16.vlgmr.msra.gmra.mrb[28].mxu0 %v16983_v58  ;;  %v10034_v58 = vld [vmem:[#allocation15 + $0x1b0] ss:$8 sps:$4 sm:$0xff]  }
 0x899   :  { %7466 = vmatpush1.bf16.msra.mxu0 %v10012_v59  ;;  %7497 = vmatprep.mubr.bf16.mxu0 %v16984_v62  ;;  %v10035_v59 = vld [vmem:[#allocation15 + $0x1c4] ss:$8 sps:$4 sm:$0xff]   ;;  %v10036_v62 = vld [vmem:[#allocation15 + $0x1c0] ss:$8 sps:$4 sm:$0xff]  }
 0x89a   :  { %7467 = vmatprep.subr.bf16.mxu0 %v10013_v63  ;;  %7619 = vmatpush1.bf16.msra.mxu1 %v10712_v10  ;;  %v10019_v10 = vld [vmem:[#allocation15 + $0x144] ss:$8 sps:$4 sm:$0xff]   ;;  %v10037_v63 = vld [vmem:[#allocation15 + $0x1d4] ss:$8 sps:$4 sm:$0xff]  }
 0x89b   :  { %7620 = vmatprep.subr.bf16.mxu1 %v10715_v13  ;;  %v10020_v13 = vld [vmem:[#allocation15 + $0x140] ss:$8 sps:$4 sm:$0xff]  }
 0x89d   :  { %7468 = vmatpush1.bf16.msra.mxu0 %v10014_v1  ;;  %v10038_v1 = vld [vmem:[#allocation15 + $0x1d0] ss:$8 sps:$4 sm:$0xff]  }
 0x89e   :  { %7469 = vmatprep.subr.bf16.mxu0 %v10015_v4  ;;  %7621 = vmatpush1.bf16.msra.mxu1 %v10718_v18  ;;  %v10021_v18 = vld [vmem:[#allocation15 + $0x154] ss:$8 sps:$4 sm:$0xff]   ;;  %v10039_v4 = vld [vmem:[#allocation15 + $0x1e4] ss:$8 sps:$4 sm:$0xff]  }
 0x89f   :  { %7622 = vmatprep.subr.bf16.mxu1 %v10721_v21  ;;  %v16985_v21 = vld [vmem:[#allocation25_spill] sm:$0xff] }
 0x8a1   :  { %7470 = vmatpush1.bf16.msra.mxu0 %v10016_v5  ;;  %v10040_v5 = vld [vmem:[#allocation15 + $0x1e0] ss:$8 sps:$4 sm:$0xff]  }
 0x8a2   :  { %7471 = vmatprep.subr.bf16.mxu0 %v10017_v6  ;;  %7623 = vmatpush1.bf16.msra.mxu1 %v10724_v26  ;;  %v10023_v26 = vld [vmem:[#allocation15 + $0x164] ss:$8 sps:$4 sm:$0xff]   ;;  %v10041_v6 = vld [vmem:[#allocation15 + $0x1f4] ss:$8 sps:$4 sm:$0xff]  }
 0x8a3   :  { %7624 = vmatprep.subr.bf16.mxu1 %v10727_v29  ;;  %v16987_v29 = vld [vmem:[#allocation27_spill] sm:$0xff] }
 0x8a5   :  { %7472 = vmatpush1.bf16.msra.mxu0 %v10018_v33  ;;  %v10042_v33 = vld [vmem:[#allocation15 + $0x1f0] ss:$8 sps:$4 sm:$0xff]  }
 0x8a6   :  { %7473 = vmatprep.subr.bf16.mxu0 %v10019_v10  ;;  %7625 = vmatpush1.bf16.msra.mxu1 %v10730_v34  ;;  %v10025_v34 = vld [vmem:[#allocation15 + $0x174] ss:$8 sps:$4 sm:$0xff]   ;;  %v10043_v10 = vld [vmem:[#allocation15 + $0x204] ss:$8 sps:$4 sm:$0xff]  }
 0x8a7   :  { %7626 = vmatprep.subr.bf16.mxu1 %v10733_v37  ;;  %v16989_v37 = vld [vmem:[#allocation29_spill] sm:$0xff] }
 0x8a9   :  { %7474 = vmatpush1.bf16.msra.mxu0 %v10020_v13  ;;  %v16995_v13 = vpack.c.bf16 %v13597_v47, %v13594_v39  ;;  %v10053_v47 = vld [vmem:[#allocation15 + $0x254] ss:$8 sps:$4 sm:$0xff]   ;;  %v10054_v39 = vld [vmem:[#allocation15 + $0x250] ss:$8 sps:$4 sm:$0xff]  }
 0x8aa   :  { %7475 = vmatprep.subr.bf16.mxu0 %v10021_v18  ;;  %7627 = vmatpush1.bf16.msra.mxu1 %v16985_v21  ;;  %v10044_v18 = vld [vmem:[#allocation15 + $0x200] ss:$8 sps:$4 sm:$0xff]   ;;  %v10045_v21 = vld [vmem:[#allocation15 + $0x214] ss:$8 sps:$4 sm:$0xff]  }
 0x8ab   :  { %7628 = vmatprep.subr.bf16.mxu1 %v16986_v40  ;;  %v10046_v40 = vld [vmem:[#allocation15 + $0x210] ss:$8 sps:$4 sm:$0xff]  }
 0x8ad   :  { %7476 = vmatpush1.bf16.msra.mxu0 %v10022_v28  ;;  %v10047_v28 = vld [vmem:[#allocation15 + $0x224] ss:$8 sps:$4 sm:$0xff]  }
 0x8ae   :  { %7477 = vmatprep.subr.bf16.mxu0 %v10023_v26  ;;  %7629 = vmatpush1.bf16.msra.mxu1 %v16987_v29  ;;  %v10048_v26 = vld [vmem:[#allocation15 + $0x220] ss:$8 sps:$4 sm:$0xff]   ;;  %v10049_v29 = vld [vmem:[#allocation15 + $0x234] ss:$8 sps:$4 sm:$0xff]  }
 0x8af   :  { %7630 = vmatprep.subr.bf16.mxu1 %v16988_v55  ;;  %v10050_v55 = vld [vmem:[#allocation15 + $0x230] ss:$8 sps:$4 sm:$0xff]  }
 0x8b1   :  { %7478 = vmatpush1.bf16.msra.mxu0 %v10024_v2  ;;  %v10051_v2 = vld [vmem:[#allocation15 + $0x244] ss:$8 sps:$4 sm:$0xff]  }
 0x8b2   :  { %7479 = vmatprep.subr.bf16.mxu0 %v10025_v34  ;;  %7631 = vmatpush1.bf16.msra.mxu1 %v16989_v37  ;;  %v10052_v34 = vld [vmem:[#allocation15 + $0x240] ss:$8 sps:$4 sm:$0xff]   ;;  %v10055_v37 = vld [vmem:[#allocation15 + $0x264] ss:$8 sps:$4 sm:$0xff]  }
 0x8b3   :  { %7632 = vmatprep.subr.bf16.mxu1 %v16990_v43  ;;  %v10056_v43 = vld [vmem:[#allocation15 + $0x260] ss:$8 sps:$4 sm:$0xff]  }
 0x8b5   :  { %7480 = vmatpush1.bf16.msra.mxu0 %v10026_v12  ;;  %v10057_v12 = vld [vmem:[#allocation15 + $0x274] ss:$8 sps:$4 sm:$0xff]  }
 0x8b6   :  { %7481 = vmatprep.subr.bf16.mxu0 %v10027_v44  ;;  %7633 = vmatpush1.bf16.msra.mxu1 %v16991_v20  ;;  %v10058_v44 = vld [vmem:[#allocation15 + $0x270] ss:$8 sps:$4 sm:$0xff]   ;;  %v10059_v20 = vld [vmem:[#allocation15 + $0x284] ss:$8 sps:$4 sm:$0xff]  }
 0x8b7   :  { %7634 = vmatprep.subr.bf16.mxu1 %v16992_v41  ;;  %v10060_v41 = vld [vmem:[#allocation15 + $0x280] ss:$8 sps:$4 sm:$0xff]  }
 0x8b9   :  { %7482 = vmatpush1.bf16.msra.mxu0 %v10028_v22  ;;  %v10061_v22 = vld [vmem:[#allocation15 + $0x294] ss:$8 sps:$4 sm:$0xff]  }
 0x8ba   :  { %7483 = vmatprep.subr.bf16.mxu0 %v10029_v42  ;;  %7635 = vmatpush1.bf16.msra.mxu1 %v16993_v45  ;;  %v10062_v42 = vld [vmem:[#allocation15 + $0x290] ss:$8 sps:$4 sm:$0xff]   ;;  %v10063_v45 = vld [vmem:[#allocation15 + $0x2a4] ss:$8 sps:$4 sm:$0xff]  }
 0x8bb   :  { %7647 = vmatprep.subr.bf16.mxu1 %v16994_v46  ;;  %v10064_v46 = vld [vmem:[#allocation15 + $0x2a0] ss:$8 sps:$4 sm:$0xff]  }
 0x8bd   :  { %7484 = vmatpush1.bf16.msra.mxu0 %v10030_v49  ;;  %v10065_v49 = vld [vmem:[#allocation15 + $0x2b4] ss:$8 sps:$4 sm:$0xff]  }
 0x8be   :  { %7485 = vmatprep.subr.bf16.mxu0 %v10031_v50  ;;  %v10066_v50 = vld [vmem:[#allocation15 + $0x2b0] ss:$8 sps:$4 sm:$0xff]  }
 0x8c1   :  { %7486 = vmatpush1.bf16.msra.mxu0 %v10032_v53  ;;  %v10067_v53 = vld [vmem:[#allocation15 + $0x2c4] ss:$8 sps:$4 sm:$0xff]  }
 0x8c2   :  { %7487 = vmatprep.subr.bf16.mxu0 %v10033_v54  ;;  %v10068_v54 = vld [vmem:[#allocation15 + $0x2c0] ss:$8 sps:$4 sm:$0xff]  }
 0x8c5   :  { %7488 = vmatpush1.bf16.msra.mxu0 %v10034_v58  ;;  %v10069_v58 = vld [vmem:[#allocation15 + $0x2d4] ss:$8 sps:$4 sm:$0xff]  }
 0x8c6   :  { %7489 = vmatprep.subr.bf16.mxu0 %v10035_v59  ;;  %v10070_v59 = vld [vmem:[#allocation15 + $0x2d0] ss:$8 sps:$4 sm:$0xff]  }
 0x8c9   :  { %7490 = vmatpush1.bf16.msra.mxu0 %v10036_v62  ;;  %v10071_v62 = vld [vmem:[#allocation15 + $0x2e4] ss:$8 sps:$4 sm:$0xff]  }
 0x8ca   :  { %7491 = vmatprep.subr.bf16.mxu0 %v10037_v63  ;;  %v10072_v63 = vld [vmem:[#allocation15 + $0x2e0] ss:$8 sps:$4 sm:$0xff]  }
 0x8cd   :  { %7492 = vmatpush1.bf16.msra.mxu0 %v10038_v1  ;;  %v10073_v1 = vld [vmem:[#allocation15 + $0x2f4] ss:$8 sps:$4 sm:$0xff]  }
 0x8ce   :  { %7493 = vmatprep.subr.bf16.mxu0 %v10039_v4  ;;  %v10074_v4 = vld [vmem:[#allocation15 + $0x2f0] ss:$8 sps:$4 sm:$0xff]  }
 0x8d1   :  { %7494 = vmatpush1.bf16.msra.mxu0 %v10040_v5  ;;  %v10075_v5 = vld [vmem:[#allocation15 + $0x304] ss:$8 sps:$4 sm:$0xff]  }
 0x8d2   :  { %7495 = vmatprep.subr.bf16.mxu0 %v10041_v6 }
 0x8d5   :  { %7496 = vmatpush1.bf16.msra.mxu0 %v10042_v33 }
 0x8d6   :  { %7508 = vmatprep.subr.bf16.mxu0 %v10043_v10 }
 0x8d8   :  { %7498 = vmatmul.mubr.bf16.vlgmr.msra.gmra.mrb[28].mxu0 %v16995_v13 }
 0x8d9   :  { %7509 = vmatpush1.bf16.msra.mxu0 %v10044_v18 }
 0x8da   :  { %7510 = vmatprep.subr.bf16.mxu0 %v10045_v21 }
 0x8dd   :  { %7511 = vmatpush1.bf16.msra.mxu0 %v10046_v40  ;;  %v16996_v40 = vld [vmem:[#allocation650_spill] sm:$0xff] }
 0x8de   :  { %7512 = vmatprep.subr.bf16.mxu0 %v10047_v28 }
 0x8e1   :  { %7513 = vmatpush1.bf16.msra.mxu0 %v10048_v26 }
 0x8e2   :  { %7514 = vmatprep.subr.bf16.mxu0 %v10049_v29 }
 0x8e5   :  { %7515 = vmatpush1.bf16.msra.mxu0 %v10050_v55 }
 0x8e6   :  { %7516 = vmatprep.subr.bf16.mxu0 %v10051_v2  ;;  %v10076_v2 = vld [vmem:[#allocation15 + $0x300] ss:$8 sps:$4 sm:$0xff]  }
 0x8e9   :  { %7517 = vmatpush1.bf16.msra.mxu0 %v10052_v34  ;;  %v10077_v34 = vld [vmem:[#allocation15 + $0x314] ss:$8 sps:$4 sm:$0xff]  }
 0x8ea   :  { %7518 = vmatprep.subr.bf16.mxu0 %v10053_v47  ;;  %v10078_v47 = vld [vmem:[#allocation15 + $0x310] ss:$8 sps:$4 sm:$0xff]  }
 0x8ed   :  { %7519 = vmatpush1.bf16.msra.mxu0 %v10054_v39  ;;  %v10079_v39 = vld [vmem:[#allocation15 + $0x324] ss:$8 sps:$4 sm:$0xff]  }
 0x8ee   :  { %7520 = vmatprep.subr.bf16.mxu0 %v10055_v37  ;;  %v10080_v37 = vld [vmem:[#allocation15 + $0x320] ss:$8 sps:$4 sm:$0xff]  }
 0x8f1   :  { %7521 = vmatpush1.bf16.msra.mxu0 %v10056_v43  ;;  %v10081_v43 = vld [vmem:[#allocation15 + $0x334] ss:$8 sps:$4 sm:$0xff]  }
 0x8f2   :  { %7522 = vmatprep.subr.bf16.mxu0 %v10057_v12  ;;  %v10082_v12 = vld [vmem:[#allocation15 + $0x330] ss:$8 sps:$4 sm:$0xff]  }
 0x8f5   :  { %7523 = vmatpush1.bf16.msra.mxu0 %v10058_v44  ;;  %v10083_v44 = vld [vmem:[#allocation15 + $0x344] ss:$8 sps:$4 sm:$0xff]  }
 0x8f6   :  { %7524 = vmatprep.subr.bf16.mxu0 %v10059_v20  ;;  %v10084_v20 = vld [vmem:[#allocation15 + $0x340] ss:$8 sps:$4 sm:$0xff]  }
 0x8f9   :  { %7525 = vmatpush1.bf16.msra.mxu0 %v10060_v41  ;;  %v10085_v41 = vld [vmem:[#allocation15 + $0x354] ss:$8 sps:$4 sm:$0xff]  }
 0x8fa   :  { %7526 = vmatprep.subr.bf16.mxu0 %v10061_v22  ;;  %v10086_v22 = vld [vmem:[#allocation15 + $0x350] ss:$8 sps:$4 sm:$0xff]  }
 0x8fd   :  { %7527 = vmatpush1.bf16.msra.mxu0 %v10062_v42  ;;  %v10087_v42 = vld [vmem:[#allocation15 + $0x364] ss:$8 sps:$4 sm:$0xff]  }
 0x8fe   :  { %7528 = vmatprep.subr.bf16.mxu0 %v10063_v45  ;;  %v10088_v45 = vld [vmem:[#allocation15 + $0x360] ss:$8 sps:$4 sm:$0xff]  }
 0x901   :  { %7529 = vmatpush1.bf16.msra.mxu0 %v10064_v46  ;;  %v10089_v46 = vld [vmem:[#allocation15 + $0x374] ss:$8 sps:$4 sm:$0xff]  }
 0x902   :  { %7530 = vmatprep.subr.bf16.mxu0 %v10065_v49 }
 0x905   :  { %7531 = vmatpush1.bf16.msra.mxu0 %v10066_v50 }
 0x906   :  { %7532 = vmatprep.subr.bf16.mxu0 %v10067_v53  ;;  %v10090_v53 = vld [vmem:[#allocation15 + $0x370] ss:$8 sps:$4 sm:$0xff]  }
 0x909   :  { %7533 = vmatpush1.bf16.msra.mxu0 %v10068_v54 }
 0x90a   :  { %7534 = vmatprep.subr.bf16.mxu0 %v10069_v58  ;;  %v10091_v58 = vld [vmem:[#allocation15 + $0x384] ss:$8 sps:$4 sm:$0xff]  }
 0x90d   :  { %7535 = vmatpush1.bf16.msra.mxu0 %v10070_v59  ;;  %v16997_v59 = vld [vmem:[#allocation651_spill] sm:$0xff] }
 0x90e   :  { %7536 = vmatprep.subr.bf16.mxu0 %v10071_v62 }
 0x911   :  { %7537 = vmatpush1.bf16.msra.mxu0 %v10072_v63 }
 0x912   :  { %7538 = vmatprep.subr.bf16.mxu0 %v10073_v1 }
 0x915   :  { %7539 = vmatpush1.bf16.msra.mxu0 %v10074_v4 }
 0x916   :  { %7551 = vmatprep.subr.bf16.mxu0 %v10075_v5 }
 0x92b   :  { %v7233_v6 = vpop.f32.mrb[24].mxu0 }
 0x92c   :  { %v7235_v33 = vpop.f32.mrb[25].mxu0  ;;  %v9558_v13 = vadd.f32 %v7233_v6, %v12878_v31 }
 0x92d   :  { %v7237_v10 = vpop.f32.mrb[26].mxu0  ;;  %v9559_v28 = vadd.f32 %v7235_v33, %v16996_v40  ;;  %v10092_v33 = vld [vmem:[#allocation15 + $0x380] ss:$8 sps:$4 sm:$0xff]  }
 0x92e   :  { %v9560_v18 = vadd.f32 %v7237_v10, %v12878_v31  ;;  %v7239_v21 = vpop.f32.mrb[27].mxu0 }
 0x92f   :  { %v9561_v26 = vadd.f32 %v7239_v21, %v16996_v40  ;;  %v10095_v21 = vld [vmem:[#allocation15 + $0x3a4] ss:$8 sps:$4 sm:$0xff]  }
 0x930   :  { %v7418_v29 = vpack.c.bf16 %v9560_v18, %v9558_v13  ;;  %v10093_v13 = vld [vmem:[#allocation15 + $0x394] ss:$8 sps:$4 sm:$0xff]   ;;  %v10094_v18 = vld [vmem:[#allocation15 + $0x390] ss:$8 sps:$4 sm:$0xff]  }
 0x931   :  { %v7419_v55 = vpack.c.bf16 %v9561_v26, %v9559_v28  ;;  %v10096_v28 = vld [vmem:[#allocation15 + $0x3a0] ss:$8 sps:$4 sm:$0xff]   ;;  %v10097_v26 = vld [vmem:[#allocation15 + $0x3b4] ss:$8 sps:$4 sm:$0xff]  }
 0x933   :  { %7540 = vmatprep.mubr.bf16.mxu0 %v7419_v55  ;;  %v10099_v55 = vld [vmem:[#allocation15 + $0x3c4] ss:$8 sps:$4 sm:$0xff]  }
 0x934   :  { %7541 = vmatmul.mubr.bf16.vlgmr.msra.gmra.mrb[28].mxu0 %v7418_v29  ;;  %v10098_v29 = vld [vmem:[#allocation15 + $0x3b0] ss:$8 sps:$4 sm:$0xff]  }
 0x935   :  { %7552 = vmatpush1.bf16.msra.mxu0 %v10076_v2  ;;  %v10100_v2 = vld [vmem:[#allocation15 + $0x3c0] ss:$8 sps:$4 sm:$0xff]  }
 0x936   :  { %7553 = vmatprep.subr.bf16.mxu0 %v10077_v34  ;;  %v10101_v34 = vld [vmem:[#allocation15 + $0x3d4] ss:$8 sps:$4 sm:$0xff]  }
 0x939   :  { %7554 = vmatpush1.bf16.msra.mxu0 %v10078_v47  ;;  %v10102_v47 = vld [vmem:[#allocation15 + $0x3d0] ss:$8 sps:$4 sm:$0xff]  }
 0x93a   :  { %7555 = vmatprep.subr.bf16.mxu0 %v10079_v39  ;;  %v10103_v39 = vld [vmem:[#allocation15 + $0x3e4] ss:$8 sps:$4 sm:$0xff]  }
 0x93d   :  { %7556 = vmatpush1.bf16.msra.mxu0 %v10080_v37  ;;  %v10104_v37 = vld [vmem:[#allocation15 + $0x3e0] ss:$8 sps:$4 sm:$0xff]  }
 0x93e   :  { %7557 = vmatprep.subr.bf16.mxu0 %v10081_v43  ;;  %v10105_v43 = vld [vmem:[#allocation15 + $0x3f4] ss:$8 sps:$4 sm:$0xff]  }
 0x941   :  { %7558 = vmatpush1.bf16.msra.mxu0 %v10082_v12  ;;  %v10106_v12 = vld [vmem:[#allocation15 + $0x3f0] ss:$8 sps:$4 sm:$0xff]  }
 0x942   :  { %7559 = vmatprep.subr.bf16.mxu0 %v10083_v44  ;;  %v16998_v44 = vld [vmem:[#allocation51_spill] sm:$0xff] }
 0x945   :  { %7560 = vmatpush1.bf16.msra.mxu0 %v10084_v20  ;;  %v16999_v20 = vld [vmem:[#allocation50_spill] sm:$0xff] }
 0x946   :  { %7561 = vmatprep.subr.bf16.mxu0 %v10085_v41  ;;  %v17000_v41 = vld [vmem:[#allocation55_spill] sm:$0xff] }
 0x949   :  { %7562 = vmatpush1.bf16.msra.mxu0 %v10086_v22  ;;  %v17001_v22 = vld [vmem:[#allocation54_spill] sm:$0xff] }
 0x94a   :  { %7563 = vmatprep.subr.bf16.mxu0 %v10087_v42  ;;  %v17002_v42 = vld [vmem:[#allocation59_spill] sm:$0xff] }
 0x94d   :  { %7564 = vmatpush1.bf16.msra.mxu0 %v10088_v45  ;;  %v17003_v45 = vld [vmem:[#allocation58_spill] sm:$0xff] }
 0x94e   :  { %7565 = vmatprep.subr.bf16.mxu0 %v10089_v46  ;;  %v17004_v46 = vld [vmem:[#allocation63_spill] sm:$0xff] }
 0x950   :  { %v7405_v49 = vpop.f32.mrb[52].mxu1 }
 0x951   :  { %v7407_v50 = vpop.f32.mrb[53].mxu1  ;;  %7566 = vmatpush1.bf16.msra.mxu0 %v10090_v53  ;;  %v9562_v62 = vadd.f32 %v7405_v49, %v16997_v59  ;;  %v17005_v49 = vld [vmem:[#allocation62_spill] sm:$0xff] }
 0x952   :  { %v7409_v54 = vpop.f32.mrb[54].mxu1  ;;  %7567 = vmatprep.subr.bf16.mxu0 %v10091_v58  ;;  %v9563_v4 = vadd.f32 %v7407_v50, %v12897_v36  ;;  %v17006_v50 = vld [vmem:[#allocation67_spill] sm:$0xff]  ;;  %v17007_v53 = vld [vmem:[#allocation66_spill] sm:$0xff] }
 0x953   :  { %v9564_v63 = vadd.f32 %v7409_v54, %v16997_v59  ;;  %v7411_v1 = vpop.f32.mrb[55].mxu1  ;;  %v17008_v54 = vld [vmem:[#allocation71_spill] sm:$0xff]  ;;  %v17009_v58 = vld [vmem:[#allocation70_spill] sm:$0xff] }
 0x954   :  { %v9565_v5 = vadd.f32 %v7411_v1, %v12897_v36  ;;  %v17012_v1 = vld [vmem:[#allocation79_spill] sm:$0xff] }
 0x955   :  { %v7420_v6 = vpack.c.bf16 %v9564_v63, %v9562_v62  ;;  %7568 = vmatpush1.bf16.msra.mxu0 %v10092_v33  ;;  %v17010_v62 = vld [vmem:[#allocation75_spill] sm:$0xff]  ;;  %v17011_v63 = vld [vmem:[#allocation74_spill] sm:$0xff] }
 0x956   :  { %v7421_v10 = vpack.c.bf16 %v9565_v5, %v9563_v4  ;;  %7569 = vmatprep.subr.bf16.mxu0 %v10093_v13  ;;  %v17013_v4 = vld [vmem:[#allocation78_spill] sm:$0xff]  ;;  %v17014_v5 = vld [vmem:[#allocation83_spill] sm:$0xff] }
 0x957   :  { %v17016_v33 = vld [vmem:[#allocation87_spill] sm:$0xff] }
 0x958   :  { %7583 = vmatprep.mubr.bf16.mxu0 %v7421_v10  ;;  %v17017_v10 = vld [vmem:[#allocation86_spill] sm:$0xff]  ;;  %v17018_v13 = vld [vmem:[#allocation91_spill] sm:$0xff] }
 0x959   :  { %7570 = vmatpush1.bf16.msra.mxu0 %v10094_v18  ;;  %v17019_v18 = vld [vmem:[#allocation90_spill] sm:$0xff] }
 0x95a   :  { %7571 = vmatprep.subr.bf16.mxu0 %v10095_v21  ;;  %v17020_v21 = vld [vmem:[#allocation95_spill] sm:$0xff] }
 0x95d   :  { %7572 = vmatpush1.bf16.msra.mxu0 %v10096_v28  ;;  %v17021_v28 = vld [vmem:[#allocation94_spill] sm:$0xff] }
 0x95e   :  { %7573 = vmatprep.subr.bf16.mxu0 %v10097_v26  ;;  %v17022_v26 = vld [vmem:[#allocation99_spill] sm:$0xff] }
 0x961   :  { %7574 = vmatpush1.bf16.msra.mxu0 %v10098_v29  ;;  %v17023_v29 = vld [vmem:[#allocation98_spill] sm:$0xff] }
 0x962   :  { %7575 = vmatprep.subr.bf16.mxu0 %v10099_v55  ;;  %v17024_v55 = vld [vmem:[#allocation103_spill] sm:$0xff] }
 0x965   :  { %7576 = vmatpush1.bf16.msra.mxu0 %v10100_v2  ;;  %v17025_v2 = vld [vmem:[#allocation102_spill] sm:$0xff] }
 0x966   :  { %7577 = vmatprep.subr.bf16.mxu0 %v10101_v34  ;;  %v17026_v34 = vld [vmem:[#allocation106_spill] sm:$0xff] }
 0x969   :  { %7578 = vmatpush1.bf16.msra.mxu0 %v10102_v47  ;;  %v17027_v47 = vld [vmem:[#allocation108_spill] sm:$0xff] }
 0x96a   :  { %7579 = vmatprep.subr.bf16.mxu0 %v10103_v39  ;;  %v17028_v39 = vld [vmem:[#allocation110_spill] sm:$0xff] }
 0x96d   :  { %7580 = vmatpush1.bf16.msra.mxu0 %v10104_v37  ;;  %v17029_v37 = vld [vmem:[#allocation112_spill] sm:$0xff] }
 0x96e   :  { %7581 = vmatprep.subr.bf16.mxu0 %v10105_v43  ;;  %v17030_v43 = vld [vmem:[#allocation114_spill] sm:$0xff] }
 0x971   :  { %7582 = vmatpush1.bf16.msra.mxu0 %v10106_v12 }
 0x972   :  { %7800 = vmatprep.subr.bf16.mxu0 %v16998_v44 }
 0x974   :  { %7584 = vmatmul.mubr.bf16.vlgmr.msra.gmra.mrb[28].mxu0 %v7420_v6  ;;  %v17015_v6 = vld [vmem:[#allocation82_spill] sm:$0xff] }
 0x975   :  { %7801 = vmatpush1.bf16.msra.mxu0 %v16999_v20 }
 0x976   :  { %7802 = vmatprep.subr.bf16.mxu0 %v17000_v41 }
 0x979   :  { %7803 = vmatpush1.bf16.msra.mxu0 %v17001_v22  ;;  %v17031_v22 = vld [vmem:[#allocation656_spill] sm:$0xff] }
 0x97a   :  { %7804 = vmatprep.subr.bf16.mxu0 %v17002_v42 }
 0x97d   :  { %7805 = vmatpush1.bf16.msra.mxu0 %v17003_v45  ;;  %v17032_v45 = vld [vmem:[#allocation654_spill] sm:$0xff] }
 0x97e   :  { %7806 = vmatprep.subr.bf16.mxu0 %v17004_v46 }
 0x981   :  { %7807 = vmatpush1.bf16.msra.mxu0 %v17005_v49 }
 0x982   :  { %7808 = vmatprep.subr.bf16.mxu0 %v17006_v50  ;;  %v17033_v50 = vld [vmem:[#allocation655_spill] sm:$0xff] }
 0x985   :  { %7809 = vmatpush1.bf16.msra.mxu0 %v17007_v53 }
 0x986   :  { %7810 = vmatprep.subr.bf16.mxu0 %v17008_v54  ;;  %v17034_v54 = vld [vmem:[#allocation653_spill] sm:$0xff] }
 0x989   :  { %7811 = vmatpush1.bf16.msra.mxu0 %v17009_v58 }
 0x98a   :  { %7812 = vmatprep.subr.bf16.mxu0 %v17010_v62  ;;  %v17035_v62 = vld [vmem:[#allocation652_spill] sm:$0xff] }
 0x98d   :  { %7813 = vmatpush1.bf16.msra.mxu0 %v17011_v63 }
 0x98e   :  { %7814 = vmatprep.subr.bf16.mxu0 %v17012_v1 }
 0x991   :  { %7815 = vmatpush1.bf16.msra.mxu0 %v17013_v4 }
 0x992   :  { %7816 = vmatprep.subr.bf16.mxu0 %v17014_v5 }
 0x995   :  { %7817 = vmatpush1.bf16.msra.mxu0 %v17015_v6  ;;  %v17036_v6 = vld [vmem:[#allocation35_spill] sm:$0xff] }
 0x996   :  { %7818 = vmatprep.subr.bf16.mxu0 %v17016_v33  ;;  %v17037_v33 = vld [vmem:[#allocation36_spill] sm:$0xff] }
 0x999   :  { %7819 = vmatpush1.bf16.msra.mxu0 %v17017_v10  ;;  %v17038_v10 = vld [vmem:[#allocation37_spill] sm:$0xff] }
 0x99a   :  { %7820 = vmatprep.subr.bf16.mxu0 %v17018_v13  ;;  %v17039_v13 = vld [vmem:[#allocation38_spill] sm:$0xff] }
 0x99d   :  { %7821 = vmatpush1.bf16.msra.mxu0 %v17019_v18  ;;  %v17040_v18 = vld [vmem:[#allocation39_spill] sm:$0xff] }
 0x99e   :  { %7822 = vmatprep.subr.bf16.mxu0 %v17020_v21  ;;  %v17041_v21 = vld [vmem:[#allocation40_spill] sm:$0xff] }
 0x9a1   :  { %7823 = vmatpush1.bf16.msra.mxu0 %v17021_v28  ;;  %v17042_v28 = vld [vmem:[#allocation41_spill] sm:$0xff] }
 0x9a2   :  { %7824 = vmatprep.subr.bf16.mxu0 %v17022_v26  ;;  %v17043_v26 = vld [vmem:[#allocation42_spill] sm:$0xff] }
 0x9a5   :  { %7825 = vmatpush1.bf16.msra.mxu0 %v17023_v29  ;;  %v17044_v29 = vld [vmem:[#allocation43_spill] sm:$0xff] }
 0x9a6   :  { %7826 = vmatprep.subr.bf16.mxu0 %v17024_v55  ;;  %v17045_v55 = vld [vmem:[#allocation44_spill] sm:$0xff] }
 0x9a9   :  { %7827 = vmatpush1.bf16.msra.mxu0 %v17025_v2  ;;  %v17046_v2 = vld [vmem:[#allocation45_spill] sm:$0xff] }
 0x9aa   :  { %7828 = vmatprep.subr.bf16.mxu0 %v17026_v34  ;;  %v17047_v34 = vld [vmem:[#allocation46_spill] sm:$0xff] }
 0x9ad   :  { %7829 = vmatpush1.bf16.msra.mxu0 %v17027_v47  ;;  %v17048_v47 = vld [vmem:[#allocation47_spill] sm:$0xff] }
 0x9ae   :  { %7830 = vmatprep.subr.bf16.mxu0 %v17028_v39  ;;  %v17049_v39 = vld [vmem:[#allocation48_spill] sm:$0xff] }
 0x9b1   :  { %7831 = vmatpush1.bf16.msra.mxu0 %v17029_v37  ;;  %v17050_v37 = vld [vmem:[#allocation49_spill] sm:$0xff] }
 0x9b2   :  { %7843 = vmatprep.subr.bf16.mxu0 %v17030_v43  ;;  %v17051_v43 = vld [vmem:[#allocation52_spill] sm:$0xff] }
 0xa47   :  { %v7585_v12 = vpop.f32.mrb[28].mxu0 }
 0xa48   :  { %v7587_v44 = vpop.f32.mrb[29].mxu0  ;;  %v7594_v42 = vadd.f32 %v7585_v12, %v17031_v22  ;;  %v17052_v12 = vld [vmem:[#allocation53_spill] sm:$0xff] }
 0xa49   :  { %v7595_v20 = vadd.f32 %v7587_v44, %v12946_v24  ;;  %v7589_v41 = vpop.f32.mrb[30].mxu0  ;;  %v17053_v44 = vld [vmem:[#allocation56_spill] sm:$0xff]  ;;  %v17056_v22 = vld [vmem:[#allocation61_spill] sm:$0xff] }
 0xa4a   :  { %v7596_v46 = vadd.f32 %v7589_v41, %v17032_v45  ;;  %v7591_v49 = vpop.f32.mrb[31].mxu0  ;;  %v13731_v4 = vadd.f32 %v7594_v42, %v17034_v54  ;;  %v17055_v41 = vld [vmem:[#allocation60_spill] sm:$0xff]  ;;  %v17058_v45 = vld [vmem:[#allocation65_spill] sm:$0xff] }
 0xa4b   :  { %v7597_v53 = vadd.f32 %v7591_v49, %v17033_v50  ;;  %v13725_v63 = vadd.f32 %v7595_v20, %v17035_v62  ;;  %v17054_v20 = vld [vmem:[#allocation57_spill] sm:$0xff]  ;;  %v17057_v42 = vld [vmem:[#allocation64_spill] sm:$0xff] }
 0xa4c   :  { %v13722_v58 = vadd.f32 %v7596_v46, %v17034_v54  ;;  %v17059_v46 = vld [vmem:[#allocation68_spill] sm:$0xff]  ;;  %v17060_v49 = vld [vmem:[#allocation69_spill] sm:$0xff] }
 0xa4d   :  { %v13728_v1 = vadd.f32 %v7597_v53, %v17035_v62  ;;  %v17061_v50 = vld [vmem:[#allocation72_spill] sm:$0xff]  ;;  %v17062_v53 = vld [vmem:[#allocation73_spill] sm:$0xff] }
 0xa4e   :  { %v13739_v5 = vpack.c.bf16 %v13722_v58, %v13731_v4 }
 0xa4f   :  { %v13735_v24 = vpack.c.bf16 %v13728_v1, %v13725_v63 }
 0xa51   :  { %7636 = vmatprep.mubr.bf16.mxu1 %v13735_v24 }
 0xa52   :  { %7637 = vmatmul.mubr.bf16.vlgmr.msra.gmra.mrb[56].mxu1 %v13739_v5 }
 0xa53   :  { %7648 = vmatpush1.bf16.msra.mxu1 %v17036_v6  ;;  %7679 = vmatprep.mubr.bf16.mxu1 %v13735_v24  ;;  %v17063_v6 = vld [vmem:[#allocation76_spill] sm:$0xff] }
 0xa54   :  { %7649 = vmatprep.subr.bf16.mxu1 %v17037_v33  ;;  %v17064_v33 = vld [vmem:[#allocation77_spill] sm:$0xff] }
 0xa57   :  { %7650 = vmatpush1.bf16.msra.mxu1 %v17038_v10  ;;  %v17065_v10 = vld [vmem:[#allocation80_spill] sm:$0xff] }
 0xa58   :  { %7651 = vmatprep.subr.bf16.mxu1 %v17039_v13  ;;  %v17066_v13 = vld [vmem:[#allocation81_spill] sm:$0xff] }
 0xa5b   :  { %7652 = vmatpush1.bf16.msra.mxu1 %v17040_v18  ;;  %v17067_v18 = vld [vmem:[#allocation84_spill] sm:$0xff] }
 0xa5c   :  { %7653 = vmatprep.subr.bf16.mxu1 %v17041_v21  ;;  %v17068_v21 = vld [vmem:[#allocation85_spill] sm:$0xff] }
 0xa5f   :  { %7654 = vmatpush1.bf16.msra.mxu1 %v17042_v28  ;;  %v17069_v28 = vld [vmem:[#allocation88_spill] sm:$0xff] }
 0xa60   :  { %7655 = vmatprep.subr.bf16.mxu1 %v17043_v26  ;;  %v17070_v26 = vld [vmem:[#allocation89_spill] sm:$0xff] }
 0xa63   :  { %7656 = vmatpush1.bf16.msra.mxu1 %v17044_v29  ;;  %v17071_v29 = vld [vmem:[#allocation92_spill] sm:$0xff] }
 0xa64   :  { %7657 = vmatprep.subr.bf16.mxu1 %v17045_v55  ;;  %v17072_v55 = vld [vmem:[#allocation93_spill] sm:$0xff] }
 0xa67   :  { %7658 = vmatpush1.bf16.msra.mxu1 %v17046_v2  ;;  %v17073_v2 = vld [vmem:[#allocation96_spill] sm:$0xff] }
 0xa68   :  { %7659 = vmatprep.subr.bf16.mxu1 %v17047_v34  ;;  %v17074_v34 = vld [vmem:[#allocation97_spill] sm:$0xff] }
 0xa6b   :  { %7660 = vmatpush1.bf16.msra.mxu1 %v17048_v47  ;;  %v17075_v47 = vld [vmem:[#allocation100_spill] sm:$0xff] }
 0xa6c   :  { %7661 = vmatprep.subr.bf16.mxu1 %v17049_v39  ;;  %v17076_v39 = vld [vmem:[#allocation101_spill] sm:$0xff] }
 0xa6f   :  { %7662 = vmatpush1.bf16.msra.mxu1 %v17050_v37  ;;  %v17077_v37 = vld [vmem:[#allocation104_spill] sm:$0xff] }
 0xa70   :  { %7663 = vmatprep.subr.bf16.mxu1 %v17051_v43  ;;  %v17078_v43 = vld [vmem:[#allocation105_spill] sm:$0xff] }
 0xa73   :  { %7664 = vmatpush1.bf16.msra.mxu1 %v17052_v12  ;;  %v17079_v12 = vld [vmem:[#allocation107_spill] sm:$0xff] }
 0xa74   :  { %7665 = vmatprep.subr.bf16.mxu1 %v17053_v44  ;;  %v17080_v44 = vld [vmem:[#allocation109_spill] sm:$0xff] }
 0xa77   :  { %7666 = vmatpush1.bf16.msra.mxu1 %v17054_v20  ;;  %v17081_v20 = vld [vmem:[#allocation111_spill] sm:$0xff] }
 0xa78   :  { %7667 = vmatprep.subr.bf16.mxu1 %v17055_v41  ;;  %v17082_v41 = vld [vmem:[#allocation113_spill] sm:$0xff] }
 0xa7b   :  { %7668 = vmatpush1.bf16.msra.mxu1 %v17056_v22  ;;  %v17083_v22 = vld [vmem:[#allocation115_spill] sm:$0xff] }
 0xa7c   :  { %7669 = vmatprep.subr.bf16.mxu1 %v17057_v42  ;;  %v17084_v42 = vld [vmem:[#allocation117_spill] sm:$0xff] }
 0xa7f   :  { %7670 = vmatpush1.bf16.msra.mxu1 %v17058_v45  ;;  %v17085_v45 = vld [vmem:[#allocation118_spill] sm:$0xff] }
 0xa80   :  { %7671 = vmatprep.subr.bf16.mxu1 %v17059_v46  ;;  %v17086_v46 = vld [vmem:[#allocation119_spill] sm:$0xff] }
 0xa83   :  { %7672 = vmatpush1.bf16.msra.mxu1 %v17060_v49  ;;  %v17087_v49 = vld [vmem:[#allocation120_spill] sm:$0xff] }
 0xa84   :  { %7673 = vmatprep.subr.bf16.mxu1 %v17061_v50  ;;  %v17088_v50 = vld [vmem:[#allocation121_spill] sm:$0xff] }
 0xa87   :  { %7674 = vmatpush1.bf16.msra.mxu1 %v17062_v53  ;;  %v17089_v53 = vld [vmem:[#allocation122_spill] sm:$0xff] }
 0xa88   :  { %7675 = vmatprep.subr.bf16.mxu1 %v17063_v6  ;;  %v17090_v6 = vld [vmem:[#allocation123_spill] sm:$0xff] }
 0xa8b   :  { %7676 = vmatpush1.bf16.msra.mxu1 %v17064_v33  ;;  %v17091_v33 = vld [vmem:[#allocation124_spill] sm:$0xff] }
 0xa8c   :  { %7677 = vmatprep.subr.bf16.mxu1 %v17065_v10  ;;  %v17092_v10 = vld [vmem:[#allocation125_spill] sm:$0xff] }
 0xa8f   :  { %7678 = vmatpush1.bf16.msra.mxu1 %v17066_v13  ;;  %v17093_v13 = vld [vmem:[#allocation126_spill] sm:$0xff] }
 0xa90   :  { %7690 = vmatprep.subr.bf16.mxu1 %v17067_v18  ;;  %v17094_v18 = vld [vmem:[#allocation127_spill] sm:$0xff] }
 0xa92   :  { %7680 = vmatmul.mubr.bf16.vlgmr.msra.gmra.mrb[60].mxu1 %v13739_v5 }
 0xa93   :  { %7691 = vmatpush1.bf16.msra.mxu1 %v17068_v21  ;;  %7722 = vmatprep.mubr.bf16.mxu1 %v13735_v24  ;;  %v17095_v21 = vld [vmem:[#allocation128_spill] sm:$0xff] }
 0xa94   :  { %7692 = vmatprep.subr.bf16.mxu1 %v17069_v28  ;;  %v17096_v28 = vld [vmem:[#allocation129_spill] sm:$0xff] }
 0xa97   :  { %7693 = vmatpush1.bf16.msra.mxu1 %v17070_v26  ;;  %v17097_v26 = vld [vmem:[#allocation130_spill] sm:$0xff] }
 0xa98   :  { %7694 = vmatprep.subr.bf16.mxu1 %v17071_v29  ;;  %v17098_v29 = vld [vmem:[#allocation131_spill] sm:$0xff] }
 0xa9b   :  { %7695 = vmatpush1.bf16.msra.mxu1 %v17072_v55  ;;  %v17099_v55 = vld [vmem:[#allocation132_spill] sm:$0xff] }
 0xa9c   :  { %7696 = vmatprep.subr.bf16.mxu1 %v17073_v2  ;;  %v17100_v2 = vld [vmem:[#allocation133_spill] sm:$0xff] }
 0xa9f   :  { %7697 = vmatpush1.bf16.msra.mxu1 %v17074_v34  ;;  %v17101_v34 = vld [vmem:[#allocation134_spill] sm:$0xff] }
 0xaa0   :  { %7698 = vmatprep.subr.bf16.mxu1 %v17075_v47  ;;  %v17102_v47 = vld [vmem:[#allocation135_spill] sm:$0xff] }
 0xaa3   :  { %7699 = vmatpush1.bf16.msra.mxu1 %v17076_v39  ;;  %v17103_v39 = vld [vmem:[#allocation136_spill] sm:$0xff] }
 0xaa4   :  { %7700 = vmatprep.subr.bf16.mxu1 %v17077_v37  ;;  %v17104_v37 = vld [vmem:[#allocation137_spill] sm:$0xff] }
 0xaa7   :  { %7701 = vmatpush1.bf16.msra.mxu1 %v17078_v43  ;;  %v17105_v43 = vld [vmem:[#allocation138_spill] sm:$0xff] }
 0xaa8   :  { %7702 = vmatprep.subr.bf16.mxu1 %v17079_v12  ;;  %v17106_v12 = vld [vmem:[#allocation139_spill] sm:$0xff] }
 0xaab   :  { %7703 = vmatpush1.bf16.msra.mxu1 %v17080_v44  ;;  %v17107_v44 = vld [vmem:[#allocation140_spill] sm:$0xff] }
 0xaac   :  { %7704 = vmatprep.subr.bf16.mxu1 %v17081_v20  ;;  %v17108_v20 = vld [vmem:[#allocation141_spill] sm:$0xff] }
 0xaaf   :  { %7705 = vmatpush1.bf16.msra.mxu1 %v17082_v41  ;;  %v17109_v41 = vld [vmem:[#allocation142_spill] sm:$0xff] }
 0xab0   :  { %7706 = vmatprep.subr.bf16.mxu1 %v17083_v22  ;;  %v17110_v22 = vld [vmem:[#allocation143_spill] sm:$0xff] }
 0xab3   :  { %7707 = vmatpush1.bf16.msra.mxu1 %v17084_v42  ;;  %v17112_v42 = vld [vmem:[#allocation145_spill] sm:$0xff] }
 0xab4   :  { %7708 = vmatprep.subr.bf16.mxu1 %v17085_v45  ;;  %v17113_v45 = vld [vmem:[#allocation146_spill] sm:$0xff] }
 0xab7   :  { %7709 = vmatpush1.bf16.msra.mxu1 %v17086_v46  ;;  %v17114_v46 = vld [vmem:[#allocation147_spill] sm:$0xff] }
 0xab8   :  { %7710 = vmatprep.subr.bf16.mxu1 %v17087_v49  ;;  %v17115_v49 = vld [vmem:[#allocation148_spill] sm:$0xff] }
 0xabb   :  { %7711 = vmatpush1.bf16.msra.mxu1 %v17088_v50  ;;  %v17116_v50 = vld [vmem:[#allocation149_spill] sm:$0xff] }
 0xabc   :  { %7712 = vmatprep.subr.bf16.mxu1 %v17089_v53  ;;  %v17117_v53 = vld [vmem:[#allocation150_spill] sm:$0xff] }
 0xabf   :  { %7713 = vmatpush1.bf16.msra.mxu1 %v17090_v6  ;;  %v17118_v6 = vld [vmem:[#allocation151_spill] sm:$0xff] }
 0xac0   :  { %7714 = vmatprep.subr.bf16.mxu1 %v17091_v33  ;;  %v17119_v33 = vld [vmem:[#allocation152_spill] sm:$0xff] }
 0xac3   :  { %7715 = vmatpush1.bf16.msra.mxu1 %v17092_v10  ;;  %v17120_v10 = vld [vmem:[#allocation153_spill] sm:$0xff] }
 0xac4   :  { %7716 = vmatprep.subr.bf16.mxu1 %v17093_v13  ;;  %v17121_v13 = vld [vmem:[#allocation154_spill] sm:$0xff] }
 0xac7   :  { %7717 = vmatpush1.bf16.msra.mxu1 %v17094_v18  ;;  %v17122_v18 = vld [vmem:[#allocation155_spill] sm:$0xff] }
 0xac8   :  { %7718 = vmatprep.subr.bf16.mxu1 %v17095_v21  ;;  %v17123_v21 = vld [vmem:[#allocation156_spill] sm:$0xff] }
 0xacb   :  { %7719 = vmatpush1.bf16.msra.mxu1 %v17096_v28  ;;  %v17124_v28 = vld [vmem:[#allocation157_spill] sm:$0xff] }
 0xacc   :  { %7720 = vmatprep.subr.bf16.mxu1 %v17097_v26  ;;  %v17125_v26 = vld [vmem:[#allocation158_spill] sm:$0xff] }
 0xacf   :  { %7721 = vmatpush1.bf16.msra.mxu1 %v17098_v29  ;;  %v17126_v29 = vld [vmem:[#allocation159_spill] sm:$0xff] }
 0xad0   :  { %7733 = vmatprep.subr.bf16.mxu1 %v17099_v55  ;;  %v17127_v55 = vld [vmem:[#allocation160_spill] sm:$0xff] }
 0xad2   :  { %7723 = vmatmul.mubr.bf16.vlgmr.msra.gmra.mrb[64].mxu1 %v13739_v5 }
 0xad3   :  { %7734 = vmatpush1.bf16.msra.mxu1 %v17100_v2  ;;  %7765 = vmatprep.mubr.bf16.mxu1 %v13735_v24  ;;  %v17111_v24 = vld [vmem:[#allocation144_spill] sm:$0xff]  ;;  %v17128_v2 = vld [vmem:[#allocation161_spill] sm:$0xff] }
 0xad4   :  { %7735 = vmatprep.subr.bf16.mxu1 %v17101_v34  ;;  %v17129_v34 = vld [vmem:[#allocation162_spill] sm:$0xff] }
 0xad7   :  { %7736 = vmatpush1.bf16.msra.mxu1 %v17102_v47  ;;  %v17130_v47 = vld [vmem:[#allocation163_spill] sm:$0xff] }
 0xad8   :  { %7737 = vmatprep.subr.bf16.mxu1 %v17103_v39  ;;  %v17131_v39 = vld [vmem:[#allocation164_spill] sm:$0xff] }
 0xadb   :  { %7738 = vmatpush1.bf16.msra.mxu1 %v17104_v37  ;;  %v17132_v37 = vld [vmem:[#allocation165_spill] sm:$0xff] }
 0xadc   :  { %7739 = vmatprep.subr.bf16.mxu1 %v17105_v43  ;;  %v17133_v43 = vld [vmem:[#allocation166_spill] sm:$0xff] }
 0xadf   :  { %7740 = vmatpush1.bf16.msra.mxu1 %v17106_v12  ;;  %v17134_v12 = vld [vmem:[#allocation167_spill] sm:$0xff] }
 0xae0   :  { %7741 = vmatprep.subr.bf16.mxu1 %v17107_v44  ;;  %v17135_v44 = vld [vmem:[#allocation168_spill] sm:$0xff] }
 0xae3   :  { %7742 = vmatpush1.bf16.msra.mxu1 %v17108_v20  ;;  %v17136_v20 = vld [vmem:[#allocation169_spill] sm:$0xff] }
 0xae4   :  { %7743 = vmatprep.subr.bf16.mxu1 %v17109_v41  ;;  %v17137_v41 = vld [vmem:[#allocation170_spill] sm:$0xff] }
 0xae7   :  { %7744 = vmatpush1.bf16.msra.mxu1 %v17110_v22  ;;  %v17138_v22 = vld [vmem:[#allocation171_spill] sm:$0xff] }
 0xae8   :  { %7745 = vmatprep.subr.bf16.mxu1 %v17111_v24  ;;  %v17139_v24 = vld [vmem:[#allocation172_spill] sm:$0xff] }
 0xaeb   :  { %7746 = vmatpush1.bf16.msra.mxu1 %v17112_v42  ;;  %v17140_v42 = vld [vmem:[#allocation173_spill] sm:$0xff] }
 0xaec   :  { %7747 = vmatprep.subr.bf16.mxu1 %v17113_v45  ;;  %v17141_v45 = vld [vmem:[#allocation174_spill] sm:$0xff] }
 0xaef   :  { %7748 = vmatpush1.bf16.msra.mxu1 %v17114_v46 }
 0xaf0   :  { %7749 = vmatprep.subr.bf16.mxu1 %v17115_v49 }
 0xaf3   :  { %7750 = vmatpush1.bf16.msra.mxu1 %v17116_v50  ;;  %v17142_v50 = vld [vmem:[#allocation176_spill] sm:$0xff] }
 0xaf4   :  { %7751 = vmatprep.subr.bf16.mxu1 %v17117_v53 }
 0xaf7   :  { %7752 = vmatpush1.bf16.msra.mxu1 %v17118_v6  ;;  %v17143_v6 = vld [vmem:[#allocation179_spill] sm:$0xff] }
 0xaf8   :  { %7753 = vmatprep.subr.bf16.mxu1 %v17119_v33 }
 0xafb   :  { %7754 = vmatpush1.bf16.msra.mxu1 %v17120_v10 }
 0xafc   :  { %7755 = vmatprep.subr.bf16.mxu1 %v17121_v13  ;;  %v17144_v13 = vld [vmem:[#allocation177_spill] sm:$0xff] }
 0xaff   :  { %7756 = vmatpush1.bf16.msra.mxu1 %v17122_v18  ;;  %v17145_v18 = vld [vmem:[#allocation178_spill] sm:$0xff] }
 0xb00   :  { %7757 = vmatprep.subr.bf16.mxu1 %v17123_v21 }
 0xb03   :  { %7758 = vmatpush1.bf16.msra.mxu1 %v17124_v28  ;;  %v17146_v28 = vld [vmem:[#allocation180_spill] sm:$0xff] }
 0xb04   :  { %7759 = vmatprep.subr.bf16.mxu1 %v17125_v26 }
 0xb07   :  { %7760 = vmatpush1.bf16.msra.mxu1 %v17126_v29 }
 0xb08   :  { %7761 = vmatprep.subr.bf16.mxu1 %v17127_v55 }
 0xb0b   :  { %7762 = vmatpush1.bf16.msra.mxu1 %v17128_v2  ;;  %v17147_v2 = vld [vmem:[#allocation181_spill] sm:$0xff] }
 0xb0c   :  { %7763 = vmatprep.subr.bf16.mxu1 %v17129_v34  ;;  %v17148_v34 = vld [vmem:[#allocation182_spill] sm:$0xff] }
 0xb0f   :  { %7764 = vmatpush1.bf16.msra.mxu1 %v17130_v47  ;;  %v17150_v47 = vld [vmem:[#allocation183_spill] sm:$0xff] }
 0xb10   :  { %7972 = vmatprep.subr.bf16.mxu1 %v17131_v39  ;;  %v17151_v39 = vld [vmem:[#allocation184_spill] sm:$0xff] }
 0xb12   :  { %7766 = vmatmul.mubr.bf16.vlgmr.msra.gmra.mrb[68].mxu1 %v13739_v5 }
 0xb13   :  { %7973 = vmatpush1.bf16.msra.mxu1 %v17132_v37  ;;  %v17152_v37 = vld [vmem:[#allocation185_spill] sm:$0xff] }
 0xb14   :  { %7974 = vmatprep.subr.bf16.mxu1 %v17133_v43  ;;  %v17153_v43 = vld [vmem:[#allocation186_spill] sm:$0xff] }
 0xb17   :  { %7975 = vmatpush1.bf16.msra.mxu1 %v17134_v12  ;;  %v17154_v12 = vld [vmem:[#allocation187_spill] sm:$0xff] }
 0xb18   :  { %7976 = vmatprep.subr.bf16.mxu1 %v17135_v44  ;;  %v17155_v44 = vld [vmem:[#allocation188_spill] sm:$0xff] }
 0xb1b   :  { %7977 = vmatpush1.bf16.msra.mxu1 %v17136_v20  ;;  %v17156_v20 = vld [vmem:[#allocation189_spill] sm:$0xff] }
 0xb1c   :  { %7978 = vmatprep.subr.bf16.mxu1 %v17137_v41  ;;  %v17157_v41 = vld [vmem:[#allocation190_spill] sm:$0xff] }
 0xb1f   :  { %7979 = vmatpush1.bf16.msra.mxu1 %v17138_v22  ;;  %v17158_v22 = vld [vmem:[#allocation191_spill] sm:$0xff] }
 0xb20   :  { %7980 = vmatprep.subr.bf16.mxu1 %v17139_v24  ;;  %v17159_v24 = vld [vmem:[#allocation192_spill] sm:$0xff] }
 0xb23   :  { %7981 = vmatpush1.bf16.msra.mxu1 %v17140_v42  ;;  %v17160_v42 = vld [vmem:[#allocation193_spill] sm:$0xff] }
 0xb24   :  { %7982 = vmatprep.subr.bf16.mxu1 %v17141_v45  ;;  %v17161_v45 = vld [vmem:[#allocation194_spill] sm:$0xff] }
 0xb25   :  { %v7638_v5 = vpop.f32.mrb[56].mxu1 }
 0xb26   :  { %v7640_v46 = vpop.f32.mrb[57].mxu1  ;;  %v7776_v53 = vadd.f32 %v7638_v5, %v17142_v50  ;;  %v17162_v5 = vld [vmem:[#allocation195_spill] sm:$0xff]  ;;  %v17165_v50 = vld [vmem:[#allocation198_spill] sm:$0xff] }
 0xb27   :  { %7983 = vmatpush1.bf16.msra.mxu1 %v16515_v25  ;;  %v7642_v49 = vpop.f32.mrb[58].mxu1  ;;  %v7777_v21 = vadd.f32 %v7640_v46, %v17145_v18  ;;  %v17149_v25 = vld [vmem:[#allocation116_spill] sm:$0xff] }
 0xb28   :  { %v7784_v33 = vadd.f32 %v7642_v49, %v17143_v6  ;;  %v7644_v10 = vpop.f32.mrb[59].mxu1  ;;  %7984 = vmatprep.subr.bf16.mxu1 %v17144_v13  ;;  %v17163_v46 = vld [vmem:[#allocation196_spill] sm:$0xff]  ;;  %v17164_v49 = vld [vmem:[#allocation197_spill] sm:$0xff]  ;;  %v17170_v13 = vld [vmem:[#allocation203_spill] sm:$0xff] }
 0xb29   :  { %v7785_v26 = vadd.f32 %v7644_v10, %v17146_v28  ;;  %v17167_v6 = vld [vmem:[#allocation200_spill] sm:$0xff]  ;;  %v17169_v10 = vld [vmem:[#allocation202_spill] sm:$0xff] }
 0xb2a   :  { %v13861_v29 = vpack.c.bf16 %v7784_v33, %v7776_v53  ;;  %v17166_v53 = vld [vmem:[#allocation199_spill] sm:$0xff]  ;;  %v17168_v33 = vld [vmem:[#allocation201_spill] sm:$0xff]  ;;  %v17171_v18 = vld [vmem:[#allocation204_spill] sm:$0xff] }
 0xb2b   :  { %v13863_v55 = vpack.c.bf16 %v7785_v26, %v7777_v21  ;;  %7985 = vmatpush1.bf16.msra.mxu1 %v17147_v2  ;;  %v17172_v21 = vld [vmem:[#allocation205_spill] sm:$0xff]  ;;  %v17173_v28 = vld [vmem:[#allocation206_spill] sm:$0xff]  ;;  %v17174_v26 = vld [vmem:[#allocation207_spill] sm:$0xff] }
 0xb2c   :  { %7986 = vmatprep.subr.bf16.mxu1 %v17148_v34  ;;  %v17175_v2 = vld [vmem:[#allocation208_spill] sm:$0xff]  ;;  %v17176_v34 = vld [vmem:[#allocation209_spill] sm:$0xff] }
 0xb2d   :  { %7832 = vmatprep.mubr.bf16.mxu0 %v13863_v55  ;;  %8004 = vmatprep.mubr.bf16.mxu1 %v13863_v55 }
 0xb2e   :  { %7833 = vmatmul.mubr.bf16.vlgmr.msra.gmra.mrb[32].mxu0 %v13861_v29 }
 0xb2f   :  { %7844 = vmatpush1.bf16.msra.mxu0 %v17149_v25  ;;  %7987 = vmatpush1.bf16.msra.mxu1 %v17150_v47  ;;  %v17177_v25 = vld [vmem:[#allocation210_spill] sm:$0xff]  ;;  %v17178_v47 = vld [vmem:[#allocation211_spill] sm:$0xff] }
 0xb30   :  { %7845 = vmatprep.subr.bf16.mxu0 %v17151_v39  ;;  %7988 = vmatprep.subr.bf16.mxu1 %v17152_v37  ;;  %v17179_v39 = vld [vmem:[#allocation212_spill] sm:$0xff]  ;;  %v17180_v37 = vld [vmem:[#allocation213_spill] sm:$0xff] }
 0xb33   :  { %7846 = vmatpush1.bf16.msra.mxu0 %v17153_v43  ;;  %7989 = vmatpush1.bf16.msra.mxu1 %v17154_v12  ;;  %v17181_v43 = vld [vmem:[#allocation214_spill] sm:$0xff]  ;;  %v17182_v12 = vld [vmem:[#allocation215_spill] sm:$0xff] }
 0xb34   :  { %7847 = vmatprep.subr.bf16.mxu0 %v17155_v44  ;;  %7990 = vmatprep.subr.bf16.mxu1 %v17156_v20  ;;  %v17183_v44 = vld [vmem:[#allocation216_spill] sm:$0xff]  ;;  %v17184_v20 = vld [vmem:[#allocation217_spill] sm:$0xff] }
 0xb37   :  { %7848 = vmatpush1.bf16.msra.mxu0 %v17157_v41  ;;  %7991 = vmatpush1.bf16.msra.mxu1 %v17158_v22  ;;  %v17185_v41 = vld [vmem:[#allocation218_spill] sm:$0xff]  ;;  %v17186_v22 = vld [vmem:[#allocation219_spill] sm:$0xff] }
 0xb38   :  { %7849 = vmatprep.subr.bf16.mxu0 %v17159_v24  ;;  %7992 = vmatprep.subr.bf16.mxu1 %v17160_v42  ;;  %v17187_v24 = vld [vmem:[#allocation220_spill] sm:$0xff]  ;;  %v17188_v42 = vld [vmem:[#allocation221_spill] sm:$0xff] }
 0xb3b   :  { %7850 = vmatpush1.bf16.msra.mxu0 %v17161_v45  ;;  %7993 = vmatpush1.bf16.msra.mxu1 %v17162_v5  ;;  %v17189_v45 = vld [vmem:[#allocation222_spill] sm:$0xff]  ;;  %v17190_v5 = vld [vmem:[#allocation223_spill] sm:$0xff] }
 0xb3c   :  { %7851 = vmatprep.subr.bf16.mxu0 %v17163_v46  ;;  %7994 = vmatprep.subr.bf16.mxu1 %v17164_v49  ;;  %v17191_v46 = vld [vmem:[#allocation224_spill] sm:$0xff]  ;;  %v17192_v49 = vld [vmem:[#allocation225_spill] sm:$0xff] }
 0xb3f   :  { %7852 = vmatpush1.bf16.msra.mxu0 %v17165_v50  ;;  %7995 = vmatpush1.bf16.msra.mxu1 %v17166_v53  ;;  %v17193_v50 = vld [vmem:[#allocation226_spill] sm:$0xff]  ;;  %v17194_v53 = vld [vmem:[#allocation227_spill] sm:$0xff] }
 0xb40   :  { %7853 = vmatprep.subr.bf16.mxu0 %v17167_v6  ;;  %7996 = vmatprep.subr.bf16.mxu1 %v17168_v33  ;;  %v17195_v6 = vld [vmem:[#allocation228_spill] sm:$0xff]  ;;  %v17196_v33 = vld [vmem:[#allocation229_spill] sm:$0xff] }
 0xb43   :  { %7854 = vmatpush1.bf16.msra.mxu0 %v17169_v10  ;;  %7997 = vmatpush1.bf16.msra.mxu1 %v17170_v13  ;;  %v17197_v10 = vld [vmem:[#allocation230_spill] sm:$0xff]  ;;  %v17198_v13 = vld [vmem:[#allocation231_spill] sm:$0xff] }
 0xb44   :  { %7855 = vmatprep.subr.bf16.mxu0 %v17171_v18  ;;  %7998 = vmatprep.subr.bf16.mxu1 %v17172_v21  ;;  %v17199_v18 = vld [vmem:[#allocation232_spill] sm:$0xff]  ;;  %v17200_v21 = vld [vmem:[#allocation233_spill] sm:$0xff] }
 0xb47   :  { %7856 = vmatpush1.bf16.msra.mxu0 %v17173_v28  ;;  %7999 = vmatpush1.bf16.msra.mxu1 %v17174_v26  ;;  %v17201_v28 = vld [vmem:[#allocation234_spill] sm:$0xff]  ;;  %v17202_v26 = vld [vmem:[#allocation235_spill] sm:$0xff] }
 0xb48   :  { %7857 = vmatprep.subr.bf16.mxu0 %v17175_v2  ;;  %8000 = vmatprep.subr.bf16.mxu1 %v17176_v34  ;;  %v17203_v2 = vld [vmem:[#allocation236_spill] sm:$0xff]  ;;  %v17204_v34 = vld [vmem:[#allocation237_spill] sm:$0xff] }
 0xb4b   :  { %7858 = vmatpush1.bf16.msra.mxu0 %v17177_v25  ;;  %8001 = vmatpush1.bf16.msra.mxu1 %v17178_v47 }
 0xb4c   :  { %7859 = vmatprep.subr.bf16.mxu0 %v17179_v39  ;;  %8002 = vmatprep.subr.bf16.mxu1 %v17180_v37  ;;  %v17205_v37 = vld [vmem:[#allocation238_spill] sm:$0xff] }
 0xb4f   :  { %7860 = vmatpush1.bf16.msra.mxu0 %v17181_v43  ;;  %8003 = vmatpush1.bf16.msra.mxu1 %v17182_v12  ;;  %v17206_v43 = vld [vmem:[#allocation239_spill] sm:$0xff]  ;;  %v17207_v12 = vld [vmem:[#allocation242_spill] sm:$0xff] }
 0xb50   :  { %7861 = vmatprep.subr.bf16.mxu0 %v17183_v44  ;;  %8015 = vmatprep.subr.bf16.mxu1 %v17184_v20  ;;  %v17208_v20 = vld [vmem:[#allocation244_spill] sm:$0xff] }
 0xb52   :  { %8005 = vmatmul.mubr.bf16.vlgmr.msra.gmra.mrb[72].mxu1 %v13861_v29 }
 0xb53   :  { %7862 = vmatpush1.bf16.msra.mxu0 %v17185_v41  ;;  %8016 = vmatpush1.bf16.msra.mxu1 %v17186_v22 }
 0xb54   :  { %7863 = vmatprep.subr.bf16.mxu0 %v17187_v24  ;;  %8017 = vmatprep.subr.bf16.mxu1 %v17188_v42  ;;  %v17209_v24 = vld [vmem:[#allocation240_spill] sm:$0xff]  ;;  %v17210_v42 = vld [vmem:[#allocation241_spill] sm:$0xff] }
 0xb57   :  { %7864 = vmatpush1.bf16.msra.mxu0 %v17189_v45  ;;  %8018 = vmatpush1.bf16.msra.mxu1 %v17190_v5  ;;  %v17211_v45 = vld [vmem:[#allocation243_spill] sm:$0xff] }
 0xb58   :  { %7865 = vmatprep.subr.bf16.mxu0 %v17191_v46  ;;  %8019 = vmatprep.subr.bf16.mxu1 %v17192_v49  ;;  %v17212_v46 = vld [vmem:[#allocation245_spill] sm:$0xff] }
 0xb5b   :  { %7866 = vmatpush1.bf16.msra.mxu0 %v17193_v50  ;;  %8020 = vmatpush1.bf16.msra.mxu1 %v17194_v53 }
 0xb5c   :  { %7867 = vmatprep.subr.bf16.mxu0 %v17195_v6  ;;  %8021 = vmatprep.subr.bf16.mxu1 %v17196_v33  ;;  %v17213_v6 = vld [vmem:[#allocation246_spill] sm:$0xff]  ;;  %v17214_v33 = vld [vmem:[#allocation247_spill] sm:$0xff] }
 0xb5f   :  { %7868 = vmatpush1.bf16.msra.mxu0 %v17197_v10  ;;  %8022 = vmatpush1.bf16.msra.mxu1 %v17198_v13  ;;  %v17215_v10 = vld [vmem:[#allocation248_spill] sm:$0xff]  ;;  %v17216_v13 = vld [vmem:[#allocation249_spill] sm:$0xff] }
 0xb60   :  { %7869 = vmatprep.subr.bf16.mxu0 %v17199_v18  ;;  %8023 = vmatprep.subr.bf16.mxu1 %v17200_v21  ;;  %v17217_v18 = vld [vmem:[#allocation250_spill] sm:$0xff]  ;;  %v17218_v21 = vld [vmem:[#allocation251_spill] sm:$0xff] }
 0xb63   :  { %7870 = vmatpush1.bf16.msra.mxu0 %v17201_v28  ;;  %8024 = vmatpush1.bf16.msra.mxu1 %v17202_v26  ;;  %v17219_v28 = vld [vmem:[#allocation252_spill] sm:$0xff]  ;;  %v17220_v26 = vld [vmem:[#allocation253_spill] sm:$0xff] }
 0xb64   :  { %7871 = vmatprep.subr.bf16.mxu0 %v17203_v2  ;;  %8025 = vmatprep.subr.bf16.mxu1 %v17204_v34  ;;  %v17221_v2 = vld [vmem:[#allocation254_spill] sm:$0xff]  ;;  %v17222_v34 = vld [vmem:[#allocation255_spill] sm:$0xff] }
 0xb65   :  { %v7681_v25 = vpop.f32.mrb[60].mxu1 }
 0xb66   :  { %v7683_v47 = vpop.f32.mrb[61].mxu1  ;;  %v7778_v44 = vadd.f32 %v7681_v25, %v17207_v12  ;;  %v17223_v25 = vld [vmem:[#allocation256_spill] sm:$0xff]  ;;  %v17228_v12 = vld [vmem:[#allocation261_spill] sm:$0xff] }
 0xb67   :  { %v7685_v39 = vpop.f32.mrb[62].mxu1  ;;  %7872 = vmatpush1.bf16.msra.mxu0 %v17205_v37  ;;  %8026 = vmatpush1.bf16.msra.mxu1 %v17206_v43  ;;  %v7779_v5 = vadd.f32 %v7683_v47, %v17211_v45  ;;  %v17224_v47 = vld [vmem:[#allocation257_spill] sm:$0xff]  ;;  %v17226_v37 = vld [vmem:[#allocation259_spill] sm:$0xff]  ;;  %v17227_v43 = vld [vmem:[#allocation260_spill] sm:$0xff] }
 0xb68   :  { %v7786_v41 = vadd.f32 %v7685_v39, %v17208_v20  ;;  %v7687_v22 = vpop.f32.mrb[63].mxu1  ;;  %7873 = vmatprep.subr.bf16.mxu0 %v17209_v24  ;;  %8027 = vmatprep.subr.bf16.mxu1 %v17210_v42  ;;  %v17225_v39 = vld [vmem:[#allocation258_spill] sm:$0xff]  ;;  %v17230_v20 = vld [vmem:[#allocation263_spill] sm:$0xff]  ;;  %v17235_v45 = vld [vmem:[#allocation268_spill] sm:$0xff] }
 0xb69   :  { %v7787_v49 = vadd.f32 %v7687_v22, %v17212_v46  ;;  %v17232_v22 = vld [vmem:[#allocation265_spill] sm:$0xff]  ;;  %v17233_v24 = vld [vmem:[#allocation266_spill] sm:$0xff]  ;;  %v17234_v42 = vld [vmem:[#allocation267_spill] sm:$0xff] }
 0xb6a   :  { %v13935_v50 = vpack.c.bf16 %v7786_v41, %v7778_v44  ;;  %v17229_v44 = vld [vmem:[#allocation262_spill] sm:$0xff]  ;;  %v17231_v41 = vld [vmem:[#allocation264_spill] sm:$0xff] }
 0xb6b   :  { %v13937_v53 = vpack.c.bf16 %v7787_v49, %v7779_v5  ;;  %7874 = vmatpush1.bf16.msra.mxu0 %v17213_v6  ;;  %8028 = vmatpush1.bf16.msra.mxu1 %v17214_v33  ;;  %v17236_v5 = vld [vmem:[#allocation269_spill] sm:$0xff]  ;;  %v17237_v46 = vld [vmem:[#allocation270_spill] sm:$0xff]  ;;  %v17238_v49 = vld [vmem:[#allocation271_spill] sm:$0xff] }
 0xb6c   :  { %7886 = vmatprep.subr.bf16.mxu0 %v17215_v10  ;;  %8029 = vmatprep.subr.bf16.mxu1 %v17216_v13  ;;  %v17239_v6 = vld [vmem:[#allocation272_spill] sm:$0xff]  ;;  %v17240_v33 = vld [vmem:[#allocation273_spill] sm:$0xff]  ;;  %v17241_v10 = vld [vmem:[#allocation274_spill] sm:$0xff] }
 0xb6d   :  { %7875 = vmatprep.mubr.bf16.mxu0 %v13937_v53  ;;  %8047 = vmatprep.mubr.bf16.mxu1 %v13937_v53  ;;  %v17242_v13 = vld [vmem:[#allocation275_spill] sm:$0xff] }
 0xb6e   :  { %7876 = vmatmul.mubr.bf16.vlgmr.msra.gmra.mrb[32].mxu0 %v13935_v50 }
 0xb6f   :  { %7887 = vmatpush1.bf16.msra.mxu0 %v17217_v18  ;;  %8030 = vmatpush1.bf16.msra.mxu1 %v17218_v21  ;;  %v17243_v18 = vld [vmem:[#allocation276_spill] sm:$0xff]  ;;  %v17244_v21 = vld [vmem:[#allocation277_spill] sm:$0xff] }
 0xb70   :  { %7888 = vmatprep.subr.bf16.mxu0 %v17219_v28  ;;  %8031 = vmatprep.subr.bf16.mxu1 %v17220_v26  ;;  %v17245_v28 = vld [vmem:[#allocation278_spill] sm:$0xff]  ;;  %v17246_v26 = vld [vmem:[#allocation279_spill] sm:$0xff] }
 0xb73   :  { %7889 = vmatpush1.bf16.msra.mxu0 %v17221_v2  ;;  %8032 = vmatpush1.bf16.msra.mxu1 %v17222_v34  ;;  %v17247_v2 = vld [vmem:[#allocation280_spill] sm:$0xff]  ;;  %v17248_v34 = vld [vmem:[#allocation281_spill] sm:$0xff] }
 0xb74   :  { %7890 = vmatprep.subr.bf16.mxu0 %v17223_v25  ;;  %8033 = vmatprep.subr.bf16.mxu1 %v17224_v47  ;;  %v17249_v25 = vld [vmem:[#allocation282_spill] sm:$0xff]  ;;  %v17250_v47 = vld [vmem:[#allocation283_spill] sm:$0xff] }
 0xb77   :  { %7891 = vmatpush1.bf16.msra.mxu0 %v17225_v39  ;;  %8034 = vmatpush1.bf16.msra.mxu1 %v17226_v37  ;;  %v17251_v39 = vld [vmem:[#allocation284_spill] sm:$0xff]  ;;  %v17252_v37 = vld [vmem:[#allocation285_spill] sm:$0xff] }
 0xb78   :  { %7892 = vmatprep.subr.bf16.mxu0 %v17227_v43  ;;  %8035 = vmatprep.subr.bf16.mxu1 %v17228_v12  ;;  %v17253_v43 = vld [vmem:[#allocation286_spill] sm:$0xff]  ;;  %v17254_v12 = vld [vmem:[#allocation287_spill] sm:$0xff] }
 0xb7b   :  { %7893 = vmatpush1.bf16.msra.mxu0 %v17229_v44  ;;  %8036 = vmatpush1.bf16.msra.mxu1 %v17230_v20  ;;  %v17255_v44 = vld [vmem:[#allocation288_spill] sm:$0xff]  ;;  %v17256_v20 = vld [vmem:[#allocation289_spill] sm:$0xff] }
 0xb7c   :  { %7894 = vmatprep.subr.bf16.mxu0 %v17231_v41  ;;  %8037 = vmatprep.subr.bf16.mxu1 %v17232_v22  ;;  %v17257_v41 = vld [vmem:[#allocation290_spill] sm:$0xff]  ;;  %v17258_v22 = vld [vmem:[#allocation291_spill] sm:$0xff] }
 0xb7f   :  { %7895 = vmatpush1.bf16.msra.mxu0 %v17233_v24  ;;  %8038 = vmatpush1.bf16.msra.mxu1 %v17234_v42  ;;  %v17259_v24 = vld [vmem:[#allocation292_spill] sm:$0xff]  ;;  %v17260_v42 = vld [vmem:[#allocation293_spill] sm:$0xff] }
 0xb80   :  { %7896 = vmatprep.subr.bf16.mxu0 %v17235_v45  ;;  %8039 = vmatprep.subr.bf16.mxu1 %v17236_v5  ;;  %v17261_v45 = vld [vmem:[#allocation294_spill] sm:$0xff]  ;;  %v17262_v5 = vld [vmem:[#allocation295_spill] sm:$0xff] }
 0xb83   :  { %7897 = vmatpush1.bf16.msra.mxu0 %v17237_v46  ;;  %8040 = vmatpush1.bf16.msra.mxu1 %v17238_v49  ;;  %v17263_v46 = vld [vmem:[#allocation296_spill] sm:$0xff]  ;;  %v17264_v49 = vld [vmem:[#allocation297_spill] sm:$0xff] }
 0xb84   :  { %7898 = vmatprep.subr.bf16.mxu0 %v17239_v6  ;;  %8041 = vmatprep.subr.bf16.mxu1 %v17240_v33  ;;  %v17265_v6 = vld [vmem:[#allocation298_spill] sm:$0xff]  ;;  %v17266_v33 = vld [vmem:[#allocation299_spill] sm:$0xff] }
 0xb87   :  { %7899 = vmatpush1.bf16.msra.mxu0 %v17241_v10  ;;  %8042 = vmatpush1.bf16.msra.mxu1 %v17242_v13  ;;  %v17267_v10 = vld [vmem:[#allocation300_spill] sm:$0xff]  ;;  %v17268_v13 = vld [vmem:[#allocation301_spill] sm:$0xff] }
 0xb88   :  { %7900 = vmatprep.subr.bf16.mxu0 %v17243_v18  ;;  %8043 = vmatprep.subr.bf16.mxu1 %v17244_v21  ;;  %v17269_v18 = vld [vmem:[#allocation302_spill] sm:$0xff]  ;;  %v17270_v21 = vld [vmem:[#allocation303_spill] sm:$0xff] }
 0xb8b   :  { %7901 = vmatpush1.bf16.msra.mxu0 %v17245_v28  ;;  %8044 = vmatpush1.bf16.msra.mxu1 %v17246_v26  ;;  %v17271_v28 = vld [vmem:[#allocation304_spill] sm:$0xff]  ;;  %v17272_v26 = vld [vmem:[#allocation305_spill] sm:$0xff] }
 0xb8c   :  { %7902 = vmatprep.subr.bf16.mxu0 %v17247_v2  ;;  %8045 = vmatprep.subr.bf16.mxu1 %v17248_v34 }
 0xb8f   :  { %7903 = vmatpush1.bf16.msra.mxu0 %v17249_v25  ;;  %8046 = vmatpush1.bf16.msra.mxu1 %v17250_v47  ;;  %v17273_v47 = vld [vmem:[#allocation306_spill] sm:$0xff] }
 0xb90   :  { %7904 = vmatprep.subr.bf16.mxu0 %v17251_v39  ;;  %8058 = vmatprep.subr.bf16.mxu1 %v17252_v37  ;;  %v17274_v39 = vld [vmem:[#allocation307_spill] sm:$0xff] }
 0xb92   :  { %8048 = vmatmul.mubr.bf16.vlgmr.msra.gmra.mrb[72].mxu1 %v13935_v50 }
 0xb93   :  { %7905 = vmatpush1.bf16.msra.mxu0 %v17253_v43  ;;  %8059 = vmatpush1.bf16.msra.mxu1 %v17254_v12 }
 0xb94   :  { %7906 = vmatprep.subr.bf16.mxu0 %v17255_v44  ;;  %8060 = vmatprep.subr.bf16.mxu1 %v17256_v20  ;;  %v17275_v44 = vld [vmem:[#allocation309_spill] sm:$0xff]  ;;  %v17276_v20 = vld [vmem:[#allocation310_spill] sm:$0xff] }
 0xb97   :  { %7907 = vmatpush1.bf16.msra.mxu0 %v17257_v41  ;;  %8061 = vmatpush1.bf16.msra.mxu1 %v17258_v22  ;;  %v17277_v22 = vld [vmem:[#allocation311_spill] sm:$0xff] }
 0xb98   :  { %7908 = vmatprep.subr.bf16.mxu0 %v17259_v24  ;;  %8062 = vmatprep.subr.bf16.mxu1 %v17260_v42 }
 0xb9b   :  { %7909 = vmatpush1.bf16.msra.mxu0 %v17261_v45  ;;  %8063 = vmatpush1.bf16.msra.mxu1 %v17262_v5  ;;  %v17278_v5 = vld [vmem:[#allocation312_spill] sm:$0xff] }
 0xb9c   :  { %7910 = vmatprep.subr.bf16.mxu0 %v17263_v46  ;;  %8064 = vmatprep.subr.bf16.mxu1 %v17264_v49  ;;  %v17279_v46 = vld [vmem:[#allocation313_spill] sm:$0xff] }
 0xb9d   :  { %v17283_v49 = vld [vmem:[#allocation317_spill] sm:$0xff] }
 0xb9f   :  { %7911 = vmatpush1.bf16.msra.mxu0 %v17265_v6  ;;  %8065 = vmatpush1.bf16.msra.mxu1 %v17266_v33  ;;  %v17284_v6 = vld [vmem:[#allocation318_spill] sm:$0xff]  ;;  %v17285_v33 = vld [vmem:[#allocation319_spill] sm:$0xff] }
 0xba0   :  { %7912 = vmatprep.subr.bf16.mxu0 %v17267_v10  ;;  %8066 = vmatprep.subr.bf16.mxu1 %v17268_v13  ;;  %v17286_v10 = vld [vmem:[#allocation320_spill] sm:$0xff]  ;;  %v17287_v13 = vld [vmem:[#allocation321_spill] sm:$0xff] }
 0xba3   :  { %7913 = vmatpush1.bf16.msra.mxu0 %v17269_v18  ;;  %8067 = vmatpush1.bf16.msra.mxu1 %v17270_v21  ;;  %v17288_v18 = vld [vmem:[#allocation322_spill] sm:$0xff]  ;;  %v17289_v21 = vld [vmem:[#allocation323_spill] sm:$0xff] }
 0xba4   :  { %7914 = vmatprep.subr.bf16.mxu0 %v17271_v28  ;;  %8068 = vmatprep.subr.bf16.mxu1 %v17272_v26  ;;  %v17290_v28 = vld [vmem:[#allocation324_spill] sm:$0xff]  ;;  %v17291_v26 = vld [vmem:[#allocation325_spill] sm:$0xff] }
 0xba5   :  { %v7724_v2 = vpop.f32.mrb[64].mxu1 }
 0xba6   :  { %v7726_v34 = vpop.f32.mrb[65].mxu1  ;;  %v7780_v37 = vadd.f32 %v7724_v2, %v11679_v51  ;;  %v17280_v51 = vld [vmem:[#allocation314_spill] sm:$0xff] }
 0xba7   :  { %v7728_v25 = vpop.f32.mrb[66].mxu1  ;;  %7915 = vmatpush1.bf16.msra.mxu0 %v17273_v47  ;;  %8069 = vmatpush1.bf16.msra.mxu1 %v17274_v39  ;;  %v7781_v41 = vadd.f32 %v7726_v34, %v17276_v20  ;;  %v17292_v2 = vld [vmem:[#allocation326_spill] sm:$0xff]  ;;  %v17293_v34 = vld [vmem:[#allocation327_spill] sm:$0xff]  ;;  %v17295_v47 = vld [vmem:[#allocation329_spill] sm:$0xff] }
 0xba8   :  { %v7788_v43 = vadd.f32 %v7728_v25, %v11691_v0  ;;  %v7730_v12 = vpop.f32.mrb[67].mxu1  ;;  %7916 = vmatprep.subr.bf16.mxu0 %v16646_v3  ;;  %8070 = vmatprep.subr.bf16.mxu1 %v17275_v44  ;;  %v17281_v0 = vld [vmem:[#allocation315_spill] sm:$0xff]  ;;  %v17282_v3 = vld [vmem:[#allocation316_spill] sm:$0xff]  ;;  %v17296_v39 = vld [vmem:[#allocation330_spill] sm:$0xff] }
 0xba9   :  { %v7789_v24 = vadd.f32 %v7730_v12, %v17277_v22  ;;  %v17294_v25 = vld [vmem:[#allocation328_spill] sm:$0xff]  ;;  %v17299_v12 = vld [vmem:[#allocation333_spill] sm:$0xff]  ;;  %v17300_v44 = vld [vmem:[#allocation334_spill] sm:$0xff] }
 0xbaa   :  { %v14011_v42 = vpack.c.bf16 %v7788_v43, %v7780_v37  ;;  %v17297_v37 = vld [vmem:[#allocation331_spill] sm:$0xff]  ;;  %v17298_v43 = vld [vmem:[#allocation332_spill] sm:$0xff]  ;;  %v17303_v22 = vld [vmem:[#allocation337_spill] sm:$0xff] }
 0xbab   :  { %v14013_v45 = vpack.c.bf16 %v7789_v24, %v7781_v41  ;;  %7917 = vmatpush1.bf16.msra.mxu0 %v17278_v5  ;;  %8071 = vmatpush1.bf16.msra.mxu1 %v17279_v46  ;;  %v17301_v20 = vld [vmem:[#allocation335_spill] sm:$0xff]  ;;  %v17302_v41 = vld [vmem:[#allocation336_spill] sm:$0xff]  ;;  %v17304_v24 = vld [vmem:[#allocation338_spill] sm:$0xff] }
 0xbac   :  { %7929 = vmatprep.subr.bf16.mxu0 %v17280_v51  ;;  %8072 = vmatprep.subr.bf16.mxu1 %v17281_v0  ;;  %v17305_v5 = vld [vmem:[#allocation339_spill] sm:$0xff]  ;;  %v17306_v46 = vld [vmem:[#allocation340_spill] sm:$0xff]  ;;  %v17307_v51 = vld [vmem:[#allocation341_spill] sm:$0xff] }
 0xbad   :  { %7918 = vmatprep.mubr.bf16.mxu0 %v14013_v45  ;;  %8090 = vmatprep.mubr.bf16.mxu1 %v14013_v45  ;;  %v17308_v0 = vld [vmem:[#allocation342_spill] sm:$0xff] }
 0xbae   :  { %7919 = vmatmul.mubr.bf16.vlgmr.msra.gmra.mrb[32].mxu0 %v14011_v42 }
 0xbaf   :  { %7930 = vmatpush1.bf16.msra.mxu0 %v17282_v3  ;;  %8073 = vmatpush1.bf16.msra.mxu1 %v17283_v49  ;;  %v17309_v3 = vld [vmem:[#allocation343_spill] sm:$0xff]  ;;  %v17310_v49 = vld [vmem:[#allocation344_spill] sm:$0xff] }
 0xbb0   :  { %7931 = vmatprep.subr.bf16.mxu0 %v17284_v6  ;;  %8074 = vmatprep.subr.bf16.mxu1 %v17285_v33  ;;  %v17311_v6 = vld [vmem:[#allocation345_spill] sm:$0xff]  ;;  %v17312_v33 = vld [vmem:[#allocation346_spill] sm:$0xff] }
 0xbb3   :  { %7932 = vmatpush1.bf16.msra.mxu0 %v17286_v10  ;;  %8075 = vmatpush1.bf16.msra.mxu1 %v17287_v13  ;;  %v17313_v10 = vld [vmem:[#allocation347_spill] sm:$0xff]  ;;  %v17314_v13 = vld [vmem:[#allocation348_spill] sm:$0xff] }
 0xbb4   :  { %7933 = vmatprep.subr.bf16.mxu0 %v17288_v18  ;;  %8076 = vmatprep.subr.bf16.mxu1 %v17289_v21  ;;  %v17315_v18 = vld [vmem:[#allocation349_spill] sm:$0xff]  ;;  %v17316_v21 = vld [vmem:[#allocation350_spill] sm:$0xff] }
 0xbb7   :  { %7934 = vmatpush1.bf16.msra.mxu0 %v17290_v28  ;;  %8077 = vmatpush1.bf16.msra.mxu1 %v17291_v26  ;;  %v17317_v28 = vld [vmem:[#allocation351_spill] sm:$0xff]  ;;  %v17318_v26 = vld [vmem:[#allocation352_spill] sm:$0xff] }
 0xbb8   :  { %7935 = vmatprep.subr.bf16.mxu0 %v17292_v2  ;;  %8078 = vmatprep.subr.bf16.mxu1 %v17293_v34  ;;  %v17319_v2 = vld [vmem:[#allocation353_spill] sm:$0xff]  ;;  %v17320_v34 = vld [vmem:[#allocation354_spill] sm:$0xff] }
 0xbbb   :  { %7936 = vmatpush1.bf16.msra.mxu0 %v17294_v25  ;;  %8079 = vmatpush1.bf16.msra.mxu1 %v17295_v47  ;;  %v17321_v25 = vld [vmem:[#allocation355_spill] sm:$0xff]  ;;  %v17322_v47 = vld [vmem:[#allocation356_spill] sm:$0xff] }
 0xbbc   :  { %7937 = vmatprep.subr.bf16.mxu0 %v17296_v39  ;;  %8080 = vmatprep.subr.bf16.mxu1 %v17297_v37  ;;  %v17323_v39 = vld [vmem:[#allocation357_spill] sm:$0xff]  ;;  %v17324_v37 = vld [vmem:[#allocation358_spill] sm:$0xff] }
 0xbbf   :  { %7938 = vmatpush1.bf16.msra.mxu0 %v17298_v43  ;;  %8081 = vmatpush1.bf16.msra.mxu1 %v17299_v12  ;;  %v17325_v43 = vld [vmem:[#allocation359_spill] sm:$0xff]  ;;  %v17326_v12 = vld [vmem:[#allocation360_spill] sm:$0xff] }
 0xbc0   :  { %7939 = vmatprep.subr.bf16.mxu0 %v17300_v44  ;;  %8082 = vmatprep.subr.bf16.mxu1 %v17301_v20  ;;  %v17327_v44 = vld [vmem:[#allocation361_spill] sm:$0xff]  ;;  %v17328_v20 = vld [vmem:[#allocation362_spill] sm:$0xff] }
 0xbc3   :  { %7940 = vmatpush1.bf16.msra.mxu0 %v17302_v41  ;;  %8083 = vmatpush1.bf16.msra.mxu1 %v17303_v22  ;;  %v17329_v41 = vld [vmem:[#allocation363_spill] sm:$0xff]  ;;  %v17330_v22 = vld [vmem:[#allocation364_spill] sm:$0xff] }
 0xbc4   :  { %7941 = vmatprep.subr.bf16.mxu0 %v17304_v24  ;;  %8084 = vmatprep.subr.bf16.mxu1 %v17305_v5  ;;  %v17331_v24 = vld [vmem:[#allocation365_spill] sm:$0xff]  ;;  %v17332_v5 = vld [vmem:[#allocation366_spill] sm:$0xff] }
 0xbc7   :  { %7942 = vmatpush1.bf16.msra.mxu0 %v17306_v46  ;;  %8085 = vmatpush1.bf16.msra.mxu1 %v17307_v51  ;;  %v17333_v46 = vld [vmem:[#allocation367_spill] sm:$0xff]  ;;  %v17334_v51 = vld [vmem:[#allocation368_spill] sm:$0xff] }
 0xbc8   :  { %7943 = vmatprep.subr.bf16.mxu0 %v17308_v0  ;;  %8086 = vmatprep.subr.bf16.mxu1 %v17309_v3  ;;  %v17335_v0 = vld [vmem:[#allocation369_spill] sm:$0xff]  ;;  %v17336_v3 = vld [vmem:[#allocation370_spill] sm:$0xff] }
 0xbcb   :  { %7944 = vmatpush1.bf16.msra.mxu0 %v17310_v49  ;;  %8087 = vmatpush1.bf16.msra.mxu1 %v17311_v6  ;;  %v17337_v49 = vld [vmem:[#allocation371_spill] sm:$0xff] }
 0xbcc   :  { %7945 = vmatprep.subr.bf16.mxu0 %v17312_v33  ;;  %8088 = vmatprep.subr.bf16.mxu1 %v17313_v10 }
 0xbcf   :  { %7946 = vmatpush1.bf16.msra.mxu0 %v17314_v13  ;;  %8089 = vmatpush1.bf16.msra.mxu1 %v17315_v18  ;;  %v17338_v13 = vld [vmem:[#allocation372_spill] sm:$0xff]  ;;  %v17339_v18 = vld [vmem:[#allocation373_spill] sm:$0xff] }
 0xbd0   :  { %7947 = vmatprep.subr.bf16.mxu0 %v17316_v21  ;;  %8101 = vmatprep.subr.bf16.mxu1 %v17317_v28 }
 0xbd2   :  { %8091 = vmatmul.mubr.bf16.vlgmr.msra.gmra.mrb[72].mxu1 %v14011_v42 }
 0xbd3   :  { %7948 = vmatpush1.bf16.msra.mxu0 %v17318_v26  ;;  %8102 = vmatpush1.bf16.msra.mxu1 %v17319_v2 }
 0xbd4   :  { %7949 = vmatprep.subr.bf16.mxu0 %v17320_v34  ;;  %8103 = vmatprep.subr.bf16.mxu1 %v17321_v25  ;;  %v17340_v34 = vld [vmem:[#allocation375_spill] sm:$0xff] }
 0xbd7   :  { %7950 = vmatpush1.bf16.msra.mxu0 %v17322_v47  ;;  %8104 = vmatpush1.bf16.msra.mxu1 %v17323_v39 }
 0xbd8   :  { %7951 = vmatprep.subr.bf16.mxu0 %v17324_v37  ;;  %8105 = vmatprep.subr.bf16.mxu1 %v17325_v43  ;;  %v17341_v37 = vld [vmem:[#allocation376_spill] sm:$0xff]  ;;  %v17342_v43 = vld [vmem:[#allocation377_spill] sm:$0xff] }
 0xbdb   :  { %7952 = vmatpush1.bf16.msra.mxu0 %v17326_v12  ;;  %8106 = vmatpush1.bf16.msra.mxu1 %v17327_v44  ;;  %v17348_v12 = vld [vmem:[#allocation382_spill] sm:$0xff]  ;;  %v17349_v44 = vld [vmem:[#allocation385_spill] sm:$0xff] }
 0xbdc   :  { %7953 = vmatprep.subr.bf16.mxu0 %v17328_v20  ;;  %8107 = vmatprep.subr.bf16.mxu1 %v17329_v41  ;;  %v17350_v20 = vld [vmem:[#allocation384_spill] sm:$0xff]  ;;  %v17351_v41 = vld [vmem:[#allocation387_spill] sm:$0xff] }
 0xbdf   :  { %7954 = vmatpush1.bf16.msra.mxu0 %v17330_v22  ;;  %8108 = vmatpush1.bf16.msra.mxu1 %v17331_v24  ;;  %v17352_v22 = vld [vmem:[#allocation386_spill] sm:$0xff]  ;;  %v17353_v24 = vld [vmem:[#allocation389_spill] sm:$0xff] }
 0xbe0   :  { %7955 = vmatprep.subr.bf16.mxu0 %v17332_v5  ;;  %8109 = vmatprep.subr.bf16.mxu1 %v17333_v46  ;;  %v17354_v5 = vld [vmem:[#allocation388_spill] sm:$0xff]  ;;  %v17355_v46 = vld [vmem:[#allocation391_spill] sm:$0xff] }
 0xbe3   :  { %7956 = vmatpush1.bf16.msra.mxu0 %v17334_v51  ;;  %8110 = vmatpush1.bf16.msra.mxu1 %v17335_v0  ;;  %v17356_v51 = vld [vmem:[#allocation390_spill] sm:$0xff]  ;;  %v17357_v0 = vld [vmem:[#allocation393_spill] sm:$0xff] }
 0xbe4   :  { %7957 = vmatprep.subr.bf16.mxu0 %v17336_v3  ;;  %8111 = vmatprep.subr.bf16.mxu1 %v17337_v49  ;;  %v17358_v3 = vld [vmem:[#allocation392_spill] sm:$0xff]  ;;  %v17359_v49 = vld [vmem:[#allocation395_spill] sm:$0xff] }
 0xbe5   :  { %v7767_v6 = vpop.f32.mrb[68].mxu1 }
 0xbe6   :  { %v7769_v33 = vpop.f32.mrb[69].mxu1  ;;  %v7782_v21 = vadd.f32 %v7767_v6, %v11907_v35  ;;  %v17343_v35 = vld [vmem:[#allocation379_spill] sm:$0xff]  ;;  %v17360_v6 = vld [vmem:[#allocation394_spill] sm:$0xff] }
 0xbe7   :  { %v7771_v10 = vpop.f32.mrb[70].mxu1  ;;  %7958 = vmatpush1.bf16.msra.mxu0 %v17338_v13  ;;  %8112 = vmatpush1.bf16.msra.mxu1 %v17339_v18  ;;  %v7783_v2 = vadd.f32 %v7769_v33, %v11910_v30  ;;  %v17346_v30 = vld [vmem:[#allocation380_spill] sm:$0xff]  ;;  %v17361_v33 = vld [vmem:[#allocation397_spill] sm:$0xff]  ;;  %v17363_v13 = vld [vmem:[#allocation399_spill] sm:$0xff] }
 0xbe8   :  { %v7790_v28 = vadd.f32 %v7771_v10, %v11913_v23  ;;  %v7773_v26 = vpop.f32.mrb[71].mxu1  ;;  %7959 = vmatprep.subr.bf16.mxu0 %v11902_v32  ;;  %8113 = vmatprep.subr.bf16.mxu1 %v16712_v38  ;;  %v17344_v23 = vld [vmem:[#allocation378_spill] sm:$0xff]  ;;  %v17345_v32 = vld [vmem:[#allocation381_spill] sm:$0xff]  ;;  %v17347_v38 = vld [vmem:[#allocation383_spill] sm:$0xff] }
 0xbe9   :  { %v7791_v25 = vadd.f32 %v7773_v26, %v17340_v34  ;;  %v17362_v10 = vld [vmem:[#allocation396_spill] sm:$0xff]  ;;  %v17364_v18 = vld [vmem:[#allocation398_spill] sm:$0xff]  ;;  %v17367_v26 = vld [vmem:[#allocation403_spill] sm:$0xff] }
 0xbea   :  { %v14087_v47 = vpack.c.bf16 %v7790_v28, %v7782_v21  ;;  %v17365_v21 = vld [vmem:[#allocation401_spill] sm:$0xff]  ;;  %v17366_v28 = vld [vmem:[#allocation400_spill] sm:$0xff] }
 0xbeb   :  { %v14089_v39 = vpack.c.bf16 %v7791_v25, %v7783_v2  ;;  %7960 = vmatpush1.bf16.msra.mxu0 %v17341_v37  ;;  %8114 = vmatpush1.bf16.msra.mxu1 %v17342_v43  ;;  %v17368_v2 = vld [vmem:[#allocation402_spill] sm:$0xff]  ;;  %v17369_v34 = vld [vmem:[#allocation405_spill] sm:$0xff]  ;;  %v17370_v25 = vld [vmem:[#allocation404_spill] sm:$0xff] }
 0xbec   :  { %8115 = vmatprep.subr.bf16.mxu1 %v17343_v35  ;;  %8144 = vmatprep.subr.bf16.mxu0 %v17344_v23  ;;  %v17371_v37 = vld [vmem:[#allocation407_spill] sm:$0xff]  ;;  %v17372_v43 = vld [vmem:[#allocation406_spill] sm:$0xff]  ;;  %v17373_v35 = vld [vmem:[#allocation409_spill] sm:$0xff] }
 0xbed   :  { %7961 = vmatprep.mubr.bf16.mxu0 %v14089_v39  ;;  %8133 = vmatprep.mubr.bf16.mxu1 %v14089_v39  ;;  %v17374_v23 = vld [vmem:[#allocation408_spill] sm:$0xff] }
 0xbee   :  { %7962 = vmatmul.mubr.bf16.vlgmr.msra.gmra.mrb[32].mxu0 %v14087_v47 }
 0xbef   :  { %8116 = vmatpush1.bf16.msra.mxu1 %v17345_v32  ;;  %8145 = vmatpush1.bf16.msra.mxu0 %v17346_v30  ;;  %v17375_v32 = vld [vmem:[#allocation411_spill] sm:$0xff]  ;;  %v17376_v30 = vld [vmem:[#allocation410_spill] sm:$0xff] }
 0xbf0   :  { %8176 = vmatprep.mubr.bf16.mxu0 %v13863_v55  ;;  %8117 = vmatprep.subr.bf16.mxu1 %v17347_v38  ;;  %v17377_v38 = vld [vmem:[#allocation413_spill] sm:$0xff] }
 0xbf1   :  { %8146 = vmatprep.subr.bf16.mxu0 %v17348_v12  ;;  %v17378_v12 = vld [vmem:[#allocation412_spill] sm:$0xff] }
 0xbf3   :  { %8118 = vmatpush1.bf16.msra.mxu1 %v17349_v44  ;;  %8147 = vmatpush1.bf16.msra.mxu0 %v17350_v20  ;;  %v17379_v44 = vld [vmem:[#allocation414_spill] sm:$0xff]  ;;  %v17380_v20 = vld [vmem:[#allocation415_spill] sm:$0xff] }
 0xbf4   :  { %8119 = vmatprep.subr.bf16.mxu1 %v17351_v41  ;;  %8148 = vmatprep.subr.bf16.mxu0 %v17352_v22  ;;  %v17381_v41 = vld [vmem:[#allocation416_spill] sm:$0xff]  ;;  %v17382_v22 = vld [vmem:[#allocation417_spill] sm:$0xff] }
 0xbf7   :  { %8120 = vmatpush1.bf16.msra.mxu1 %v17353_v24  ;;  %8149 = vmatpush1.bf16.msra.mxu0 %v17354_v5  ;;  %v17383_v24 = vld [vmem:[#allocation418_spill] sm:$0xff]  ;;  %v17384_v5 = vld [vmem:[#allocation419_spill] sm:$0xff] }
 0xbf8   :  { %8121 = vmatprep.subr.bf16.mxu1 %v17355_v46  ;;  %8150 = vmatprep.subr.bf16.mxu0 %v17356_v51  ;;  %v17385_v46 = vld [vmem:[#allocation420_spill] sm:$0xff]  ;;  %v17386_v51 = vld [vmem:[#allocation421_spill] sm:$0xff] }
 0xbfb   :  { %8122 = vmatpush1.bf16.msra.mxu1 %v17357_v0  ;;  %8151 = vmatpush1.bf16.msra.mxu0 %v17358_v3  ;;  %v17387_v0 = vld [vmem:[#allocation422_spill] sm:$0xff]  ;;  %v17388_v3 = vld [vmem:[#allocation423_spill] sm:$0xff] }
 0xbfc   :  { %8123 = vmatprep.subr.bf16.mxu1 %v17359_v49  ;;  %8152 = vmatprep.subr.bf16.mxu0 %v17360_v6  ;;  %v17389_v49 = vld [vmem:[#allocation424_spill] sm:$0xff]  ;;  %v17390_v6 = vld [vmem:[#allocation425_spill] sm:$0xff] }
 0xbff   :  { %8124 = vmatpush1.bf16.msra.mxu1 %v17361_v33  ;;  %8153 = vmatpush1.bf16.msra.mxu0 %v17362_v10  ;;  %v17391_v33 = vld [vmem:[#allocation426_spill] sm:$0xff]  ;;  %v17392_v10 = vld [vmem:[#allocation427_spill] sm:$0xff] }
 0xc00   :  { %8125 = vmatprep.subr.bf16.mxu1 %v17363_v13  ;;  %8154 = vmatprep.subr.bf16.mxu0 %v17364_v18  ;;  %v17394_v13 = vld [vmem:[#allocation429_spill] sm:$0xff]  ;;  %v17395_v18 = vld [vmem:[#allocation430_spill] sm:$0xff] }
 0xc03   :  { %8126 = vmatpush1.bf16.msra.mxu1 %v17365_v21  ;;  %8155 = vmatpush1.bf16.msra.mxu0 %v17366_v28  ;;  %v17396_v21 = vld [vmem:[#allocation431_spill] sm:$0xff]  ;;  %v17397_v28 = vld [vmem:[#allocation432_spill] sm:$0xff] }
 0xc04   :  { %8127 = vmatprep.subr.bf16.mxu1 %v17367_v26  ;;  %8156 = vmatprep.subr.bf16.mxu0 %v17368_v2  ;;  %v17398_v26 = vld [vmem:[#allocation433_spill] sm:$0xff]  ;;  %v17399_v2 = vld [vmem:[#allocation434_spill] sm:$0xff] }
 0xc07   :  { %8128 = vmatpush1.bf16.msra.mxu1 %v17369_v34  ;;  %8157 = vmatpush1.bf16.msra.mxu0 %v17370_v25  ;;  %v17400_v34 = vld [vmem:[#allocation435_spill] sm:$0xff]  ;;  %v17401_v25 = vld [vmem:[#allocation436_spill] sm:$0xff] }
 0xc08   :  { %8129 = vmatprep.subr.bf16.mxu1 %v17371_v37  ;;  %8158 = vmatprep.subr.bf16.mxu0 %v17372_v43  ;;  %v17402_v37 = vld [vmem:[#allocation437_spill] sm:$0xff]  ;;  %v17403_v43 = vld [vmem:[#allocation438_spill] sm:$0xff] }
 0xc0b   :  { %8130 = vmatpush1.bf16.msra.mxu1 %v17373_v35  ;;  %8159 = vmatpush1.bf16.msra.mxu0 %v17374_v23  ;;  %v17404_v35 = vld [vmem:[#allocation439_spill] sm:$0xff]  ;;  %v17405_v23 = vld [vmem:[#allocation440_spill] sm:$0xff] }
 0xc0c   :  { %8131 = vmatprep.subr.bf16.mxu1 %v17375_v32  ;;  %8160 = vmatprep.subr.bf16.mxu0 %v17376_v30  ;;  %v17406_v32 = vld [vmem:[#allocation441_spill] sm:$0xff]  ;;  %v17407_v30 = vld [vmem:[#allocation442_spill] sm:$0xff] }
 0xc0f   :  { %8132 = vmatpush1.bf16.msra.mxu1 %v17377_v38  ;;  %8161 = vmatpush1.bf16.msra.mxu0 %v17378_v12  ;;  %v17408_v38 = vld [vmem:[#allocation443_spill] sm:$0xff]  ;;  %v17409_v12 = vld [vmem:[#allocation444_spill] sm:$0xff] }
 0xc10   :  { %8162 = vmatprep.subr.bf16.mxu0 %v17379_v44  ;;  %8316 = vmatprep.subr.bf16.mxu1 %v17380_v20  ;;  %v17410_v44 = vld [vmem:[#allocation445_spill] sm:$0xff]  ;;  %v17411_v20 = vld [vmem:[#allocation446_spill] sm:$0xff] }
 0xc12   :  { %8134 = vmatmul.mubr.bf16.vlgmr.msra.gmra.mrb[72].mxu1 %v14087_v47 }
 0xc13   :  { %8163 = vmatpush1.bf16.msra.mxu0 %v17381_v41  ;;  %8317 = vmatpush1.bf16.msra.mxu1 %v17382_v22  ;;  %v17412_v41 = vld [vmem:[#allocation447_spill] sm:$0xff]  ;;  %v17413_v22 = vld [vmem:[#allocation448_spill] sm:$0xff] }
 0xc14   :  { %8348 = vmatprep.mubr.bf16.mxu1 %v13863_v55  ;;  %8164 = vmatprep.subr.bf16.mxu0 %v17383_v24  ;;  %v17393_v55 = vld [vmem:[#allocation428_spill] sm:$0xff]  ;;  %v17414_v24 = vld [vmem:[#allocation449_spill] sm:$0xff] }
 0xc15   :  { %8318 = vmatprep.subr.bf16.mxu1 %v17384_v5  ;;  %v17415_v5 = vld [vmem:[#allocation450_spill] sm:$0xff] }
 0xc17   :  { %8165 = vmatpush1.bf16.msra.mxu0 %v17385_v46  ;;  %8319 = vmatpush1.bf16.msra.mxu1 %v17386_v51  ;;  %v17416_v46 = vld [vmem:[#allocation451_spill] sm:$0xff]  ;;  %v17417_v51 = vld [vmem:[#allocation452_spill] sm:$0xff] }
 0xc18   :  { %8166 = vmatprep.subr.bf16.mxu0 %v17387_v0  ;;  %8320 = vmatprep.subr.bf16.mxu1 %v17388_v3  ;;  %v17418_v0 = vld [vmem:[#allocation453_spill] sm:$0xff]  ;;  %v17419_v3 = vld [vmem:[#allocation454_spill] sm:$0xff] }
 0xc1b   :  { %8167 = vmatpush1.bf16.msra.mxu0 %v17389_v49  ;;  %8321 = vmatpush1.bf16.msra.mxu1 %v17390_v6  ;;  %v17420_v49 = vld [vmem:[#allocation455_spill] sm:$0xff]  ;;  %v17421_v6 = vld [vmem:[#allocation456_spill] sm:$0xff] }
 0xc1c   :  { %8168 = vmatprep.subr.bf16.mxu0 %v17391_v33  ;;  %8322 = vmatprep.subr.bf16.mxu1 %v17392_v10  ;;  %v17422_v33 = vld [vmem:[#allocation457_spill] sm:$0xff]  ;;  %v17423_v10 = vld [vmem:[#allocation458_spill] sm:$0xff] }
 0xc1f   :  { %8169 = vmatpush1.bf16.msra.mxu0 %v17393_v55  ;;  %8323 = vmatpush1.bf16.msra.mxu1 %v17394_v13  ;;  %v17424_v55 = vld [vmem:[#allocation459_spill] sm:$0xff]  ;;  %v17425_v13 = vld [vmem:[#allocation460_spill] sm:$0xff] }
 0xc20   :  { %8170 = vmatprep.subr.bf16.mxu0 %v17395_v18  ;;  %8324 = vmatprep.subr.bf16.mxu1 %v17396_v21  ;;  %v17426_v18 = vld [vmem:[#allocation461_spill] sm:$0xff]  ;;  %v17427_v21 = vld [vmem:[#allocation462_spill] sm:$0xff] }
 0xc23   :  { %8171 = vmatpush1.bf16.msra.mxu0 %v17397_v28  ;;  %8325 = vmatpush1.bf16.msra.mxu1 %v17398_v26  ;;  %v17428_v28 = vld [vmem:[#allocation463_spill] sm:$0xff]  ;;  %v17429_v26 = vld [vmem:[#allocation464_spill] sm:$0xff] }
 0xc24   :  { %8172 = vmatprep.subr.bf16.mxu0 %v17399_v2  ;;  %8326 = vmatprep.subr.bf16.mxu1 %v17400_v34  ;;  %v17430_v2 = vld [vmem:[#allocation465_spill] sm:$0xff]  ;;  %v17431_v34 = vld [vmem:[#allocation466_spill] sm:$0xff] }
 0xc27   :  { %8173 = vmatpush1.bf16.msra.mxu0 %v17401_v25  ;;  %8327 = vmatpush1.bf16.msra.mxu1 %v17402_v37  ;;  %v17432_v25 = vld [vmem:[#allocation467_spill] sm:$0xff]  ;;  %v17433_v37 = vld [vmem:[#allocation468_spill] sm:$0xff] }
 0xc28   :  { %8174 = vmatprep.subr.bf16.mxu0 %v17403_v43  ;;  %8328 = vmatprep.subr.bf16.mxu1 %v17404_v35  ;;  %v17434_v43 = vld [vmem:[#allocation469_spill] sm:$0xff]  ;;  %v17435_v35 = vld [vmem:[#allocation470_spill] sm:$0xff] }
 0xc2b   :  { %8175 = vmatpush1.bf16.msra.mxu0 %v17405_v23  ;;  %8329 = vmatpush1.bf16.msra.mxu1 %v17406_v32  ;;  %v17436_v23 = vld [vmem:[#allocation471_spill] sm:$0xff]  ;;  %v17437_v32 = vld [vmem:[#allocation472_spill] sm:$0xff] }
 0xc2c   :  { %8187 = vmatprep.subr.bf16.mxu0 %v17407_v30  ;;  %8330 = vmatprep.subr.bf16.mxu1 %v17408_v38  ;;  %v17438_v30 = vld [vmem:[#allocation473_spill] sm:$0xff]  ;;  %v17439_v38 = vld [vmem:[#allocation474_spill] sm:$0xff] }
 0xc2e   :  { %8177 = vmatmul.mubr.bf16.vlgmr.msra.gmra.mrb[36].mxu0 %v13861_v29 }
 0xc2f   :  { %8188 = vmatpush1.bf16.msra.mxu0 %v17409_v12  ;;  %8219 = vmatprep.mubr.bf16.mxu0 %v13937_v53  ;;  %v17440_v12 = vld [vmem:[#allocation475_spill] sm:$0xff] }
 0xc30   :  { %8331 = vmatpush1.bf16.msra.mxu1 %v17410_v44  ;;  %8189 = vmatprep.subr.bf16.mxu0 %v17411_v20  ;;  %v17441_v44 = vld [vmem:[#allocation476_spill] sm:$0xff]  ;;  %v17442_v20 = vld [vmem:[#allocation477_spill] sm:$0xff] }
 0xc31   :  { %8332 = vmatprep.subr.bf16.mxu1 %v17412_v41  ;;  %v17443_v41 = vld [vmem:[#allocation478_spill] sm:$0xff] }
 0xc33   :  { %8190 = vmatpush1.bf16.msra.mxu0 %v17413_v22  ;;  %v17444_v22 = vld [vmem:[#allocation479_spill] sm:$0xff] }
 0xc34   :  { %8333 = vmatpush1.bf16.msra.mxu1 %v17414_v24  ;;  %8191 = vmatprep.subr.bf16.mxu0 %v17415_v5  ;;  %v17445_v24 = vld [vmem:[#allocation480_spill] sm:$0xff]  ;;  %v17446_v5 = vld [vmem:[#allocation481_spill] sm:$0xff] }
 0xc35   :  { %8334 = vmatprep.subr.bf16.mxu1 %v17416_v46  ;;  %v17447_v46 = vld [vmem:[#allocation482_spill] sm:$0xff] }
 0xc37   :  { %8192 = vmatpush1.bf16.msra.mxu0 %v17417_v51  ;;  %v17448_v51 = vld [vmem:[#allocation483_spill] sm:$0xff] }
 0xc38   :  { %8335 = vmatpush1.bf16.msra.mxu1 %v17418_v0  ;;  %8193 = vmatprep.subr.bf16.mxu0 %v17419_v3  ;;  %v17449_v0 = vld [vmem:[#allocation484_spill] sm:$0xff]  ;;  %v17450_v3 = vld [vmem:[#allocation485_spill] sm:$0xff] }
 0xc39   :  { %8336 = vmatprep.subr.bf16.mxu1 %v17420_v49  ;;  %v17451_v49 = vld [vmem:[#allocation486_spill] sm:$0xff] }
 0xc3b   :  { %8194 = vmatpush1.bf16.msra.mxu0 %v17421_v6  ;;  %v17452_v6 = vld [vmem:[#allocation487_spill] sm:$0xff] }
 0xc3c   :  { %8337 = vmatpush1.bf16.msra.mxu1 %v17422_v33  ;;  %8195 = vmatprep.subr.bf16.mxu0 %v17423_v10  ;;  %v17453_v33 = vld [vmem:[#allocation488_spill] sm:$0xff]  ;;  %v17455_v10 = vld [vmem:[#allocation490_spill] sm:$0xff] }
 0xc3d   :  { %8338 = vmatprep.subr.bf16.mxu1 %v17424_v55  ;;  %v17456_v55 = vld [vmem:[#allocation491_spill] sm:$0xff] }
 0xc3f   :  { %8196 = vmatpush1.bf16.msra.mxu0 %v17425_v13  ;;  %v17458_v13 = vld [vmem:[#allocation493_spill] sm:$0xff] }
 0xc40   :  { %8339 = vmatpush1.bf16.msra.mxu1 %v17426_v18  ;;  %8197 = vmatprep.subr.bf16.mxu0 %v17427_v21  ;;  %v17459_v18 = vld [vmem:[#allocation494_spill] sm:$0xff]  ;;  %v17460_v21 = vld [vmem:[#allocation495_spill] sm:$0xff] }
 0xc41   :  { %8340 = vmatprep.subr.bf16.mxu1 %v17428_v28  ;;  %v17461_v28 = vld [vmem:[#allocation496_spill] sm:$0xff] }
 0xc43   :  { %8198 = vmatpush1.bf16.msra.mxu0 %v17429_v26  ;;  %v17462_v26 = vld [vmem:[#allocation497_spill] sm:$0xff] }
 0xc44   :  { %8341 = vmatpush1.bf16.msra.mxu1 %v17430_v2  ;;  %8199 = vmatprep.subr.bf16.mxu0 %v17431_v34  ;;  %v17463_v2 = vld [vmem:[#allocation498_spill] sm:$0xff]  ;;  %v17464_v34 = vld [vmem:[#allocation499_spill] sm:$0xff] }
 0xc45   :  { %8342 = vmatprep.subr.bf16.mxu1 %v17432_v25  ;;  %v17465_v25 = vld [vmem:[#allocation500_spill] sm:$0xff] }
 0xc47   :  { %8200 = vmatpush1.bf16.msra.mxu0 %v17433_v37  ;;  %v17466_v37 = vld [vmem:[#allocation501_spill] sm:$0xff] }
 0xc48   :  { %8343 = vmatpush1.bf16.msra.mxu1 %v17434_v43  ;;  %8201 = vmatprep.subr.bf16.mxu0 %v17435_v35  ;;  %v17467_v43 = vld [vmem:[#allocation502_spill] sm:$0xff]  ;;  %v17468_v35 = vld [vmem:[#allocation503_spill] sm:$0xff] }
 0xc49   :  { %8344 = vmatprep.subr.bf16.mxu1 %v17436_v23  ;;  %v17469_v23 = vld [vmem:[#allocation504_spill] sm:$0xff] }
 0xc4b   :  { %8202 = vmatpush1.bf16.msra.mxu0 %v17437_v32  ;;  %v17470_v32 = vld [vmem:[#allocation505_spill] sm:$0xff] }
 0xc4c   :  { %8345 = vmatpush1.bf16.msra.mxu1 %v17438_v30  ;;  %8203 = vmatprep.subr.bf16.mxu0 %v17439_v38  ;;  %v17471_v30 = vld [vmem:[#allocation506_spill] sm:$0xff]  ;;  %v17472_v38 = vld [vmem:[#allocation507_spill] sm:$0xff] }
 0xc4d   :  { %8346 = vmatprep.subr.bf16.mxu1 %v17440_v12  ;;  %v17473_v12 = vld [vmem:[#allocation508_spill] sm:$0xff] }
 0xc4f   :  { %8204 = vmatpush1.bf16.msra.mxu0 %v17441_v44  ;;  %v17474_v44 = vld [vmem:[#allocation509_spill] sm:$0xff] }
 0xc50   :  { %8347 = vmatpush1.bf16.msra.mxu1 %v17442_v20  ;;  %8205 = vmatprep.subr.bf16.mxu0 %v17443_v41  ;;  %v17475_v20 = vld [vmem:[#allocation510_spill] sm:$0xff]  ;;  %v17476_v41 = vld [vmem:[#allocation511_spill] sm:$0xff] }
 0xc51   :  { %8359 = vmatprep.subr.bf16.mxu1 %v17444_v22  ;;  %v17477_v22 = vld [vmem:[#allocation512_spill] sm:$0xff] }
 0xc53   :  { %8349 = vmatmul.mubr.bf16.vlgmr.msra.gmra.mrb[76].mxu1 %v13861_v29  ;;  %8206 = vmatpush1.bf16.msra.mxu0 %v17445_v24  ;;  %v17454_v29 = vld [vmem:[#allocation489_spill] sm:$0xff] }
 0xc54   :  { %8360 = vmatpush1.bf16.msra.mxu1 %v17446_v5  ;;  %8391 = vmatprep.mubr.bf16.mxu1 %v13937_v53  ;;  %v17457_v53 = vld [vmem:[#allocation492_spill] sm:$0xff]  ;;  %v17478_v24 = vld [vmem:[#allocation513_spill] sm:$0xff]  ;;  %v17479_v5 = vld [vmem:[#allocation514_spill] sm:$0xff] }
 0xc55   :  { %8207 = vmatprep.subr.bf16.mxu0 %v17447_v46  ;;  %8361 = vmatprep.subr.bf16.mxu1 %v17448_v51  ;;  %v17480_v46 = vld [vmem:[#allocation515_spill] sm:$0xff]  ;;  %v17481_v51 = vld [vmem:[#allocation516_spill] sm:$0xff] }
 0xc57   :  { %8208 = vmatpush1.bf16.msra.mxu0 %v17449_v0  ;;  %v17482_v0 = vld [vmem:[#allocation517_spill] sm:$0xff] }
 0xc58   :  { %8362 = vmatpush1.bf16.msra.mxu1 %v17450_v3  ;;  %8209 = vmatprep.subr.bf16.mxu0 %v17451_v49  ;;  %v17483_v3 = vld [vmem:[#allocation518_spill] sm:$0xff]  ;;  %v17484_v49 = vld [vmem:[#allocation519_spill] sm:$0xff] }
 0xc59   :  { %8363 = vmatprep.subr.bf16.mxu1 %v17452_v6  ;;  %v17485_v6 = vld [vmem:[#allocation520_spill] sm:$0xff] }
 0xc5b   :  { %8210 = vmatpush1.bf16.msra.mxu0 %v17453_v33  ;;  %v17486_v33 = vld [vmem:[#allocation521_spill] sm:$0xff] }
 0xc5c   :  { %8364 = vmatpush1.bf16.msra.mxu1 %v17454_v29  ;;  %8211 = vmatprep.subr.bf16.mxu0 %v17455_v10  ;;  %v17487_v29 = vld [vmem:[#allocation522_spill] sm:$0xff]  ;;  %v17488_v10 = vld [vmem:[#allocation523_spill] sm:$0xff] }
 0xc5d   :  { %8365 = vmatprep.subr.bf16.mxu1 %v17456_v55  ;;  %v17489_v55 = vld [vmem:[#allocation524_spill] sm:$0xff] }
 0xc5f   :  { %8212 = vmatpush1.bf16.msra.mxu0 %v17457_v53  ;;  %v17490_v53 = vld [vmem:[#allocation525_spill] sm:$0xff] }
 0xc60   :  { %8366 = vmatpush1.bf16.msra.mxu1 %v17458_v13  ;;  %8213 = vmatprep.subr.bf16.mxu0 %v17459_v18  ;;  %v17491_v13 = vld [vmem:[#allocation526_spill] sm:$0xff]  ;;  %v17492_v18 = vld [vmem:[#allocation527_spill] sm:$0xff] }
 0xc61   :  { %8367 = vmatprep.subr.bf16.mxu1 %v17460_v21  ;;  %v17493_v21 = vld [vmem:[#allocation528_spill] sm:$0xff] }
 0xc63   :  { %8214 = vmatpush1.bf16.msra.mxu0 %v17461_v28  ;;  %v17494_v28 = vld [vmem:[#allocation529_spill] sm:$0xff] }
 0xc64   :  { %8368 = vmatpush1.bf16.msra.mxu1 %v17462_v26  ;;  %8215 = vmatprep.subr.bf16.mxu0 %v17463_v2  ;;  %v17495_v26 = vld [vmem:[#allocation530_spill] sm:$0xff]  ;;  %v17496_v2 = vld [vmem:[#allocation531_spill] sm:$0xff] }
 0xc65   :  { %8369 = vmatprep.subr.bf16.mxu1 %v17464_v34  ;;  %v17497_v34 = vld [vmem:[#allocation532_spill] sm:$0xff] }
 0xc67   :  { %8216 = vmatpush1.bf16.msra.mxu0 %v17465_v25  ;;  %v17498_v25 = vld [vmem:[#allocation533_spill] sm:$0xff] }
 0xc68   :  { %8370 = vmatpush1.bf16.msra.mxu1 %v17466_v37  ;;  %8217 = vmatprep.subr.bf16.mxu0 %v17467_v43  ;;  %v17499_v37 = vld [vmem:[#allocation534_spill] sm:$0xff]  ;;  %v17500_v43 = vld [vmem:[#allocation535_spill] sm:$0xff] }
 0xc69   :  { %8371 = vmatprep.subr.bf16.mxu1 %v17468_v35  ;;  %v17501_v35 = vld [vmem:[#allocation536_spill] sm:$0xff] }
 0xc6b   :  { %8218 = vmatpush1.bf16.msra.mxu0 %v17469_v23  ;;  %v17502_v23 = vld [vmem:[#allocation537_spill] sm:$0xff] }
 0xc6c   :  { %8372 = vmatpush1.bf16.msra.mxu1 %v17470_v32  ;;  %8230 = vmatprep.subr.bf16.mxu0 %v17471_v30  ;;  %v17503_v32 = vld [vmem:[#allocation538_spill] sm:$0xff]  ;;  %v17504_v30 = vld [vmem:[#allocation539_spill] sm:$0xff] }
 0xc6d   :  { %8373 = vmatprep.subr.bf16.mxu1 %v17472_v38  ;;  %v17505_v38 = vld [vmem:[#allocation540_spill] sm:$0xff] }
 0xc6e   :  { %8220 = vmatmul.mubr.bf16.vlgmr.msra.gmra.mrb[36].mxu0 %v13935_v50 }
 0xc6f   :  { %8231 = vmatpush1.bf16.msra.mxu0 %v17473_v12  ;;  %8262 = vmatprep.mubr.bf16.mxu0 %v14013_v45  ;;  %v17506_v12 = vld [vmem:[#allocation541_spill] sm:$0xff] }
 0xc70   :  { %8374 = vmatpush1.bf16.msra.mxu1 %v17474_v44  ;;  %8232 = vmatprep.subr.bf16.mxu0 %v17475_v20  ;;  %v17507_v44 = vld [vmem:[#allocation542_spill] sm:$0xff]  ;;  %v17508_v20 = vld [vmem:[#allocation543_spill] sm:$0xff] }
 0xc71   :  { %8375 = vmatprep.subr.bf16.mxu1 %v17476_v41  ;;  %v17509_v41 = vld [vmem:[#allocation544_spill] sm:$0xff] }
 0xc73   :  { %8233 = vmatpush1.bf16.msra.mxu0 %v17477_v22  ;;  %v17510_v22 = vld [vmem:[#allocation545_spill] sm:$0xff] }
 0xc74   :  { %8376 = vmatpush1.bf16.msra.mxu1 %v17478_v24  ;;  %8234 = vmatprep.subr.bf16.mxu0 %v17479_v5  ;;  %v17511_v24 = vld [vmem:[#allocation546_spill] sm:$0xff]  ;;  %v17512_v5 = vld [vmem:[#allocation547_spill] sm:$0xff] }
 0xc75   :  { %8377 = vmatprep.subr.bf16.mxu1 %v17480_v46  ;;  %v17513_v46 = vld [vmem:[#allocation548_spill] sm:$0xff] }
 0xc77   :  { %8235 = vmatpush1.bf16.msra.mxu0 %v17481_v51  ;;  %v17514_v51 = vld [vmem:[#allocation549_spill] sm:$0xff] }
 0xc78   :  { %8378 = vmatpush1.bf16.msra.mxu1 %v17482_v0  ;;  %8236 = vmatprep.subr.bf16.mxu0 %v17483_v3  ;;  %v17515_v0 = vld [vmem:[#allocation550_spill] sm:$0xff]  ;;  %v17516_v3 = vld [vmem:[#allocation551_spill] sm:$0xff] }
 0xc79   :  { %8379 = vmatprep.subr.bf16.mxu1 %v17484_v49  ;;  %v17517_v49 = vld [vmem:[#allocation552_spill] sm:$0xff] }
 0xc7b   :  { %8237 = vmatpush1.bf16.msra.mxu0 %v17485_v6  ;;  %v17519_v6 = vld [vmem:[#allocation554_spill] sm:$0xff] }
 0xc7c   :  { %8380 = vmatpush1.bf16.msra.mxu1 %v17486_v33  ;;  %8238 = vmatprep.subr.bf16.mxu0 %v17487_v29  ;;  %v17520_v33 = vld [vmem:[#allocation555_spill] sm:$0xff]  ;;  %v17522_v29 = vld [vmem:[#allocation557_spill] sm:$0xff] }
 0xc7d   :  { %8381 = vmatprep.subr.bf16.mxu1 %v17488_v10  ;;  %v17523_v10 = vld [vmem:[#allocation558_spill] sm:$0xff] }
 0xc7f   :  { %8239 = vmatpush1.bf16.msra.mxu0 %v17489_v55  ;;  %v17524_v55 = vld [vmem:[#allocation559_spill] sm:$0xff] }
 0xc80   :  { %8382 = vmatpush1.bf16.msra.mxu1 %v17490_v53  ;;  %8240 = vmatprep.subr.bf16.mxu0 %v17491_v13  ;;  %v17525_v53 = vld [vmem:[#allocation560_spill] sm:$0xff]  ;;  %v17526_v13 = vld [vmem:[#allocation561_spill] sm:$0xff] }
 0xc81   :  { %8383 = vmatprep.subr.bf16.mxu1 %v17492_v18  ;;  %v17527_v18 = vld [vmem:[#allocation562_spill] sm:$0xff] }
 0xc83   :  { %8241 = vmatpush1.bf16.msra.mxu0 %v17493_v21  ;;  %v17528_v21 = vld [vmem:[#allocation563_spill] sm:$0xff] }
 0xc84   :  { %8384 = vmatpush1.bf16.msra.mxu1 %v17494_v28  ;;  %8242 = vmatprep.subr.bf16.mxu0 %v17495_v26  ;;  %v17529_v28 = vld [vmem:[#allocation564_spill] sm:$0xff]  ;;  %v17530_v26 = vld [vmem:[#allocation565_spill] sm:$0xff] }
 0xc85   :  { %8385 = vmatprep.subr.bf16.mxu1 %v17496_v2  ;;  %v17531_v2 = vld [vmem:[#allocation566_spill] sm:$0xff] }
 0xc87   :  { %8243 = vmatpush1.bf16.msra.mxu0 %v17497_v34  ;;  %v17532_v34 = vld [vmem:[#allocation567_spill] sm:$0xff] }
 0xc88   :  { %8386 = vmatpush1.bf16.msra.mxu1 %v17498_v25  ;;  %8244 = vmatprep.subr.bf16.mxu0 %v17499_v37  ;;  %v17533_v25 = vld [vmem:[#allocation568_spill] sm:$0xff]  ;;  %v17534_v37 = vld [vmem:[#allocation569_spill] sm:$0xff] }
 0xc89   :  { %8387 = vmatprep.subr.bf16.mxu1 %v17500_v43  ;;  %v17535_v43 = vld [vmem:[#allocation570_spill] sm:$0xff] }
 0xc8b   :  { %8245 = vmatpush1.bf16.msra.mxu0 %v17501_v35  ;;  %v17536_v35 = vld [vmem:[#allocation571_spill] sm:$0xff] }
 0xc8c   :  { %8388 = vmatpush1.bf16.msra.mxu1 %v17502_v23  ;;  %8246 = vmatprep.subr.bf16.mxu0 %v17503_v32  ;;  %v17537_v23 = vld [vmem:[#allocation572_spill] sm:$0xff]  ;;  %v17538_v32 = vld [vmem:[#allocation573_spill] sm:$0xff] }
 0xc8d   :  { %8389 = vmatprep.subr.bf16.mxu1 %v17504_v30  ;;  %v17539_v30 = vld [vmem:[#allocation574_spill] sm:$0xff] }
 0xc8f   :  { %8247 = vmatpush1.bf16.msra.mxu0 %v17505_v38  ;;  %v17540_v38 = vld [vmem:[#allocation575_spill] sm:$0xff] }
 0xc90   :  { %8390 = vmatpush1.bf16.msra.mxu1 %v17506_v12  ;;  %8248 = vmatprep.subr.bf16.mxu0 %v17507_v44  ;;  %v17541_v12 = vld [vmem:[#allocation576_spill] sm:$0xff]  ;;  %v17542_v44 = vld [vmem:[#allocation577_spill] sm:$0xff] }
 0xc91   :  { %8402 = vmatprep.subr.bf16.mxu1 %v17508_v20  ;;  %v17543_v20 = vld [vmem:[#allocation578_spill] sm:$0xff] }
 0xc93   :  { %8392 = vmatmul.mubr.bf16.vlgmr.msra.gmra.mrb[76].mxu1 %v13935_v50  ;;  %8249 = vmatpush1.bf16.msra.mxu0 %v17509_v41  ;;  %v17518_v50 = vld [vmem:[#allocation553_spill] sm:$0xff]  ;;  %v17544_v41 = vld [vmem:[#allocation579_spill] sm:$0xff] }
 0xc94   :  { %8403 = vmatpush1.bf16.msra.mxu1 %v17510_v22  ;;  %8434 = vmatprep.mubr.bf16.mxu1 %v14013_v45  ;;  %v17521_v45 = vld [vmem:[#allocation556_spill] sm:$0xff] }
 0xc95   :  { %8250 = vmatprep.subr.bf16.mxu0 %v17511_v24  ;;  %8404 = vmatprep.subr.bf16.mxu1 %v17512_v5  ;;  %v17545_v22 = vld [vmem:[#allocation580_spill] sm:$0xff]  ;;  %v17546_v24 = vld [vmem:[#allocation581_spill] sm:$0xff]  ;;  %v17547_v5 = vld [vmem:[#allocation582_spill] sm:$0xff] }
 0xc97   :  { %8251 = vmatpush1.bf16.msra.mxu0 %v17513_v46  ;;  %v17548_v46 = vld [vmem:[#allocation583_spill] sm:$0xff] }
 0xc98   :  { %8405 = vmatpush1.bf16.msra.mxu1 %v17514_v51  ;;  %8252 = vmatprep.subr.bf16.mxu0 %v17515_v0  ;;  %v17549_v51 = vld [vmem:[#allocation584_spill] sm:$0xff]  ;;  %v17550_v0 = vld [vmem:[#allocation585_spill] sm:$0xff] }
 0xc99   :  { %8406 = vmatprep.subr.bf16.mxu1 %v17516_v3  ;;  %v17551_v3 = vld [vmem:[#allocation586_spill] sm:$0xff] }
 0xc9b   :  { %8253 = vmatpush1.bf16.msra.mxu0 %v17517_v49  ;;  %v17552_v49 = vld [vmem:[#allocation587_spill] sm:$0xff] }
 0xc9c   :  { %8407 = vmatpush1.bf16.msra.mxu1 %v17518_v50  ;;  %8254 = vmatprep.subr.bf16.mxu0 %v17519_v6  ;;  %v17553_v50 = vld [vmem:[#allocation588_spill] sm:$0xff]  ;;  %v17554_v6 = vld [vmem:[#allocation589_spill] sm:$0xff] }
 0xc9d   :  { %8408 = vmatprep.subr.bf16.mxu1 %v17520_v33  ;;  %v17555_v33 = vld [vmem:[#allocation590_spill] sm:$0xff] }
 0xc9f   :  { %8255 = vmatpush1.bf16.msra.mxu0 %v17521_v45 }
 0xca0   :  { %8409 = vmatpush1.bf16.msra.mxu1 %v17522_v29  ;;  %8256 = vmatprep.subr.bf16.mxu0 %v17523_v10  ;;  %v17556_v29 = vld [vmem:[#allocation591_spill] sm:$0xff] }
 0xca1   :  { %8410 = vmatprep.subr.bf16.mxu1 %v17524_v55 }
 0xca3   :  { %8257 = vmatpush1.bf16.msra.mxu0 %v17525_v53  ;;  %v17557_v53 = vld [vmem:[#allocation592_spill] sm:$0xff] }
 0xca4   :  { %8411 = vmatpush1.bf16.msra.mxu1 %v17526_v13  ;;  %8258 = vmatprep.subr.bf16.mxu0 %v17527_v18  ;;  %v17558_v13 = vld [vmem:[#allocation593_spill] sm:$0xff] }
 0xca5   :  { %8412 = vmatprep.subr.bf16.mxu1 %v17528_v21 }
 0xca7   :  { %8259 = vmatpush1.bf16.msra.mxu0 %v17529_v28  ;;  %v17559_v28 = vld [vmem:[#allocation594_spill] sm:$0xff] }
 0xca8   :  { %8413 = vmatpush1.bf16.msra.mxu1 %v17530_v26  ;;  %8260 = vmatprep.subr.bf16.mxu0 %v17531_v2  ;;  %v17560_v2 = vld [vmem:[#allocation595_spill] sm:$0xff] }
 0xca9   :  { %8414 = vmatprep.subr.bf16.mxu1 %v17532_v34 }
 0xcab   :  { %8261 = vmatpush1.bf16.msra.mxu0 %v17533_v25 }
 0xcac   :  { %8415 = vmatpush1.bf16.msra.mxu1 %v17534_v37  ;;  %8273 = vmatprep.subr.bf16.mxu0 %v17535_v43  ;;  %v17561_v37 = vld [vmem:[#allocation597_spill] sm:$0xff] }
 0xcad   :  { %8416 = vmatprep.subr.bf16.mxu1 %v17536_v35 }
 0xcae   :  { %8263 = vmatmul.mubr.bf16.vlgmr.msra.gmra.mrb[36].mxu0 %v14011_v42 }
 0xcaf   :  { %8274 = vmatpush1.bf16.msra.mxu0 %v17537_v23  ;;  %8305 = vmatprep.mubr.bf16.mxu0 %v14089_v39  ;;  %v17562_v23 = vld [vmem:[#allocation600_spill] sm:$0xff] }
 0xcb0   :  { %8417 = vmatpush1.bf16.msra.mxu1 %v17538_v32  ;;  %8275 = vmatprep.subr.bf16.mxu0 %v17539_v30  ;;  %v17563_v32 = vld [vmem:[#allocation601_spill] sm:$0xff]  ;;  %v17564_v30 = vld [vmem:[#allocation602_spill] sm:$0xff] }
 0xcb1   :  { %8418 = vmatprep.subr.bf16.mxu1 %v17540_v38  ;;  %v17565_v38 = vld [vmem:[#allocation603_spill] sm:$0xff] }
 0xcb3   :  { %8276 = vmatpush1.bf16.msra.mxu0 %v17541_v12  ;;  %v17566_v12 = vld [vmem:[#allocation604_spill] sm:$0xff] }
 0xcb4   :  { %8419 = vmatpush1.bf16.msra.mxu1 %v17542_v44  ;;  %8277 = vmatprep.subr.bf16.mxu0 %v17543_v20  ;;  %v17568_v44 = vld [vmem:[#allocation606_spill] sm:$0xff]  ;;  %v17569_v20 = vld [vmem:[#allocation607_spill] sm:$0xff] }
 0xcb5   :  { %8420 = vmatprep.subr.bf16.mxu1 %v17544_v41  ;;  %v17570_v41 = vld [vmem:[#allocation608_spill] sm:$0xff] }
 0xcb7   :  { %8278 = vmatpush1.bf16.msra.mxu0 %v17545_v22  ;;  %v17573_v22 = vld [vmem:[#allocation611_spill] sm:$0xff] }
 0xcb8   :  { %8421 = vmatpush1.bf16.msra.mxu1 %v17546_v24  ;;  %8279 = vmatprep.subr.bf16.mxu0 %v17547_v5  ;;  %v17574_v24 = vld [vmem:[#allocation612_spill] sm:$0xff]  ;;  %v17575_v5 = vld [vmem:[#allocation613_spill] sm:$0xff] }
 0xcb9   :  { %8422 = vmatprep.subr.bf16.mxu1 %v17548_v46  ;;  %v17576_v46 = vld [vmem:[#allocation614_spill] sm:$0xff] }
 0xcbb   :  { %8280 = vmatpush1.bf16.msra.mxu0 %v17549_v51  ;;  %v17577_v51 = vld [vmem:[#allocation615_spill] sm:$0xff] }
 0xcbc   :  { %8423 = vmatpush1.bf16.msra.mxu1 %v17550_v0  ;;  %8281 = vmatprep.subr.bf16.mxu0 %v17551_v3  ;;  %v17578_v0 = vld [vmem:[#allocation616_spill] sm:$0xff]  ;;  %v17579_v3 = vld [vmem:[#allocation617_spill] sm:$0xff] }
 0xcbd   :  { %8424 = vmatprep.subr.bf16.mxu1 %v17552_v49  ;;  %v17580_v49 = vld [vmem:[#allocation618_spill] sm:$0xff] }
 0xcbf   :  { %8282 = vmatpush1.bf16.msra.mxu0 %v17553_v50  ;;  %v17582_v50 = vld [vmem:[#allocation620_spill] sm:$0xff] }
 0xcc0   :  { %8425 = vmatpush1.bf16.msra.mxu1 %v17554_v6  ;;  %8283 = vmatprep.subr.bf16.mxu0 %v17555_v33  ;;  %v17583_v6 = vld [vmem:[#allocation621_spill] sm:$0xff]  ;;  %v17585_v33 = vld [vmem:[#allocation623_spill] sm:$0xff] }
 0xcc1   :  { %v7963_v45 = vpop.f32.mrb[32].mxu0  ;;  %8426 = vmatprep.subr.bf16.mxu1 %v17556_v29  ;;  %v17587_v29 = vld [vmem:[#allocation625_spill] sm:$0xff] }
 0xcc2   :  { %v7965_v10 = vpop.f32.mrb[33].mxu0  ;;  %v14325_v18 = vadd.f32 %v7963_v45, %v17558_v13  ;;  %v17586_v45 = vld [vmem:[#allocation624_spill] sm:$0xff] }
 0xcc3   :  { %v7967_v55 = vpop.f32.mrb[34].mxu0  ;;  %8284 = vmatpush1.bf16.msra.mxu0 %v17557_v53  ;;  %v9567_v34 = vadd.f32 %v7965_v10, %v16933_v16  ;;  %v17588_v10 = vld [vmem:[#allocation626_spill] sm:$0xff]  ;;  %v17590_v53 = vld [vmem:[#allocation628_spill] sm:$0xff] }
 0xcc4   :  { %v14328_v21 = vadd.f32 %v7967_v55, %v17558_v13  ;;  %8427 = vmatpush1.bf16.msra.mxu1 %v17559_v28  ;;  %v7969_v26 = vpop.f32.mrb[35].mxu0  ;;  %8285 = vmatprep.subr.bf16.mxu0 %v17560_v2  ;;  %v17589_v55 = vld [vmem:[#allocation627_spill] sm:$0xff]  ;;  %v17591_v28 = vld [vmem:[#allocation629_spill] sm:$0xff] }
 0xcc5   :  { %v9569_v25 = vadd.f32 %v7969_v26, %v16933_v16  ;;  %8428 = vmatprep.subr.bf16.mxu1 %v17561_v37  ;;  %v17567_v16 = vld [vmem:[#allocation605_spill] sm:$0xff] }
 0xcc6   :  { %v8488_v43 = vpack.c.bf16 %v14328_v21, %v14325_v18  ;;  %v10147_v18 = vld [vmem:[#allocation15 + $0x144] ss:$8 sps:$4 sm:$0xff]   ;;  %v10148_v21 = vld [vmem:[#allocation15 + $0x140] ss:$8 sps:$4 sm:$0xff]  }
 0xcc7   :  { %v8489_v35 = vpack.c.bf16 %v9569_v25, %v9567_v34  ;;  %8286 = vmatpush1.bf16.msra.mxu0 %v16935_v7  ;;  %v17571_v7 = vld [vmem:[#allocation609_spill] sm:$0xff]  ;;  %v17592_v34 = vld [vmem:[#allocation630_spill] sm:$0xff]  ;;  %v17593_v25 = vld [vmem:[#allocation631_spill] sm:$0xff] }
 0xcc8   :  { %8429 = vmatpush1.bf16.msra.mxu1 %v16936_v9  ;;  %8287 = vmatprep.subr.bf16.mxu0 %v17562_v23  ;;  %v17572_v9 = vld [vmem:[#allocation610_spill] sm:$0xff] }
 0xcc9   :  { %8430 = vmatprep.subr.bf16.mxu1 %v17563_v32  ;;  %v17594_v32 = vld [vmem:[#allocation632_spill] sm:$0xff] }
 0xccb   :  { %8288 = vmatpush1.bf16.msra.mxu0 %v17564_v30 }
 0xccc   :  { %8431 = vmatpush1.bf16.msra.mxu1 %v17565_v38  ;;  %8289 = vmatprep.subr.bf16.mxu0 %v17566_v12  ;;  %v17595_v38 = vld [vmem:[#allocation633_spill] sm:$0xff] }
 0xccd   :  { %8432 = vmatprep.subr.bf16.mxu1 %v17567_v16 }
 0xccf   :  { %8290 = vmatpush1.bf16.msra.mxu0 %v17568_v44 }
 0xcd0   :  { %8433 = vmatpush1.bf16.msra.mxu1 %v17569_v20  ;;  %8291 = vmatprep.subr.bf16.mxu0 %v17570_v41  ;;  %v17596_v41 = vld [vmem:[#allocation636_spill] sm:$0xff] }
 0xcd1   :  { %8445 = vmatprep.subr.bf16.mxu1 %v17571_v7  ;;  %v17597_v7 = vld [vmem:[#allocation637_spill] sm:$0xff] }
 0xcd3   :  { %8435 = vmatmul.mubr.bf16.vlgmr.msra.gmra.mrb[76].mxu1 %v14011_v42  ;;  %8292 = vmatpush1.bf16.msra.mxu0 %v17572_v9  ;;  %v17581_v42 = vld [vmem:[#allocation619_spill] sm:$0xff]  ;;  %v10107_v9 = vld [vmem:[#allocation15 + $0x4] ss:$8 sps:$4 sm:$0xff]  }
 0xcd4   :  { %8446 = vmatpush1.bf16.msra.mxu1 %v17573_v22  ;;  %8477 = vmatprep.mubr.bf16.mxu1 %v14089_v39  ;;  %v17584_v39 = vld [vmem:[#allocation622_spill] sm:$0xff] }
 0xcd5   :  { %8293 = vmatprep.subr.bf16.mxu0 %v17574_v24  ;;  %8447 = vmatprep.subr.bf16.mxu1 %v17575_v5  ;;  %v17598_v22 = vld [vmem:[#allocation638_spill] sm:$0xff]  ;;  %v10109_v24 = vld [vmem:[#allocation15 + $0x14] ss:$8 sps:$4 sm:$0xff]  }
 0xcd6   :  { %v17600_v5 = vld [vmem:[#allocation640_spill] sm:$0xff] }
 0xcd7   :  { %8294 = vmatpush1.bf16.msra.mxu0 %v17576_v46  ;;  %v10110_v46 = vld [vmem:[#allocation15 + $0x10] ss:$8 sps:$4 sm:$0xff]  }
 0xcd8   :  { %8448 = vmatpush1.bf16.msra.mxu1 %v17577_v51  ;;  %8295 = vmatprep.subr.bf16.mxu0 %v17578_v0  ;;  %v17601_v51 = vld [vmem:[#allocation641_spill] sm:$0xff] }
 0xcd9   :  { %8449 = vmatprep.subr.bf16.mxu1 %v17579_v3  ;;  %v10111_v0 = vld [vmem:[#allocation15 + $0x24] ss:$8 sps:$4 sm:$0xff]  }
 0xcda   :  { %v17602_v3 = vld [vmem:[#allocation642_spill] sm:$0xff] }
 0xcdb   :  { %8296 = vmatpush1.bf16.msra.mxu0 %v17580_v49  ;;  %v10112_v49 = vld [vmem:[#allocation15 + $0x20] ss:$8 sps:$4 sm:$0xff]  }
 0xcdc   :  { %8450 = vmatpush1.bf16.msra.mxu1 %v17581_v42  ;;  %8297 = vmatprep.subr.bf16.mxu0 %v17582_v50  ;;  %v17603_v42 = vld [vmem:[#allocation643_spill] sm:$0xff] }
 0xcdd   :  { %8451 = vmatprep.subr.bf16.mxu1 %v17583_v6  ;;  %v10113_v50 = vld [vmem:[#allocation15 + $0x34] ss:$8 sps:$4 sm:$0xff]   ;;  %v17604_v6 = vld [vmem:[#allocation645_spill] sm:$0xff] }
 0xcdf   :  { %8298 = vmatpush1.bf16.msra.mxu0 %v17584_v39  ;;  %v10115_v39 = vld [vmem:[#allocation15 + $0x44] ss:$8 sps:$4 sm:$0xff]  }
 0xce0   :  { %8452 = vmatpush1.bf16.msra.mxu1 %v17585_v33  ;;  %8299 = vmatprep.subr.bf16.mxu0 %v17586_v45  ;;  %v10116_v33 = vld [vmem:[#allocation15 + $0x40] ss:$8 sps:$4 sm:$0xff]   ;;  %v10117_v45 = vld [vmem:[#allocation15 + $0x54] ss:$8 sps:$4 sm:$0xff]  }
 0xce1   :  { %8453 = vmatprep.subr.bf16.mxu1 %v17587_v29  ;;  %v10118_v29 = vld [vmem:[#allocation15 + $0x50] ss:$8 sps:$4 sm:$0xff]  }
 0xce3   :  { %8300 = vmatpush1.bf16.msra.mxu0 %v17588_v10  ;;  %v10120_v10 = vld [vmem:[#allocation15 + $0x60] ss:$8 sps:$4 sm:$0xff]  }
 0xce4   :  { %8454 = vmatpush1.bf16.msra.mxu1 %v17589_v55  ;;  %8301 = vmatprep.subr.bf16.mxu0 %v17590_v53  ;;  %v10127_v55 = vld [vmem:[#allocation15 + $0xa4] ss:$8 sps:$4 sm:$0xff]   ;;  %v10129_v53 = vld [vmem:[#allocation15 + $0xb4] ss:$8 sps:$4 sm:$0xff]  }
 0xce5   :  { %v8135_v13 = vpop.f32.mrb[72].mxu1  ;;  %8455 = vmatprep.subr.bf16.mxu1 %v17591_v28  ;;  %v10133_v28 = vld [vmem:[#allocation15 + $0xd4] ss:$8 sps:$4 sm:$0xff]  }
 0xce6   :  { %v8137_v26 = vpop.f32.mrb[73].mxu1  ;;  %v14373_v37 = vadd.f32 %v8135_v13, %v17593_v25  ;;  %v10131_v13 = vld [vmem:[#allocation15 + $0xc4] ss:$8 sps:$4 sm:$0xff]  }
 0xce7   :  { %v8139_v2 = vpop.f32.mrb[74].mxu1  ;;  %8302 = vmatpush1.bf16.msra.mxu0 %v17592_v34  ;;  %v14381_v12 = vadd.f32 %v8137_v26, %v16969_v27  ;;  %v10135_v26 = vld [vmem:[#allocation15 + $0xe4] ss:$8 sps:$4 sm:$0xff]   ;;  %v10138_v34 = vld [vmem:[#allocation15 + $0xf0] ss:$8 sps:$4 sm:$0xff]  }
 0xce8   :  { %v14376_v23 = vadd.f32 %v8139_v2, %v17593_v25  ;;  %8456 = vmatpush1.bf16.msra.mxu1 %v17594_v32  ;;  %v8141_v30 = vpop.f32.mrb[75].mxu1  ;;  %8303 = vmatprep.subr.bf16.mxu0 %v17595_v38  ;;  %v10137_v2 = vld [vmem:[#allocation15 + $0xf4] ss:$8 sps:$4 sm:$0xff]   ;;  %v10139_v25 = vld [vmem:[#allocation15 + $0x104] ss:$8 sps:$4 sm:$0xff]  }
 0xce9   :  { %v14384_v16 = vadd.f32 %v8141_v30, %v16969_v27  ;;  %8457 = vmatprep.subr.bf16.mxu1 %v16970_v11  ;;  %v10108_v27 = vld [vmem:[#allocation15] ss:$8 sps:$4 sm:$0xff]   ;;  %v17599_v11 = vld [vmem:[#allocation639_spill] sm:$0xff] }
 0xcea   :  { %v8490_v44 = vpack.c.bf16 %v14376_v23, %v14373_v37  ;;  %v10140_v32 = vld [vmem:[#allocation15 + $0x100] ss:$8 sps:$4 sm:$0xff]   ;;  %v10141_v30 = vld [vmem:[#allocation15 + $0x114] ss:$8 sps:$4 sm:$0xff]   ;;  %v10142_v38 = vld [vmem:[#allocation15 + $0x110] ss:$8 sps:$4 sm:$0xff]  }
 0xceb   :  { %v8491_v20 = vpack.c.bf16 %v14384_v16, %v14381_v12  ;;  %8304 = vmatpush1.bf16.msra.mxu0 %v17596_v41  ;;  %v10143_v41 = vld [vmem:[#allocation15 + $0x124] ss:$8 sps:$4 sm:$0xff]   ;;  %v10150_v12 = vld [vmem:[#allocation15 + $0x150] ss:$8 sps:$4 sm:$0xff]   ;;  %v10181_v37 = vld [vmem:[#allocation15 + $0x254] ss:$8 sps:$4 sm:$0xff]  }
 0xcec   :  { %8458 = vmatpush1.bf16.msra.mxu1 %v17597_v7  ;;  %8496 = vmatprep.subr.bf16.mxu0 %v10107_v9  ;;  %v10144_v7 = vld [vmem:[#allocation15 + $0x120] ss:$8 sps:$4 sm:$0xff]   ;;  %v10145_v9 = vld [vmem:[#allocation15 + $0x134] ss:$8 sps:$4 sm:$0xff]   ;;  %v10151_v16 = vld [vmem:[#allocation15 + $0x164] ss:$8 sps:$4 sm:$0xff]  }
 0xced   :  { %8459 = vmatprep.subr.bf16.mxu1 %v17598_v22  ;;  %v10146_v22 = vld [vmem:[#allocation15 + $0x130] ss:$8 sps:$4 sm:$0xff]  }
 0xcee   :  { %8306 = vmatmul.mubr.bf16.vlgmr.msra.gmra.mrb[36].mxu0 %v14087_v47  ;;  %v10182_v23 = vld [vmem:[#allocation15 + $0x250] ss:$8 sps:$4 sm:$0xff]  }
 0xcef   :  { %8497 = vmatpush1.bf16.msra.mxu0 %v10108_v27  ;;  %8528 = vmatprep.mubr.bf16.mxu0 %v8489_v35  ;;  %v10114_v35 = vld [vmem:[#allocation15 + $0x30] ss:$8 sps:$4 sm:$0xff]   ;;  %v10153_v27 = vld [vmem:[#allocation15 + $0x174] ss:$8 sps:$4 sm:$0xff]  }
 0xcf0   :  { %8460 = vmatpush1.bf16.msra.mxu1 %v17599_v11  ;;  %8498 = vmatprep.subr.bf16.mxu0 %v10109_v24  ;;  %v10154_v11 = vld [vmem:[#allocation15 + $0x170] ss:$8 sps:$4 sm:$0xff]   ;;  %v10155_v24 = vld [vmem:[#allocation15 + $0x184] ss:$8 sps:$4 sm:$0xff]  }
 0xcf1   :  { %8461 = vmatprep.subr.bf16.mxu1 %v17600_v5  ;;  %v10156_v5 = vld [vmem:[#allocation15 + $0x180] ss:$8 sps:$4 sm:$0xff]  }
 0xcf3   :  { %8499 = vmatpush1.bf16.msra.mxu0 %v10110_v46  ;;  %v10157_v46 = vld [vmem:[#allocation15 + $0x194] ss:$8 sps:$4 sm:$0xff]  }
 0xcf4   :  { %8462 = vmatpush1.bf16.msra.mxu1 %v17601_v51  ;;  %8500 = vmatprep.subr.bf16.mxu0 %v10111_v0  ;;  %v10158_v51 = vld [vmem:[#allocation15 + $0x190] ss:$8 sps:$4 sm:$0xff]   ;;  %v10159_v0 = vld [vmem:[#allocation15 + $0x1a4] ss:$8 sps:$4 sm:$0xff]  }
 0xcf5   :  { %8463 = vmatprep.subr.bf16.mxu1 %v17602_v3  ;;  %v10160_v3 = vld [vmem:[#allocation15 + $0x1a0] ss:$8 sps:$4 sm:$0xff]  }
 0xcf7   :  { %8501 = vmatpush1.bf16.msra.mxu0 %v10112_v49  ;;  %v10161_v49 = vld [vmem:[#allocation15 + $0x1b4] ss:$8 sps:$4 sm:$0xff]  }
 0xcf8   :  { %8464 = vmatpush1.bf16.msra.mxu1 %v17603_v42  ;;  %8502 = vmatprep.subr.bf16.mxu0 %v10113_v50  ;;  %v10162_v42 = vld [vmem:[#allocation15 + $0x1b0] ss:$8 sps:$4 sm:$0xff]   ;;  %v10163_v50 = vld [vmem:[#allocation15 + $0x1c4] ss:$8 sps:$4 sm:$0xff]  }
 0xcf9   :  { %8465 = vmatprep.subr.bf16.mxu1 %v16977_v52  ;;  %v10119_v52 = vld [vmem:[#allocation15 + $0x64] ss:$8 sps:$4 sm:$0xff]  }
 0xcfb   :  { %8503 = vmatpush1.bf16.msra.mxu0 %v10114_v35  ;;  %v10164_v35 = vld [vmem:[#allocation15 + $0x1c0] ss:$8 sps:$4 sm:$0xff]  }
 0xcfc   :  { %8466 = vmatpush1.bf16.msra.mxu1 %v17604_v6  ;;  %8504 = vmatprep.subr.bf16.mxu0 %v10115_v39  ;;  %v10165_v6 = vld [vmem:[#allocation15 + $0x1d4] ss:$8 sps:$4 sm:$0xff]   ;;  %v10166_v39 = vld [vmem:[#allocation15 + $0x1d0] ss:$8 sps:$4 sm:$0xff]  }
 0xcfd   :  { %8467 = vmatprep.subr.bf16.mxu1 %v16979_v8  ;;  %v10121_v8 = vld [vmem:[#allocation15 + $0x74] ss:$8 sps:$4 sm:$0xff]  }
 0xcff   :  { %8505 = vmatpush1.bf16.msra.mxu0 %v10116_v33  ;;  %v10167_v33 = vld [vmem:[#allocation15 + $0x1e4] ss:$8 sps:$4 sm:$0xff]  }
 0xd00   :  { %8468 = vmatpush1.bf16.msra.mxu1 %v16980_v56  ;;  %8506 = vmatprep.subr.bf16.mxu0 %v10117_v45  ;;  %v10122_v56 = vld [vmem:[#allocation15 + $0x70] ss:$8 sps:$4 sm:$0xff]   ;;  %v10168_v45 = vld [vmem:[#allocation15 + $0x1e0] ss:$8 sps:$4 sm:$0xff]  }
 0xd01   :  { %8469 = vmatprep.subr.bf16.mxu1 %v16981_v14  ;;  %v10123_v14 = vld [vmem:[#allocation15 + $0x84] ss:$8 sps:$4 sm:$0xff]  }
 0xd03   :  { %8507 = vmatpush1.bf16.msra.mxu0 %v10118_v29  ;;  %v10169_v29 = vld [vmem:[#allocation15 + $0x1f4] ss:$8 sps:$4 sm:$0xff]  }
 0xd04   :  { %8470 = vmatpush1.bf16.msra.mxu1 %v12810_v60  ;;  %8508 = vmatprep.subr.bf16.mxu0 %v10119_v52  ;;  %v10124_v60 = vld [vmem:[#allocation15 + $0x80] ss:$8 sps:$4 sm:$0xff]   ;;  %v10170_v52 = vld [vmem:[#allocation15 + $0x1f0] ss:$8 sps:$4 sm:$0xff]  }
 0xd05   :  { %8471 = vmatprep.subr.bf16.mxu1 %v16982_v57  ;;  %v10125_v57 = vld [vmem:[#allocation15 + $0x94] ss:$8 sps:$4 sm:$0xff]  }
 0xd07   :  { %8509 = vmatpush1.bf16.msra.mxu0 %v10120_v10  ;;  %v10171_v10 = vld [vmem:[#allocation15 + $0x204] ss:$8 sps:$4 sm:$0xff]  }
 0xd08   :  { %8472 = vmatpush1.bf16.msra.mxu1 %v12816_v61  ;;  %8510 = vmatprep.subr.bf16.mxu0 %v10121_v8  ;;  %v10126_v61 = vld [vmem:[#allocation15 + $0x90] ss:$8 sps:$4 sm:$0xff]   ;;  %v10172_v8 = vld [vmem:[#allocation15 + $0x200] ss:$8 sps:$4 sm:$0xff]  }
 0xd09   :  { %8473 = vmatprep.subr.bf16.mxu1 %v12819_v17  ;;  %v10128_v17 = vld [vmem:[#allocation15 + $0xa0] ss:$8 sps:$4 sm:$0xff]  }
 0xd0b   :  { %8511 = vmatpush1.bf16.msra.mxu0 %v10122_v56  ;;  %v10173_v56 = vld [vmem:[#allocation15 + $0x214] ss:$8 sps:$4 sm:$0xff]  }
 0xd0c   :  { %8474 = vmatpush1.bf16.msra.mxu1 %v12822_v48  ;;  %8512 = vmatprep.subr.bf16.mxu0 %v10123_v14  ;;  %v10130_v48 = vld [vmem:[#allocation15 + $0xb0] ss:$8 sps:$4 sm:$0xff]  }
 0xd0d   :  { %8475 = vmatprep.subr.bf16.mxu1 %v12825_v15  ;;  %v10132_v15 = vld [vmem:[#allocation15 + $0xc0] ss:$8 sps:$4 sm:$0xff]   ;;  %v10174_v14 = vld [vmem:[#allocation15 + $0x210] ss:$8 sps:$4 sm:$0xff]  }
 0xd0f   :  { %8513 = vmatpush1.bf16.msra.mxu0 %v10124_v60  ;;  %v10175_v60 = vld [vmem:[#allocation15 + $0x224] ss:$8 sps:$4 sm:$0xff]  }
 0xd10   :  { %8476 = vmatpush1.bf16.msra.mxu1 %v12828_v19  ;;  %8514 = vmatprep.subr.bf16.mxu0 %v10125_v57  ;;  %v10134_v19 = vld [vmem:[#allocation15 + $0xd0] ss:$8 sps:$4 sm:$0xff]   ;;  %v10176_v57 = vld [vmem:[#allocation15 + $0x220] ss:$8 sps:$4 sm:$0xff]  }
 0xd13   :  { %8478 = vmatmul.mubr.bf16.vlgmr.msra.gmra.mrb[76].mxu1 %v14087_v47  ;;  %8515 = vmatpush1.bf16.msra.mxu0 %v10126_v61  ;;  %v10136_v47 = vld [vmem:[#allocation15 + $0xe0] ss:$8 sps:$4 sm:$0xff]   ;;  %v10177_v61 = vld [vmem:[#allocation15 + $0x234] ss:$8 sps:$4 sm:$0xff]  }
 0xd14   :  { %8516 = vmatprep.subr.bf16.mxu0 %v10127_v55  ;;  %v10178_v55 = vld [vmem:[#allocation15 + $0x230] ss:$8 sps:$4 sm:$0xff]  }
 0xd17   :  { %8517 = vmatpush1.bf16.msra.mxu0 %v10128_v17  ;;  %v10179_v17 = vld [vmem:[#allocation15 + $0x244] ss:$8 sps:$4 sm:$0xff]  }
 0xd18   :  { %8518 = vmatprep.subr.bf16.mxu0 %v10129_v53  ;;  %v10180_v53 = vld [vmem:[#allocation15 + $0x240] ss:$8 sps:$4 sm:$0xff]  }
 0xd1b   :  { %8519 = vmatpush1.bf16.msra.mxu0 %v10130_v48  ;;  %v10184_v48 = vld [vmem:[#allocation15 + $0x260] ss:$8 sps:$4 sm:$0xff]  }
 0xd1c   :  { %8520 = vmatprep.subr.bf16.mxu0 %v10131_v13  ;;  %v10185_v13 = vld [vmem:[#allocation15 + $0x274] ss:$8 sps:$4 sm:$0xff]  }
 0xd1f   :  { %8521 = vmatpush1.bf16.msra.mxu0 %v10132_v15  ;;  %v10186_v15 = vld [vmem:[#allocation15 + $0x270] ss:$8 sps:$4 sm:$0xff]  }
 0xd20   :  { %8522 = vmatprep.subr.bf16.mxu0 %v10133_v28  ;;  %v10187_v28 = vld [vmem:[#allocation15 + $0x284] ss:$8 sps:$4 sm:$0xff]  }
 0xd23   :  { %8523 = vmatpush1.bf16.msra.mxu0 %v10134_v19  ;;  %v10188_v19 = vld [vmem:[#allocation15 + $0x280] ss:$8 sps:$4 sm:$0xff]  }
 0xd24   :  { %8524 = vmatprep.subr.bf16.mxu0 %v10135_v26  ;;  %v10189_v26 = vld [vmem:[#allocation15 + $0x294] ss:$8 sps:$4 sm:$0xff]  }
 0xd27   :  { %8525 = vmatpush1.bf16.msra.mxu0 %v10136_v47  ;;  %v10190_v47 = vld [vmem:[#allocation15 + $0x290] ss:$8 sps:$4 sm:$0xff]  }
 0xd28   :  { %8526 = vmatprep.subr.bf16.mxu0 %v10137_v2  ;;  %v10191_v2 = vld [vmem:[#allocation15 + $0x2a4] ss:$8 sps:$4 sm:$0xff]  }
 0xd2b   :  { %8527 = vmatpush1.bf16.msra.mxu0 %v10138_v34  ;;  %v10192_v34 = vld [vmem:[#allocation15 + $0x2a0] ss:$8 sps:$4 sm:$0xff]  }
 0xd2c   :  { %8539 = vmatprep.subr.bf16.mxu0 %v10139_v25  ;;  %v10193_v25 = vld [vmem:[#allocation15 + $0x2b4] ss:$8 sps:$4 sm:$0xff]  }
 0xd2e   :  { %8529 = vmatmul.mubr.bf16.vlgmr.msra.gmra.mrb[40].mxu0 %v8488_v43  ;;  %v10149_v43 = vld [vmem:[#allocation15 + $0x154] ss:$8 sps:$4 sm:$0xff]  }
 0xd2f   :  { %8540 = vmatpush1.bf16.msra.mxu0 %v10140_v32  ;;  %8571 = vmatprep.mubr.bf16.mxu0 %v8491_v20  ;;  %v10152_v20 = vld [vmem:[#allocation15 + $0x160] ss:$8 sps:$4 sm:$0xff]   ;;  %v10194_v32 = vld [vmem:[#allocation15 + $0x2b0] ss:$8 sps:$4 sm:$0xff]  }
 0xd30   :  { %8541 = vmatprep.subr.bf16.mxu0 %v10141_v30  ;;  %v10195_v30 = vld [vmem:[#allocation15 + $0x2c4] ss:$8 sps:$4 sm:$0xff]  }
 0xd33   :  { %8542 = vmatpush1.bf16.msra.mxu0 %v10142_v38  ;;  %v10196_v38 = vld [vmem:[#allocation15 + $0x2c0] ss:$8 sps:$4 sm:$0xff]  }
 0xd34   :  { %8543 = vmatprep.subr.bf16.mxu0 %v10143_v41  ;;  %v10197_v41 = vld [vmem:[#allocation15 + $0x2d4] ss:$8 sps:$4 sm:$0xff]  }
 0xd37   :  { %8544 = vmatpush1.bf16.msra.mxu0 %v10144_v7  ;;  %v10198_v7 = vld [vmem:[#allocation15 + $0x2d0] ss:$8 sps:$4 sm:$0xff]  }
 0xd38   :  { %8545 = vmatprep.subr.bf16.mxu0 %v10145_v9  ;;  %v10199_v9 = vld [vmem:[#allocation15 + $0x2e4] ss:$8 sps:$4 sm:$0xff]  }
 0xd3b   :  { %8546 = vmatpush1.bf16.msra.mxu0 %v10146_v22  ;;  %v10200_v22 = vld [vmem:[#allocation15 + $0x2e0] ss:$8 sps:$4 sm:$0xff]  }
 0xd3c   :  { %8547 = vmatprep.subr.bf16.mxu0 %v10147_v18  ;;  %v10201_v18 = vld [vmem:[#allocation15 + $0x2f4] ss:$8 sps:$4 sm:$0xff]  }
 0xd3f   :  { %8548 = vmatpush1.bf16.msra.mxu0 %v10148_v21  ;;  %v10202_v21 = vld [vmem:[#allocation15 + $0x2f0] ss:$8 sps:$4 sm:$0xff]  }
 0xd40   :  { %8549 = vmatprep.subr.bf16.mxu0 %v10149_v43  ;;  %v10203_v43 = vld [vmem:[#allocation15 + $0x304] ss:$8 sps:$4 sm:$0xff]  }
 0xd43   :  { %8550 = vmatpush1.bf16.msra.mxu0 %v10150_v12 }
 0xd44   :  { %8551 = vmatprep.subr.bf16.mxu0 %v10151_v16 }
 0xd47   :  { %8552 = vmatpush1.bf16.msra.mxu0 %v10152_v20 }
 0xd48   :  { %8553 = vmatprep.subr.bf16.mxu0 %v10153_v27 }
 0xd4b   :  { %8554 = vmatpush1.bf16.msra.mxu0 %v10154_v11 }
 0xd4c   :  { %8555 = vmatprep.subr.bf16.mxu0 %v10155_v24 }
 0xd4f   :  { %8556 = vmatpush1.bf16.msra.mxu0 %v10156_v5 }
 0xd50   :  { %8557 = vmatprep.subr.bf16.mxu0 %v10157_v46 }
 0xd53   :  { %8558 = vmatpush1.bf16.msra.mxu0 %v10158_v51 }
 0xd54   :  { %8559 = vmatprep.subr.bf16.mxu0 %v10159_v0 }
 0xd57   :  { %8560 = vmatpush1.bf16.msra.mxu0 %v10160_v3  ;;  %v10204_v3 = vld [vmem:[#allocation15 + $0x300] ss:$8 sps:$4 sm:$0xff]  }
 0xd58   :  { %8561 = vmatprep.subr.bf16.mxu0 %v10161_v49  ;;  %v10205_v49 = vld [vmem:[#allocation15 + $0x314] ss:$8 sps:$4 sm:$0xff]  }
 0xd5b   :  { %8562 = vmatpush1.bf16.msra.mxu0 %v10162_v42  ;;  %v10206_v42 = vld [vmem:[#allocation15 + $0x310] ss:$8 sps:$4 sm:$0xff]  }
 0xd5c   :  { %8563 = vmatprep.subr.bf16.mxu0 %v10163_v50  ;;  %v10207_v50 = vld [vmem:[#allocation15 + $0x324] ss:$8 sps:$4 sm:$0xff]  }
 0xd5f   :  { %8564 = vmatpush1.bf16.msra.mxu0 %v10164_v35  ;;  %v10208_v35 = vld [vmem:[#allocation15 + $0x320] ss:$8 sps:$4 sm:$0xff]  }
 0xd60   :  { %8565 = vmatprep.subr.bf16.mxu0 %v10165_v6  ;;  %v10210_v6 = vld [vmem:[#allocation15 + $0x330] ss:$8 sps:$4 sm:$0xff]  }
 0xd63   :  { %8566 = vmatpush1.bf16.msra.mxu0 %v10166_v39  ;;  %v10211_v39 = vld [vmem:[#allocation15 + $0x344] ss:$8 sps:$4 sm:$0xff]  }
 0xd64   :  { %8567 = vmatprep.subr.bf16.mxu0 %v10167_v33  ;;  %v10213_v33 = vld [vmem:[#allocation15 + $0x354] ss:$8 sps:$4 sm:$0xff]  }
 0xd67   :  { %8568 = vmatpush1.bf16.msra.mxu0 %v10168_v45  ;;  %v10214_v45 = vld [vmem:[#allocation15 + $0x350] ss:$8 sps:$4 sm:$0xff]  }
 0xd68   :  { %8569 = vmatprep.subr.bf16.mxu0 %v10169_v29  ;;  %v10215_v29 = vld [vmem:[#allocation15 + $0x364] ss:$8 sps:$4 sm:$0xff]  }
 0xd6b   :  { %8570 = vmatpush1.bf16.msra.mxu0 %v10170_v52  ;;  %v10216_v52 = vld [vmem:[#allocation15 + $0x360] ss:$8 sps:$4 sm:$0xff]  }
 0xd6c   :  { %8582 = vmatprep.subr.bf16.mxu0 %v10171_v10  ;;  %v10217_v10 = vld [vmem:[#allocation15 + $0x374] ss:$8 sps:$4 sm:$0xff]  }
 0xd6e   :  { %8572 = vmatmul.mubr.bf16.vlgmr.msra.gmra.mrb[40].mxu0 %v8490_v44  ;;  %v10183_v44 = vld [vmem:[#allocation15 + $0x264] ss:$8 sps:$4 sm:$0xff]  }
 0xd6f   :  { %8583 = vmatpush1.bf16.msra.mxu0 %v10172_v8 }
 0xd70   :  { %8584 = vmatprep.subr.bf16.mxu0 %v10173_v56 }
 0xd73   :  { %8585 = vmatpush1.bf16.msra.mxu0 %v10174_v14  ;;  %v10218_v14 = vld [vmem:[#allocation15 + $0x370] ss:$8 sps:$4 sm:$0xff]  }
 0xd74   :  { %8586 = vmatprep.subr.bf16.mxu0 %v10175_v60 }
 0xd77   :  { %8587 = vmatpush1.bf16.msra.mxu0 %v10176_v57  ;;  %v10219_v57 = vld [vmem:[#allocation15 + $0x384] ss:$8 sps:$4 sm:$0xff]  }
 0xd78   :  { %8588 = vmatprep.subr.bf16.mxu0 %v10177_v61 }
 0xd7b   :  { %8589 = vmatpush1.bf16.msra.mxu0 %v10178_v55 }
 0xd7c   :  { %8590 = vmatprep.subr.bf16.mxu0 %v10179_v17 }
 0xd7f   :  { %8591 = vmatpush1.bf16.msra.mxu0 %v10180_v53 }
 0xd80   :  { %8592 = vmatprep.subr.bf16.mxu0 %v10181_v37 }
 0xd83   :  { %8593 = vmatpush1.bf16.msra.mxu0 %v10182_v23 }
 0xd84   :  { %8594 = vmatprep.subr.bf16.mxu0 %v10183_v44  ;;  %v10220_v44 = vld [vmem:[#allocation15 + $0x380] ss:$8 sps:$4 sm:$0xff]  }
 0xd87   :  { %8595 = vmatpush1.bf16.msra.mxu0 %v10184_v48 }
 0xd88   :  { %8596 = vmatprep.subr.bf16.mxu0 %v10185_v13  ;;  %v10221_v13 = vld [vmem:[#allocation15 + $0x394] ss:$8 sps:$4 sm:$0xff]  }
 0xd8b   :  { %8597 = vmatpush1.bf16.msra.mxu0 %v10186_v15  ;;  %v10222_v15 = vld [vmem:[#allocation15 + $0x390] ss:$8 sps:$4 sm:$0xff]  }
 0xd8c   :  { %8598 = vmatprep.subr.bf16.mxu0 %v10187_v28  ;;  %v10223_v28 = vld [vmem:[#allocation15 + $0x3a4] ss:$8 sps:$4 sm:$0xff]  }
 0xd8f   :  { %8599 = vmatpush1.bf16.msra.mxu0 %v10188_v19  ;;  %v10224_v19 = vld [vmem:[#allocation15 + $0x3a0] ss:$8 sps:$4 sm:$0xff]  }
 0xd90   :  { %8600 = vmatprep.subr.bf16.mxu0 %v10189_v26  ;;  %v10225_v26 = vld [vmem:[#allocation15 + $0x3b4] ss:$8 sps:$4 sm:$0xff]  }
 0xd93   :  { %8601 = vmatpush1.bf16.msra.mxu0 %v10190_v47  ;;  %v10227_v47 = vld [vmem:[#allocation15 + $0x3c4] ss:$8 sps:$4 sm:$0xff]  }
 0xd94   :  { %8602 = vmatprep.subr.bf16.mxu0 %v10191_v2  ;;  %v10229_v2 = vld [vmem:[#allocation15 + $0x3d4] ss:$8 sps:$4 sm:$0xff]  }
 0xd97   :  { %8603 = vmatpush1.bf16.msra.mxu0 %v10192_v34  ;;  %v10230_v34 = vld [vmem:[#allocation15 + $0x3d0] ss:$8 sps:$4 sm:$0xff]  }
 0xd98   :  { %8604 = vmatprep.subr.bf16.mxu0 %v10193_v25  ;;  %v10231_v25 = vld [vmem:[#allocation15 + $0x3e4] ss:$8 sps:$4 sm:$0xff]  }
 0xd9b   :  { %8605 = vmatpush1.bf16.msra.mxu0 %v10194_v32  ;;  %v10232_v32 = vld [vmem:[#allocation15 + $0x3e0] ss:$8 sps:$4 sm:$0xff]  }
 0xd9c   :  { %8606 = vmatprep.subr.bf16.mxu0 %v10195_v30  ;;  %v10233_v30 = vld [vmem:[#allocation15 + $0x3f4] ss:$8 sps:$4 sm:$0xff]  }
 0xd9f   :  { %8607 = vmatpush1.bf16.msra.mxu0 %v10196_v38  ;;  %v10234_v38 = vld [vmem:[#allocation15 + $0x3f0] ss:$8 sps:$4 sm:$0xff]  }
 0xda0   :  { %8608 = vmatprep.subr.bf16.mxu0 %v10197_v41 }
 0xda3   :  { %8609 = vmatpush1.bf16.msra.mxu0 %v10198_v7 }
 0xda4   :  { %8610 = vmatprep.subr.bf16.mxu0 %v10199_v9 }
 0xda7   :  { %8611 = vmatpush1.bf16.msra.mxu0 %v10200_v22 }
 0xda8   :  { %8612 = vmatprep.subr.bf16.mxu0 %v10201_v18 }
 0xdab   :  { %8613 = vmatpush1.bf16.msra.mxu0 %v10202_v21 }
 0xdac   :  { %8625 = vmatprep.subr.bf16.mxu0 %v10203_v43 }
 0xdc1   :  { %v8307_v12 = vpop.f32.mrb[36].mxu0 }
 0xdc2   :  { %v8309_v16 = vpop.f32.mrb[37].mxu0  ;;  %v9574_v27 = vadd.f32 %v8307_v12, %v12878_v31 }
 0xdc3   :  { %v8311_v20 = vpop.f32.mrb[38].mxu0  ;;  %v9575_v5 = vadd.f32 %v8309_v16, %v16996_v40 }
 0xdc4   :  { %v9576_v11 = vadd.f32 %v8311_v20, %v12878_v31  ;;  %v8313_v24 = vpop.f32.mrb[39].mxu0  ;;  %v10209_v31 = vld [vmem:[#allocation15 + $0x334] ss:$8 sps:$4 sm:$0xff]  }
 0xdc5   :  { %v9577_v46 = vadd.f32 %v8313_v24, %v16996_v40  ;;  %v10212_v40 = vld [vmem:[#allocation15 + $0x340] ss:$8 sps:$4 sm:$0xff]  }
 0xdc6   :  { %v8492_v51 = vpack.c.bf16 %v9576_v11, %v9574_v27 }
 0xdc7   :  { %v8493_v0 = vpack.c.bf16 %v9577_v46, %v9575_v5 }
 0xdc9   :  { %8614 = vmatprep.mubr.bf16.mxu0 %v8493_v0 }
 0xdca   :  { %8615 = vmatmul.mubr.bf16.vlgmr.msra.gmra.mrb[40].mxu0 %v8492_v51 }
 0xdcb   :  { %8626 = vmatpush1.bf16.msra.mxu0 %v10204_v3 }
 0xdcc   :  { %8627 = vmatprep.subr.bf16.mxu0 %v10205_v49 }
 0xdcf   :  { %8628 = vmatpush1.bf16.msra.mxu0 %v10206_v42 }
 0xdd0   :  { %8629 = vmatprep.subr.bf16.mxu0 %v10207_v50 }
 0xdd3   :  { %8630 = vmatpush1.bf16.msra.mxu0 %v10208_v35 }
 0xdd4   :  { %8631 = vmatprep.subr.bf16.mxu0 %v10209_v31 }
 0xdd7   :  { %8632 = vmatpush1.bf16.msra.mxu0 %v10210_v6 }
 0xdd8   :  { %8633 = vmatprep.subr.bf16.mxu0 %v10211_v39 }
 0xddb   :  { %8634 = vmatpush1.bf16.msra.mxu0 %v10212_v40 }
 0xddc   :  { %8635 = vmatprep.subr.bf16.mxu0 %v10213_v33 }
 0xddf   :  { %8636 = vmatpush1.bf16.msra.mxu0 %v10214_v45 }
 0xde0   :  { %8637 = vmatprep.subr.bf16.mxu0 %v10215_v29 }
 0xde3   :  { %8638 = vmatpush1.bf16.msra.mxu0 %v10216_v52 }
 0xde4   :  { %8639 = vmatprep.subr.bf16.mxu0 %v10217_v10 }
 0xde6   :  { %v8479_v8 = vpop.f32.mrb[76].mxu1 }
 0xde7   :  { %v8481_v56 = vpop.f32.mrb[77].mxu1  ;;  %8640 = vmatpush1.bf16.msra.mxu0 %v10218_v14  ;;  %v9578_v61 = vadd.f32 %v8479_v8, %v16997_v59 }
 0xde8   :  { %v8483_v60 = vpop.f32.mrb[78].mxu1  ;;  %8641 = vmatprep.subr.bf16.mxu0 %v10219_v57  ;;  %v9579_v53 = vadd.f32 %v8481_v56, %v12897_v36 }
 0xde9   :  { %v9580_v55 = vadd.f32 %v8483_v60, %v16997_v59  ;;  %v8485_v17 = vpop.f32.mrb[79].mxu1  ;;  %v10226_v59 = vld [vmem:[#allocation15 + $0x3b0] ss:$8 sps:$4 sm:$0xff]  }
 0xdea   :  { %v9581_v37 = vadd.f32 %v8485_v17, %v12897_v36  ;;  %v10228_v36 = vld [vmem:[#allocation15 + $0x3c0] ss:$8 sps:$4 sm:$0xff]  }
 0xdeb   :  { %v8494_v23 = vpack.c.bf16 %v9580_v55, %v9578_v61  ;;  %8642 = vmatpush1.bf16.msra.mxu0 %v10220_v44 }
 0xdec   :  { %v8495_v48 = vpack.c.bf16 %v9581_v37, %v9579_v53  ;;  %8643 = vmatprep.subr.bf16.mxu0 %v10221_v13 }
 0xdee   :  { %8657 = vmatprep.mubr.bf16.mxu0 %v8495_v48 }
 0xdef   :  { %8644 = vmatpush1.bf16.msra.mxu0 %v10222_v15 }
 0xdf0   :  { %8645 = vmatprep.subr.bf16.mxu0 %v10223_v28 }
 0xdf3   :  { %8646 = vmatpush1.bf16.msra.mxu0 %v10224_v19 }
 0xdf4   :  { %8647 = vmatprep.subr.bf16.mxu0 %v10225_v26 }
 0xdf7   :  { %8648 = vmatpush1.bf16.msra.mxu0 %v10226_v59 }
 0xdf8   :  { %8649 = vmatprep.subr.bf16.mxu0 %v10227_v47 }
 0xdfb   :  { %8650 = vmatpush1.bf16.msra.mxu0 %v10228_v36 }
 0xdfc   :  { %8651 = vmatprep.subr.bf16.mxu0 %v10229_v2 }
 0xdff   :  { %8652 = vmatpush1.bf16.msra.mxu0 %v10230_v34 }
 0xe00   :  { %8653 = vmatprep.subr.bf16.mxu0 %v10231_v25 }
 0xe03   :  { %8654 = vmatpush1.bf16.msra.mxu0 %v10232_v32 }
 0xe04   :  { %8655 = vmatprep.subr.bf16.mxu0 %v10233_v30 }
 0xe07   :  { %8656 = vmatpush1.bf16.msra.mxu0 %v10234_v38 }
 0xe0a   :  { %8658 = vmatmul.mubr.bf16.vlgmr.msra.gmra.mrb[40].mxu0 %v8494_v23 }
 0xedd   :  { %v8659_v41 = vpop.f32.mrb[40].mxu0 }
 0xede   :  { %v8668_v7 = vadd.f32 %v8659_v41, %v13731_v4  ;;  %v8661_v9 = vpop.f32.mrb[41].mxu0 }
 0xedf   :  { %v8669_v22 = vadd.f32 %v8661_v9, %v13725_v63  ;;  %v8663_v18 = vpop.f32.mrb[42].mxu0 }
 0xee0   :  { %v8672_v21 = vadd.f32 %v8668_v7, %v17034_v54  ;;  %v8670_v43 = vadd.f32 %v8663_v18, %v13722_v58  ;;  %v8665_v12 = vpop.f32.mrb[43].mxu0 }
 0xee1   :  { %v8673_v16 = vadd.f32 %v8669_v22, %v17035_v62  ;;  %v8671_v20 = vadd.f32 %v8665_v12, %v13728_v1 }
 0xee2   :  { %8676 = vst [vmem:[#allocation18] sm:$0xff] %v8672_v21  ;;  %v8674_v27 = vadd.f32 %v8670_v43, %v17034_v54 }
 0xee3   :  { %8677 = vst [vmem:[#allocation18 + $0x8] sm:$0xff] %v8673_v16  ;;  %v8675_v4 = vadd.f32 %v8671_v20, %v17035_v62 }
 0xee4   :  { %8678 = vst [vmem:[#allocation18 + $0x10] sm:$0xff] %v8674_v27 }
 0xee5   :  { %8679 = vst [vmem:[#allocation18 + $0x18] sm:$0xff] %v8675_v4 }
 0xee6   :  { %10444 = shalt.err (!%p10441_p6)
}
 0xee7   :  { %s10445_s16 = scalar_lea.hbm %s14462_s9, 512 }
 0xee8   :  { %p10446_p7 = scmp.ne.s32.totalorder %s14462_s9, %s10445_s16  ;;  %p10449_p8 = scmp.lt.u32.totalorder %s10445_s16, %s14462_s9 }
 0xeea   :  { %p10451_p9 = pnand %p10449_p8, %p10446_p7 }
 0xeec   :  { %10454 = shalt.err (!%p10451_p9)
}
 0xeed   :  { %8691 = dma.vmem_to_hbm [thread:$0]  %s8686_s15, 512, %s14462_s9, [#allocation5], %s10468_s19, %s10468_s19, %s10469_s20  }
 0xeee   :  { %10465 = dma.done.wait [#allocation5], 512  }
 0xeef   :  { %10466 = vsyncadd [#allocation5], 4294966784 }
 0xef0   :  { %8695 = vsyncpa [#allocation4], 1 }
 0xef1   :  { %8696 = vsyncpa [#allocation7], 1 }
 0xef2   :  { %8697 = vsyncpa [#allocation10], 1 }
 0xef3   :  { %8698 = vsyncpa [#allocation13], 1 }
 0xef4   :  { %8699 = vsyncpa [#allocation16], 1 }
 0xef5   :  { %8700 = vsyncpa [#allocation5], 1 }

</bundles_post_ra>
